<compile_context>
chip_gen: v6e
topology: v6e:2x2x1
jax: 0.10.0
libtpu: 0.0.40
codegen_flags: <defaults>
</compile_context>

<pallas_src>
import functools

import jax
import jax.numpy as jnp
from jax.experimental import pallas as pl
from jax.experimental.pallas import tpu as pltpu


# ----------------------------------------------------------------------------
# Fused Pallas kernel: conv1 + bn1 + relu + maxpool + layer1 (2 BasicBlocks)
# ----------------------------------------------------------------------------
def _feature_kernel(a_ref, w1_ref, b1_ref, wblk_ref, sblk_ref, o_ref,
                    a_pad, pbuf, rbuf, xpad, slab,
                    *, H1, W1, H2, W2, C, K, K_pad, KB, KBp, n_blocks):
    f32 = jnp.float32
    bf16 = jnp.bfloat16
    M1 = H1 * W1
    M2 = H2 * W2

    # ---- per-step zeroing: only borders / alignment tails (interiors are
    #      fully overwritten each grid step; done every step so it is correct
    #      even when the parallel batch axis is sharded across TensorCores) ---
    a_pad[:, pl.ds(K, K_pad - K)] = jnp.zeros((M1, K_pad - K), bf16)
    pbuf[pl.ds(0, 1), :, :] = jnp.zeros((1, W1 + 1, C), f32)
    pbuf[:, pl.ds(0, 1), :] = jnp.zeros((H1 + 1, 1, C), f32)
    xpad[pl.ds(0, 1), :, :] = jnp.zeros((1, W2 + 2, C), bf16)
    xpad[pl.ds(H2 + 1, 1), :, :] = jnp.zeros((1, W2 + 2, C), bf16)
    xpad[:, pl.ds(0, 1), :] = jnp.zeros((H2 + 2, 1, C), bf16)
    xpad[:, pl.ds(W2 + 1, 1), :] = jnp.zeros((H2 + 2, 1, C), bf16)
    slab[:, pl.ds(KB, KBp - KB)] = jnp.zeros((M2, KBp - KB), bf16)

    # ---- conv1 (7x7/2) as a single MXU-aligned GEMM; BN scale folded in w1 --
    # HBM patches arrive at natural K=147; align to K_pad=256 in VMEM only.
    a_pad[:, pl.ds(0, K)] = a_ref[...]
    y = jnp.dot(a_pad[...], w1_ref[...], preferred_element_type=f32)
    y = jnp.maximum(y + b1_ref[...], 0.0)                    # (M1, C), f32

    # ---- maxpool 3x3/2 pad=1 (post-ReLU => zero padding == -inf padding) ---
    pbuf[pl.ds(1, H1), pl.ds(1, W1), :] = y.reshape(H1, W1, C)
    # separable pool: reduce the 3 W offsets first, then the 3 H offsets
    rm = pbuf[:, pl.ds(0, W2, 2), :]
    rm = jnp.maximum(rm, pbuf[:, pl.ds(1, W2, 2), :])
    rm = jnp.maximum(rm, pbuf[:, pl.ds(2, W2, 2), :])        # (H1+1, W2, C)
    rbuf[...] = rm
    x = rbuf[pl.ds(0, H2, 2), :, :]
    x = jnp.maximum(x, rbuf[pl.ds(1, H2, 2), :, :])
    x = jnp.maximum(x, rbuf[pl.ds(2, H2, 2), :, :])          # (H2, W2, C)
    x = x.reshape(M2, C)                                     # block input, f32

    # ---- layer1: BasicBlocks; each 3x3 conv == ONE K=9*C implicit GEMM -----
    def conv3x3_bn(inp, widx):
        """inp: (M2, C) f32 -> conv3x3 + BN (pre-activation), f32."""
        # single bf16 cast + padded-activation write per conv
        xpad[pl.ds(1, H2), pl.ds(1, W2), :] = inp.reshape(H2, W2, C).astype(bf16)
        # single shifted-copy pass builds the (M2, 9*C) bf16 im2col slab
        for t in range(9):
            di, dj = divmod(t, 3)
            slab[:, pl.ds(t * C, C)] = (
                xpad[pl.ds(di, H2), pl.ds(dj, W2), :].reshape(M2, C))
        acc = jnp.dot(slab[...], wblk_ref[widx], preferred_element_type=f32)
        return acc + sblk_ref[pl.ds(widx, 1), :]             # BN shift, f32

    for b in range(n_blocks):
        y1 = jnp.maximum(conv3x3_bn(x, 2 * b), 0.0)
        x = jnp.maximum(conv3x3_bn(y1, 2 * b + 1) + x, 0.0)  # f32 residual

    o_ref[...] = x.astype(o_ref.dtype)


# ----------------------------------------------------------------------------
# Host-side glue (im2col for conv1 only, BN folding, pallas_call wrapper)
# ----------------------------------------------------------------------------
def _im2col(x, kh, kw, stride, pad):
    """x: (N,H,W,C) NHWC -> (N, Ho*Wo, kh*kw*C); feature order (kh, kw, C)."""
    N, H, W, C = x.shape
    xp = jnp.pad(x, ((0, 0), (pad, pad), (pad, pad), (0, 0)))
    Ho = (H + 2 * pad - kh) // stride + 1
    Wo = (W + 2 * pad - kw) // stride + 1
    cols = []
    for i in range(kh):
        for j in range(kw):
            cols.append(xp[:, i:i + stride * (Ho - 1) + 1:stride,
                              j:j + stride * (Wo - 1) + 1:stride, :])
    patches = jnp.concatenate(cols, axis=-1)                 # (N, Ho, Wo, K)
    return patches.reshape(N, Ho * Wo, kh * kw * C), Ho, Wo


def _fold_bn(bn, eps=1e-5):
    s = bn["gamma"] * jax.lax.rsqrt(bn["var"] + eps)
    return s, bn["beta"] - bn["mean"] * s


def feature_extractor(x_nchw, params):
    """ResNet18 children[:5] forward.  (N,3,H,W) f32 -> (N,64,H/4,W/4) f32."""
    x = jnp.transpose(x_nchw, (0, 2, 3, 1)).astype(jnp.float32)   # NHWC
    N = x.shape[0]
    C = params["conv1_w"].shape[0]                                # 64

    # conv1 geometry (7x7, s=2, p=3) then maxpool (3x3, s=2, p=1)
    a, H1, W1 = _im2col(x, 7, 7, 2, 3)                            # (N, H1*W1, K)
    assert H1 % 2 == 0 and W1 % 2 == 0, "expect even conv1 output (32x32, 224x224, ...)"
    H2, W2 = H1 // 2, W1 // 2

    # keep the HBM patch stream at its natural K (no zero padding in HBM);
    # alignment padding to K_pad happens inside the kernel's VMEM scratch.
    K = a.shape[-1]                                               # 7*7*3 = 147
    K_pad = ((K + 127) // 128) * 128                              # 256
    a = a.astype(jnp.bfloat16)

    # conv1 weight: (Cout,Cin,7,7) -> (K, Cout), BN scale folded, K zero-padded
    s1, b1 = _fold_bn(params["bn1"])
    w1 = jnp.transpose(params["conv1_w"], (2, 3, 1, 0)).reshape(K, C) * s1[None, :]
    w1 = jnp.pad(w1, ((0, K_pad - K), (0, 0))).astype(jnp.bfloat16)
    b1 = b1.reshape(1, C).astype(jnp.float32)

    # layer1 weights: 4 convs -> (4, KBp, C), im2col-row-major (tap, Cin), BN
    # scale folded; KB=9*C padded to KBp (multiple of 128) with zero rows.
    KB = 9 * C
    KBp = ((KB + 127) // 128) * 128                               # 640
    wtaps, shifts = [], []
    for blk in params["layer1"]:
        for wkey, bnkey in (("conv1_w", "bn1"), ("conv2_w", "bn2")):
            s, sh = _fold_bn(blk[bnkey])
            wt = jnp.transpose(blk[wkey], (2, 3, 1, 0)).reshape(KB, C) * s[None, :]
            wtaps.append(jnp.pad(wt, ((0, KBp - KB), (0, 0))))
            shifts.append(sh)
    wblk = jnp.stack(wtaps).astype(jnp.bfloat16)                  # (4, KBp, C)
    sblk = jnp.stack(shifts).astype(jnp.float32)                  # (4, C)
    n_blocks = len(params["layer1"])
    n_convs = 2 * n_blocks

    kernel = functools.partial(_feature_kernel, H1=H1, W1=W1, H2=H2, W2=W2,
                               C=C, K=K, K_pad=K_pad, KB=KB, KBp=KBp,
                               n_blocks=n_blocks)

    out = pl.pallas_call(
        kernel,
        out_shape=jax.ShapeDtypeStruct((N, H2 * W2, C), jnp.float32),
        grid=(N,),
        in_specs=[
            pl.BlockSpec((None, H1 * W1, K), lambda n: (n, 0, 0)),      # patches (natural K)
            pl.BlockSpec((K_pad, C), lambda n: (0, 0)),                 # conv1 w (K padded)
            pl.BlockSpec((1, C), lambda n: (0, 0)),                     # conv1 shift
            pl.BlockSpec((n_convs, KBp, C), lambda n: (0, 0, 0)),       # block weights
            pl.BlockSpec((n_convs, C), lambda n: (0, 0)),               # block shifts
        ],
        out_specs=pl.BlockSpec((None, H2 * W2, C), lambda n: (n, 0, 0)),
        scratch_shapes=[
            pltpu.VMEM((H1 * W1, K_pad), jnp.bfloat16),     # MXU-aligned conv1 LHS
            pltpu.VMEM((H1 + 1, W1 + 1, C), jnp.float32),   # padded conv1 out (pool in)
            pltpu.VMEM((H1 + 1, W2, C), jnp.float32),       # pool row-max (W pass)
            pltpu.VMEM((H2 + 2, W2 + 2, C), jnp.bfloat16),  # padded act for 3x3 convs
            pltpu.VMEM((H2 * W2, KBp), jnp.bfloat16),       # layer1 im2col slab (big-K)
        ],
        compiler_params=pltpu.CompilerParams(
            dimension_semantics=("parallel",),   # v7x: batch split across 2 TCs
            vmem_limit_bytes=32 * 1024 * 1024),  # explicit budget (v7x has 64 MiB phys)
    )(a, w1, b1, wblk, sblk)

    out = out.reshape(N, H2, W2, C)
    return jnp.transpose(out, (0, 3, 1, 2))                       # NHWC -> NCHW


# ----------------------------------------------------------------------------
# Pure-XLA reference (for correctness check) and parameter init
# ----------------------------------------------------------------------------
def _reference(x_nchw, params, eps=1e-5):
    x = jnp.transpose(x_nchw, (0, 2, 3, 1)).astype(jnp.float32)

    def conv(x, w_torch, stride, pad):
        w = jnp.transpose(w_torch, (2, 3, 1, 0))                  # HWIO
        return jax.lax.conv_general_dilated(
            x, w, (stride, stride), [(pad, pad), (pad, pad)],
            dimension_numbers=("NHWC", "HWIO", "NHWC"))

    def bn(x, b):
        s = b["gamma"] * jax.lax.rsqrt(b["var"] + eps)
        return x * s + (b["beta"] - b["mean"] * s)

    y = jax.nn.relu(bn(conv(x, params["conv1_w"], 2, 3), params["bn1"]))
    y = jnp.pad(y, ((0, 0), (1, 1), (1, 1), (0, 0)), constant_values=-jnp.inf)
    y = jax.lax.reduce_window(y, -jnp.inf, jax.lax.max,
                              (1, 3, 3, 1), (1, 2, 2, 1), "VALID")
    for blk in params["layer1"]:
        idn = y
        z = jax.nn.relu(bn(conv(y, blk["conv1_w"], 1, 1), blk["bn1"]))
        y = jax.nn.relu(bn(conv(z, blk["conv2_w"], 1, 1), blk["bn2"]) + idn)
    return jnp.transpose(y, (0, 3, 1, 2))


def init_params(key):
    ks = jax.random.split(key, 12)

    def conv_w(k, cout, cin, kh, kw):
        fan_in = cin * kh * kw
        return jax.random.normal(k, (cout, cin, kh, kw), jnp.float32) \
            * (2.0 / fan_in) ** 0.5

    def bn(k, c):
        k1, k2, k3 = jax.random.split(k, 3)
        return dict(
            gamma=1.0 + 0.1 * jax.random.normal(k1, (c,), jnp.float32),
            beta=0.1 * jax.random.normal(k2, (c,), jnp.float32),
            mean=0.1 * jax.random.normal(k3, (c,), jnp.float32),
            var=jnp.ones((c,), jnp.float32),
        )

    p = {"conv1_w": conv_w(ks[0], 64, 3, 7, 7), "bn1": bn(ks[1], 64), "layer1": []}
    idx = 2
    for _ in range(2):
        p["layer1"].append(dict(
            conv1_w=conv_w(ks[idx + 0], 64, 64, 3, 3),
            bn1=bn(ks[idx + 1], 64),
            conv2_w=conv_w(ks[idx + 2], 64, 64, 3, 3),
            bn2=bn(ks[idx + 3], 64),
        ))
        idx += 4
    return p


if __name__ == "__main__":
    key = jax.random.PRNGKey(0)
    kx, kp = jax.random.split(key)
    x = jax.random.normal(kx, (2, 3, 32, 32), jnp.float32)   # NCHW RGB-like
    params = init_params(kp)

    out = jax.block_until_ready(jax.jit(feature_extractor)(x, params))

    # conv1 /2 then maxpool /2 -> 32/4 = 8 spatial, 64 channels
    assert out.shape == (2, 64, 8, 8), out.shape
    assert bool(jnp.all(jnp.isfinite(out)))

    # correctness vs pure-XLA f32 reference (bf16 operands in the Pallas path)
    ref = jax.block_until_ready(jax.jit(_reference)(x, params))
    err = float(jnp.max(jnp.abs(out - ref)))
    assert bool(jnp.allclose(out, ref, atol=0.15, rtol=0.05)), \
        f"max abs error vs reference: {err}"

    print("KERNEL_OK")
</pallas_src>

<mosaic_0001>
module attributes {stable_mosaic.version = 11 : i64} {
  func.func @_feature_kernel(%arg0: i32, %arg1: memref<1x256x147xbf16, #tpu.memory_space<vmem>>, %arg2: memref<256x64xbf16, #tpu.memory_space<vmem>>, %arg3: memref<1x64xf32, #tpu.memory_space<vmem>>, %arg4: memref<4x640x64xbf16, #tpu.memory_space<vmem>>, %arg5: memref<4x64xf32, #tpu.memory_space<vmem>>, %arg6: memref<1x64x64xf32, #tpu.memory_space<vmem>>, %arg7: memref<256x256xbf16, #tpu.memory_space<vmem>>, %arg8: memref<17x17x64xf32, #tpu.memory_space<vmem>>, %arg9: memref<17x8x64xf32, #tpu.memory_space<vmem>>, %arg10: memref<10x10x64xbf16, #tpu.memory_space<vmem>>, %arg11: memref<64x640xbf16, #tpu.memory_space<vmem>>) attributes {dimension_semantics = [#tpu.dimension_semantics<parallel>], iteration_bounds = array<i64: 2>, scalar_prefetch = 0 : i64, scratch_operands = 5 : i64, tpu.core_type = #tpu.core_type<tc>, window_params = [{transform_indices = @transform_0, window_bounds = array<i64: 1, 256, 147>}, {pipeline_mode = #tpu.pipeline_mode<synchronous>, transform_indices = @transform_1, window_bounds = array<i64: 256, 64>}, {pipeline_mode = #tpu.pipeline_mode<synchronous>, transform_indices = @transform_2, window_bounds = array<i64: 1, 64>}, {pipeline_mode = #tpu.pipeline_mode<synchronous>, transform_indices = @transform_3, window_bounds = array<i64: 4, 640, 64>}, {pipeline_mode = #tpu.pipeline_mode<synchronous>, transform_indices = @transform_4, window_bounds = array<i64: 4, 64>}, {transform_indices = @transform_5, window_bounds = array<i64: 1, 64, 64>}]} {
    %cst = arith.constant 0.000000e+00 : bf16
    %0 = vector.broadcast %cst : bf16 to vector<256x109xbf16>
    %c0 = arith.constant 0 : index
    %c147 = arith.constant 147 : index
    %1 = vector.load %arg7[%c0, %c147] : memref<256x256xbf16, #tpu.memory_space<vmem>>, vector<256x109xbf16>
    tpu.vector_store %arg7[%c0, %c147], %0 {strides = array<i32>} : memref<256x256xbf16, #tpu.memory_space<vmem>>, vector<256x109xbf16>,
    %cst_0 = arith.constant 0.000000e+00 : f32
    %2 = vector.broadcast %cst_0 : f32 to vector<1x17x64xf32>
    %c0_1 = arith.constant 0 : index
    %c0_2 = arith.constant 0 : index
    %c0_3 = arith.constant 0 : index
    %3 = vector.load %arg8[%c0_1, %c0_2, %c0_3] : memref<17x17x64xf32, #tpu.memory_space<vmem>>, vector<1x17x64xf32>
    tpu.vector_store %arg8[%c0_1, %c0_2, %c0_3], %2 {strides = array<i32>} : memref<17x17x64xf32, #tpu.memory_space<vmem>>, vector<1x17x64xf32>,
    %cst_4 = arith.constant 0.000000e+00 : f32
    %4 = vector.broadcast %cst_4 : f32 to vector<17x1x64xf32>
    %c0_5 = arith.constant 0 : index
    %c0_6 = arith.constant 0 : index
    %c0_7 = arith.constant 0 : index
    %5 = vector.load %arg8[%c0_5, %c0_6, %c0_7] : memref<17x17x64xf32, #tpu.memory_space<vmem>>, vector<17x1x64xf32>
    tpu.vector_store %arg8[%c0_5, %c0_6, %c0_7], %4 {strides = array<i32>} : memref<17x17x64xf32, #tpu.memory_space<vmem>>, vector<17x1x64xf32>,
    %cst_8 = arith.constant 0.000000e+00 : bf16
    %6 = vector.broadcast %cst_8 : bf16 to vector<1x10x64xbf16>
    %c0_9 = arith.constant 0 : index
    %c0_10 = arith.constant 0 : index
    %c0_11 = arith.constant 0 : index
    %7 = vector.load %arg10[%c0_9, %c0_10, %c0_11] : memref<10x10x64xbf16, #tpu.memory_space<vmem>>, vector<1x10x64xbf16>
    tpu.vector_store %arg10[%c0_9, %c0_10, %c0_11], %6 {strides = array<i32>} : memref<10x10x64xbf16, #tpu.memory_space<vmem>>, vector<1x10x64xbf16>,
    %cst_12 = arith.constant 0.000000e+00 : bf16
    %8 = vector.broadcast %cst_12 : bf16 to vector<1x10x64xbf16>
    %c9 = arith.constant 9 : index
    %c0_13 = arith.constant 0 : index
    %c0_14 = arith.constant 0 : index
    %9 = vector.load %arg10[%c9, %c0_13, %c0_14] : memref<10x10x64xbf16, #tpu.memory_space<vmem>>, vector<1x10x64xbf16>
    tpu.vector_store %arg10[%c9, %c0_13, %c0_14], %8 {strides = array<i32>} : memref<10x10x64xbf16, #tpu.memory_space<vmem>>, vector<1x10x64xbf16>,
    %cst_15 = arith.constant 0.000000e+00 : bf16
    %10 = vector.broadcast %cst_15 : bf16 to vector<10x1x64xbf16>
    %c0_16 = arith.constant 0 : index
    %c0_17 = arith.constant 0 : index
    %c0_18 = arith.constant 0 : index
    %11 = vector.load %arg10[%c0_16, %c0_17, %c0_18] : memref<10x10x64xbf16, #tpu.memory_space<vmem>>, vector<10x1x64xbf16>
    tpu.vector_store %arg10[%c0_16, %c0_17, %c0_18], %10 {strides = array<i32>} : memref<10x10x64xbf16, #tpu.memory_space<vmem>>, vector<10x1x64xbf16>,
    %cst_19 = arith.constant 0.000000e+00 : bf16
    %12 = vector.broadcast %cst_19 : bf16 to vector<10x1x64xbf16>
    %c0_20 = arith.constant 0 : index
    %c9_21 = arith.constant 9 : index
    %c0_22 = arith.constant 0 : index
    %13 = vector.load %arg10[%c0_20, %c9_21, %c0_22] : memref<10x10x64xbf16, #tpu.memory_space<vmem>>, vector<10x1x64xbf16>
    tpu.vector_store %arg10[%c0_20, %c9_21, %c0_22], %12 {strides = array<i32>} : memref<10x10x64xbf16, #tpu.memory_space<vmem>>, vector<10x1x64xbf16>,
    %cst_23 = arith.constant 0.000000e+00 : bf16
    %14 = vector.broadcast %cst_23 : bf16 to vector<64x64xbf16>
    %c0_24 = arith.constant 0 : index
    %c576 = arith.constant 576 : index
    %15 = vector.load %arg11[%c0_24, %c576] : memref<64x640xbf16, #tpu.memory_space<vmem>>, vector<64x64xbf16>
    tpu.vector_store %arg11[%c0_24, %c576], %14 {strides = array<i32>} : memref<64x640xbf16, #tpu.memory_space<vmem>>, vector<64x64xbf16>,
    %c0_25 = arith.constant 0 : index
    %c0_26 = arith.constant 0 : index
    %c0_27 = arith.constant 0 : index
    %16 = vector.load %arg1[%c0_25, %c0_26, %c0_27] : memref<1x256x147xbf16, #tpu.memory_space<vmem>>, vector<1x256x147xbf16>
    %17 = vector.shape_cast %16 : vector<1x256x147xbf16> to vector<256x147xbf16>
    %c0_28 = arith.constant 0 : index
    %c0_29 = arith.constant 0 : index
    %18 = vector.load %arg7[%c0_28, %c0_29] : memref<256x256xbf16, #tpu.memory_space<vmem>>, vector<256x147xbf16>
    tpu.vector_store %arg7[%c0_28, %c0_29], %17 {strides = array<i32>} : memref<256x256xbf16, #tpu.memory_space<vmem>>, vector<256x147xbf16>,
    %c0_30 = arith.constant 0 : index
    %c0_31 = arith.constant 0 : index
    %19 = vector.load %arg7[%c0_30, %c0_31] : memref<256x256xbf16, #tpu.memory_space<vmem>>, vector<256x256xbf16>
    %c0_32 = arith.constant 0 : index
    %c0_33 = arith.constant 0 : index
    %20 = vector.load %arg2[%c0_32, %c0_33] : memref<256x64xbf16, #tpu.memory_space<vmem>>, vector<256x64xbf16>
    %cst_34 = arith.constant dense<0.000000e+00> : vector<256x64xf32>
    %21 = tpu.matmul %19, %20, %cst_34 {dimension_numbers = #tpu.dot_dimension_numbers<[1], [0], [0], [1], [0, 0, 1, 1], [], []>} : vector<256x256xbf16>, vector<256x64xbf16>, vector<256x64xf32> -> vector<256x64xf32>
    %c0_35 = arith.constant 0 : index
    %c0_36 = arith.constant 0 : index
    %22 = vector.load %arg3[%c0_35, %c0_36] : memref<1x64xf32, #tpu.memory_space<vmem>>, vector<1x64xf32>
    %23 = vector.broadcast %22 : vector<1x64xf32> to vector<256x64xf32>
    %24 = arith.addf %21, %23 : vector<256x64xf32>
    %cst_37 = arith.constant 0.000000e+00 : f32
    %25 = vector.broadcast %cst_37 : f32 to vector<256x64xf32>
    %26 = arith.maximumf %24, %25 : vector<256x64xf32>
    %27 = vector.shape_cast %26 : vector<256x64xf32> to vector<16x16x64xf32>
    %c1 = arith.constant 1 : index
    %c1_38 = arith.constant 1 : index
    %c0_39 = arith.constant 0 : index
    %28 = vector.load %arg8[%c1, %c1_38, %c0_39] : memref<17x17x64xf32, #tpu.memory_space<vmem>>, vector<16x16x64xf32>
    tpu.vector_store %arg8[%c1, %c1_38, %c0_39], %27 {strides = array<i32>} : memref<17x17x64xf32, #tpu.memory_space<vmem>>, vector<16x16x64xf32>,
    %c0_40 = arith.constant 0 : index
    %c0_41 = arith.constant 0 : index
    %c0_42 = arith.constant 0 : index
    %29 = tpu.strided_load %arg8[%c0_40, %c0_41, %c0_42] {strides = array<i32: 1, 2, 1>} : memref<17x17x64xf32, #tpu.memory_space<vmem>>, vector<17x8x64xf32>
    %c0_43 = arith.constant 0 : index
    %c1_44 = arith.constant 1 : index
    %c0_45 = arith.constant 0 : index
    %30 = tpu.strided_load %arg8[%c0_43, %c1_44, %c0_45] {strides = array<i32: 1, 2, 1>} : memref<17x17x64xf32, #tpu.memory_space<vmem>>, vector<17x8x64xf32>
    %31 = arith.maximumf %29, %30 : vector<17x8x64xf32>
    %c0_46 = arith.constant 0 : index
    %c2 = arith.constant 2 : index
    %c0_47 = arith.constant 0 : index
    %32 = tpu.strided_load %arg8[%c0_46, %c2, %c0_47] {strides = array<i32: 1, 2, 1>} : memref<17x17x64xf32, #tpu.memory_space<vmem>>, vector<17x8x64xf32>
    %33 = arith.maximumf %31, %32 : vector<17x8x64xf32>
    %c0_48 = arith.constant 0 : index
    %c0_49 = arith.constant 0 : index
    %c0_50 = arith.constant 0 : index
    %34 = vector.load %arg9[%c0_48, %c0_49, %c0_50] : memref<17x8x64xf32, #tpu.memory_space<vmem>>, vector<17x8x64xf32>
    tpu.vector_store %arg9[%c0_48, %c0_49, %c0_50], %33 {strides = array<i32>} : memref<17x8x64xf32, #tpu.memory_space<vmem>>, vector<17x8x64xf32>,
    %c0_51 = arith.constant 0 : index
    %c0_52 = arith.constant 0 : index
    %c0_53 = arith.constant 0 : index
    %35 = tpu.strided_load %arg9[%c0_51, %c0_52, %c0_53] {strides = array<i32: 2, 1, 1>} : memref<17x8x64xf32, #tpu.memory_space<vmem>>, vector<8x8x64xf32>
    %c1_54 = arith.constant 1 : index
    %c0_55 = arith.constant 0 : index
    %c0_56 = arith.constant 0 : index
    %36 = tpu.strided_load %arg9[%c1_54, %c0_55, %c0_56] {strides = array<i32: 2, 1, 1>} : memref<17x8x64xf32, #tpu.memory_space<vmem>>, vector<8x8x64xf32>
    %37 = arith.maximumf %35, %36 : vector<8x8x64xf32>
    %c2_57 = arith.constant 2 : index
    %c0_58 = arith.constant 0 : index
    %c0_59 = arith.constant 0 : index
    %38 = tpu.strided_load %arg9[%c2_57, %c0_58, %c0_59] {strides = array<i32: 2, 1, 1>} : memref<17x8x64xf32, #tpu.memory_space<vmem>>, vector<8x8x64xf32>
    %39 = arith.maximumf %37, %38 : vector<8x8x64xf32>
    %40 = vector.shape_cast %39 : vector<8x8x64xf32> to vector<64x64xf32>
    %41 = vector.shape_cast %40 : vector<64x64xf32> to vector<8x8x64xf32>
    %42 = arith.truncf %41 : vector<8x8x64xf32> to vector<8x8x64xbf16>
    %c1_60 = arith.constant 1 : index
    %c1_61 = arith.constant 1 : index
    %c0_62 = arith.constant 0 : index
    %43 = vector.load %arg10[%c1_60, %c1_61, %c0_62] : memref<10x10x64xbf16, #tpu.memory_space<vmem>>, vector<8x8x64xbf16>
    tpu.vector_store %arg10[%c1_60, %c1_61, %c0_62], %42 {strides = array<i32>} : memref<10x10x64xbf16, #tpu.memory_space<vmem>>, vector<8x8x64xbf16>,
    %c0_63 = arith.constant 0 : index
    %c0_64 = arith.constant 0 : index
    %c0_65 = arith.constant 0 : index
    %44 = vector.load %arg10[%c0_63, %c0_64, %c0_65] : memref<10x10x64xbf16, #tpu.memory_space<vmem>>, vector<8x8x64xbf16>
    %45 = vector.shape_cast %44 : vector<8x8x64xbf16> to vector<64x64xbf16>
    %c0_66 = arith.constant 0 : index
    %c0_67 = arith.constant 0 : index
    %46 = vector.load %arg11[%c0_66, %c0_67] : memref<64x640xbf16, #tpu.memory_space<vmem>>, vector<64x64xbf16>
    tpu.vector_store %arg11[%c0_66, %c0_67], %45 {strides = array<i32>} : memref<64x640xbf16, #tpu.memory_space<vmem>>, vector<64x64xbf16>,
    %c0_68 = arith.constant 0 : index
    %c1_69 = arith.constant 1 : index
    %c0_70 = arith.constant 0 : index
    %47 = vector.load %arg10[%c0_68, %c1_69, %c0_70] : memref<10x10x64xbf16, #tpu.memory_space<vmem>>, vector<8x8x64xbf16>
    %48 = vector.shape_cast %47 : vector<8x8x64xbf16> to vector<64x64xbf16>
    %c0_71 = arith.constant 0 : index
    %c64 = arith.constant 64 : index
    %49 = vector.load %arg11[%c0_71, %c64] : memref<64x640xbf16, #tpu.memory_space<vmem>>, vector<64x64xbf16>
    tpu.vector_store %arg11[%c0_71, %c64], %48 {strides = array<i32>} : memref<64x640xbf16, #tpu.memory_space<vmem>>, vector<64x64xbf16>,
    %c0_72 = arith.constant 0 : index
    %c2_73 = arith.constant 2 : index
    %c0_74 = arith.constant 0 : index
    %50 = vector.load %arg10[%c0_72, %c2_73, %c0_74] : memref<10x10x64xbf16, #tpu.memory_space<vmem>>, vector<8x8x64xbf16>
    %51 = vector.shape_cast %50 : vector<8x8x64xbf16> to vector<64x64xbf16>
    %c0_75 = arith.constant 0 : index
    %c128 = arith.constant 128 : index
    %52 = vector.load %arg11[%c0_75, %c128] : memref<64x640xbf16, #tpu.memory_space<vmem>>, vector<64x64xbf16>
    tpu.vector_store %arg11[%c0_75, %c128], %51 {strides = array<i32>} : memref<64x640xbf16, #tpu.memory_space<vmem>>, vector<64x64xbf16>,
    %c1_76 = arith.constant 1 : index
    %c0_77 = arith.constant 0 : index
    %c0_78 = arith.constant 0 : index
    %53 = vector.load %arg10[%c1_76, %c0_77, %c0_78] : memref<10x10x64xbf16, #tpu.memory_space<vmem>>, vector<8x8x64xbf16>
    %54 = vector.shape_cast %53 : vector<8x8x64xbf16> to vector<64x64xbf16>
    %c0_79 = arith.constant 0 : index
    %c192 = arith.constant 192 : index
    %55 = vector.load %arg11[%c0_79, %c192] : memref<64x640xbf16, #tpu.memory_space<vmem>>, vector<64x64xbf16>
    tpu.vector_store %arg11[%c0_79, %c192], %54 {strides = array<i32>} : memref<64x640xbf16, #tpu.memory_space<vmem>>, vector<64x64xbf16>,
    %c1_80 = arith.constant 1 : index
    %c1_81 = arith.constant 1 : index
    %c0_82 = arith.constant 0 : index
    %56 = vector.load %arg10[%c1_80, %c1_81, %c0_82] : memref<10x10x64xbf16, #tpu.memory_space<vmem>>, vector<8x8x64xbf16>
    %57 = vector.shape_cast %56 : vector<8x8x64xbf16> to vector<64x64xbf16>
    %c0_83 = arith.constant 0 : index
    %c256 = arith.constant 256 : index
    %58 = vector.load %arg11[%c0_83, %c256] : memref<64x640xbf16, #tpu.memory_space<vmem>>, vector<64x64xbf16>
    tpu.vector_store %arg11[%c0_83, %c256], %57 {strides = array<i32>} : memref<64x640xbf16, #tpu.memory_space<vmem>>, vector<64x64xbf16>,
    %c1_84 = arith.constant 1 : index
    %c2_85 = arith.constant 2 : index
    %c0_86 = arith.constant 0 : index
    %59 = vector.load %arg10[%c1_84, %c2_85, %c0_86] : memref<10x10x64xbf16, #tpu.memory_space<vmem>>, vector<8x8x64xbf16>
    %60 = vector.shape_cast %59 : vector<8x8x64xbf16> to vector<64x64xbf16>
    %c0_87 = arith.constant 0 : index
    %c320 = arith.constant 320 : index
    %61 = vector.load %arg11[%c0_87, %c320] : memref<64x640xbf16, #tpu.memory_space<vmem>>, vector<64x64xbf16>
    tpu.vector_store %arg11[%c0_87, %c320], %60 {strides = array<i32>} : memref<64x640xbf16, #tpu.memory_space<vmem>>, vector<64x64xbf16>,
    %c2_88 = arith.constant 2 : index
    %c0_89 = arith.constant 0 : index
    %c0_90 = arith.constant 0 : index
    %62 = vector.load %arg10[%c2_88, %c0_89, %c0_90] : memref<10x10x64xbf16, #tpu.memory_space<vmem>>, vector<8x8x64xbf16>
    %63 = vector.shape_cast %62 : vector<8x8x64xbf16> to vector<64x64xbf16>
    %c0_91 = arith.constant 0 : index
    %c384 = arith.constant 384 : index
    %64 = vector.load %arg11[%c0_91, %c384] : memref<64x640xbf16, #tpu.memory_space<vmem>>, vector<64x64xbf16>
    tpu.vector_store %arg11[%c0_91, %c384], %63 {strides = array<i32>} : memref<64x640xbf16, #tpu.memory_space<vmem>>, vector<64x64xbf16>,
    %c2_92 = arith.constant 2 : index
    %c1_93 = arith.constant 1 : index
    %c0_94 = arith.constant 0 : index
    %65 = vector.load %arg10[%c2_92, %c1_93, %c0_94] : memref<10x10x64xbf16, #tpu.memory_space<vmem>>, vector<8x8x64xbf16>
    %66 = vector.shape_cast %65 : vector<8x8x64xbf16> to vector<64x64xbf16>
    %c0_95 = arith.constant 0 : index
    %c448 = arith.constant 448 : index
    %67 = vector.load %arg11[%c0_95, %c448] : memref<64x640xbf16, #tpu.memory_space<vmem>>, vector<64x64xbf16>
    tpu.vector_store %arg11[%c0_95, %c448], %66 {strides = array<i32>} : memref<64x640xbf16, #tpu.memory_space<vmem>>, vector<64x64xbf16>,
    %c2_96 = arith.constant 2 : index
    %c2_97 = arith.constant 2 : index
    %c0_98 = arith.constant 0 : index
    %68 = vector.load %arg10[%c2_96, %c2_97, %c0_98] : memref<10x10x64xbf16, #tpu.memory_space<vmem>>, vector<8x8x64xbf16>
    %69 = vector.shape_cast %68 : vector<8x8x64xbf16> to vector<64x64xbf16>
    %c0_99 = arith.constant 0 : index
    %c512 = arith.constant 512 : index
    %70 = vector.load %arg11[%c0_99, %c512] : memref<64x640xbf16, #tpu.memory_space<vmem>>, vector<64x64xbf16>
    tpu.vector_store %arg11[%c0_99, %c512], %69 {strides = array<i32>} : memref<64x640xbf16, #tpu.memory_space<vmem>>, vector<64x64xbf16>,
    %c0_100 = arith.constant 0 : index
    %c0_101 = arith.constant 0 : index
    %71 = vector.load %arg11[%c0_100, %c0_101] : memref<64x640xbf16, #tpu.memory_space<vmem>>, vector<64x640xbf16>
    %c0_102 = arith.constant 0 : index
    %c0_103 = arith.constant 0 : index
    %c0_104 = arith.constant 0 : index
    %72 = vector.load %arg4[%c0_102, %c0_103, %c0_104] : memref<4x640x64xbf16, #tpu.memory_space<vmem>>, vector<1x640x64xbf16>
    %73 = vector.shape_cast %72 : vector<1x640x64xbf16> to vector<640x64xbf16>
    %cst_105 = arith.constant dense<0.000000e+00> : vector<64x64xf32>
    %74 = tpu.matmul %71, %73, %cst_105 {dimension_numbers = #tpu.dot_dimension_numbers<[1], [0], [0], [1], [0, 0, 1, 1], [], []>} : vector<64x640xbf16>, vector<640x64xbf16>, vector<64x64xf32> -> vector<64x64xf32>
    %c0_106 = arith.constant 0 : index
    %c0_107 = arith.constant 0 : index
    %75 = vector.load %arg5[%c0_106, %c0_107] : memref<4x64xf32, #tpu.memory_space<vmem>>, vector<1x64xf32>
    %76 = vector.broadcast %75 : vector<1x64xf32> to vector<64x64xf32>
    %77 = arith.addf %74, %76 : vector<64x64xf32>
    %cst_108 = arith.constant 0.000000e+00 : f32
    %78 = vector.broadcast %cst_108 : f32 to vector<64x64xf32>
    %79 = arith.maximumf %77, %78 : vector<64x64xf32>
    %80 = vector.shape_cast %79 : vector<64x64xf32> to vector<8x8x64xf32>
    %81 = arith.truncf %80 : vector<8x8x64xf32> to vector<8x8x64xbf16>
    %c1_109 = arith.constant 1 : index
    %c1_110 = arith.constant 1 : index
    %c0_111 = arith.constant 0 : index
    %82 = vector.load %arg10[%c1_109, %c1_110, %c0_111] : memref<10x10x64xbf16, #tpu.memory_space<vmem>>, vector<8x8x64xbf16>
    tpu.vector_store %arg10[%c1_109, %c1_110, %c0_111], %81 {strides = array<i32>} : memref<10x10x64xbf16, #tpu.memory_space<vmem>>, vector<8x8x64xbf16>,
    %c0_112 = arith.constant 0 : index
    %c0_113 = arith.constant 0 : index
    %c0_114 = arith.constant 0 : index
    %83 = vector.load %arg10[%c0_112, %c0_113, %c0_114] : memref<10x10x64xbf16, #tpu.memory_space<vmem>>, vector<8x8x64xbf16>
    %84 = vector.shape_cast %83 : vector<8x8x64xbf16> to vector<64x64xbf16>
    %c0_115 = arith.constant 0 : index
    %c0_116 = arith.constant 0 : index
    %85 = vector.load %arg11[%c0_115, %c0_116] : memref<64x640xbf16, #tpu.memory_space<vmem>>, vector<64x64xbf16>
    tpu.vector_store %arg11[%c0_115, %c0_116], %84 {strides = array<i32>} : memref<64x640xbf16, #tpu.memory_space<vmem>>, vector<64x64xbf16>,
    %c0_117 = arith.constant 0 : index
    %c1_118 = arith.constant 1 : index
    %c0_119 = arith.constant 0 : index
    %86 = vector.load %arg10[%c0_117, %c1_118, %c0_119] : memref<10x10x64xbf16, #tpu.memory_space<vmem>>, vector<8x8x64xbf16>
    %87 = vector.shape_cast %86 : vector<8x8x64xbf16> to vector<64x64xbf16>
    %c0_120 = arith.constant 0 : index
    %c64_121 = arith.constant 64 : index
    %88 = vector.load %arg11[%c0_120, %c64_121] : memref<64x640xbf16, #tpu.memory_space<vmem>>, vector<64x64xbf16>
    tpu.vector_store %arg11[%c0_120, %c64_121], %87 {strides = array<i32>} : memref<64x640xbf16, #tpu.memory_space<vmem>>, vector<64x64xbf16>,
    %c0_122 = arith.constant 0 : index
    %c2_123 = arith.constant 2 : index
    %c0_124 = arith.constant 0 : index
    %89 = vector.load %arg10[%c0_122, %c2_123, %c0_124] : memref<10x10x64xbf16, #tpu.memory_space<vmem>>, vector<8x8x64xbf16>
    %90 = vector.shape_cast %89 : vector<8x8x64xbf16> to vector<64x64xbf16>
    %c0_125 = arith.constant 0 : index
    %c128_126 = arith.constant 128 : index
    %91 = vector.load %arg11[%c0_125, %c128_126] : memref<64x640xbf16, #tpu.memory_space<vmem>>, vector<64x64xbf16>
    tpu.vector_store %arg11[%c0_125, %c128_126], %90 {strides = array<i32>} : memref<64x640xbf16, #tpu.memory_space<vmem>>, vector<64x64xbf16>,
    %c1_127 = arith.constant 1 : index
    %c0_128 = arith.constant 0 : index
    %c0_129 = arith.constant 0 : index
    %92 = vector.load %arg10[%c1_127, %c0_128, %c0_129] : memref<10x10x64xbf16, #tpu.memory_space<vmem>>, vector<8x8x64xbf16>
    %93 = vector.shape_cast %92 : vector<8x8x64xbf16> to vector<64x64xbf16>
    %c0_130 = arith.constant 0 : index
    %c192_131 = arith.constant 192 : index
    %94 = vector.load %arg11[%c0_130, %c192_131] : memref<64x640xbf16, #tpu.memory_space<vmem>>, vector<64x64xbf16>
    tpu.vector_store %arg11[%c0_130, %c192_131], %93 {strides = array<i32>} : memref<64x640xbf16, #tpu.memory_space<vmem>>, vector<64x64xbf16>,
    %c1_132 = arith.constant 1 : index
    %c1_133 = arith.constant 1 : index
    %c0_134 = arith.constant 0 : index
    %95 = vector.load %arg10[%c1_132, %c1_133, %c0_134] : memref<10x10x64xbf16, #tpu.memory_space<vmem>>, vector<8x8x64xbf16>
    %96 = vector.shape_cast %95 : vector<8x8x64xbf16> to vector<64x64xbf16>
    %c0_135 = arith.constant 0 : index
    %c256_136 = arith.constant 256 : index
    %97 = vector.load %arg11[%c0_135, %c256_136] : memref<64x640xbf16, #tpu.memory_space<vmem>>, vector<64x64xbf16>
    tpu.vector_store %arg11[%c0_135, %c256_136], %96 {strides = array<i32>} : memref<64x640xbf16, #tpu.memory_space<vmem>>, vector<64x64xbf16>,
    %c1_137 = arith.constant 1 : index
    %c2_138 = arith.constant 2 : index
    %c0_139 = arith.constant 0 : index
    %98 = vector.load %arg10[%c1_137, %c2_138, %c0_139] : memref<10x10x64xbf16, #tpu.memory_space<vmem>>, vector<8x8x64xbf16>
    %99 = vector.shape_cast %98 : vector<8x8x64xbf16> to vector<64x64xbf16>
    %c0_140 = arith.constant 0 : index
    %c320_141 = arith.constant 320 : index
    %100 = vector.load %arg11[%c0_140, %c320_141] : memref<64x640xbf16, #tpu.memory_space<vmem>>, vector<64x64xbf16>
    tpu.vector_store %arg11[%c0_140, %c320_141], %99 {strides = array<i32>} : memref<64x640xbf16, #tpu.memory_space<vmem>>, vector<64x64xbf16>,
    %c2_142 = arith.constant 2 : index
    %c0_143 = arith.constant 0 : index
    %c0_144 = arith.constant 0 : index
    %101 = vector.load %arg10[%c2_142, %c0_143, %c0_144] : memref<10x10x64xbf16, #tpu.memory_space<vmem>>, vector<8x8x64xbf16>
    %102 = vector.shape_cast %101 : vector<8x8x64xbf16> to vector<64x64xbf16>
    %c0_145 = arith.constant 0 : index
    %c384_146 = arith.constant 384 : index
    %103 = vector.load %arg11[%c0_145, %c384_146] : memref<64x640xbf16, #tpu.memory_space<vmem>>, vector<64x64xbf16>
    tpu.vector_store %arg11[%c0_145, %c384_146], %102 {strides = array<i32>} : memref<64x640xbf16, #tpu.memory_space<vmem>>, vector<64x64xbf16>,
    %c2_147 = arith.constant 2 : index
    %c1_148 = arith.constant 1 : index
    %c0_149 = arith.constant 0 : index
    %104 = vector.load %arg10[%c2_147, %c1_148, %c0_149] : memref<10x10x64xbf16, #tpu.memory_space<vmem>>, vector<8x8x64xbf16>
    %105 = vector.shape_cast %104 : vector<8x8x64xbf16> to vector<64x64xbf16>
    %c0_150 = arith.constant 0 : index
    %c448_151 = arith.constant 448 : index
    %106 = vector.load %arg11[%c0_150, %c448_151] : memref<64x640xbf16, #tpu.memory_space<vmem>>, vector<64x64xbf16>
    tpu.vector_store %arg11[%c0_150, %c448_151], %105 {strides = array<i32>} : memref<64x640xbf16, #tpu.memory_space<vmem>>, vector<64x64xbf16>,
    %c2_152 = arith.constant 2 : index
    %c2_153 = arith.constant 2 : index
    %c0_154 = arith.constant 0 : index
    %107 = vector.load %arg10[%c2_152, %c2_153, %c0_154] : memref<10x10x64xbf16, #tpu.memory_space<vmem>>, vector<8x8x64xbf16>
    %108 = vector.shape_cast %107 : vector<8x8x64xbf16> to vector<64x64xbf16>
    %c0_155 = arith.constant 0 : index
    %c512_156 = arith.constant 512 : index
    %109 = vector.load %arg11[%c0_155, %c512_156] : memref<64x640xbf16, #tpu.memory_space<vmem>>, vector<64x64xbf16>
    tpu.vector_store %arg11[%c0_155, %c512_156], %108 {strides = array<i32>} : memref<64x640xbf16, #tpu.memory_space<vmem>>, vector<64x64xbf16>,
    %c0_157 = arith.constant 0 : index
    %c0_158 = arith.constant 0 : index
    %110 = vector.load %arg11[%c0_157, %c0_158] : memref<64x640xbf16, #tpu.memory_space<vmem>>, vector<64x640xbf16>
    %c1_159 = arith.constant 1 : index
    %c0_160 = arith.constant 0 : index
    %c0_161 = arith.constant 0 : index
    %111 = vector.load %arg4[%c1_159, %c0_160, %c0_161] : memref<4x640x64xbf16, #tpu.memory_space<vmem>>, vector<1x640x64xbf16>
    %112 = vector.shape_cast %111 : vector<1x640x64xbf16> to vector<640x64xbf16>
    %cst_162 = arith.constant dense<0.000000e+00> : vector<64x64xf32>
    %113 = tpu.matmul %110, %112, %cst_162 {dimension_numbers = #tpu.dot_dimension_numbers<[1], [0], [0], [1], [0, 0, 1, 1], [], []>} : vector<64x640xbf16>, vector<640x64xbf16>, vector<64x64xf32> -> vector<64x64xf32>
    %c1_163 = arith.constant 1 : index
    %c0_164 = arith.constant 0 : index
    %114 = vector.load %arg5[%c1_163, %c0_164] : memref<4x64xf32, #tpu.memory_space<vmem>>, vector<1x64xf32>
    %115 = vector.broadcast %114 : vector<1x64xf32> to vector<64x64xf32>
    %116 = arith.addf %113, %115 : vector<64x64xf32>
    %117 = arith.addf %116, %40 : vector<64x64xf32>
    %cst_165 = arith.constant 0.000000e+00 : f32
    %118 = vector.broadcast %cst_165 : f32 to vector<64x64xf32>
    %119 = arith.maximumf %117, %118 : vector<64x64xf32>
    %120 = vector.shape_cast %119 : vector<64x64xf32> to vector<8x8x64xf32>
    %121 = arith.truncf %120 : vector<8x8x64xf32> to vector<8x8x64xbf16>
    %c1_166 = arith.constant 1 : index
    %c1_167 = arith.constant 1 : index
    %c0_168 = arith.constant 0 : index
    %122 = vector.load %arg10[%c1_166, %c1_167, %c0_168] : memref<10x10x64xbf16, #tpu.memory_space<vmem>>, vector<8x8x64xbf16>
    tpu.vector_store %arg10[%c1_166, %c1_167, %c0_168], %121 {strides = array<i32>} : memref<10x10x64xbf16, #tpu.memory_space<vmem>>, vector<8x8x64xbf16>,
    %c0_169 = arith.constant 0 : index
    %c0_170 = arith.constant 0 : index
    %c0_171 = arith.constant 0 : index
    %123 = vector.load %arg10[%c0_169, %c0_170, %c0_171] : memref<10x10x64xbf16, #tpu.memory_space<vmem>>, vector<8x8x64xbf16>
    %124 = vector.shape_cast %123 : vector<8x8x64xbf16> to vector<64x64xbf16>
    %c0_172 = arith.constant 0 : index
    %c0_173 = arith.constant 0 : index
    %125 = vector.load %arg11[%c0_172, %c0_173] : memref<64x640xbf16, #tpu.memory_space<vmem>>, vector<64x64xbf16>
    tpu.vector_store %arg11[%c0_172, %c0_173], %124 {strides = array<i32>} : memref<64x640xbf16, #tpu.memory_space<vmem>>, vector<64x64xbf16>,
    %c0_174 = arith.constant 0 : index
    %c1_175 = arith.constant 1 : index
    %c0_176 = arith.constant 0 : index
    %126 = vector.load %arg10[%c0_174, %c1_175, %c0_176] : memref<10x10x64xbf16, #tpu.memory_space<vmem>>, vector<8x8x64xbf16>
    %127 = vector.shape_cast %126 : vector<8x8x64xbf16> to vector<64x64xbf16>
    %c0_177 = arith.constant 0 : index
    %c64_178 = arith.constant 64 : index
    %128 = vector.load %arg11[%c0_177, %c64_178] : memref<64x640xbf16, #tpu.memory_space<vmem>>, vector<64x64xbf16>
    tpu.vector_store %arg11[%c0_177, %c64_178], %127 {strides = array<i32>} : memref<64x640xbf16, #tpu.memory_space<vmem>>, vector<64x64xbf16>,
    %c0_179 = arith.constant 0 : index
    %c2_180 = arith.constant 2 : index
    %c0_181 = arith.constant 0 : index
    %129 = vector.load %arg10[%c0_179, %c2_180, %c0_181] : memref<10x10x64xbf16, #tpu.memory_space<vmem>>, vector<8x8x64xbf16>
    %130 = vector.shape_cast %129 : vector<8x8x64xbf16> to vector<64x64xbf16>
    %c0_182 = arith.constant 0 : index
    %c128_183 = arith.constant 128 : index
    %131 = vector.load %arg11[%c0_182, %c128_183] : memref<64x640xbf16, #tpu.memory_space<vmem>>, vector<64x64xbf16>
    tpu.vector_store %arg11[%c0_182, %c128_183], %130 {strides = array<i32>} : memref<64x640xbf16, #tpu.memory_space<vmem>>, vector<64x64xbf16>,
    %c1_184 = arith.constant 1 : index
    %c0_185 = arith.constant 0 : index
    %c0_186 = arith.constant 0 : index
    %132 = vector.load %arg10[%c1_184, %c0_185, %c0_186] : memref<10x10x64xbf16, #tpu.memory_space<vmem>>, vector<8x8x64xbf16>
    %133 = vector.shape_cast %132 : vector<8x8x64xbf16> to vector<64x64xbf16>
    %c0_187 = arith.constant 0 : index
    %c192_188 = arith.constant 192 : index
    %134 = vector.load %arg11[%c0_187, %c192_188] : memref<64x640xbf16, #tpu.memory_space<vmem>>, vector<64x64xbf16>
    tpu.vector_store %arg11[%c0_187, %c192_188], %133 {strides = array<i32>} : memref<64x640xbf16, #tpu.memory_space<vmem>>, vector<64x64xbf16>,
    %c1_189 = arith.constant 1 : index
    %c1_190 = arith.constant 1 : index
    %c0_191 = arith.constant 0 : index
    %135 = vector.load %arg10[%c1_189, %c1_190, %c0_191] : memref<10x10x64xbf16, #tpu.memory_space<vmem>>, vector<8x8x64xbf16>
    %136 = vector.shape_cast %135 : vector<8x8x64xbf16> to vector<64x64xbf16>
    %c0_192 = arith.constant 0 : index
    %c256_193 = arith.constant 256 : index
    %137 = vector.load %arg11[%c0_192, %c256_193] : memref<64x640xbf16, #tpu.memory_space<vmem>>, vector<64x64xbf16>
    tpu.vector_store %arg11[%c0_192, %c256_193], %136 {strides = array<i32>} : memref<64x640xbf16, #tpu.memory_space<vmem>>, vector<64x64xbf16>,
    %c1_194 = arith.constant 1 : index
    %c2_195 = arith.constant 2 : index
    %c0_196 = arith.constant 0 : index
    %138 = vector.load %arg10[%c1_194, %c2_195, %c0_196] : memref<10x10x64xbf16, #tpu.memory_space<vmem>>, vector<8x8x64xbf16>
    %139 = vector.shape_cast %138 : vector<8x8x64xbf16> to vector<64x64xbf16>
    %c0_197 = arith.constant 0 : index
    %c320_198 = arith.constant 320 : index
    %140 = vector.load %arg11[%c0_197, %c320_198] : memref<64x640xbf16, #tpu.memory_space<vmem>>, vector<64x64xbf16>
    tpu.vector_store %arg11[%c0_197, %c320_198], %139 {strides = array<i32>} : memref<64x640xbf16, #tpu.memory_space<vmem>>, vector<64x64xbf16>,
    %c2_199 = arith.constant 2 : index
    %c0_200 = arith.constant 0 : index
    %c0_201 = arith.constant 0 : index
    %141 = vector.load %arg10[%c2_199, %c0_200, %c0_201] : memref<10x10x64xbf16, #tpu.memory_space<vmem>>, vector<8x8x64xbf16>
    %142 = vector.shape_cast %141 : vector<8x8x64xbf16> to vector<64x64xbf16>
    %c0_202 = arith.constant 0 : index
    %c384_203 = arith.constant 384 : index
    %143 = vector.load %arg11[%c0_202, %c384_203] : memref<64x640xbf16, #tpu.memory_space<vmem>>, vector<64x64xbf16>
    tpu.vector_store %arg11[%c0_202, %c384_203], %142 {strides = array<i32>} : memref<64x640xbf16, #tpu.memory_space<vmem>>, vector<64x64xbf16>,
    %c2_204 = arith.constant 2 : index
    %c1_205 = arith.constant 1 : index
    %c0_206 = arith.constant 0 : index
    %144 = vector.load %arg10[%c2_204, %c1_205, %c0_206] : memref<10x10x64xbf16, #tpu.memory_space<vmem>>, vector<8x8x64xbf16>
    %145 = vector.shape_cast %144 : vector<8x8x64xbf16> to vector<64x64xbf16>
    %c0_207 = arith.constant 0 : index
    %c448_208 = arith.constant 448 : index
    %146 = vector.load %arg11[%c0_207, %c448_208] : memref<64x640xbf16, #tpu.memory_space<vmem>>, vector<64x64xbf16>
    tpu.vector_store %arg11[%c0_207, %c448_208], %145 {strides = array<i32>} : memref<64x640xbf16, #tpu.memory_space<vmem>>, vector<64x64xbf16>,
    %c2_209 = arith.constant 2 : index
    %c2_210 = arith.constant 2 : index
    %c0_211 = arith.constant 0 : index
    %147 = vector.load %arg10[%c2_209, %c2_210, %c0_211] : memref<10x10x64xbf16, #tpu.memory_space<vmem>>, vector<8x8x64xbf16>
    %148 = vector.shape_cast %147 : vector<8x8x64xbf16> to vector<64x64xbf16>
    %c0_212 = arith.constant 0 : index
    %c512_213 = arith.constant 512 : index
    %149 = vector.load %arg11[%c0_212, %c512_213] : memref<64x640xbf16, #tpu.memory_space<vmem>>, vector<64x64xbf16>
    tpu.vector_store %arg11[%c0_212, %c512_213], %148 {strides = array<i32>} : memref<64x640xbf16, #tpu.memory_space<vmem>>, vector<64x64xbf16>,
    %c0_214 = arith.constant 0 : index
    %c0_215 = arith.constant 0 : index
    %150 = vector.load %arg11[%c0_214, %c0_215] : memref<64x640xbf16, #tpu.memory_space<vmem>>, vector<64x640xbf16>
    %c2_216 = arith.constant 2 : index
    %c0_217 = arith.constant 0 : index
    %c0_218 = arith.constant 0 : index
    %151 = vector.load %arg4[%c2_216, %c0_217, %c0_218] : memref<4x640x64xbf16, #tpu.memory_space<vmem>>, vector<1x640x64xbf16>
    %152 = vector.shape_cast %151 : vector<1x640x64xbf16> to vector<640x64xbf16>
    %cst_219 = arith.constant dense<0.000000e+00> : vector<64x64xf32>
    %153 = tpu.matmul %150, %152, %cst_219 {dimension_numbers = #tpu.dot_dimension_numbers<[1], [0], [0], [1], [0, 0, 1, 1], [], []>} : vector<64x640xbf16>, vector<640x64xbf16>, vector<64x64xf32> -> vector<64x64xf32>
    %c2_220 = arith.constant 2 : index
    %c0_221 = arith.constant 0 : index
    %154 = vector.load %arg5[%c2_220, %c0_221] : memref<4x64xf32, #tpu.memory_space<vmem>>, vector<1x64xf32>
    %155 = vector.broadcast %154 : vector<1x64xf32> to vector<64x64xf32>
    %156 = arith.addf %153, %155 : vector<64x64xf32>
    %cst_222 = arith.constant 0.000000e+00 : f32
    %157 = vector.broadcast %cst_222 : f32 to vector<64x64xf32>
    %158 = arith.maximumf %156, %157 : vector<64x64xf32>
    %159 = vector.shape_cast %158 : vector<64x64xf32> to vector<8x8x64xf32>
    %160 = arith.truncf %159 : vector<8x8x64xf32> to vector<8x8x64xbf16>
    %c1_223 = arith.constant 1 : index
    %c1_224 = arith.constant 1 : index
    %c0_225 = arith.constant 0 : index
    %161 = vector.load %arg10[%c1_223, %c1_224, %c0_225] : memref<10x10x64xbf16, #tpu.memory_space<vmem>>, vector<8x8x64xbf16>
    tpu.vector_store %arg10[%c1_223, %c1_224, %c0_225], %160 {strides = array<i32>} : memref<10x10x64xbf16, #tpu.memory_space<vmem>>, vector<8x8x64xbf16>,
    %c0_226 = arith.constant 0 : index
    %c0_227 = arith.constant 0 : index
    %c0_228 = arith.constant 0 : index
    %162 = vector.load %arg10[%c0_226, %c0_227, %c0_228] : memref<10x10x64xbf16, #tpu.memory_space<vmem>>, vector<8x8x64xbf16>
    %163 = vector.shape_cast %162 : vector<8x8x64xbf16> to vector<64x64xbf16>
    %c0_229 = arith.constant 0 : index
    %c0_230 = arith.constant 0 : index
    %164 = vector.load %arg11[%c0_229, %c0_230] : memref<64x640xbf16, #tpu.memory_space<vmem>>, vector<64x64xbf16>
    tpu.vector_store %arg11[%c0_229, %c0_230], %163 {strides = array<i32>} : memref<64x640xbf16, #tpu.memory_space<vmem>>, vector<64x64xbf16>,
    %c0_231 = arith.constant 0 : index
    %c1_232 = arith.constant 1 : index
    %c0_233 = arith.constant 0 : index
    %165 = vector.load %arg10[%c0_231, %c1_232, %c0_233] : memref<10x10x64xbf16, #tpu.memory_space<vmem>>, vector<8x8x64xbf16>
    %166 = vector.shape_cast %165 : vector<8x8x64xbf16> to vector<64x64xbf16>
    %c0_234 = arith.constant 0 : index
    %c64_235 = arith.constant 64 : index
    %167 = vector.load %arg11[%c0_234, %c64_235] : memref<64x640xbf16, #tpu.memory_space<vmem>>, vector<64x64xbf16>
    tpu.vector_store %arg11[%c0_234, %c64_235], %166 {strides = array<i32>} : memref<64x640xbf16, #tpu.memory_space<vmem>>, vector<64x64xbf16>,
    %c0_236 = arith.constant 0 : index
    %c2_237 = arith.constant 2 : index
    %c0_238 = arith.constant 0 : index
    %168 = vector.load %arg10[%c0_236, %c2_237, %c0_238] : memref<10x10x64xbf16, #tpu.memory_space<vmem>>, vector<8x8x64xbf16>
    %169 = vector.shape_cast %168 : vector<8x8x64xbf16> to vector<64x64xbf16>
    %c0_239 = arith.constant 0 : index
    %c128_240 = arith.constant 128 : index
    %170 = vector.load %arg11[%c0_239, %c128_240] : memref<64x640xbf16, #tpu.memory_space<vmem>>, vector<64x64xbf16>
    tpu.vector_store %arg11[%c0_239, %c128_240], %169 {strides = array<i32>} : memref<64x640xbf16, #tpu.memory_space<vmem>>, vector<64x64xbf16>,
    %c1_241 = arith.constant 1 : index
    %c0_242 = arith.constant 0 : index
    %c0_243 = arith.constant 0 : index
    %171 = vector.load %arg10[%c1_241, %c0_242, %c0_243] : memref<10x10x64xbf16, #tpu.memory_space<vmem>>, vector<8x8x64xbf16>
    %172 = vector.shape_cast %171 : vector<8x8x64xbf16> to vector<64x64xbf16>
    %c0_244 = arith.constant 0 : index
    %c192_245 = arith.constant 192 : index
    %173 = vector.load %arg11[%c0_244, %c192_245] : memref<64x640xbf16, #tpu.memory_space<vmem>>, vector<64x64xbf16>
    tpu.vector_store %arg11[%c0_244, %c192_245], %172 {strides = array<i32>} : memref<64x640xbf16, #tpu.memory_space<vmem>>, vector<64x64xbf16>,
    %c1_246 = arith.constant 1 : index
    %c1_247 = arith.constant 1 : index
    %c0_248 = arith.constant 0 : index
    %174 = vector.load %arg10[%c1_246, %c1_247, %c0_248] : memref<10x10x64xbf16, #tpu.memory_space<vmem>>, vector<8x8x64xbf16>
    %175 = vector.shape_cast %174 : vector<8x8x64xbf16> to vector<64x64xbf16>
    %c0_249 = arith.constant 0 : index
    %c256_250 = arith.constant 256 : index
    %176 = vector.load %arg11[%c0_249, %c256_250] : memref<64x640xbf16, #tpu.memory_space<vmem>>, vector<64x64xbf16>
    tpu.vector_store %arg11[%c0_249, %c256_250], %175 {strides = array<i32>} : memref<64x640xbf16, #tpu.memory_space<vmem>>, vector<64x64xbf16>,
    %c1_251 = arith.constant 1 : index
    %c2_252 = arith.constant 2 : index
    %c0_253 = arith.constant 0 : index
    %177 = vector.load %arg10[%c1_251, %c2_252, %c0_253] : memref<10x10x64xbf16, #tpu.memory_space<vmem>>, vector<8x8x64xbf16>
    %178 = vector.shape_cast %177 : vector<8x8x64xbf16> to vector<64x64xbf16>
    %c0_254 = arith.constant 0 : index
    %c320_255 = arith.constant 320 : index
    %179 = vector.load %arg11[%c0_254, %c320_255] : memref<64x640xbf16, #tpu.memory_space<vmem>>, vector<64x64xbf16>
    tpu.vector_store %arg11[%c0_254, %c320_255], %178 {strides = array<i32>} : memref<64x640xbf16, #tpu.memory_space<vmem>>, vector<64x64xbf16>,
    %c2_256 = arith.constant 2 : index
    %c0_257 = arith.constant 0 : index
    %c0_258 = arith.constant 0 : index
    %180 = vector.load %arg10[%c2_256, %c0_257, %c0_258] : memref<10x10x64xbf16, #tpu.memory_space<vmem>>, vector<8x8x64xbf16>
    %181 = vector.shape_cast %180 : vector<8x8x64xbf16> to vector<64x64xbf16>
    %c0_259 = arith.constant 0 : index
    %c384_260 = arith.constant 384 : index
    %182 = vector.load %arg11[%c0_259, %c384_260] : memref<64x640xbf16, #tpu.memory_space<vmem>>, vector<64x64xbf16>
    tpu.vector_store %arg11[%c0_259, %c384_260], %181 {strides = array<i32>} : memref<64x640xbf16, #tpu.memory_space<vmem>>, vector<64x64xbf16>,
    %c2_261 = arith.constant 2 : index
    %c1_262 = arith.constant 1 : index
    %c0_263 = arith.constant 0 : index
    %183 = vector.load %arg10[%c2_261, %c1_262, %c0_263] : memref<10x10x64xbf16, #tpu.memory_space<vmem>>, vector<8x8x64xbf16>
    %184 = vector.shape_cast %183 : vector<8x8x64xbf16> to vector<64x64xbf16>
    %c0_264 = arith.constant 0 : index
    %c448_265 = arith.constant 448 : index
    %185 = vector.load %arg11[%c0_264, %c448_265] : memref<64x640xbf16, #tpu.memory_space<vmem>>, vector<64x64xbf16>
    tpu.vector_store %arg11[%c0_264, %c448_265], %184 {strides = array<i32>} : memref<64x640xbf16, #tpu.memory_space<vmem>>, vector<64x64xbf16>,
    %c2_266 = arith.constant 2 : index
    %c2_267 = arith.constant 2 : index
    %c0_268 = arith.constant 0 : index
    %186 = vector.load %arg10[%c2_266, %c2_267, %c0_268] : memref<10x10x64xbf16, #tpu.memory_space<vmem>>, vector<8x8x64xbf16>
    %187 = vector.shape_cast %186 : vector<8x8x64xbf16> to vector<64x64xbf16>
    %c0_269 = arith.constant 0 : index
    %c512_270 = arith.constant 512 : index
    %188 = vector.load %arg11[%c0_269, %c512_270] : memref<64x640xbf16, #tpu.memory_space<vmem>>, vector<64x64xbf16>
    tpu.vector_store %arg11[%c0_269, %c512_270], %187 {strides = array<i32>} : memref<64x640xbf16, #tpu.memory_space<vmem>>, vector<64x64xbf16>,
    %c0_271 = arith.constant 0 : index
    %c0_272 = arith.constant 0 : index
    %189 = vector.load %arg11[%c0_271, %c0_272] : memref<64x640xbf16, #tpu.memory_space<vmem>>, vector<64x640xbf16>
    %c3 = arith.constant 3 : index
    %c0_273 = arith.constant 0 : index
    %c0_274 = arith.constant 0 : index
    %190 = vector.load %arg4[%c3, %c0_273, %c0_274] : memref<4x640x64xbf16, #tpu.memory_space<vmem>>, vector<1x640x64xbf16>
    %191 = vector.shape_cast %190 : vector<1x640x64xbf16> to vector<640x64xbf16>
    %cst_275 = arith.constant dense<0.000000e+00> : vector<64x64xf32>
    %192 = tpu.matmul %189, %191, %cst_275 {dimension_numbers = #tpu.dot_dimension_numbers<[1], [0], [0], [1], [0, 0, 1, 1], [], []>} : vector<64x640xbf16>, vector<640x64xbf16>, vector<64x64xf32> -> vector<64x64xf32>
    %c3_276 = arith.constant 3 : index
    %c0_277 = arith.constant 0 : index
    %193 = vector.load %arg5[%c3_276, %c0_277] : memref<4x64xf32, #tpu.memory_space<vmem>>, vector<1x64xf32>
    %194 = vector.broadcast %193 : vector<1x64xf32> to vector<64x64xf32>
    %195 = arith.addf %192, %194 : vector<64x64xf32>
    %196 = arith.addf %195, %119 : vector<64x64xf32>
    %cst_278 = arith.constant 0.000000e+00 : f32
    %197 = vector.broadcast %cst_278 : f32 to vector<64x64xf32>
    %198 = arith.maximumf %196, %197 : vector<64x64xf32>
    %c0_279 = arith.constant 0 : index
    %c0_280 = arith.constant 0 : index
    %c0_281 = arith.constant 0 : index
    %199 = vector.load %arg6[%c0_279, %c0_280, %c0_281] : memref<1x64x64xf32, #tpu.memory_space<vmem>>, vector<1x64x64xf32>
    %200 = vector.shape_cast %199 : vector<1x64x64xf32> to vector<64x64xf32>
    %201 = vector.shape_cast %198 : vector<64x64xf32> to vector<1x64x64xf32>
    tpu.vector_store %arg6[%c0_279, %c0_280, %c0_281], %201 {strides = array<i32>} : memref<1x64x64xf32, #tpu.memory_space<vmem>>, vector<1x64x64xf32>,
    return
  }
  func.func @transform_0(%arg0: i32) -> (i32, i32, i32) {
    %c0_i32 = arith.constant 0 : i32
    %c0_i32_0 = arith.constant 0 : i32
    %c0_i32_1 = arith.constant 0 : i32
    return %arg0, %c0_i32, %c0_i32_0 : i32, i32, i32
  }
  func.func @transform_1(%arg0: i32) -> (i32, i32) {
    %c0_i32 = arith.constant 0 : i32
    %c0_i32_0 = arith.constant 0 : i32
    %c0_i32_1 = arith.constant 0 : i32
    return %c0_i32, %c0_i32_0 : i32, i32
  }
  func.func @transform_2(%arg0: i32) -> (i32, i32) {
    %c0_i32 = arith.constant 0 : i32
    %c0_i32_0 = arith.constant 0 : i32
    %c0_i32_1 = arith.constant 0 : i32
    return %c0_i32, %c0_i32_0 : i32, i32
  }
  func.func @transform_3(%arg0: i32) -> (i32, i32, i32) {
    %c0_i32 = arith.constant 0 : i32
    %c0_i32_0 = arith.constant 0 : i32
    %c0_i32_1 = arith.constant 0 : i32
    %c0_i32_2 = arith.constant 0 : i32
    return %c0_i32, %c0_i32_0, %c0_i32_1 : i32, i32, i32
  }
  func.func @transform_4(%arg0: i32) -> (i32, i32) {
    %c0_i32 = arith.constant 0 : i32
    %c0_i32_0 = arith.constant 0 : i32
    %c0_i32_1 = arith.constant 0 : i32
    return %c0_i32, %c0_i32_0 : i32, i32
  }
  func.func @transform_5(%arg0: i32) -> (i32, i32, i32) {
    %c0_i32 = arith.constant 0 : i32
    %c0_i32_0 = arith.constant 0 : i32
    %c0_i32_1 = arith.constant 0 : i32
    return %arg0, %c0_i32, %c0_i32_0 : i32, i32, i32
  }
}

</mosaic_0001>

<bundles_post_ra>
// kernel: feature_extractor.1
= control target key start
LH: loop header
LB: loop body
LE: loop exit
PB: predicated region body
PF: predicated region fallthrough
CT: control target
= control target key end

     0   :  { %10 = vsyncpa [#allocation8], 0  ;;  %s12262_s0 = inlined_call_operand.vmem [shape: bf16[2,256,147], index: 0, kind: input, shape index: {}]   ;;  %s12263_s1 = inlined_call_operand.vmem [shape: bf16[256,64], index: 1, kind: input, shape index: {}]   ;;  %s12264_s2 = inlined_call_operand.vmem [shape: f32[1,64], index: 2, kind: input, shape index: {}]   ;;  %s12265_s3 = inlined_call_operand.vmem [shape: bf16[4,640,64], index: 3, kind: input, shape index: {}]   ;;  %s12266_s4 = inlined_call_operand.vmem [shape: f32[4,64], index: 4, kind: input, shape index: {}]   ;;  %s12267_s5 = inlined_call_operand.hbm [shape: f32[2,64,64], index: 5, kind: output, shape index: {}]  }
   0x1   :  { %12 = vsyncpa [#allocation8 + $0x1], 0  ;;  %s9470_s18 = smov 0   ;;  %s9472_s19 = smov 0  }
   0x2   :  { %s9474_s20 = smov 0   ;;  %s9476_s21 = smov 0  }
   0x3 LB: > { %s9491_s22 = sadd.s32 4294967295, %s9432_s21   ;;  %s7750_s23 = sadd.s32 4294967294, %s9432_s21   ;;  %s9432_s21 = sphi %s9476_s21, %s12285_s21   ;;  %s9428_s20 = sphi %s9474_s20, %s12284_s20   ;;  %s9424_s19 = sphi %s9472_s19, %s12283_s19   ;;  %s9420_s18 = sphi %s9470_s18, %s12282_s18  }
   0x4   : > { %s9495_s24 = sadd.s32 1, %s9432_s21   ;;  %s135_s25 = sadd.s32 1, %s9428_s20 }
   0x5   : > { %s132_s26 = ssub.s32 %s9432_s21, %s9495_s24  ;;  %p145_p0 = scmp.ne.s32.totalorder %s9428_s20, %s9424_s19 }
   0x6   : > { %p133_p1 = scmp.eq.s32.totalorder %s132_s26, 0  ;;  %p146_p2 = scmp.eq.s32.totalorder %s9491_s22, 1 }
   0x7   : > { %p151_p3 = scmp.ne.s32.totalorder %s9424_s19, %s9420_s18  ;;  %p152_p4 = scmp.eq.s32.totalorder %s7750_s23, 1 }
   0x8   : > { %s9506_s27 = scalar_select %p133_p1, %s9428_s20, %s135_s25  }
   0x9   : > { %p9508_p5 = por %p146_p2, %p145_p0  ;;  %p9512_p6 = por %p152_p4, %p151_p3 }
   0xa   : > { %p7753_p7 = scmp.ge.s32.totalorder %s9432_s21, 1  ;;  %p190_p8 = scmp.lt.s32.totalorder %s9432_s21, 3 }
   0xc   : > { %p191_p9 = pnand %p7753_p7, %p190_p8 }
   0xd   : > { %p218_p10 = scmp.lt.s32.totalorder (!%p191_p9), %s9491_s22, 1  ;;  %s9436_s10 = smov (!%p191_p9), 64  }
   0xe   : > { %194 = sbr.rel (%p191_p9) target bundleno = 2027 (0x7eb), region = 40  ;;  %s8456_s14 = sshll.u32 (!%p191_p9), %s9491_s22, 10 }
   0xf   : > { %s12212_s23 = scalar_lea.hbm (!%p191_p9), %s12267_s5, %s8456_s14 }
  0x13   : > { %v9077_v0 = vld [vmem:[%s12263_s1 + $0x78] sm:$0xff]   ;;  %vm224_vm0 = vcmask 1043608   ;;  %v9079_v2 = vld [vmem:[%s12263_s1 + $0x70] sm:$0xff]   ;;  %v9081_v4 = vld [vmem:[%s12263_s1 + $0x68] sm:$0xff]   ;;  %v9434_v5 = vmov 0   ;;  %s219_s15 = scalar_select %p218_p10, %s9491_s22, 1 }
  0x14   : > { %v9078_v1 = vld [vmem:[%s12263_s1 + $0x38] sm:$0xff]   ;;  %8457 = vmatprep.subr.bf16.mxu0 %v9077_v0  ;;  %v9080_v3 = vld [vmem:[%s12263_s1 + $0x30] sm:$0xff]   ;;  %225 = vst.msk [vmem:[#allocation2 + $0x4] sm:$0xf] %vm224_vm0, %v9434_v5  ;;  %226 = vst.msk [vmem:[#allocation2 + $0xc] sm:$0xf] %vm224_vm0, %v9434_v5 }
  0x15   : > { %8458 = vmatpush3.bf16.msra.mxu0 %v9078_v1  ;;  %227 = vst.msk [vmem:[#allocation2 + $0x14] sm:$0xf] %vm224_vm0, %v9434_v5  ;;  %228 = vst.msk [vmem:[#allocation2 + $0x1c] sm:$0xf] %vm224_vm0, %v9434_v5  ;;  %v9082_v6 = vld [vmem:[%s12263_s1 + $0x28] sm:$0xff]   ;;  %v9083_v7 = vld [vmem:[%s12263_s1 + $0x60] sm:$0xff]  }
  0x16   : > { %8459 = vmatprep.subr.bf16.mxu0 %v9079_v2  ;;  %229 = vst.msk [vmem:[#allocation2 + $0x24] sm:$0xf] %vm224_vm0, %v9434_v5  ;;  %230 = vst.msk [vmem:[#allocation2 + $0x2c] sm:$0xf] %vm224_vm0, %v9434_v5  ;;  %s8423_s26 = sshll.u32 %s219_s15, 8  ;;  %v9084_v8 = vld [vmem:[%s12263_s1 + $0x20] sm:$0xff]  }
  0x17   : > { %231 = vst.msk [vmem:[#allocation2 + $0x34] sm:$0xf] %vm224_vm0, %v9434_v5  ;;  %232 = vst.msk [vmem:[#allocation2 + $0x3c] sm:$0xf] %vm224_vm0, %v9434_v5  ;;  %v9085_v9 = vld [vmem:[%s12263_s1 + $0x58] sm:$0xff]   ;;  %s9616_s11 = scalar_lea.vmem %s12262_s0, %s8423_s26  ;;  %vm391_vm1 = vcmask 1043456  }
  0x18   : > { %233 = vst.msk [vmem:[#allocation2 + $0x44] sm:$0xf] %vm224_vm0, %v9434_v5  ;;  %234 = vst.msk [vmem:[#allocation2 + $0x4c] sm:$0xf] %vm224_vm0, %v9434_v5  ;;  %vm392_vm2 = vcmask 154628   ;;  %v9086_v10 = vld [vmem:[%s12263_s1 + $0x18] sm:$0xff]  }
  0x19   : > { %235 = vst.msk [vmem:[#allocation2 + $0x54] sm:$0xf] %vm224_vm0, %v9434_v5  ;;  %236 = vst.msk [vmem:[#allocation2 + $0x5c] sm:$0xf] %vm224_vm0, %v9434_v5  ;;  %8460 = vmatpush3.bf16.msra.mxu0 %v9080_v3  ;;  %v9087_v11 = vld [vmem:[%s12263_s1 + $0x50] sm:$0xff]   ;;  %v359_v12 = vld [vmem:[%s9616_s11] sm:$0xff] }
  0x1a   : > { %237 = vst.msk [vmem:[#allocation2 + $0x64] sm:$0xf] %vm224_vm0, %v9434_v5  ;;  %238 = vst.msk [vmem:[#allocation2 + $0x6c] sm:$0xf] %vm224_vm0, %v9434_v5  ;;  %8461 = vmatprep.subr.bf16.mxu0 %v9081_v4  ;;  %v360_v13 = vld [vmem:[%s9616_s11 + $0x8] sm:$0xff]  ;;  %v9088_v15 = vld [vmem:[%s12263_s1 + $0x10] sm:$0xff]  }
  0x1b   : > { %239 = vst.msk [vmem:[#allocation2 + $0x74] sm:$0xf] %vm224_vm0, %v9434_v5  ;;  %240 = vst.msk [vmem:[#allocation2 + $0x7c] sm:$0xf] %vm224_vm0, %v9434_v5  ;;  %v361_v16 = vld [vmem:[%s9616_s11 + $0x10] sm:$0xff]  ;;  %v362_v17 = vld [vmem:[%s9616_s11 + $0x18] sm:$0xff] }
  0x1c   : > { %241 = vst.msk [vmem:[#allocation2 + $0x84] sm:$0xf] %vm224_vm0, %v9434_v5  ;;  %242 = vst.msk [vmem:[#allocation2 + $0x8c] sm:$0xf] %vm224_vm0, %v9434_v5  ;;  %v363_v18 = vld [vmem:[%s9616_s11 + $0x20] sm:$0xff]  ;;  %v9089_v19 = vld [vmem:[%s12263_s1 + $0x48] sm:$0xff]  }
  0x1d   : > { %243 = vst.msk [vmem:[#allocation2 + $0x94] sm:$0xf] %vm224_vm0, %v9434_v5  ;;  %244 = vst.msk [vmem:[#allocation2 + $0x9c] sm:$0xf] %vm224_vm0, %v9434_v5  ;;  %8462 = vmatpush3.bf16.msra.mxu0 %v9082_v6  ;;  %v364_v20 = vld [vmem:[%s9616_s11 + $0x28] sm:$0xff]  ;;  %v365_v21 = vld [vmem:[%s9616_s11 + $0x30] sm:$0xff] }
  0x1e   : > { %245 = vst.msk [vmem:[#allocation2 + $0xa4] sm:$0xf] %vm224_vm0, %v9434_v5  ;;  %246 = vst.msk [vmem:[#allocation2 + $0xac] sm:$0xf] %vm224_vm0, %v9434_v5  ;;  %8463 = vmatprep.subr.bf16.mxu0 %v9083_v7  ;;  %v366_v22 = vld [vmem:[%s9616_s11 + $0x38] sm:$0xff]  ;;  %v367_v23 = vld [vmem:[%s9616_s11 + $0x40] sm:$0xff] }
  0x1f   : > { %247 = vst.msk [vmem:[#allocation2 + $0xb4] sm:$0xf] %vm224_vm0, %v9434_v5  ;;  %248 = vst.msk [vmem:[#allocation2 + $0xbc] sm:$0xf] %vm224_vm0, %v9434_v5  ;;  %v368_v24 = vld [vmem:[%s9616_s11 + $0x48] sm:$0xff]  ;;  %v369_v25 = vld [vmem:[%s9616_s11 + $0x50] sm:$0xff] }
  0x20   : > { %249 = vst.msk [vmem:[#allocation2 + $0xc4] sm:$0xf] %vm224_vm0, %v9434_v5  ;;  %250 = vst.msk [vmem:[#allocation2 + $0xcc] sm:$0xf] %vm224_vm0, %v9434_v5  ;;  %v370_v26 = vld [vmem:[%s9616_s11 + $0x58] sm:$0xff]  ;;  %v371_v27 = vld [vmem:[%s9616_s11 + $0x60] sm:$0xff] }
  0x21   : > { %251 = vst.msk [vmem:[#allocation2 + $0xd4] sm:$0xf] %vm224_vm0, %v9434_v5  ;;  %252 = vst.msk [vmem:[#allocation2 + $0xdc] sm:$0xf] %vm224_vm0, %v9434_v5  ;;  %8464 = vmatpush3.bf16.msra.mxu0 %v9084_v8  ;;  %v372_v28 = vld [vmem:[%s9616_s11 + $0x68] sm:$0xff]  ;;  %v373_v30 = vld [vmem:[%s9616_s11 + $0x70] sm:$0xff] }
  0x22   : > { %253 = vst.msk [vmem:[#allocation2 + $0xe4] sm:$0xf] %vm224_vm0, %v9434_v5  ;;  %254 = vst.msk [vmem:[#allocation2 + $0xec] sm:$0xf] %vm224_vm0, %v9434_v5  ;;  %8465 = vmatprep.subr.bf16.mxu0 %v9085_v9  ;;  %v9090_v29 = vld [vmem:[%s12263_s1 + $0x8] sm:$0xff]   ;;  %v374_v31 = vld [vmem:[%s9616_s11 + $0x78] sm:$0xff] }
  0x23   : > { %255 = vst.msk [vmem:[#allocation2 + $0xf4] sm:$0xf] %vm224_vm0, %v9434_v5  ;;  %256 = vst.msk [vmem:[#allocation2 + $0xfc] sm:$0xf] %vm224_vm0, %v9434_v5  ;;  %v375_v32 = vld [vmem:[%s9616_s11 + $0x80] sm:$0xff]  ;;  %v376_v33 = vld [vmem:[%s9616_s11 + $0x88] sm:$0xff] }
  0x24   : > { %vm9626_vm3 = vmor %vm392_vm2, %vm391_vm1  ;;  %v377_v34 = vld [vmem:[%s9616_s11 + $0x90] sm:$0xff]  ;;  %v378_v35 = vld [vmem:[%s9616_s11 + $0x98] sm:$0xff]  ;;  %vm257_vm4 = vcmask 523264   ;;  %vm260_vm5 = vcmask 516096   ;;  %v9435_v9 = vmov 0.0   ;;  %vm279_vm6 = vcmask 519168  }
  0x25   : > { %394 = vst.msk [vmem:[#allocation2] sm:$0xff] %vm9626_vm3, %v359_v12  ;;  %395 = vst.msk [vmem:[#allocation2 + $0x8] sm:$0xff] %vm9626_vm3, %v360_v13  ;;  %8466 = vmatpush3.bf16.msra.mxu0 %v9086_v10  ;;  %v379_v36 = vld [vmem:[%s9616_s11 + $0xa0] sm:$0xff]  ;;  %v380_v37 = vld [vmem:[%s9616_s11 + $0xa8] sm:$0xff]  ;;  %vm286_vm7 = vsmask.f32 256 }
  0x26   : > { %396 = vst.msk [vmem:[#allocation2 + $0x10] sm:$0xff] %vm9626_vm3, %v361_v16  ;;  %397 = vst.msk [vmem:[#allocation2 + $0x18] sm:$0xff] %vm9626_vm3, %v362_v17  ;;  %8467 = vmatprep.subr.bf16.mxu0 %v9087_v11  ;;  %v381_v38 = vld [vmem:[%s9616_s11 + $0xb0] sm:$0xff]  ;;  %v9091_v39 = vld [vmem:[%s12263_s1 + $0x40] sm:$0xff]   ;;  %vm318_vm8 = vsmask.f32 7938 }
  0x27   : > { %398 = vst.msk [vmem:[#allocation2 + $0x20] sm:$0xff] %vm9626_vm3, %v363_v18  ;;  %399 = vst.msk [vmem:[#allocation2 + $0x28] sm:$0xff] %vm9626_vm3, %v364_v20  ;;  %v9092_v41 = vld [vmem:[%s12263_s1] sm:$0xff]   ;;  %v382_v46 = vld [vmem:[%s9616_s11 + $0xb8] sm:$0xff]  ;;  %vm1368_vm11 = vsmask.f32 3328 }
  0x28   : > { %400 = vst.msk [vmem:[#allocation2 + $0x30] sm:$0xff] %vm9626_vm3, %v365_v21  ;;  %401 = vst.msk [vmem:[#allocation2 + $0x38] sm:$0xff] %vm9626_vm3, %v366_v22  ;;  %v383_v47 = vld [vmem:[%s9616_s11 + $0xc0] sm:$0xff]  ;;  %v384_v48 = vld [vmem:[%s9616_s11 + $0xc8] sm:$0xff]  ;;  %vm1369_vm12 = vsmask.f32 7440 }
  0x29   : > { %402 = vst.msk [vmem:[#allocation2 + $0x40] sm:$0xff] %vm9626_vm3, %v367_v23  ;;  %403 = vst.msk [vmem:[#allocation2 + $0x48] sm:$0xff] %vm9626_vm3, %v368_v24  ;;  %8468 = vmatpush3.bf16.msra.mxu0 %v9088_v15  ;;  %v385_v49 = vld [vmem:[%s9616_s11 + $0xd0] sm:$0xff]  ;;  %v386_v50 = vld [vmem:[%s9616_s11 + $0xd8] sm:$0xff]  ;;  %vm350_vm14 = vcmask 1043968   ;;  %vm1547_vm15 = vcmask 1042432  }
  0x2a   : > { %404 = vst.msk [vmem:[#allocation2 + $0x50] sm:$0xff] %vm9626_vm3, %v369_v25  ;;  %405 = vst.msk [vmem:[#allocation2 + $0x58] sm:$0xff] %vm9626_vm3, %v370_v26  ;;  %8469 = vmatprep.subr.bf16.mxu0 %v9089_v19  ;;  %v387_v51 = vld [vmem:[%s9616_s11 + $0xe0] sm:$0xff]  ;;  %v388_v52 = vld [vmem:[%s9616_s11 + $0xe8] sm:$0xff]  ;;  %vm1548_vm0 = vcmask 1046532   ;;  %s9437_s26 = smov [#allocation7]  }
  0x2b   : > { %406 = vst.msk [vmem:[#allocation2 + $0x60] sm:$0xff] %vm9626_vm3, %v371_v27  ;;  %407 = vst.msk [vmem:[#allocation2 + $0x68] sm:$0xff] %vm9626_vm3, %v372_v28  ;;  %v389_v53 = vld [vmem:[%s9616_s11 + $0xf0] sm:$0xff]  ;;  %v390_v54 = vld [vmem:[%s9616_s11 + $0xf8] sm:$0xff]  ;;  %s9376_s30 = sshll.u32 %s9437_s26, 4  ;;  %s9377_s30 = int_to_ptr.vmem [resolvable:$false] %s9376_s30 }
  0x2c   : > { %408 = vst.msk [vmem:[#allocation2 + $0x70] sm:$0xff] %vm9626_vm3, %v373_v30  ;;  %409 = vst.msk [vmem:[#allocation2 + $0x78] sm:$0xff] %vm9626_vm3, %v374_v31  ;;  %v9095_v40 = vld [vmem:[#allocation2 + $0x4] ss:$8 sps:$4 sm:$0xff]   ;;  %v9093_v42 = vld [vmem:[#allocation2] ss:$8 sps:$4 sm:$0xff]  }
  0x2d   : > { %410 = vst.msk [vmem:[#allocation2 + $0x80] sm:$0xff] %vm9626_vm3, %v375_v32  ;;  %411 = vst.msk [vmem:[#allocation2 + $0x88] sm:$0xff] %vm9626_vm3, %v376_v33  ;;  %8470 = vmatpush3.bf16.msra.mxu0 %v9090_v29  ;;  %785 = vmatprep.mubr.bf16.mxu0 %v9095_v40  ;;  %v9096_v43 = vld [vmem:[#allocation2 + $0x14] ss:$8 sps:$4 sm:$0xff]   ;;  %v9098_v44 = vld [vmem:[#allocation2 + $0x10] ss:$8 sps:$4 sm:$0xff]  }
  0x2e   : > { %412 = vst.msk [vmem:[#allocation2 + $0x90] sm:$0xff] %vm9626_vm3, %v377_v34  ;;  %413 = vst.msk [vmem:[#allocation2 + $0x98] sm:$0xff] %vm9626_vm3, %v378_v35  ;;  %8471 = vmatprep.subr.bf16.mxu0 %v9091_v39  ;;  %v9099_v45 = vld [vmem:[#allocation2 + $0x24] ss:$8 sps:$4 sm:$0xff]   ;;  %v9101_v55 = vld [vmem:[#allocation2 + $0x20] ss:$8 sps:$4 sm:$0xff]  }
  0x2f   : > { %414 = vst.msk [vmem:[#allocation2 + $0xa0] sm:$0xff] %vm9626_vm3, %v379_v36  ;;  %415 = vst.msk [vmem:[#allocation2 + $0xa8] sm:$0xff] %vm9626_vm3, %v380_v37  ;;  %v9102_v56 = vld [vmem:[#allocation2 + $0x34] ss:$8 sps:$4 sm:$0xff]   ;;  %v9104_v57 = vld [vmem:[#allocation2 + $0x30] ss:$8 sps:$4 sm:$0xff]  }
  0x30   : > { %416 = vst.msk [vmem:[#allocation2 + $0xb0] sm:$0xff] %vm9626_vm3, %v381_v38  ;;  %417 = vst.msk [vmem:[#allocation2 + $0xb8] sm:$0xff] %vm9626_vm3, %v382_v46  ;;  %v9105_v58 = vld [vmem:[#allocation2 + $0x44] ss:$8 sps:$4 sm:$0xff]   ;;  %v9107_v59 = vld [vmem:[#allocation2 + $0x40] ss:$8 sps:$4 sm:$0xff]  }
  0x31   : > { %8472 = vmatpush3.bf16.msra.mxu0 %v9092_v41  ;;  %418 = vst.msk [vmem:[#allocation2 + $0xc0] sm:$0xff] %vm9626_vm3, %v383_v47  ;;  %419 = vst.msk [vmem:[#allocation2 + $0xc8] sm:$0xff] %vm9626_vm3, %v384_v48  ;;  %v9108_v60 = vld [vmem:[#allocation2 + $0x54] ss:$8 sps:$4 sm:$0xff]   ;;  %v9110_v61 = vld [vmem:[#allocation2 + $0x50] ss:$8 sps:$4 sm:$0xff]  }
  0x32   : > { %420 = vst.msk [vmem:[#allocation2 + $0xd0] sm:$0xff] %vm9626_vm3, %v385_v49  ;;  %421 = vst.msk [vmem:[#allocation2 + $0xd8] sm:$0xff] %vm9626_vm3, %v386_v50  ;;  %v9111_v62 = vld [vmem:[#allocation2 + $0x64] ss:$8 sps:$4 sm:$0xff]   ;;  %v9113_v63 = vld [vmem:[#allocation2 + $0x60] ss:$8 sps:$4 sm:$0xff]  }
  0x33   : > { %422 = vst.msk [vmem:[#allocation2 + $0xe0] sm:$0xff] %vm9626_vm3, %v387_v51  ;;  %423 = vst.msk [vmem:[#allocation2 + $0xe8] sm:$0xff] %vm9626_vm3, %v388_v52  ;;  %v9114_v0 = vld [vmem:[#allocation2 + $0x74] ss:$8 sps:$4 sm:$0xff]   ;;  %v9116_v1 = vld [vmem:[#allocation2 + $0x70] ss:$8 sps:$4 sm:$0xff]  }
  0x34   : > { %786 = vmatmul.mubr.bf16.vlgmr.msra.gmra.mxu0 %v9093_v42  ;;  %424 = vst.msk [vmem:[#allocation2 + $0xf0] sm:$0xff] %vm9626_vm3, %v389_v53  ;;  %425 = vst.msk [vmem:[#allocation2 + $0xf8] sm:$0xff] %vm9626_vm3, %v390_v54  ;;  %v9117_v2 = vld [vmem:[#allocation2 + $0x84] ss:$8 sps:$4 sm:$0xff]   ;;  %v9119_v3 = vld [vmem:[#allocation2 + $0x80] ss:$8 sps:$4 sm:$0xff]  }
  0x35   : > { %793 = vmatprep.mubr.bf16.mxu0 %v9096_v43  ;;  %v9120_v4 = vld [vmem:[#allocation2 + $0x94] ss:$8 sps:$4 sm:$0xff]   ;;  %v9122_v6 = vld [vmem:[#allocation2 + $0x90] ss:$8 sps:$4 sm:$0xff]   ;;  %263 = vst.msk [vmem:[#allocation3 + $0x18] sm:$0x1] %vm260_vm5, %v9435_v9  ;;  %vm9769_vm9 = vmand %vm260_vm5, %vm286_vm7 }
  0x36   : > { %v9123_v7 = vld [vmem:[#allocation2 + $0xa4] ss:$8 sps:$4 sm:$0xff]   ;;  %v9125_v8 = vld [vmem:[#allocation2 + $0xa0] ss:$8 sps:$4 sm:$0xff]   ;;  %258 = vst.msk [vmem:[#allocation3] sm:$0xff] %vm257_vm4, %v9435_v9  ;;  %259 = vst.msk [vmem:[#allocation3 + $0x8] sm:$0xff] %vm257_vm4, %v9435_v9 }
  0x37   : > { %261 = vst.msk [vmem:[#allocation3 + $0x10] sm:$0x1] %vm260_vm5, %v9435_v9  ;;  %264 = vst.msk [vmem:[#allocation3 + $0x30] sm:$0x1] %vm260_vm5, %v9435_v9  ;;  %v9126_v10 = vld [vmem:[#allocation2 + $0xb4] ss:$8 sps:$4 sm:$0xff]  }
  0x38   : > { %265 = vst.msk [vmem:[#allocation3 + $0x48] sm:$0x1] %vm260_vm5, %v9435_v9  ;;  %266 = vst.msk [vmem:[#allocation3 + $0x60] sm:$0x1] %vm260_vm5, %v9435_v9  ;;  %v9128_v11 = vld [vmem:[#allocation2 + $0xb0] ss:$8 sps:$4 sm:$0xff]  }
  0x39   : > { %267 = vst.msk [vmem:[#allocation3 + $0x78] sm:$0x1] %vm260_vm5, %v9435_v9  ;;  %268 = vst.msk [vmem:[#allocation3 + $0x90] sm:$0x1] %vm260_vm5, %v9435_v9  ;;  %v9129_v12 = vld [vmem:[#allocation2 + $0xc4] ss:$8 sps:$4 sm:$0xff]  }
  0x3a   : > { %269 = vst.msk [vmem:[#allocation3 + $0xa8] sm:$0x1] %vm260_vm5, %v9435_v9  ;;  %270 = vst.msk [vmem:[#allocation3 + $0xc0] sm:$0x1] %vm260_vm5, %v9435_v9  ;;  %v9131_v18 = vld [vmem:[#allocation2 + $0xc0] ss:$8 sps:$4 sm:$0xff]  }
  0x3b   : > { %271 = vst.msk [vmem:[#allocation3 + $0xd8] sm:$0x1] %vm260_vm5, %v9435_v9  ;;  %272 = vst.msk [vmem:[#allocation3 + $0xf0] sm:$0x1] %vm260_vm5, %v9435_v9  ;;  %v9132_v19 = vld [vmem:[#allocation2 + $0xd4] ss:$8 sps:$4 sm:$0xff]  }
  0x3c   : > { %794 = vmatmul.mubr.bf16.gmra.mxu0 %v9098_v44  ;;  %273 = vst.msk [vmem:[#allocation3 + $0x108] sm:$0x1] %vm260_vm5, %v9435_v9  ;;  %274 = vst.msk [vmem:[#allocation3 + $0x120] sm:$0x1] %vm260_vm5, %v9435_v9  ;;  %v9134_v20 = vld [vmem:[#allocation2 + $0xd0] ss:$8 sps:$4 sm:$0xff]  }
  0x3d   : > { %801 = vmatprep.mubr.bf16.mxu0 %v9099_v45  ;;  %275 = vst.msk [vmem:[#allocation3 + $0x138] sm:$0x1] %vm260_vm5, %v9435_v9  ;;  %276 = vst.msk [vmem:[#allocation3 + $0x150] sm:$0x1] %vm260_vm5, %v9435_v9  ;;  %v1013_v14 = vld [vmem:[#allocation3 + $0x1] ss:$2 sm:$0xff] }
  0x3e   : > { %277 = vst.msk [vmem:[#allocation3 + $0x168] sm:$0x1] %vm260_vm5, %v9435_v9  ;;  %278 = vst.msk [vmem:[#allocation3 + $0x180] sm:$0x1] %vm260_vm5, %v9435_v9  ;;  %v1064_v16 = vld [vmem:[#allocation3 + $0x2] ss:$2 sm:$0xff] }
  0x3f   : > { %281 = vst.msk [vmem:[#allocation5 + $0x4] sm:$0x1] %vm260_vm5, %v9434_v5  ;;  %284 = vst.msk [vmem:[#allocation5 + $0x4c] sm:$0x1] %vm260_vm5, %v9434_v5  ;;  %v9135_v21 = vld [vmem:[#allocation2 + $0xe4] ss:$8 sps:$4 sm:$0xff]  }
  0x40   : > { %262 = vst.msk [vmem:[#allocation3] sm:$0x1] %vm260_vm5, %v9435_v9  ;;  %v291_v24 = vld [vmem:[#allocation5 + $0x8] sm:$0x1]  ;;  %vm9777_vm10 = vmand %vm260_vm5, %vm318_vm8  ;;  %v323_v29 = vld [vmem:[#allocation5 + $0xc] sm:$0x1] }
  0x41   : > { %280 = vst.msk [vmem:[#allocation5] sm:$0xf] %vm279_vm6, %v9434_v5  ;;  %283 = vst.msk [vmem:[#allocation5 + $0x48] sm:$0xf] %vm279_vm6, %v9434_v5  ;;  %v9137_v25 = vld [vmem:[#allocation2 + $0xe0] ss:$8 sps:$4 sm:$0xff]  }
  0x42   : > { %v292_v28 = vsel %vm9769_vm9, 0, %v291_v24  ;;  %v9138_v30 = vld [vmem:[#allocation2 + $0xf4] ss:$8 sps:$4 sm:$0xff]   ;;  %v324_v31 = vsel %vm9777_vm10, 0, %v323_v29  ;;  %v9140_v35 = vld [vmem:[#allocation2 + $0xf0] ss:$8 sps:$4 sm:$0xff]   ;;  %vm9787_vm13 = vmor %vm1368_vm11, %vm1369_vm12 }
  0x43   : > { %293 = vst [vmem:[#allocation5 + $0x8] sm:$0x1] %v292_v28  ;;  %325 = vst [vmem:[#allocation5 + $0xc] sm:$0x1] %v324_v31  ;;  %v294_v47 = vld [vmem:[#allocation5 + $0x10] sm:$0x1] }
  0x44   : > { %802 = vmatmul.mubr.bf16.gmra.mxu0 %v9101_v55  ;;  %v326_v48 = vld [vmem:[#allocation5 + $0x14] sm:$0x1]  ;;  %v295_v49 = vsel %vm9769_vm9, 0, %v294_v47  ;;  %v297_v51 = vld [vmem:[#allocation5 + $0x18] sm:$0x1]  ;;  %vm9887_vm1 = vmand %vm279_vm6, %vm318_vm8  ;;  %s9378_s6 = scalar_lea.vmem %s9377_s30, 2048 }
  0x45   : > { %809 = vmatprep.mubr.bf16.mxu0 %v9102_v56  ;;  %v327_v50 = vsel %vm9777_vm10, 0, %v326_v48  ;;  %296 = vst [vmem:[#allocation5 + $0x10] sm:$0x1] %v295_v49  ;;  %v329_v52 = vld [vmem:[#allocation5 + $0x1c] sm:$0x1]  ;;  %v298_v53 = vsel %vm9769_vm9, 0, %v297_v51  ;;  %vm9896_vm2 = vmor %vm1547_vm15, %vm1548_vm0 }
  0x46   : > { %v320_v32 = vld [vmem:[#allocation5 + $0x4] sm:$0x1]  ;;  %328 = vst [vmem:[#allocation5 + $0x14] sm:$0x1] %v327_v50  ;;  %v330_v54 = vsel %vm9777_vm10, 0, %v329_v52 }
  0x47   : > { %v979_v13 = vld [vmem:[#allocation3] ss:$2 sm:$0xff]  ;;  %v321_v33 = vsel %vm9777_vm10, 0, %v320_v32  ;;  %299 = vst [vmem:[#allocation5 + $0x18] sm:$0x1] %v298_v53 }
  0x48   : > { %v1046_v15 = vmax.f32 %v979_v13, %v1013_v14  ;;  %v288_v23 = vld [vmem:[#allocation5] sm:$0x1]  ;;  %322 = vst [vmem:[#allocation5 + $0x4] sm:$0x1] %v321_v33  ;;  %331 = vst [vmem:[#allocation5 + $0x1c] sm:$0x1] %v330_v54 }
  0x49   : > { %v289_v26 = vsel %vm9769_vm9, 0, %v288_v23  ;;  %351 = vst.msk [vmem:[#allocation6 + $0x10] sm:$0xf] %vm350_vm14, %v9434_v5  ;;  %352 = vst.msk [vmem:[#allocation6 + $0x24] sm:$0xf] %vm350_vm14, %v9434_v5 }
  0x4a   : > { %v1097_v17 = vmax.f32 %v1046_v15, %v1064_v16  ;;  %290 = vst [vmem:[#allocation5] sm:$0x1] %v289_v26  ;;  %353 = vst.msk [vmem:[#allocation6 + $0x38] sm:$0xf] %vm350_vm14, %v9434_v5  ;;  %v300_v55 = vld [vmem:[#allocation5 + $0x20] sm:$0x1] }
  0x4b   : > { %354 = vst.msk [vmem:[#allocation6 + $0x4c] sm:$0xf] %vm350_vm14, %v9434_v5  ;;  %355 = vst.msk [vmem:[#allocation6 + $0x60] sm:$0xf] %vm350_vm14, %v9434_v5  ;;  %v332_v56 = vld [vmem:[#allocation5 + $0x24] sm:$0x1] }
  0x4c   : > { %810 = vmatmul.mubr.bf16.gmra.mxu0 %v9104_v57  ;;  %1114 = vst.msk [vmem:[#allocation4] sm:$0xff] %vm257_vm4, %v1097_v17  ;;  %v301_v57 = vsel %vm9769_vm9, 0, %v300_v55  ;;  %v341_v28 = vld [vmem:[#allocation5 + $0x3c] sm:$0x1] }
  0x4d   : > { %817 = vmatprep.mubr.bf16.mxu0 %v9105_v58  ;;  %356 = vst.msk [vmem:[#allocation6 + $0x74] sm:$0xf] %vm350_vm14, %v9434_v5  ;;  %357 = vst.msk [vmem:[#allocation6 + $0x88] sm:$0xf] %vm350_vm14, %v9434_v5  ;;  %v333_v58 = vsel %vm9777_vm10, 0, %v332_v56 }
  0x4e   : > { %358 = vst.msk [vmem:[#allocation6 + $0x9c] sm:$0xf] %vm350_vm14, %v9434_v5  ;;  %302 = vst [vmem:[#allocation5 + $0x20] sm:$0x1] %v301_v57  ;;  %v306_v5 = vld [vmem:[#allocation5 + $0x30] sm:$0x1] }
  0x4f   : > { %v1353_v40 = vld [vmem:[#allocation5 + $0x4] sm:$0x1]  ;;  %334 = vst [vmem:[#allocation5 + $0x24] sm:$0x1] %v333_v58 }
  0x50   : > { %v1381_v42 = vshll.u32 %v1353_v40, 16 }
  0x51   : > { %v1352_v34 = vld [vmem:[#allocation5] sm:$0xf] }
  0x52   : > { %v1372_v36 = vshrl.u32 %v1352_v34, 16  ;;  %v1375_v37 = vshll.u32 %v1352_v34, 16  ;;  %v1383_v44 = vrot.slane %v1381_v42, 5 }
  0x54   : > { %818 = vmatmul.mubr.bf16.gmra.mxu0 %v9107_v59  ;;  %v1374_v38 = vrot.slane %v1372_v36, 4  ;;  %v1377_v39 = vrot.slane %v1375_v37, 5  ;;  %v303_v59 = vld [vmem:[#allocation5 + $0x28] sm:$0x1] }
  0x55   : > { %825 = vmatprep.mubr.bf16.mxu0 %v9108_v60  ;;  %v335_v60 = vld [vmem:[#allocation5 + $0x2c] sm:$0x1] }
  0x56   : > { %v1378_v41 = vor.u32 %v1377_v39, %v1374_v38 }
  0x58   : > { %v1379_v43 = vrot.slane %v1378_v41, 4 }
  0x5a   : > { %v1384_v46 = vsel %vm9787_vm13, %v1379_v43, %v1383_v44 }
  0x5b   : > { %1483 = vrot.lane.b32.xlu0 %v1384_v46, %s9436_s10 }
  0x5c   : > { %826 = vmatmul.mubr.bf16.gmra.mxu0 %v9110_v61  ;;  %v304_v61 = vsel %vm9769_vm9, 0, %v303_v59 }
  0x5d   : > { %833 = vmatprep.mubr.bf16.mxu0 %v9111_v62  ;;  %v336_v62 = vsel %vm9777_vm10, 0, %v335_v60  ;;  %305 = vst [vmem:[#allocation5 + $0x28] sm:$0x1] %v304_v61  ;;  %v312_v61 = vld [vmem:[#allocation5 + $0x40] sm:$0x1] }
  0x5e   : > { %337 = vst [vmem:[#allocation5 + $0x2c] sm:$0x1] %v336_v62 }
  0x64   : > { %834 = vmatmul.mubr.bf16.gmra.mxu0 %v9113_v63  ;;  %v338_v63 = vld [vmem:[#allocation5 + $0x34] sm:$0x1] }
  0x65   : > { %841 = vmatprep.mubr.bf16.mxu0 %v9114_v0  ;;  %v307_v0 = vsel %vm9769_vm9, 0, %v306_v5  ;;  %v313_v5 = vsel %vm9769_vm9, 0, %v312_v61 }
  0x66   : > { %308 = vst [vmem:[#allocation5 + $0x30] sm:$0x1] %v307_v0  ;;  %314 = vst [vmem:[#allocation5 + $0x40] sm:$0x1] %v313_v5 }
  0x6c   : > { %842 = vmatmul.mubr.bf16.gmra.mxu0 %v9116_v1  ;;  %v339_v1 = vsel %vm9777_vm10, 0, %v338_v63 }
  0x6d   : > { %849 = vmatprep.mubr.bf16.mxu0 %v9117_v2  ;;  %340 = vst [vmem:[#allocation5 + $0x34] sm:$0x1] %v339_v1  ;;  %v1131_v1 = vld [vmem:[#allocation4] sm:$0xff] }
  0x74   : > { %850 = vmatmul.mubr.bf16.gmra.mxu0 %v9119_v3  ;;  %v9833_v3 = vld [vmem:[%s12264_s2] ss:$0 sm:$0xff] }
  0x75   : > { %857 = vmatprep.mubr.bf16.mxu0 %v9120_v4 }
  0x7c   : > { %858 = vmatmul.mubr.bf16.gmra.mxu0 %v9122_v6 }
  0x7d   : > { %865 = vmatprep.mubr.bf16.mxu0 %v9123_v7 }
  0x84   : > { %866 = vmatmul.mubr.bf16.gmra.mxu0 %v9125_v8 }
  0x85   : > { %873 = vmatprep.mubr.bf16.mxu0 %v9126_v10 }
  0x8c   : > { %874 = vmatmul.mubr.bf16.gmra.mxu0 %v9128_v11 }
  0x8d   : > { %881 = vmatprep.mubr.bf16.mxu0 %v9129_v12 }
  0x94   : > { %882 = vmatmul.mubr.bf16.gmra.mxu0 %v9131_v18  ;;  %v309_v18 = vld [vmem:[#allocation5 + $0x38] sm:$0x1] }
  0x95   : > { %889 = vmatprep.mubr.bf16.mxu0 %v9132_v19 }
  0x9c   : > { %890 = vmatmul.mubr.bf16.gmra.mxu0 %v9134_v20  ;;  %v310_v20 = vsel %vm9769_vm9, 0, %v309_v18 }
  0x9d   : > { %897 = vmatprep.mubr.bf16.mxu0 %v9135_v21  ;;  %311 = vst [vmem:[#allocation5 + $0x38] sm:$0x1] %v310_v20 }
  0xa4   : > { %898 = vmatmul.mubr.bf16.gmra.mxu0 %v9137_v25 }
  0xa5   : > { %905 = vmatprep.mubr.bf16.mxu0 %v9138_v30  ;;  %v342_v30 = vsel %vm9777_vm10, 0, %v341_v28 }
  0xa6   : > { %343 = vst [vmem:[#allocation5 + $0x3c] sm:$0x1] %v342_v30 }
  0xac   : > { %906 = vmatmul.mubr.bf16.gmra.mxu0 %v9140_v35 }
  0xf4   : > { %v8473_v2 = vpop.f32.mrf.mxu0 }
  0xf6   : > { %v8474_v4 = vpop.f32.mrf.mxu0 }
  0xf7   : > { %v8475_v6 = vadd.f32 %v8474_v4, %v8473_v2  ;;  %v344_v2 = vld [vmem:[#allocation5 + $0x44] sm:$0x1] }
  0xf8   : > { %v8476_v7 = vpop.f32.mrf.mxu0 }
  0xf9   : > { %v788_v8 = vadd.f32 %v8475_v6, %v9833_v3 }
  0xfa   : > { %v8477_v9 = vpop.f32.mrf.mxu0 }
  0xfb   : > { %v914_v10 = vmax.f32 %v788_v8, 0.0  ;;  %v8478_v11 = vadd.f32 %v8477_v9, %v8476_v7 }
  0xfc   : > { %v8479_v12 = vpop.f32.mrf.mxu0 }
  0xfd   : > { %947 = vst.msk [vmem:[#allocation3 + $0x19] sm:$0xff] %vm257_vm4, %v914_v10  ;;  %v791_v13 = vadd.f32 %v8478_v11, %v9833_v3  ;;  %v345_v11 = vsel %vm9777_vm10, 0, %v344_v2 }
  0xfe   : > { %v8480_v14 = vpop.f32.mrf.mxu0  ;;  %346 = vst [vmem:[#allocation5 + $0x44] sm:$0x1] %v345_v11 }
  0xff   : > { %v915_v15 = vmax.f32 %v791_v13, 0.0  ;;  %v8481_v16 = vadd.f32 %v8480_v14, %v8479_v12 }
 0x100   : > { %v8482_v17 = vpop.f32.mrf.mxu0 }
 0x101   : > { %948 = vst.msk [vmem:[#allocation3 + $0x21] sm:$0xff] %vm257_vm4, %v915_v15  ;;  %v796_v19 = vadd.f32 %v8481_v16, %v9833_v3 }
 0x102   : > { %v8483_v21 = vpop.f32.mrf.mxu0 }
 0x103   : > { %v916_v23 = vmax.f32 %v796_v19, 0.0  ;;  %v8484_v24 = vadd.f32 %v8483_v21, %v8482_v17 }
 0x104   : > { %v8485_v25 = vpop.f32.mrf.mxu0 }
 0x105   : > { %949 = vst.msk [vmem:[#allocation3 + $0x31] sm:$0xff] %vm257_vm4, %v916_v23  ;;  %v799_v26 = vadd.f32 %v8484_v24, %v9833_v3  ;;  %v9141_v23 = vld [vmem:[%s12265_s3 + $0x78] sm:$0xff]  }
 0x106   : > { %v8486_v29 = vpop.f32.mrf.mxu0  ;;  %v9142_v24 = vld [vmem:[%s12265_s3 + $0x38] sm:$0xff]   ;;  %8569 = vmatprep.subr.bf16.mxu1 %v9141_v23  ;;  %v9147_v23 = vld [vmem:[%s12265_s3 + $0x60] sm:$0xff]  }
 0x107   : > { %v917_v31 = vmax.f32 %v799_v26, 0.0  ;;  %v8487_v32 = vadd.f32 %v8486_v29, %v8485_v25  ;;  %8570 = vmatpush3.bf16.msra.mxu1 %v9142_v24 }
 0x108   : > { %v981_v33 = vld [vmem:[#allocation3 + $0x18] ss:$2 sm:$0xff]  ;;  %v1015_v34 = vld [vmem:[#allocation3 + $0x19] ss:$2 sm:$0xff]  ;;  %v8488_v35 = vpop.f32.mrf.mxu0 }
 0x109   : > { %v1047_v36 = vmax.f32 %v981_v33, %v1015_v34  ;;  %950 = vst.msk [vmem:[#allocation3 + $0x39] sm:$0xff] %vm257_vm4, %v917_v31  ;;  %v804_v37 = vadd.f32 %v8487_v32, %v9833_v3  ;;  %v1066_v38 = vld [vmem:[#allocation3 + $0x1a] ss:$2 sm:$0xff] }
 0x10a   : > { %v8489_v39 = vpop.f32.mrf.mxu0 }
 0x10b   : > { %v1098_v40 = vmax.f32 %v1047_v36, %v1066_v38  ;;  %v918_v41 = vmax.f32 %v804_v37, 0.0  ;;  %v8490_v42 = vadd.f32 %v8489_v39, %v8488_v35  ;;  %v9143_v37 = vld [vmem:[%s12265_s3 + $0x70] sm:$0xff]   ;;  %v1336_v38 = vld [vmem:[#allocation5] sm:$0xf] }
 0x10c   : > { %v8491_v43 = vpop.f32.mrf.mxu0  ;;  %1344 = vst.msk [vmem:[#allocation6] sm:$0xf] %vm279_vm6, %v1336_v38  ;;  %8571 = vmatprep.subr.bf16.mxu1 %v9143_v37 }
 0x10d   : > { %1115 = vst.msk [vmem:[#allocation4 + $0x8] sm:$0xff] %vm257_vm4, %v1098_v40  ;;  %951 = vst.msk [vmem:[#allocation3 + $0x49] sm:$0xff] %vm257_vm4, %v918_v41  ;;  %v807_v44 = vadd.f32 %v8490_v42, %v9833_v3  ;;  %v1484_v41 = vpop.permute.xlu0 %1483  ;;  %v1515_v42 = vld [vmem:[#allocation5] sm:$0xe] }
 0x10e   : > { %v8492_v46 = vpop.f32.mrf.mxu0  ;;  %1507 = vst.msk [vmem:[#allocation6] sm:$0xf] %vm350_vm14, %v1484_v41 }
 0x10f   : > { %v919_v47 = vmax.f32 %v807_v44, 0.0  ;;  %v8493_v48 = vadd.f32 %v8492_v46, %v8491_v43  ;;  %v1516_v43 = vld [vmem:[#allocation5 + $0x4] sm:$0x1] }
 0x110   : > { %v983_v49 = vld [vmem:[#allocation3 + $0x30] ss:$2 sm:$0xff]  ;;  %v1017_v50 = vld [vmem:[#allocation3 + $0x31] ss:$2 sm:$0xff]  ;;  %v8494_v51 = vpop.f32.mrf.mxu0 }
 0x111   : > { %v1048_v52 = vmax.f32 %v983_v49, %v1017_v50  ;;  %952 = vst.msk [vmem:[#allocation3 + $0x51] sm:$0xff] %vm257_vm4, %v919_v47  ;;  %v812_v53 = vadd.f32 %v8493_v48, %v9833_v3  ;;  %v1068_v54 = vld [vmem:[#allocation3 + $0x32] ss:$2 sm:$0xff] }
 0x112   : > { %v8495_v55 = vpop.f32.mrf.mxu0 }
 0x113   : > { %v1099_v56 = vmax.f32 %v1048_v52, %v1068_v54  ;;  %v920_v57 = vmax.f32 %v812_v53, 0.0  ;;  %v8496_v58 = vadd.f32 %v8495_v55, %v8494_v51  ;;  %v1288_v51 = vld [vmem:[#allocation5 + $0x8] sm:$0xf]  ;;  %v1291_v52 = vld [vmem:[#allocation5 + $0xc] sm:$0x1]  ;;  %v7814_v53 = vrot.slane %v1515_v42, 9 }
 0x114   : > { %v8497_v59 = vpop.f32.mrf.mxu0  ;;  %v1140_v8 = vld [vmem:[#allocation4 + $0x8] sm:$0xff]  ;;  %v1552_v54 = vrot.slane %v1516_v43, 5 }
 0x115   : > { %1116 = vst.msk [vmem:[#allocation4 + $0x10] sm:$0xff] %vm257_vm4, %v1099_v56  ;;  %953 = vst.msk [vmem:[#allocation3 + $0x61] sm:$0xff] %vm257_vm4, %v920_v57  ;;  %v815_v60 = vadd.f32 %v8496_v58, %v9833_v3  ;;  %v1148_v17 = vmax.f32 %v1131_v1, %v1140_v8 }
 0x116   : > { %v8498_v62 = vpop.f32.mrf.mxu0  ;;  %v1553_v61 = vsel %vm9896_vm2, %v7814_v53, %v1552_v54  ;;  %v9150_v53 = vld [vmem:[%s12265_s3 + $0x18] sm:$0xff]  }
 0x117   : > { %v921_v63 = vmax.f32 %v815_v60, 0.0  ;;  %v8499_v0 = vadd.f32 %v8498_v62, %v8497_v59  ;;  %v347_v59 = vld [vmem:[#allocation5 + $0x4c] sm:$0x1]  ;;  %1590 = vst.msk [vmem:[#allocation6 + $0x4] sm:$0xf] %vm279_vm6, %v1553_v61 }
 0x118   : > { %v985_v4 = vld [vmem:[#allocation3 + $0x48] ss:$2 sm:$0xff]  ;;  %v1019_v6 = vld [vmem:[#allocation3 + $0x49] ss:$2 sm:$0xff]  ;;  %v8500_v7 = vpop.f32.mrf.mxu0  ;;  %v348_v62 = vsel %vm9777_vm10, 0, %v347_v59 }
 0x119   : > { %v1049_v9 = vmax.f32 %v985_v4, %v1019_v6  ;;  %954 = vst.msk [vmem:[#allocation3 + $0x69] sm:$0xff] %vm257_vm4, %v921_v63  ;;  %v820_v10 = vadd.f32 %v8499_v0, %v9833_v3  ;;  %v1070_v12 = vld [vmem:[#allocation3 + $0x4a] ss:$2 sm:$0xff]  ;;  %349 = vst [vmem:[#allocation5 + $0x4c] sm:$0x1] %v348_v62 }
 0x11a   : > { %v8501_v13 = vpop.f32.mrf.mxu0  ;;  %v1297_v62 = vld [vmem:[#allocation5 + $0x14] sm:$0x1] }
 0x11b   : > { %v1100_v14 = vmax.f32 %v1049_v9, %v1070_v12  ;;  %v922_v15 = vmax.f32 %v820_v10, 0.0  ;;  %v8502_v16 = vadd.f32 %v8501_v13, %v8500_v7  ;;  %v9144_v9 = vld [vmem:[%s12265_s3 + $0x30] sm:$0xff]  }
 0x11c   : > { %v8503_v18 = vpop.f32.mrf.mxu0  ;;  %v9862_v19 = vld [vmem:[#allocation4 + $0x10] sm:$0xff]  ;;  %8572 = vmatpush3.bf16.msra.mxu1 %v9144_v9 }
 0x11d   : > { %1117 = vst.msk [vmem:[#allocation4 + $0x18] sm:$0xff] %vm257_vm4, %v1100_v14  ;;  %955 = vst.msk [vmem:[#allocation3 + $0x79] sm:$0xff] %vm257_vm4, %v922_v15  ;;  %v823_v20 = vadd.f32 %v8502_v16, %v9833_v3  ;;  %v9868_v21 = vmax.f32 %v1148_v17, %v9862_v19  ;;  %v9145_v16 = vld [vmem:[%s12265_s3 + $0x68] sm:$0xff]  }
 0x11e   : > { %v8504_v25 = vpop.f32.mrf.mxu0  ;;  %v9146_v17 = vld [vmem:[%s12265_s3 + $0x28] sm:$0xff]   ;;  %8573 = vmatprep.subr.bf16.mxu1 %v9145_v16 }
 0x11f   : > { %v923_v26 = vmax.f32 %v823_v20, 0.0  ;;  %v8505_v28 = vadd.f32 %v8504_v25, %v8503_v18  ;;  %v8424_v29 = vpack.c.bf16 %v9868_v21, %v9868_v21 }
 0x120   : > { %v987_v30 = vld [vmem:[#allocation3 + $0x60] ss:$2 sm:$0xff]  ;;  %v1021_v31 = vld [vmem:[#allocation3 + $0x61] ss:$2 sm:$0xff]  ;;  %v8506_v32 = vpop.f32.mrf.mxu0  ;;  %8574 = vmatpush3.bf16.msra.mxu1 %v9146_v17 }
 0x121   : > { %v1050_v33 = vmax.f32 %v987_v30, %v1021_v31  ;;  %v1072_v34 = vld [vmem:[#allocation3 + $0x62] ss:$2 sm:$0xff]  ;;  %956 = vst.msk [vmem:[#allocation3 + $0x81] sm:$0xff] %vm257_vm4, %v923_v26  ;;  %v828_v35 = vadd.f32 %v8505_v28, %v9833_v3  ;;  %v1206_v36 = vshrl.u32 %v8424_v29, 16  ;;  %v1209_v40 = vshll.u32 %v8424_v29, 16  ;;  %8575 = vmatprep.subr.bf16.mxu1 %v9147_v23 }
 0x122   : > { %v8507_v39 = vpop.f32.mrf.mxu0 }
 0x123   : > { %v1101_v44 = vmax.f32 %v1050_v33, %v1072_v34  ;;  %v924_v46 = vmax.f32 %v828_v35, 0.0  ;;  %v8508_v47 = vadd.f32 %v8507_v39, %v8506_v32  ;;  %v1208_v48 = vrot.slane %v1206_v36, 7  ;;  %v9148_v32 = vld [vmem:[%s12265_s3 + $0x20] sm:$0xff]   ;;  %v9149_v36 = vld [vmem:[%s12265_s3 + $0x58] sm:$0xff]  }
 0x124   : > { %v8509_v49 = vpop.f32.mrf.mxu0  ;;  %v1141_v7 = vld [vmem:[#allocation4 + $0x18] sm:$0xff]  ;;  %8576 = vmatpush3.bf16.msra.mxu1 %v9148_v32 }
 0x125   : > { %1118 = vst.msk [vmem:[#allocation4 + $0x20] sm:$0xff] %vm257_vm4, %v1101_v44  ;;  %957 = vst.msk [vmem:[#allocation3 + $0x91] sm:$0xff] %vm257_vm4, %v924_v46  ;;  %v831_v55 = vadd.f32 %v8508_v47, %v9833_v3  ;;  %v1211_v56 = vor.u32 %v1209_v40, %v1208_v48  ;;  %v1212_v57 = vrot.slane %v1208_v48, 4  ;;  %v1149_v15 = vmax.f32 %v9862_v19, %v1141_v7 }
 0x126   : > { %v8510_v60 = vpop.f32.mrf.mxu0  ;;  %8577 = vmatprep.subr.bf16.mxu1 %v9149_v36  ;;  %v9153_v36 = vld [vmem:[%s12265_s3 + $0x48] sm:$0xff]  }
 0x127   : > { %v925_v5 = vmax.f32 %v831_v55, 0.0  ;;  %v8511_v63 = vadd.f32 %v8510_v60, %v8509_v49  ;;  %v1289_v0 = vsel %vm9887_vm1, %v1211_v56, %v1288_v51  ;;  %v1292_v1 = vsel %vm9769_vm9, %v1212_v57, %v1291_v52  ;;  %v1294_v51 = vld [vmem:[#allocation5 + $0x10] sm:$0xf] }
 0x128   : > { %v989_v2 = vld [vmem:[#allocation3 + $0x78] ss:$2 sm:$0xff]  ;;  %v1023_v4 = vld [vmem:[#allocation3 + $0x79] ss:$2 sm:$0xff]  ;;  %v8512_v6 = vpop.f32.mrf.mxu0  ;;  %1290 = vst [vmem:[#allocation5 + $0x8] sm:$0xf] %v1289_v0  ;;  %8578 = vmatpush3.bf16.msra.mxu1 %v9150_v53 }
 0x129   : > { %1293 = vst [vmem:[#allocation5 + $0xc] sm:$0x1] %v1292_v1  ;;  %v1051_v8 = vmax.f32 %v989_v2, %v1023_v4  ;;  %958 = vst.msk [vmem:[#allocation3 + $0x99] sm:$0xff] %vm257_vm4, %v925_v5  ;;  %v836_v27 = vadd.f32 %v8511_v63, %v9833_v3  ;;  %v1074_v10 = vld [vmem:[#allocation3 + $0x7a] ss:$2 sm:$0xff]  ;;  %v9151_v60 = vld [vmem:[%s12265_s3 + $0x50] sm:$0xff]  }
 0x12a   : > { %v8513_v11 = vpop.f32.mrf.mxu0  ;;  %8579 = vmatprep.subr.bf16.mxu1 %v9151_v60 }
 0x12b   : > { %v1102_v12 = vmax.f32 %v1051_v8, %v1074_v10  ;;  %v926_v13 = vmax.f32 %v836_v27, 0.0  ;;  %v8514_v14 = vadd.f32 %v8513_v11, %v8512_v6  ;;  %v315_v10 = vld [vmem:[#allocation5 + $0x48] sm:$0x1] }
 0x12c   : > { %v8515_v18 = vpop.f32.mrf.mxu0  ;;  %v9921_v20 = vld [vmem:[#allocation4 + $0x20] sm:$0xff] }
 0x12d   : > { %1119 = vst.msk [vmem:[#allocation4 + $0x28] sm:$0xff] %vm257_vm4, %v1102_v12  ;;  %959 = vst.msk [vmem:[#allocation3 + $0xa9] sm:$0xff] %vm257_vm4, %v926_v13  ;;  %v839_v19 = vadd.f32 %v8514_v14, %v9833_v3  ;;  %v9930_v24 = vmax.f32 %v1149_v15, %v9921_v20 }
 0x12e   : > { %v8516_v25 = vpop.f32.mrf.mxu0 }
 0x12f   : > { %v927_v26 = vmax.f32 %v839_v19, 0.0  ;;  %v8517_v28 = vadd.f32 %v8516_v25, %v8515_v18  ;;  %v1598_v29 = vld [vmem:[#allocation5 + $0x8] sm:$0xf]  ;;  %v8425_v31 = vpack.c.bf16 %v9930_v24, %v9930_v24 }
 0x130   : > { %v1354_v30 = vld [vmem:[#allocation5 + $0x8] sm:$0xf]  ;;  %v991_v33 = vld [vmem:[#allocation3 + $0x90] ss:$2 sm:$0xff]  ;;  %v1025_v34 = vld [vmem:[#allocation3 + $0x91] ss:$2 sm:$0xff]  ;;  %v8518_v35 = vpop.f32.mrf.mxu0  ;;  %1614 = vrot.lane.b32.xlu1 %v1598_v29, %s9436_s10 }
 0x131   : > { %v1052_v37 = vmax.f32 %v991_v33, %v1025_v34  ;;  %960 = vst.msk [vmem:[#allocation3 + $0xb1] sm:$0xff] %vm257_vm4, %v927_v26  ;;  %v844_v38 = vadd.f32 %v8517_v28, %v9833_v3  ;;  %v1355_v39 = vld [vmem:[#allocation5 + $0xc] sm:$0x1]  ;;  %v1386_v40 = vshrl.u32 %v1354_v30, 16  ;;  %v1389_v41 = vshll.u32 %v1354_v30, 16  ;;  %v9152_v34 = vld [vmem:[%s12265_s3 + $0x10] sm:$0xff]  }
 0x132   : > { %v1076_v42 = vld [vmem:[#allocation3 + $0x92] ss:$2 sm:$0xff]  ;;  %v8519_v43 = vpop.f32.mrf.mxu0  ;;  %v1214_v44 = vshrl.u32 %v8425_v31, 16  ;;  %v1337_v52 = vld [vmem:[#allocation5 + $0x8] sm:$0xf]  ;;  %v1395_v56 = vshll.u32 %v1355_v39, 16  ;;  %8580 = vmatpush3.bf16.msra.mxu1 %v9152_v34 }
 0x133   : > { %v1103_v46 = vmax.f32 %v1052_v37, %v1076_v42  ;;  %v928_v47 = vmax.f32 %v844_v38, 0.0  ;;  %v8520_v48 = vadd.f32 %v8519_v43, %v8518_v35  ;;  %v1388_v49 = vrot.slane %v1386_v40, 4  ;;  %1345 = vst.msk [vmem:[#allocation6 + $0x14] sm:$0xf] %vm279_vm6, %v1337_v52  ;;  %v1518_v5 = vld [vmem:[#allocation5 + $0xc] sm:$0x1]  ;;  %8581 = vmatprep.subr.bf16.mxu1 %v9153_v36 }
 0x134   : > { %v8521_v54 = vpop.f32.mrf.mxu0  ;;  %v1391_v55 = vrot.slane %v1389_v41, 5  ;;  %v1216_v57 = vrot.slane %v1214_v44, 7  ;;  %v1217_v59 = vshll.u32 %v8425_v31, 16  ;;  %v1517_v63 = vld [vmem:[#allocation5 + $0x8] sm:$0xe]  ;;  %v1142_v8 = vld [vmem:[#allocation4 + $0x28] sm:$0xff] }
 0x135   : > { %1120 = vst.msk [vmem:[#allocation4 + $0x30] sm:$0xff] %vm257_vm4, %v1103_v46  ;;  %961 = vst.msk [vmem:[#allocation3 + $0xc1] sm:$0xff] %vm257_vm4, %v928_v47  ;;  %v847_v61 = vadd.f32 %v8520_v48, %v9833_v3  ;;  %v1556_v27 = vrot.slane %v1518_v5, 5  ;;  %v7815_v9 = vrot.slane %v1517_v63, 9  ;;  %v1397_v14 = vrot.slane %v1395_v56, 5  ;;  %v9154_v39 = vld [vmem:[%s12265_s3 + $0x8] sm:$0xff]  }
 0x136   : > { %v8522_v0 = vpop.f32.mrf.mxu0  ;;  %v1392_v1 = vor.u32 %v1391_v55, %v1388_v49  ;;  %v1219_v2 = vor.u32 %v1217_v59, %v1216_v57  ;;  %v1220_v4 = vrot.slane %v1216_v57, 4  ;;  %v1150_v28 = vmax.f32 %v9921_v20, %v1142_v8  ;;  %v1646_v40 = vld [vmem:[#allocation5 + $0x8] sm:$0xf]  ;;  %v9155_v42 = vld [vmem:[%s12265_s3 + $0x40] sm:$0xff]   ;;  %8582 = vmatpush3.bf16.msra.mxu1 %v9154_v39 }
 0x137   : > { %v929_v6 = vmax.f32 %v847_v61, 0.0  ;;  %v8523_v7 = vadd.f32 %v8522_v0, %v8521_v54  ;;  %v1557_v19 = vsel %vm9896_vm2, %v7815_v9, %v1556_v27  ;;  %v316_v29 = vsel %vm9769_vm9, 0, %v315_v10  ;;  %8583 = vmatprep.subr.bf16.mxu1 %v9155_v42  ;;  %v1300_v9 = vld [vmem:[#allocation5 + $0x18] sm:$0xf] }
 0x138   : > { %v993_v11 = vld [vmem:[#allocation3 + $0xa8] ss:$2 sm:$0xff]  ;;  %v1027_v12 = vld [vmem:[#allocation3 + $0xa9] ss:$2 sm:$0xff]  ;;  %v8524_v13 = vpop.f32.mrf.mxu0  ;;  %v1295_v15 = vsel %vm9887_vm1, %v1219_v2, %v1294_v51  ;;  %v1298_v16 = vsel %vm9769_vm9, %v1220_v4, %v1297_v62  ;;  %v1393_v23 = vrot.slane %v1392_v1, 4  ;;  %v9156_v51 = vld [vmem:[%s12265_s3] sm:$0xff]  }
 0x139   : > { %v1053_v17 = vmax.f32 %v993_v11, %v1027_v12  ;;  %962 = vst.msk [vmem:[#allocation3 + $0xc9] sm:$0xff] %vm257_vm4, %v929_v6  ;;  %v852_v18 = vadd.f32 %v8523_v7, %v9833_v3  ;;  %1296 = vst [vmem:[#allocation5 + $0x10] sm:$0xf] %v1295_v15  ;;  %v1078_v25 = vld [vmem:[#allocation3 + $0xaa] ss:$2 sm:$0xff]  ;;  %v1663_v52 = vshrl.u32 %v1646_v40, 16 }
 0x13a   : > { %1299 = vst [vmem:[#allocation5 + $0x14] sm:$0x1] %v1298_v16  ;;  %v8525_v26 = vpop.f32.mrf.mxu0  ;;  %1591 = vst.msk [vmem:[#allocation6 + $0x18] sm:$0xf] %vm279_vm6, %v1557_v19  ;;  %v1398_v32 = vsel %vm9787_vm13, %v1393_v23, %v1397_v14  ;;  %v1666_v63 = vshll.u32 %v1646_v40, 16  ;;  %8584 = vmatpush3.bf16.msra.mxu1 %v9156_v51 }
 0x13b   : > { %v1104_v30 = vmax.f32 %v1053_v17, %v1078_v25  ;;  %v930_v31 = vmax.f32 %v852_v18, 0.0  ;;  %v8526_v33 = vadd.f32 %v8525_v26, %v8524_v13  ;;  %317 = vst [vmem:[#allocation5 + $0x48] sm:$0x1] %v316_v29  ;;  %1485 = vrot.lane.b32.xlu0 %v1398_v32, %s9436_s10  ;;  %v1303_v12 = vld [vmem:[#allocation5 + $0x1c] sm:$0x1]  ;;  %v1665_v14 = vrot.slane %v1663_v52, 4 }
 0x13c   : > { %v8527_v35 = vpop.f32.mrf.mxu0  ;;  %v9971_v20 = vld [vmem:[#allocation4 + $0x30] sm:$0xff]  ;;  %v1668_v23 = vrot.slane %v1666_v63, 5 }
 0x13d   : > { %1121 = vst.msk [vmem:[#allocation4 + $0x38] sm:$0xff] %vm257_vm4, %v1104_v30  ;;  %963 = vst.msk [vmem:[#allocation3 + $0xd9] sm:$0xff] %vm257_vm4, %v930_v31  ;;  %v855_v37 = vadd.f32 %v8526_v33, %v9833_v3  ;;  %v9980_v38 = vmax.f32 %v1150_v28, %v9971_v20  ;;  %v1647_v28 = vld [vmem:[#allocation5 + $0xc] sm:$0x1] }
 0x13e   : > { %v8528_v41 = vpop.f32.mrf.mxu0 }
 0x13f   : > { %v931_v43 = vmax.f32 %v855_v37, 0.0  ;;  %v8529_v44 = vadd.f32 %v8528_v41, %v8527_v35  ;;  %v8426_v46 = vpack.c.bf16 %v9980_v38, %v9980_v38 }
 0x140   : > { %v995_v47 = vld [vmem:[#allocation3 + $0xc0] ss:$2 sm:$0xff]  ;;  %v1029_v48 = vld [vmem:[#allocation3 + $0xc1] ss:$2 sm:$0xff]  ;;  %v8530_v49 = vpop.f32.mrf.mxu0  ;;  %v1599_v56 = vld [vmem:[#allocation5 + $0x10] sm:$0xf] }
 0x141   : > { %v1054_v53 = vmax.f32 %v995_v47, %v1029_v48  ;;  %v1080_v54 = vld [vmem:[#allocation3 + $0xc2] ss:$2 sm:$0xff]  ;;  %964 = vst.msk [vmem:[#allocation3 + $0xe1] sm:$0xff] %vm257_vm4, %v931_v43  ;;  %v860_v55 = vadd.f32 %v8529_v44, %v9833_v3  ;;  %1616 = vrot.lane.b32.xlu1 %v1599_v56, %s9436_s10  ;;  %v1357_v60 = vld [vmem:[#allocation5 + $0x14] sm:$0x1]  ;;  %v1222_v5 = vshrl.u32 %v8426_v46, 16  ;;  %v1669_v44 = vor.u32 %v1668_v23, %v1665_v14 }
 0x142   : > { %v1356_v57 = vld [vmem:[#allocation5 + $0x10] sm:$0xf]  ;;  %v8531_v59 = vpop.f32.mrf.mxu0  ;;  %v1225_v27 = vshll.u32 %v8426_v46, 16  ;;  %v1409_v11 = vshll.u32 %v1357_v60, 16  ;;  %v1672_v46 = vshll.u32 %v1647_v28, 16 }
 0x143   : > { %v1400_v61 = vshrl.u32 %v1356_v57, 16  ;;  %v1403_v62 = vshll.u32 %v1356_v57, 16  ;;  %v1105_v0 = vmax.f32 %v1054_v53, %v1080_v54  ;;  %v932_v1 = vmax.f32 %v860_v55, 0.0  ;;  %v1338_v13 = vld [vmem:[#allocation5 + $0x10] sm:$0xf] }
 0x144   : > { %v8532_v2 = vadd.f32 %v8531_v59, %v8530_v49  ;;  %v8533_v4 = vpop.f32.mrf.mxu0  ;;  %v1224_v8 = vrot.slane %v1222_v5, 7  ;;  %1346 = vst.msk [vmem:[#allocation6 + $0x28] sm:$0xf] %vm279_vm6, %v1338_v13  ;;  %v1143_v26 = vld [vmem:[#allocation4 + $0x38] sm:$0xff]  ;;  %v1411_v37 = vrot.slane %v1409_v11, 5  ;;  %v1670_v60 = vrot.slane %v1669_v44, 4 }
 0x145   : > { %v1402_v6 = vrot.slane %v1400_v61, 4  ;;  %v1405_v7 = vrot.slane %v1403_v62, 5  ;;  %1122 = vst.msk [vmem:[#allocation4 + $0x40] sm:$0xff] %vm257_vm4, %v1105_v0  ;;  %965 = vst.msk [vmem:[#allocation3 + $0xf1] sm:$0xff] %vm257_vm4, %v932_v1  ;;  %v1887_v39 = vld [vmem:[#allocation5 + $0x10] sm:$0xf]  ;;  %v1151_v42 = vmax.f32 %v9971_v20, %v1143_v26 }
 0x146   : > { %v863_v10 = vadd.f32 %v8532_v2, %v9833_v3  ;;  %v8534_v15 = vpop.f32.mrf.mxu0  ;;  %v1227_v17 = vor.u32 %v1225_v27, %v1224_v8  ;;  %v1228_v18 = vrot.slane %v1224_v8, 4  ;;  %v1519_v43 = vld [vmem:[#allocation5 + $0x10] sm:$0xe]  ;;  %1895 = vst.msk [vmem:[#allocation6 + $0xc] sm:$0xf] %vm279_vm6, %v1887_v39  ;;  %v1674_v61 = vrot.slane %v1672_v46, 5 }
 0x147   : > { %v1406_v16 = vor.u32 %v1405_v7, %v1402_v6  ;;  %v8535_v25 = vadd.f32 %v8534_v15, %v8533_v4  ;;  %v1520_v52 = vld [vmem:[#allocation5 + $0x14] sm:$0x1]  ;;  %v7816_v56 = vrot.slane %v1519_v43, 9 }
 0x148   : > { %v933_v19 = vmax.f32 %v863_v10, 0.0  ;;  %v997_v29 = vld [vmem:[#allocation3 + $0xd8] ss:$2 sm:$0xff]  ;;  %v1031_v30 = vld [vmem:[#allocation3 + $0xd9] ss:$2 sm:$0xff]  ;;  %v8536_v31 = vpop.f32.mrf.mxu0  ;;  %v1301_v32 = vsel %vm9887_vm1, %v1227_v17, %v1300_v9  ;;  %v1304_v33 = vsel %vm9769_vm9, %v1228_v18, %v1303_v12  ;;  %v1560_v59 = vrot.slane %v1520_v52, 5 }
 0x149   : > { %v1055_v34 = vmax.f32 %v997_v29, %v1031_v30  ;;  %v868_v35 = vadd.f32 %v8535_v25, %v9833_v3  ;;  %v1407_v36 = vrot.slane %v1406_v16, 4  ;;  %1302 = vst [vmem:[#allocation5 + $0x18] sm:$0xf] %v1301_v32  ;;  %1305 = vst [vmem:[#allocation5 + $0x1c] sm:$0x1] %v1304_v33  ;;  %v1675_v6 = vsel %vm9787_vm13, %v1670_v60, %v1674_v61 }
 0x14a   : > { %966 = vst.msk [vmem:[#allocation3 + $0xf9] sm:$0xff] %vm257_vm4, %v933_v19  ;;  %v1082_v40 = vld [vmem:[#allocation3 + $0xda] ss:$2 sm:$0xff]  ;;  %v8537_v41 = vpop.f32.mrf.mxu0  ;;  %v1561_v4 = vsel %vm9896_vm2, %v7816_v56, %v1560_v59 }
 0x14b   : > { %v1106_v47 = vmax.f32 %v1055_v34, %v1082_v40  ;;  %v934_v48 = vmax.f32 %v868_v35, 0.0  ;;  %v1412_v49 = vsel %vm9787_vm13, %v1407_v36, %v1411_v37  ;;  %v8538_v51 = vadd.f32 %v8537_v41, %v8536_v31  ;;  %1592 = vst.msk [vmem:[#allocation6 + $0x2c] sm:$0xf] %vm279_vm6, %v1561_v4  ;;  %1782 = vst.msk [vmem:[#allocation6 + $0x8] sm:$0xf] %vm279_vm6, %v1675_v6 }
 0x14c   : > { %1487 = vrot.lane.b32.xlu0 %v1412_v49, %s9436_s10  ;;  %v8539_v53 = vpop.f32.mrf.mxu0  ;;  %v10011_v54 = vld [vmem:[#allocation4 + $0x40] sm:$0xff]  ;;  %v1306_v29 = vld [vmem:[#allocation5 + $0x20] sm:$0xf]  ;;  %v1309_v32 = vld [vmem:[#allocation5 + $0x24] sm:$0x1] }
 0x14d   : > { %1123 = vst.msk [vmem:[#allocation4 + $0x48] sm:$0xff] %vm257_vm4, %v1106_v47  ;;  %967 = vst.msk [vmem:[#allocation3 + $0x109] sm:$0xff] %vm257_vm4, %v934_v48  ;;  %v871_v20 = vadd.f32 %v8538_v51, %v9833_v3  ;;  %v10017_v55 = vmax.f32 %v1151_v42, %v10011_v54 }
 0x14e   : > { %v8540_v57 = vpop.f32.mrf.mxu0 }
 0x14f   : > { %v935_v62 = vmax.f32 %v871_v20, 0.0  ;;  %v8541_v5 = vadd.f32 %v8540_v57, %v8539_v53  ;;  %v8427_v63 = vpack.c.bf16 %v10017_v55, %v10017_v55 }
 0x150   : > { %v8542_v2 = vpop.f32.mrf.mxu0  ;;  %v1600_v9 = vld [vmem:[#allocation5 + $0x18] sm:$0xf]  ;;  %v1359_v12 = vld [vmem:[#allocation5 + $0x1c] sm:$0x1] }
 0x151   : > { %v999_v0 = vld [vmem:[#allocation3 + $0xf0] ss:$2 sm:$0xff]  ;;  %v1033_v1 = vld [vmem:[#allocation3 + $0xf1] ss:$2 sm:$0xff]  ;;  %968 = vst.msk [vmem:[#allocation3 + $0x111] sm:$0xff] %vm257_vm4, %v935_v62  ;;  %v876_v27 = vadd.f32 %v8541_v5, %v9833_v3  ;;  %1618 = vrot.lane.b32.xlu0 %v1600_v9, %s9436_s10  ;;  %v1230_v15 = vshrl.u32 %v8427_v63, 16 }
 0x152   : > { %v1056_v7 = vmax.f32 %v999_v0, %v1033_v1  ;;  %v1084_v8 = vld [vmem:[#allocation3 + $0xf2] ss:$2 sm:$0xff]  ;;  %v8543_v11 = vpop.f32.mrf.mxu0  ;;  %v1233_v28 = vshll.u32 %v8427_v63, 16  ;;  %v1423_v31 = vshll.u32 %v1359_v12, 16 }
 0x153   : > { %v1358_v10 = vld [vmem:[#allocation5 + $0x18] sm:$0xf]  ;;  %v936_v17 = vmax.f32 %v876_v27, 0.0  ;;  %v8544_v18 = vadd.f32 %v8543_v11, %v8542_v2  ;;  %v1232_v26 = vrot.slane %v1230_v15, 7  ;;  %v1522_v20 = vld [vmem:[#allocation5 + $0x1c] sm:$0x1] }
 0x154   : > { %v1414_v13 = vshrl.u32 %v1358_v10, 16  ;;  %v1417_v14 = vshll.u32 %v1358_v10, 16  ;;  %v1107_v16 = vmax.f32 %v1056_v7, %v1084_v8  ;;  %v8545_v23 = vpop.f32.mrf.mxu0  ;;  %v1339_v33 = vld [vmem:[#allocation5 + $0x18] sm:$0xf]  ;;  %v1144_v41 = vld [vmem:[#allocation4 + $0x48] sm:$0xff]  ;;  %v1425_v53 = vrot.slane %v1423_v31, 5 }
 0x155   : > { %969 = vst.msk [vmem:[#allocation3 + $0x121] sm:$0xff] %vm257_vm4, %v936_v17  ;;  %v879_v30 = vadd.f32 %v8544_v18, %v9833_v3  ;;  %v1235_v36 = vor.u32 %v1233_v28, %v1232_v26  ;;  %v1236_v37 = vrot.slane %v1232_v26, 4  ;;  %v1521_v42 = vld [vmem:[#allocation5 + $0x18] sm:$0xe]  ;;  %v1152_v60 = vmax.f32 %v10011_v54, %v1144_v41  ;;  %v1315_v41 = vld [vmem:[#allocation5 + $0x2c] sm:$0x1] }
 0x156   : > { %v1416_v19 = vrot.slane %v1414_v13, 4  ;;  %v1419_v25 = vrot.slane %v1417_v14, 5  ;;  %1124 = vst.msk [vmem:[#allocation4 + $0x50] sm:$0xff] %vm257_vm4, %v1107_v16  ;;  %v8546_v34 = vpop.f32.mrf.mxu0  ;;  %v1888_v56 = vld [vmem:[#allocation5 + $0x18] sm:$0xf]  ;;  %v7817_v61 = vrot.slane %v1521_v42, 9 }
 0x157   : > { %1347 = vst.msk [vmem:[#allocation6 + $0x3c] sm:$0xf] %vm279_vm6, %v1339_v33  ;;  %v937_v39 = vmax.f32 %v879_v30, 0.0  ;;  %v8547_v40 = vadd.f32 %v8546_v34, %v8545_v23  ;;  %v1307_v47 = vsel %vm9887_vm1, %v1235_v36, %v1306_v29  ;;  %v1310_v48 = vsel %vm9769_vm9, %v1236_v37, %v1309_v32  ;;  %1896 = vst.msk [vmem:[#allocation6 + $0x20] sm:$0xf] %vm279_vm6, %v1888_v56 }
 0x158   : > { %v1420_v35 = vor.u32 %v1419_v25, %v1416_v19  ;;  %v1001_v43 = vld [vmem:[#allocation3 + $0x108] ss:$2 sm:$0xff]  ;;  %v1035_v44 = vld [vmem:[#allocation3 + $0x109] ss:$2 sm:$0xff]  ;;  %v8548_v46 = vpop.f32.mrf.mxu0  ;;  %1308 = vst [vmem:[#allocation5 + $0x20] sm:$0xf] %v1307_v47 }
 0x159   : > { %v1057_v49 = vmax.f32 %v1001_v43, %v1035_v44  ;;  %970 = vst.msk [vmem:[#allocation3 + $0x129] sm:$0xff] %vm257_vm4, %v937_v39  ;;  %v884_v51 = vadd.f32 %v8547_v40, %v9833_v3  ;;  %1311 = vst [vmem:[#allocation5 + $0x24] sm:$0x1] %v1310_v48  ;;  %v1086_v57 = vld [vmem:[#allocation3 + $0x10a] ss:$2 sm:$0xff]  ;;  %v1564_v4 = vrot.slane %v1522_v20, 5 }
 0x15a   : > { %v1421_v52 = vrot.slane %v1420_v35, 4  ;;  %v8549_v59 = vpop.f32.mrf.mxu0  ;;  %v1312_v37 = vld [vmem:[#allocation5 + $0x28] sm:$0xf]  ;;  %v1903_v48 = vld [vmem:[#allocation5 + $0x10] sm:$0xf] }
 0x15b   : > { %v1108_v62 = vmax.f32 %v1057_v49, %v1086_v57  ;;  %v938_v5 = vmax.f32 %v884_v51, 0.0  ;;  %v8550_v0 = vadd.f32 %v8549_v59, %v8548_v46  ;;  %v1565_v8 = vsel %vm9896_vm2, %v7817_v61, %v1564_v4  ;;  %v10067_v20 = vld [vmem:[#allocation5 + $0x4] sm:$0x1] }
 0x15c   : > { %v1426_v63 = vsel %vm9787_vm13, %v1421_v52, %v1425_v53  ;;  %v8551_v1 = vpop.f32.mrf.mxu0  ;;  %1593 = vst.msk [vmem:[#allocation6 + $0x40] sm:$0xf] %vm279_vm6, %v1565_v8  ;;  %v10065_v53 = vld [vmem:[#allocation5] sm:$0xe] }
 0x15d   : > { %1489 = vrot.lane.b32.xlu1 %v1426_v63, %s9436_s10  ;;  %v10045_v2 = vld [vmem:[#allocation4 + $0x50] sm:$0xff]  ;;  %1125 = vst.msk [vmem:[#allocation4 + $0x58] sm:$0xff] %vm257_vm4, %v1108_v62  ;;  %971 = vst.msk [vmem:[#allocation3 + $0x139] sm:$0xff] %vm257_vm4, %v938_v5  ;;  %v887_v54 = vadd.f32 %v8550_v0, %v9833_v3 }
 0x15e   : > { %v10051_v6 = vmax.f32 %v1152_v60, %v10045_v2  ;;  %v8552_v7 = vpop.f32.mrf.mxu0  ;;  %v10073_v63 = vld [vmem:[#allocation5 + $0x8] sm:$0xe]  ;;  %v10075_v0 = vld [vmem:[#allocation5 + $0xc] sm:$0x1] }
 0x15f   : > { %v939_v27 = vmax.f32 %v887_v54, 0.0  ;;  %v8553_v9 = vadd.f32 %v8552_v7, %v8551_v1  ;;  %v1601_v17 = vld [vmem:[#allocation5 + $0x20] sm:$0xf] }
 0x160   : > { %v8428_v10 = vpack.c.bf16 %v10051_v6, %v10051_v6  ;;  %v1003_v11 = vld [vmem:[#allocation3 + $0x120] ss:$2 sm:$0xff]  ;;  %v1037_v12 = vld [vmem:[#allocation3 + $0x121] ss:$2 sm:$0xff]  ;;  %v8554_v13 = vpop.f32.mrf.mxu0 }
 0x161   : > { %v1058_v14 = vmax.f32 %v1003_v11, %v1037_v12  ;;  %v1088_v15 = vld [vmem:[#allocation3 + $0x122] ss:$2 sm:$0xff]  ;;  %972 = vst.msk [vmem:[#allocation3 + $0x141] sm:$0xff] %vm257_vm4, %v939_v27  ;;  %v892_v16 = vadd.f32 %v8553_v9, %v9833_v3  ;;  %1620 = vrot.lane.b32.xlu1 %v1601_v17, %s9436_s10  ;;  %v1650_v27 = vld [vmem:[#allocation5 + $0x18] sm:$0xf]  ;;  %v1920_v12 = vshrl.u32 %v1903_v48, 16 }
 0x162   : > { %v1360_v18 = vld [vmem:[#allocation5 + $0x20] sm:$0xf]  ;;  %v8555_v23 = vpop.f32.mrf.mxu0  ;;  %v1361_v19 = vld [vmem:[#allocation5 + $0x24] sm:$0x1]  ;;  %v1238_v28 = vshrl.u32 %v8428_v10, 16  ;;  %v1241_v36 = vshll.u32 %v8428_v10, 16 }
 0x163   : > { %v1428_v25 = vshrl.u32 %v1360_v18, 16  ;;  %v1431_v26 = vshll.u32 %v1360_v18, 16  ;;  %v1109_v29 = vmax.f32 %v1058_v14, %v1088_v15  ;;  %v940_v30 = vmax.f32 %v892_v16, 0.0  ;;  %v1340_v42 = vld [vmem:[#allocation5 + $0x20] sm:$0xf] }
 0x164   : > { %v8556_v31 = vadd.f32 %v8555_v23, %v8554_v13  ;;  %v8557_v32 = vpop.f32.mrf.mxu0  ;;  %v1240_v35 = vrot.slane %v1238_v28, 7  ;;  %v1437_v40 = vshll.u32 %v1361_v19, 16  ;;  %1348 = vst.msk [vmem:[#allocation6 + $0x50] sm:$0xf] %vm279_vm6, %v1340_v42  ;;  %v1145_v52 = vld [vmem:[#allocation4 + $0x58] sm:$0xff]  ;;  %v1923_v13 = vshll.u32 %v1903_v48, 16 }
 0x165   : > { %v1430_v33 = vrot.slane %v1428_v25, 4  ;;  %v1433_v34 = vrot.slane %v1431_v26, 5  ;;  %1126 = vst.msk [vmem:[#allocation4 + $0x60] sm:$0xff] %vm257_vm4, %v1109_v29  ;;  %973 = vst.msk [vmem:[#allocation3 + $0x151] sm:$0xff] %vm257_vm4, %v940_v30  ;;  %v1523_v56 = vld [vmem:[#allocation5 + $0x20] sm:$0xe]  ;;  %v1153_v11 = vmax.f32 %v10045_v2, %v1145_v52 }
 0x166   : > { %v895_v39 = vadd.f32 %v8556_v31, %v9833_v3  ;;  %v8558_v43 = vpop.f32.mrf.mxu0  ;;  %v1243_v46 = vor.u32 %v1241_v36, %v1240_v35  ;;  %v1244_v47 = vrot.slane %v1240_v35, 4  ;;  %v1889_v57 = vld [vmem:[#allocation5 + $0x20] sm:$0xf]  ;;  %v1439_v7 = vrot.slane %v1437_v40, 5  ;;  %v1524_v8 = vld [vmem:[#allocation5 + $0x24] sm:$0x1] }
 0x167   : > { %v1434_v44 = vor.u32 %v1433_v34, %v1430_v33  ;;  %v8559_v51 = vadd.f32 %v8558_v43, %v8557_v32  ;;  %1897 = vst.msk [vmem:[#allocation6 + $0x34] sm:$0xf] %vm279_vm6, %v1889_v57  ;;  %v7818_v14 = vrot.slane %v1523_v56, 9  ;;  %v7907_v25 = vrot.slane %v10065_v53, 9  ;;  %v9371_v29 = vld [vmem:[%s12264_s2] ss:$0 sm:$0xff] }
 0x168   : > { %v941_v49 = vmax.f32 %v895_v39, 0.0  ;;  %v1005_v59 = vld [vmem:[#allocation3 + $0x138] ss:$2 sm:$0xff]  ;;  %v1039_v60 = vld [vmem:[#allocation3 + $0x139] ss:$2 sm:$0xff]  ;;  %v8560_v61 = vpop.f32.mrf.mxu0  ;;  %v1313_v62 = vsel %vm9887_vm1, %v1243_v46, %v1312_v37  ;;  %v1316_v5 = vsel %vm9769_vm9, %v1244_v47, %v1315_v41  ;;  %v3169_v26 = vrot.slane %v10067_v20, 5 }
 0x169   : > { %v1059_v1 = vmax.f32 %v1005_v59, %v1039_v60  ;;  %v900_v4 = vadd.f32 %v8559_v51, %v9833_v3  ;;  %v1435_v54 = vrot.slane %v1434_v44, 4  ;;  %1314 = vst [vmem:[#allocation5 + $0x28] sm:$0xf] %v1313_v62  ;;  %1317 = vst [vmem:[#allocation5 + $0x2c] sm:$0x1] %v1316_v5  ;;  %v1568_v2 = vrot.slane %v1524_v8, 5 }
 0x16a   : > { %974 = vst.msk [vmem:[#allocation3 + $0x159] sm:$0xff] %vm257_vm4, %v941_v49  ;;  %v1090_v9 = vld [vmem:[#allocation3 + $0x13a] ss:$2 sm:$0xff]  ;;  %v8561_v10 = vpop.f32.mrf.mxu0  ;;  %v1904_v3 = vld [vmem:[#allocation5 + $0x14] sm:$0x1]  ;;  %v1691_v28 = vshrl.u32 %v1650_v27, 16 }
 0x16b   : > { %v1110_v15 = vmax.f32 %v1059_v1, %v1090_v9  ;;  %v942_v16 = vmax.f32 %v900_v4, 0.0  ;;  %v1440_v17 = vsel %vm9787_vm13, %v1435_v54, %v1439_v7  ;;  %v8562_v18 = vadd.f32 %v8561_v10, %v8560_v61  ;;  %v1651_v34 = vld [vmem:[#allocation5 + $0x1c] sm:$0x1]  ;;  %v10107_v46 = vld [vmem:[#allocation5 + $0x10] sm:$0xf] }
 0x16c   : > { %1491 = vrot.lane.b32.xlu0 %v1440_v17, %s9436_s10  ;;  %v8563_v23 = vpop.f32.mrf.mxu0  ;;  %v10084_v19 = vld [vmem:[#allocation4 + $0x60] sm:$0xff]  ;;  %v7822_v32 = vrot.slane %v10073_v63, 9  ;;  %v1824_v33 = vrot.slane %v10075_v0, 5  ;;  %v10098_v36 = vrot.slane %v1920_v12, 4  ;;  %v1929_v37 = vshll.u32 %v1904_v3, 16 }
 0x16d   : > { %1127 = vst.msk [vmem:[#allocation4 + $0x68] sm:$0xff] %vm257_vm4, %v1110_v15  ;;  %975 = vst.msk [vmem:[#allocation3 + $0x169] sm:$0xff] %vm257_vm4, %v942_v16  ;;  %v903_v30 = vadd.f32 %v9371_v29, %v8562_v18  ;;  %v10094_v31 = vmax.f32 %v1153_v11, %v10084_v19  ;;  %v1569_v39 = vsel %vm9896_vm2, %v7818_v14, %v1568_v2  ;;  %v1694_v40 = vshll.u32 %v1650_v27, 16  ;;  %v1318_v10 = vld [vmem:[#allocation5 + $0x30] sm:$0xf] }
 0x16e   : > { %v8564_v35 = vpop.f32.mrf.mxu0  ;;  %v10104_v44 = vrot.slane %v1923_v13, 5  ;;  %1594 = vst.msk [vmem:[#allocation6 + $0x54] sm:$0xf] %vm279_vm6, %v1569_v39  ;;  %v1693_v51 = vrot.slane %v1691_v28, 4  ;;  %v1700_v52 = vshll.u32 %v1651_v34, 16  ;;  %v1677_v11 = vshrl.u32 %v10107_v46, 16 }
 0x16f   : > { %v943_v41 = vmax.f32 %v903_v30, 0.0  ;;  %v8565_v42 = vadd.f32 %v8564_v35, %v8563_v23  ;;  %v8429_v43 = vpack.c.bf16 %v10094_v31, %v10094_v31  ;;  %v1696_v7 = vrot.slane %v1694_v40, 5  ;;  %v1321_v16 = vld [vmem:[#allocation5 + $0x34] sm:$0x1] }
 0x170   : > { %v8566_v49 = vpop.f32.mrf.mxu0  ;;  %v1602_v60 = vld [vmem:[#allocation5 + $0x28] sm:$0xf]  ;;  %v1363_v5 = vld [vmem:[#allocation5 + $0x2c] sm:$0x1]  ;;  %v10114_v3 = vrot.slane %v1929_v37, 5  ;;  %v1702_v2 = vrot.slane %v1700_v52, 5 }
 0x171   : > { %v1007_v47 = vld [vmem:[#allocation3 + $0x150] ss:$2 sm:$0xff]  ;;  %v1041_v48 = vld [vmem:[#allocation3 + $0x151] ss:$2 sm:$0xff]  ;;  %976 = vst.msk [vmem:[#allocation3 + $0x171] sm:$0xff] %vm257_vm4, %v943_v41  ;;  %v908_v59 = vadd.f32 %v9371_v29, %v8565_v42  ;;  %1622 = vrot.lane.b32.xlu0 %v1602_v60, %s9436_s10  ;;  %v1246_v54 = vshrl.u32 %v8429_v43, 16  ;;  %v1697_v35 = vor.u32 %v1696_v7, %v1693_v51 }
 0x172   : > { %v1060_v56 = vmax.f32 %v1007_v47, %v1041_v48  ;;  %v1092_v57 = vld [vmem:[#allocation3 + $0x152] ss:$2 sm:$0xff]  ;;  %v1362_v61 = vld [vmem:[#allocation5 + $0x28] sm:$0xf]  ;;  %v8567_v62 = vpop.f32.mrf.mxu0  ;;  %v1249_v15 = vshll.u32 %v8429_v43, 16  ;;  %v1451_v18 = vshll.u32 %v1363_v5, 16 }
 0x173   : > { %v1442_v1 = vshrl.u32 %v1362_v61, 16  ;;  %v1445_v4 = vshll.u32 %v1362_v61, 16  ;;  %v944_v27 = vmax.f32 %v908_v59, 0.0  ;;  %v8568_v9 = vadd.f32 %v8567_v62, %v8566_v49  ;;  %v1341_v23 = vld [vmem:[#allocation5 + $0x28] sm:$0xf] }
 0x174   : > { %v1111_v8 = vmax.f32 %v1060_v56, %v1092_v57  ;;  %v1248_v14 = vrot.slane %v1246_v54, 7  ;;  %1349 = vst.msk [vmem:[#allocation6 + $0x64] sm:$0xf] %vm279_vm6, %v1341_v23  ;;  %v1649_v39 = vld [vmem:[#allocation5 + $0x14] sm:$0x1]  ;;  %v1680_v47 = vshll.u32 %v10107_v46, 16  ;;  %v1926_v46 = vor.u32 %v10104_v44, %v10098_v36 }
 0x175   : > { %v1444_v12 = vrot.slane %v1442_v1, 4  ;;  %v1447_v13 = vrot.slane %v1445_v4, 5  ;;  %977 = vst.msk [vmem:[#allocation3 + $0x181] sm:$0xff] %vm257_vm4, %v944_v27  ;;  %v911_v17 = vadd.f32 %v9371_v29, %v8568_v9  ;;  %v10117_v41 = vld [vmem:[#allocation5 + $0x10] sm:$0xe]  ;;  %v1146_v52 = vld [vmem:[#allocation4 + $0x68] sm:$0xff] }
 0x176   : > { %1128 = vst.msk [vmem:[#allocation4 + $0x70] sm:$0xff] %vm257_vm4, %v1111_v8  ;;  %v1251_v30 = vor.u32 %v1249_v15, %v1248_v14  ;;  %v1252_v34 = vrot.slane %v1248_v14, 4  ;;  %v1525_v42 = vld [vmem:[#allocation5 + $0x28] sm:$0xe]  ;;  %v1526_v43 = vld [vmem:[#allocation5 + $0x2c] sm:$0x1] }
 0x177   : > { %v1448_v28 = vor.u32 %v1447_v13, %v1444_v12  ;;  %v945_v40 = vmax.f32 %v911_v17, 0.0  ;;  %v10124_v56 = vld [vmem:[#allocation5 + $0x14] sm:$0x1]  ;;  %v1679_v51 = vrot.slane %v1677_v11, 4  ;;  %v1453_v61 = vrot.slane %v1451_v18, 5 }
 0x178   : > { %v1009_v29 = vld [vmem:[#allocation3 + $0x168] ss:$2 sm:$0xff]  ;;  %v1043_v48 = vld [vmem:[#allocation3 + $0x169] ss:$2 sm:$0xff]  ;;  %v1319_v37 = vsel %vm9887_vm1, %v1251_v30, %v1318_v10  ;;  %v1322_v49 = vsel %vm9769_vm9, %v1252_v34, %v1321_v16  ;;  %v10129_v62 = vld [vmem:[#allocation5 + $0x18] sm:$0xe]  ;;  %v1154_v10 = vmax.f32 %v10084_v19, %v1146_v52 }
 0x179   : > { %v1061_v57 = vmax.f32 %v1009_v29, %v1043_v48  ;;  %v1094_v59 = vld [vmem:[#allocation3 + $0x16a] ss:$2 sm:$0xff]  ;;  %978 = vst.msk [vmem:[#allocation3 + $0x189] sm:$0xff] %vm257_vm4, %v945_v40  ;;  %v1449_v60 = vrot.slane %v1448_v28, 4  ;;  %1320 = vst [vmem:[#allocation5 + $0x30] sm:$0xf] %v1319_v37 }
 0x17a   : > { %1323 = vst [vmem:[#allocation5 + $0x34] sm:$0x1] %v1322_v49  ;;  %v1654_v5 = vld [vmem:[#allocation5 + $0x28] sm:$0xf]  ;;  %v7819_v1 = vrot.slane %v1525_v42, 9  ;;  %v1572_v4 = vrot.slane %v1526_v43, 5 }
 0x17b   : > { %v1698_v54 = vrot.slane %v1697_v35, 4  ;;  %v1686_v7 = vshll.u32 %v1649_v39, 16  ;;  %v1890_v8 = vld [vmem:[#allocation5 + $0x28] sm:$0xf]  ;;  %v1112_v27 = vmax.f32 %v1061_v57, %v1094_v59  ;;  %v1454_v9 = vsel %vm9787_vm13, %v1449_v60, %v1453_v61  ;;  %v10134_v11 = vld [vmem:[#allocation5 + $0x1c] sm:$0x1] }
 0x17c   : > { %v1905_v12 = vld [vmem:[#allocation5 + $0x18] sm:$0xf]  ;;  %v1682_v13 = vrot.slane %v1680_v47, 5  ;;  %1898 = vst.msk [vmem:[#allocation6 + $0x48] sm:$0xf] %vm279_vm6, %v1890_v8  ;;  %1493 = vrot.lane.b32.xlu1 %v1454_v9, %s9436_s10  ;;  %v7823_v44 = vrot.slane %v10117_v41, 9  ;;  %v1573_v14 = vsel %vm9896_vm2, %v7819_v1, %v1572_v4 }
 0x17d   : > { %v10138_v36 = vld [vmem:[#allocation4 + $0x70] sm:$0xff]  ;;  %v1703_v15 = vsel %vm9787_vm13, %v1698_v54, %v1702_v2  ;;  %v1719_v16 = vshrl.u32 %v1654_v5, 16  ;;  %1129 = vst.msk [vmem:[#allocation4 + $0x78] sm:$0xff] %vm257_vm4, %v1112_v27  ;;  %v1828_v17 = vrot.slane %v10124_v56, 5  ;;  %v1722_v23 = vshll.u32 %v1654_v5, 16 }
 0x17e   : > { %v10147_v19 = vmax.f32 %v1154_v10, %v10138_v36  ;;  %1595 = vst.msk [vmem:[#allocation6 + $0x68] sm:$0xf] %vm279_vm6, %v1573_v14  ;;  %1784 = vst.msk [vmem:[#allocation6 + $0x30] sm:$0xf] %vm279_vm6, %v1703_v15  ;;  %v1683_v18 = vor.u32 %v1682_v13, %v1679_v51  ;;  %v10152_v28 = vrot.slane %v1926_v46, 4  ;;  %v7824_v30 = vrot.slane %v10129_v62, 9 }
 0x17f   : > { %v1832_v2 = vrot.slane %v10134_v11, 5  ;;  %v1934_v34 = vshrl.u32 %v1905_v12, 16  ;;  %v10158_v39 = vld [vmem:[#allocation5 + $0x1c] sm:$0x1]  ;;  %v1937_v40 = vshll.u32 %v1905_v12, 16  ;;  %v1688_v43 = vrot.slane %v1686_v7, 5 }
 0x180   : > { %v8430_v35 = vpack.c.bf16 %v10147_v19, %v10147_v19  ;;  %v1684_v42 = vrot.slane %v1683_v18, 4  ;;  %v1011_v47 = vld [vmem:[#allocation3 + $0x180] ss:$2 sm:$0xff]  ;;  %v1045_v29 = vld [vmem:[#allocation3 + $0x181] ss:$2 sm:$0xff]  ;;  %v1721_v49 = vrot.slane %v1719_v16, 4 }
 0x181   : > { %v10160_v48 = vld [vmem:[#allocation5 + $0x20] sm:$0xf]  ;;  %v1655_v37 = vld [vmem:[#allocation5 + $0x2c] sm:$0x1]  ;;  %v1724_v52 = vrot.slane %v1722_v23, 5  ;;  %v1062_v57 = vmax.f32 %v1011_v47, %v1045_v29  ;;  %v10165_v7 = vrot.slane %v1934_v34, 4  ;;  %v10220_v63 = vsel %vm9896_vm2, %v7824_v30, %v1832_v2 }
 0x182   : > { %v1652_v51 = vld [vmem:[#allocation5 + $0x20] sm:$0xf]  ;;  %v1603_v59 = vld [vmem:[#allocation5 + $0x30] sm:$0xf]  ;;  %v1365_v61 = vld [vmem:[#allocation5 + $0x34] sm:$0x1]  ;;  %v1689_v46 = vsel %vm9787_vm13, %v1684_v42, %v1688_v43 }
 0x183   : > { %v1364_v60 = vld [vmem:[#allocation5 + $0x30] sm:$0xf]  ;;  %1624 = vrot.lane.b32.xlu1 %v1603_v59, %s9436_s10  ;;  %v1254_v54 = vshrl.u32 %v8430_v35, 16  ;;  %1783 = vst.msk [vmem:[#allocation6 + $0x1c] sm:$0xf] %vm279_vm6, %v1689_v46  ;;  %v1465_v27 = vshll.u32 %v1365_v61, 16  ;;  %v1725_v42 = vor.u32 %v1724_v52, %v1721_v49 }
 0x184   : > { %v1096_v5 = vld [vmem:[#allocation3 + $0x182] ss:$2 sm:$0xff]  ;;  %v1456_v1 = vshrl.u32 %v1364_v60, 16  ;;  %v1459_v4 = vshll.u32 %v1364_v60, 16  ;;  %v1324_v9 = vld [vmem:[#allocation5 + $0x38] sm:$0xf] }
 0x185   : > { %v1113_v8 = vmax.f32 %v1062_v57, %v1096_v5  ;;  %v10168_v10 = vrot.slane %v1937_v40, 5  ;;  %v1943_v12 = vshll.u32 %v10158_v39, 16  ;;  %v1256_v15 = vrot.slane %v1254_v54, 7  ;;  %v1327_v18 = vld [vmem:[#allocation5 + $0x3c] sm:$0x1]  ;;  %v1147_v5 = vld [vmem:[#allocation4 + $0x78] sm:$0xff] }
 0x186   : > { %v1458_v13 = vrot.slane %v1456_v1, 4  ;;  %v1461_v14 = vrot.slane %v1459_v4, 5  ;;  %v1257_v16 = vshll.u32 %v8430_v35, 16  ;;  %v10172_v23 = vld [vmem:[#allocation5 + $0x24] sm:$0x1]  ;;  %v1948_v34 = vshrl.u32 %v10160_v48, 16 }
 0x187   : > { %1130 = vst.msk [vmem:[#allocation4 + $0x80] sm:$0xff] %vm257_vm4, %v1113_v8  ;;  %v1728_v43 = vshll.u32 %v1655_v37, 16  ;;  %v1705_v47 = vshrl.u32 %v1652_v51, 16  ;;  %v1260_v40 = vrot.slane %v1256_v15, 4  ;;  %v1342_v59 = vld [vmem:[#allocation5 + $0x30] sm:$0xf] }
 0x188   : > { %v1462_v29 = vor.u32 %v1461_v14, %v1458_v13  ;;  %v1259_v57 = vor.u32 %v1257_v16, %v1256_v15  ;;  %v1653_v60 = vld [vmem:[#allocation5 + $0x24] sm:$0x1]  ;;  %v1708_v61 = vshll.u32 %v1652_v51, 16  ;;  %v1467_v46 = vrot.slane %v1465_v27, 5  ;;  %1350 = vst.msk [vmem:[#allocation6 + $0x78] sm:$0xf] %vm279_vm6, %v1342_v59 }
 0x189   : > { %v1527_v35 = vld [vmem:[#allocation5 + $0x30] sm:$0xe]  ;;  %v1528_v1 = vld [vmem:[#allocation5 + $0x34] sm:$0x1]  ;;  %v1328_v37 = vsel %vm9769_vm9, %v1260_v40, %v1327_v18  ;;  %v1951_v51 = vshll.u32 %v10160_v48, 16  ;;  %v1957_v27 = vshll.u32 %v10172_v23, 16  ;;  %v1155_v40 = vmax.f32 %v10138_v36, %v1147_v5 }
 0x18a   : > { %v1463_v4 = vrot.slane %v1462_v29, 4  ;;  %v1325_v54 = vsel %vm9887_vm1, %v1259_v57, %v1324_v9  ;;  %v7820_v49 = vrot.slane %v1527_v35, 9  ;;  %v1891_v52 = vld [vmem:[#allocation5 + $0x30] sm:$0xf]  ;;  %1329 = vst [vmem:[#allocation5 + $0x3c] sm:$0x1] %v1328_v37 }
 0x18b   : > { %v1656_v8 = vld [vmem:[#allocation5 + $0x30] sm:$0xf]  ;;  %1326 = vst [vmem:[#allocation5 + $0x38] sm:$0xf] %v1325_v54  ;;  %v1576_v13 = vrot.slane %v1528_v1, 5  ;;  %v1726_v14 = vrot.slane %v1725_v42, 4 }
 0x18c   : > { %1899 = vst.msk [vmem:[#allocation6 + $0x5c] sm:$0xf] %vm279_vm6, %v1891_v52  ;;  %v2063_v15 = vld [vmem:[#allocation5 + $0x10] sm:$0xe]  ;;  %v1468_v9 = vsel %vm9787_vm13, %v1463_v4, %v1467_v46  ;;  %v1730_v16 = vrot.slane %v1728_v43, 5  ;;  %v1707_v29 = vrot.slane %v1705_v47, 4 }
 0x18d   : > { %v1710_v18 = vrot.slane %v1708_v61, 5  ;;  %v2064_v57 = vld [vmem:[#allocation5 + $0x14] sm:$0x1]  ;;  %1495 = vrot.lane.b32.xlu0 %v1468_v9, %s9436_s10  ;;  %v1577_v48 = vsel %vm9896_vm2, %v7820_v49, %v1576_v13  ;;  %v9157_v42 = vld [vmem:[%s12265_s3 + $0xf8] sm:$0xff]   ;;  %v1714_v59 = vshll.u32 %v1653_v60, 16  ;;  %v1733_v35 = vshrl.u32 %v1656_v8, 16 }
 0x18e   : > { %v2065_v1 = vld [vmem:[#allocation5 + $0x18] sm:$0xe]  ;;  %v10192_v46 = vrot.slane %v1948_v34, 4  ;;  %1596 = vst.msk [vmem:[#allocation6 + $0x7c] sm:$0xf] %vm279_vm6, %v1577_v48  ;;  %v1731_v43 = vsel %vm9787_vm13, %v1726_v14, %v1730_v16  ;;  %v1736_v36 = vshll.u32 %v1656_v8, 16  ;;  %8609 = vmatprep.subr.bf16.mxu1 %v9157_v42  ;;  %v1825_v8 = vsel %vm9896_vm2, %v7822_v32, %v1824_v33 }
 0x18f   : > { %v1164_v54 = vld [vmem:[#allocation4 + $0x80] sm:$0xff]  ;;  %v1711_v47 = vor.u32 %v1710_v18, %v1707_v29  ;;  %v10199_v4 = vrot.slane %v1951_v51, 5  ;;  %1786 = vst.msk [vmem:[#allocation6 + $0x58] sm:$0xf] %vm279_vm6, %v1731_v43  ;;  %v1735_v60 = vrot.slane %v1733_v35, 4  ;;  %v7830_v37 = vrot.slane %v2063_v15, 9 }
 0x190   : > { %v2066_v61 = vld [vmem:[#allocation5 + $0x1c] sm:$0x1]  ;;  %v10197_v5 = vmax.f32 %v1155_v40, %v1164_v54  ;;  %v1716_v34 = vrot.slane %v1714_v59, 5  ;;  %v1738_v52 = vrot.slane %v1736_v36, 5  ;;  %v2097_v13 = vrot.slane %v2064_v57, 5 }
 0x191   : > { %v1712_v49 = vrot.slane %v1711_v47, 4  ;;  %v1911_v14 = vld [vmem:[#allocation5 + $0x30] sm:$0xf]  ;;  %v1657_v9 = vld [vmem:[#allocation5 + $0x34] sm:$0x1]  ;;  %v7831_v16 = vrot.slane %v2065_v1, 9  ;;  %v1932_v15 = vsel %vm9787_vm13, %v10152_v28, %v10114_v3  ;;  %v1954_v47 = vor.u32 %v10199_v4, %v10192_v46 }
 0x192   : > { %v8431_v51 = vpack.c.bf16 %v10197_v5, %v10197_v5  ;;  %v2101_v29 = vrot.slane %v2066_v61, 5  ;;  %v1604_v18 = vld [vmem:[#allocation5 + $0x38] sm:$0xf]  ;;  %v1367_v0 = vld [vmem:[#allocation5 + $0x3c] sm:$0x1]  ;;  %v2098_v33 = vsel %vm9896_vm2, %v7830_v37, %v2097_v13  ;;  %v1739_v11 = vor.u32 %v1738_v52, %v1735_v60 }
 0x193   : > { %v1366_v57 = vld [vmem:[#allocation5 + $0x38] sm:$0xf]  ;;  %v1717_v32 = vsel %vm9787_vm13, %v1712_v49, %v1716_v34  ;;  %1626 = vrot.lane.b32.xlu0 %v1604_v18, %s9436_s10  ;;  %2135 = vst.msk [vmem:[#allocation6 + $0x10] sm:$0xf] %vm279_vm6, %v2098_v33  ;;  %v1479_v62 = vshll.u32 %v1367_v0, 16  ;;  %v1976_v48 = vshrl.u32 %v1911_v14, 16  ;;  %v1940_v61 = vor.u32 %v10168_v10, %v10165_v7 }
 0x194   : > { %v1470_v40 = vshrl.u32 %v1366_v57, 16  ;;  %v1473_v3 = vshll.u32 %v1366_v57, 16  ;;  %v1262_v28 = vshrl.u32 %v8431_v51, 16  ;;  %1785 = vst.msk [vmem:[#allocation6 + $0x44] sm:$0xf] %vm279_vm6, %v1717_v32  ;;  %v1742_v30 = vshll.u32 %v1657_v9, 16 }
 0x195   : > { %v2102_v2 = vsel %vm9896_vm2, %v7831_v16, %v2101_v29  ;;  %v1265_v1 = vshll.u32 %v8431_v51, 16  ;;  %v2067_v54 = vld [vmem:[#allocation5 + $0x20] sm:$0xe]  ;;  %v10236_v36 = vrot.slane %v1957_v27, 5  ;;  %v1979_v60 = vshll.u32 %v1911_v14, 16 }
 0x196   : > { %v1472_v42 = vrot.slane %v1470_v40, 4  ;;  %v1475_v59 = vrot.slane %v1473_v3, 5  ;;  %v1264_v35 = vrot.slane %v1262_v28, 7  ;;  %2136 = vst.msk [vmem:[#allocation6 + $0x24] sm:$0xf] %vm279_vm6, %v2102_v2  ;;  %v1740_v51 = vrot.slane %v1739_v11, 4 }
 0x197   : > { %v1330_v43 = vld [vmem:[#allocation5 + $0x40] sm:$0xf]  ;;  %v1333_v37 = vld [vmem:[#allocation5 + $0x44] sm:$0x1]  ;;  %1854 = vrot.lane.b32.xlu0 %v1825_v8, %s9436_s10  ;;  %v1343_v13 = vld [vmem:[#allocation5 + $0x38] sm:$0xf]  ;;  %v1829_v10 = vsel %vm9896_vm2, %v7823_v44, %v1828_v17 }
 0x198   : > { %v1476_v49 = vor.u32 %v1475_v59, %v1472_v42  ;;  %v1267_v34 = vor.u32 %v1265_v1, %v1264_v35  ;;  %v1268_v52 = vrot.slane %v1264_v35, 4  ;;  %v2068_v9 = vld [vmem:[#allocation5 + $0x24] sm:$0x1]  ;;  %v1481_v16 = vrot.slane %v1479_v62, 5  ;;  %v10243_v46 = vld [vmem:[#allocation5 + $0x28] sm:$0xf] }
 0x199   : > { %v10241_v29 = vrot.slane %v1976_v48, 4  ;;  %1351 = vst.msk [vmem:[#allocation6 + $0x8c] sm:$0xf] %vm279_vm6, %v1343_v13  ;;  %v1529_v23 = vld [vmem:[#allocation5 + $0x38] sm:$0xe]  ;;  %v1744_v27 = vrot.slane %v1742_v30, 5 }
 0x19a   : > { %v2069_v4 = vld [vmem:[#allocation5 + $0x28] sm:$0xe]  ;;  %v2070_v14 = vld [vmem:[#allocation5 + $0x2c] sm:$0x1]  ;;  %v7832_v18 = vrot.slane %v2067_v54, 9  ;;  %v1477_v57 = vrot.slane %v1476_v49, 4  ;;  %v1331_v8 = vsel %vm9887_vm1, %v1267_v34, %v1330_v43  ;;  %v1334_v0 = vsel %vm9769_vm9, %v1268_v52, %v1333_v37 }
 0x19b   : > { %v1530_v32 = vld [vmem:[#allocation5 + $0x3c] sm:$0x1]  ;;  %v7821_v33 = vrot.slane %v1529_v23, 9  ;;  %v1658_v40 = vld [vmem:[#allocation5 + $0x38] sm:$0xf]  ;;  %v10250_v28 = vrot.slane %v1979_v60, 5  ;;  %2031 = vrot.lane.b32.xlu0 %v1932_v15, %s9436_s10  ;;  %v1745_v1 = vsel %vm9787_vm13, %v1740_v51, %v1744_v27 }
 0x19c   : > { %v2071_v3 = vld [vmem:[#allocation5 + $0x30] sm:$0xe]  ;;  %1332 = vst [vmem:[#allocation5 + $0x40] sm:$0xf] %v1331_v8  ;;  %1335 = vst [vmem:[#allocation5 + $0x44] sm:$0x1] %v1334_v0  ;;  %v1482_v59 = vsel %vm9787_vm13, %v1477_v57, %v1481_v16 }
 0x19d   : > { %v1580_v11 = vrot.slane %v1530_v32, 5  ;;  %v1659_v62 = vld [vmem:[#allocation5 + $0x3c] sm:$0x1]  ;;  %v1747_v48 = vshrl.u32 %v1658_v40, 16  ;;  %v1750_v30 = vshll.u32 %v1658_v40, 16  ;;  %v1955_v35 = vrot.slane %v1954_v47, 4  ;;  %1497 = vrot.lane.b32.xlu1 %v1482_v59, %s9436_s10 }
 0x19e   : > { %v2072_v2 = vld [vmem:[#allocation5 + $0x34] sm:$0x1]  ;;  %v2077_v42 = vld [vmem:[#allocation5 + $0x48] sm:$0xe]  ;;  %v1892_v54 = vld [vmem:[#allocation5 + $0x38] sm:$0xf]  ;;  %v1982_v23 = vor.u32 %v10250_v28, %v10241_v29 }
 0x19f   : > { %v2105_v43 = vrot.slane %v2068_v9, 5  ;;  %v2078_v60 = vld [vmem:[#allocation5 + $0x4c] sm:$0x1]  ;;  %v1581_v37 = vsel %vm9896_vm2, %v7821_v33, %v1580_v11  ;;  %v1749_v49 = vrot.slane %v1747_v48, 4  ;;  %v1752_v34 = vrot.slane %v1750_v30, 5  ;;  %1858 = vrot.lane.b32.xlu0 %v10220_v63, %s9436_s10 }
 0x1a0   : > { %v1756_v52 = vshll.u32 %v1659_v62, 16  ;;  %1787 = vst.msk [vmem:[#allocation6 + $0x6c] sm:$0xf] %vm279_vm6, %v1745_v1  ;;  %1900 = vst.msk [vmem:[#allocation6 + $0x70] sm:$0xf] %vm279_vm6, %v1892_v54  ;;  %v1962_v47 = vshrl.u32 %v10243_v46, 16  ;;  %v1960_v63 = vsel %vm9787_vm13, %v1955_v35, %v10236_v36 }
 0x1a1   : > { %v10262_v15 = vld [vmem:[#allocation5 + $0x28] sm:$0xe]  ;;  %1597 = vst.msk [vmem:[#allocation6 + $0x90] sm:$0xf] %vm279_vm6, %v1581_v37  ;;  %v2106_v13 = vsel %vm9896_vm2, %v7832_v18, %v2105_v43  ;;  %v7833_v51 = vrot.slane %v2069_v4, 9  ;;  %v2109_v9 = vrot.slane %v2070_v14, 5  ;;  %v1753_v57 = vor.u32 %v1752_v34, %v1749_v49 }
 0x1a2   : > { %v1799_v16 = vld [vmem:[#allocation5 + $0x2c] sm:$0x1]  ;;  %v1965_v27 = vshll.u32 %v10243_v46, 16  ;;  %2137 = vst.msk [vmem:[#allocation6 + $0x38] sm:$0xf] %vm279_vm6, %v2106_v13  ;;  %v7834_v0 = vrot.slane %v2071_v3, 9  ;;  %v1615_v49 = vpop.permute.xlu1 %1614 }
 0x1a3   : > { %v2073_v8 = vld [vmem:[#allocation5 + $0x38] sm:$0xe]  ;;  %v10274_v32 = vld [vmem:[#allocation5 + $0x20] sm:$0xe]  ;;  %v2110_v4 = vsel %vm9896_vm2, %v7833_v51, %v2109_v9  ;;  %v2074_v14 = vld [vmem:[#allocation5 + $0x3c] sm:$0x1]  ;;  %2035 = vrot.lane.b32.xlu0 %v1960_v63, %s9436_s10 }
 0x1a4   : > { %v2113_v18 = vrot.slane %v2072_v2, 5  ;;  %v7835_v33 = vrot.slane %v2073_v8, 9  ;;  %v7837_v40 = vrot.slane %v2077_v42, 9  ;;  %v1912_v29 = vld [vmem:[#allocation5 + $0x34] sm:$0x1]  ;;  %v1754_v28 = vrot.slane %v1753_v57, 4 }
 0x1a5   : > { %v1758_v46 = vrot.slane %v1756_v52, 5  ;;  %2138 = vst.msk [vmem:[#allocation6 + $0x4c] sm:$0xf] %vm279_vm6, %v2110_v4  ;;  %v2117_v11 = vrot.slane %v2074_v14, 5  ;;  %v2125_v62 = vrot.slane %v2078_v60, 5  ;;  %v7826_v48 = vrot.slane %v10262_v15, 9 }
 0x1a6   : > { %v1605_v3 = vld [vmem:[#allocation5 + $0x40] sm:$0xf]  ;;  %v1945_v30 = vrot.slane %v1943_v12, 5  ;;  %v2114_v42 = vsel %vm9896_vm2, %v7834_v0, %v2113_v18  ;;  %v1840_v59 = vrot.slane %v1799_v16, 5  ;;  %v1941_v39 = vrot.slane %v1940_v61, 4 }
 0x1a7   : > { %v1915_v2 = vld [vmem:[#allocation5 + $0x40] sm:$0xf]  ;;  %1628 = vrot.lane.b32.xlu1 %v1605_v3, %s9436_s10  ;;  %v1759_v43 = vsel %vm9787_vm13, %v1754_v28, %v1758_v46  ;;  %2139 = vst.msk [vmem:[#allocation6 + $0x60] sm:$0xf] %vm279_vm6, %v2114_v42  ;;  %v1985_v12 = vshll.u32 %v1912_v29, 16  ;;  %v2118_v60 = vsel %vm9896_vm2, %v7835_v33, %v2117_v11  ;;  %v2126_v37 = vsel %vm9896_vm2, %v7837_v40, %v2125_v62 }
 0x1a8   : > { %v2004_v1 = vshrl.u32 %v1915_v2, 16  ;;  %v2007_v54 = vshll.u32 %v1915_v2, 16  ;;  %v1797_v36 = vld [vmem:[#allocation5 + $0x24] sm:$0x1]  ;;  %1788 = vst.msk [vmem:[#allocation6 + $0x80] sm:$0xf] %vm279_vm6, %v1759_v43  ;;  %v1841_v41 = vsel %vm9896_vm2, %v7826_v48, %v1840_v59  ;;  %v1946_v53 = vsel %vm9787_vm13, %v1941_v39, %v1945_v30 }
 0x1a9   : > { %v1893_v35 = vld [vmem:[#allocation5 + $0x40] sm:$0xf]  ;;  %v1983_v34 = vrot.slane %v1982_v23, 4  ;;  %v7825_v52 = vrot.slane %v10274_v32, 9  ;;  %v1964_v15 = vrot.slane %v1962_v47, 4  ;;  %v1967_v13 = vrot.slane %v1965_v27, 5  ;;  %1862 = vrot.lane.b32.xlu0 %v1841_v41, %s9436_s10 }
 0x1aa   : > { %1901 = vst.msk [vmem:[#allocation6 + $0x84] sm:$0xf] %vm279_vm6, %v1893_v35  ;;  %v1660_v7 = vld [vmem:[#allocation5 + $0x40] sm:$0xf]  ;;  %2140 = vst.msk [vmem:[#allocation6 + $0x74] sm:$0xf] %vm279_vm6, %v2118_v60  ;;  %v3170_v23 = vsel %vm9896_vm2, %v7907_v25, %v3169_v26 }
 0x1ab   : > { %2142 = vst.msk [vmem:[#allocation6 + $0x9c] sm:$0xf] %vm279_vm6, %v2126_v37  ;;  %v1802_v61 = vld [vmem:[#allocation5 + $0x38] sm:$0xe]  ;;  %v1803_v51 = vld [vmem:[#allocation5 + $0x3c] sm:$0x1]  ;;  %1856 = vrot.lane.b32.xlu1 %v1829_v10, %s9436_s10  ;;  %v1968_v25 = vor.u32 %v1967_v13, %v1964_v15 }
 0x1ac   : > { %1638 = vst.msk [vmem:[#allocation6 + $0x4] sm:$0xf] %vm350_vm14, %v1615_v49  ;;  %v1913_v47 = vld [vmem:[#allocation5 + $0x38] sm:$0xf]  ;;  %v1761_v9 = vshrl.u32 %v1660_v7, 16  ;;  %v1764_v16 = vshll.u32 %v1660_v7, 16 }
 0x1ad   : > { %v1910_v56 = vld [vmem:[#allocation5 + $0x2c] sm:$0x1]  ;;  %v2006_v27 = vrot.slane %v2004_v1, 4  ;;  %v2009_v44 = vrot.slane %v2007_v54, 5  ;;  %v1661_v17 = vld [vmem:[#allocation5 + $0x44] sm:$0x1]  ;;  %v1486_v13 = vpop.permute.xlu0 %1485 }
 0x1ae   : > { %v1987_v57 = vrot.slane %v1985_v12, 5  ;;  %v1763_v8 = vrot.slane %v1761_v9, 4  ;;  %v1766_v0 = vrot.slane %v1764_v16, 5  ;;  %v1770_v20 = vshll.u32 %v1661_v17, 16  ;;  %v1916_v26 = vld [vmem:[#allocation5 + $0x44] sm:$0x1] }
 0x1af   : > { %v1836_v32 = vrot.slane %v1797_v36, 5  ;;  %v1990_v4 = vshrl.u32 %v1913_v47, 16  ;;  %v2075_v14 = vld [vmem:[#allocation5 + $0x40] sm:$0xe]  ;;  %v1993_v33 = vshll.u32 %v1913_v47, 16  ;;  %2033 = vrot.lane.b32.xlu1 %v1946_v53, %s9436_s10  ;;  %v7828_v46 = vrot.slane %v1802_v61, 9 }
 0x1b0   : > { %v1988_v18 = vsel %vm9787_vm13, %v1983_v34, %v1987_v57  ;;  %v1767_v40 = vor.u32 %v1766_v0, %v1763_v8  ;;  %v2076_v29 = vld [vmem:[#allocation5 + $0x44] sm:$0x1]  ;;  %v7836_v28 = vrot.slane %v2075_v14, 9  ;;  %v1848_v11 = vrot.slane %v1803_v51, 5  ;;  %v1917_v1 = vld [vmem:[#allocation5 + $0x48] sm:$0xf] }
 0x1b1   : > { %v2010_v62 = vor.u32 %v2009_v44, %v2006_v27  ;;  %v2121_v3 = vrot.slane %v2076_v29, 5  ;;  %2039 = vrot.lane.b32.xlu0 %v1988_v18, %s9436_s10  ;;  %v1971_v63 = vshll.u32 %v1910_v56, 16  ;;  %v1772_v30 = vrot.slane %v1770_v20, 5  ;;  %v1800_v37 = vld [vmem:[#allocation5 + $0x30] sm:$0xe] }
 0x1b2   : > { %v1768_v48 = vrot.slane %v1767_v40, 4  ;;  %v1837_v42 = vsel %vm9896_vm2, %v7825_v52, %v1836_v32  ;;  %v2013_v59 = vshll.u32 %v1916_v26, 16  ;;  %v1969_v43 = vrot.slane %v1968_v25, 4  ;;  %v1801_v49 = vld [vmem:[#allocation5 + $0x34] sm:$0x1] }
 0x1b3   : > { %v10327_v2 = vld [vmem:[#allocation6] sm:$0xff]  ;;  %v2122_v54 = vsel %vm9896_vm2, %v7836_v28, %v2121_v3  ;;  %v1992_v39 = vrot.slane %v1990_v4, 4  ;;  %v1995_v12 = vrot.slane %v1993_v33, 5  ;;  %1860 = vrot.lane.b32.xlu1 %v1837_v42, %s9436_s10  ;;  %v1849_v35 = vsel %vm9896_vm2, %v7828_v46, %v1848_v11  ;;  %v1914_v10 = vld [vmem:[#allocation5 + $0x3c] sm:$0x1]  ;;  %v1617_v8 = vpop.permute.xlu1 %1616  ;;  %v9162_v42 = vld [vmem:[%s12265_s3 + $0xa8] sm:$0xff]  }
 0x1b4   : > { %3207 = vst.msk [vmem:[#allocation6 + $0x4] sm:$0xf] %vm279_vm6, %v3170_v23  ;;  %v1773_v36 = vsel %vm9787_vm13, %v1768_v48, %v1772_v30  ;;  %2141 = vst.msk [vmem:[#allocation6 + $0x88] sm:$0xf] %vm279_vm6, %v2122_v54  ;;  %v2011_v60 = vrot.slane %v2010_v62, 4  ;;  %v1973_v34 = vrot.slane %v1971_v63, 5 }
 0x1b5   : > { %1789 = vst.msk [vmem:[#allocation6 + $0x94] sm:$0xf] %vm279_vm6, %v1773_v36  ;;  %1866 = vrot.lane.b32.xlu0 %v1849_v35, %s9436_s10  ;;  %v2018_v52 = vshrl.u32 %v1917_v1, 16  ;;  %v2021_v15 = vshll.u32 %v1917_v1, 16  ;;  %v2015_v7 = vrot.slane %v2013_v59, 5  ;;  %v7827_v51 = vrot.slane %v1800_v37, 9 }
 0x1b6   : > { %1508 = vst.msk [vmem:[#allocation6 + $0x14] sm:$0xf] %vm350_vm14, %v1486_v13  ;;  %v1974_v61 = vsel %vm9787_vm13, %v1969_v43, %v1973_v34  ;;  %v1844_v47 = vrot.slane %v1801_v49, 5  ;;  %v1996_v9 = vor.u32 %v1995_v12, %v1992_v39  ;;  %v1999_v23 = vshll.u32 %v1914_v10, 16  ;;  %v1918_v27 = vld [vmem:[#allocation5 + $0x4c] sm:$0x1] }
 0x1b7   : > { %2037 = vrot.lane.b32.xlu1 %v1974_v61, %s9436_s10  ;;  %v2016_v16 = vsel %vm9787_vm13, %v2011_v60, %v2015_v7  ;;  %v2020_v41 = vrot.slane %v2018_v52, 4  ;;  %v2023_v56 = vrot.slane %v2021_v15, 5  ;;  %v1894_v44 = vld [vmem:[#allocation5 + $0x48] sm:$0xf]  ;;  %v1804_v0 = vld [vmem:[#allocation5 + $0x40] sm:$0xe] }
 0x1b8   : > { %v1845_v17 = vsel %vm9896_vm2, %v7827_v51, %v1844_v47  ;;  %v1997_v57 = vrot.slane %v1996_v9, 4  ;;  %1902 = vst.msk [vmem:[#allocation6 + $0x98] sm:$0xf] %vm279_vm6, %v1894_v44  ;;  %v1805_v20 = vld [vmem:[#allocation5 + $0x44] sm:$0x1]  ;;  %v2001_v53 = vrot.slane %v1999_v23, 5 }
 0x1b9   : > { %2043 = vrot.lane.b32.xlu0 %v2016_v16, %s9436_s10  ;;  %1639 = vst.msk [vmem:[#allocation6 + $0x18] sm:$0xf] %vm350_vm14, %v1617_v8  ;;  %v2024_v32 = vor.u32 %v2023_v56, %v2020_v41  ;;  %v2027_v25 = vshll.u32 %v1918_v27, 16  ;;  %v7829_v4 = vrot.slane %v1804_v0, 9  ;;  %v1852_v14 = vrot.slane %v1805_v20, 5  ;;  %v9158_v62 = vld [vmem:[%s12265_s3 + $0xb8] sm:$0xff]  }
 0x1ba   : > { %v2002_v26 = vsel %vm9787_vm13, %v1997_v57, %v2001_v53  ;;  %v9159_v63 = vld [vmem:[%s12265_s3 + $0xf0] sm:$0xff]   ;;  %v9161_v30 = vld [vmem:[%s12265_s3 + $0xe8] sm:$0xff]   ;;  %v9163_v59 = vld [vmem:[%s12265_s3 + $0xe0] sm:$0xff]  }
 0x1bb   : > { %1864 = vrot.lane.b32.xlu1 %v1845_v17, %s9436_s10  ;;  %v2025_v18 = vrot.slane %v2024_v32, 4  ;;  %v2029_v33 = vrot.slane %v2027_v25, 5  ;;  %v1853_v40 = vsel %vm9896_vm2, %v7829_v4, %v1852_v14  ;;  %v9160_v48 = vld [vmem:[%s12265_s3 + $0xb0] sm:$0xff]   ;;  %v9164_v1 = vld [vmem:[%s12265_s3 + $0xa0] sm:$0xff]   ;;  %v9165_v54 = vld [vmem:[%s12265_s3 + $0xd8] sm:$0xff]  }
 0x1bc   : > { %v9166_v43 = vld [vmem:[%s12265_s3 + $0x98] sm:$0xff]   ;;  %v9167_v12 = vld [vmem:[%s12265_s3 + $0xd0] sm:$0xff]   ;;  %v3693_v36 = vld [vmem:[#allocation5 + $0x48] sm:$0xe] }
 0x1bd   : > { %v2030_v11 = vsel %vm9787_vm13, %v2025_v18, %v2029_v33  ;;  %v3694_v35 = vld [vmem:[#allocation5 + $0x4c] sm:$0x1]  ;;  %v7930_v60 = vrot.slane %v3693_v36, 9  ;;  %v9168_v49 = vld [vmem:[%s12265_s3 + $0x90] sm:$0xff]   ;;  %v9171_v10 = vld [vmem:[%s12265_s3 + $0xc0] sm:$0xff]  }
 0x1be   : > { %v1488_v3 = vpop.permute.xlu0 %1487  ;;  %v3741_v37 = vrot.slane %v3694_v35, 5  ;;  %v10401_v34 = vld [vmem:[#allocation6 + $0x88] ss:$20 sps:$4 sm:$0xff]   ;;  %v9172_v61 = vld [vmem:[%s12265_s3 + $0x80] sm:$0xff]  }
 0x1bf   : > { %2041 = vrot.lane.b32.xlu1 %v2002_v26, %s9436_s10  ;;  %1509 = vst.msk [vmem:[#allocation6 + $0x28] sm:$0xf] %vm350_vm14, %v1488_v3  ;;  %v9169_v15 = vld [vmem:[%s12265_s3 + $0xc8] sm:$0xff]   ;;  %v10422_v51 = vld [vmem:[%s12265_s3 + $0x138] sm:$0xff]  }
 0x1c0   : > { %v2146_v29 = vld [vmem:[#allocation6 + $0x14] sm:$0xff]  ;;  %v3742_v52 = vsel %vm9896_vm2, %v7930_v60, %v3741_v37 }
 0x1c1   : > { %v7840_v28 = vcombine.high %v10327_v2, %v2146_v29  ;;  %v7839_v46 = vcombine.low %v10327_v2, %v2146_v29  ;;  %3758 = vst.msk [vmem:[#allocation6 + $0x9c] sm:$0xf] %vm279_vm6, %v3742_v52  ;;  %v9170_v7 = vld [vmem:[%s12265_s3 + $0x88] sm:$0xff]   ;;  %v9176_v52 = vld [vmem:[%s12265_s3 + $0x120] sm:$0xff]  }
 0x1c3   : > { %1868 = vrot.lane.b32.xlu1 %v1853_v40, %s9436_s10  ;;  %2628 = vmatprep.mubr.bf16.mxu1 %v7840_v28  ;;  %v1619_v2 = vpop.permute.xlu0 %1618 }
 0x1c4   : > { %2629 = vmatmul.mubr.bf16.vlgmr.msra.gmra.mxu1 %v7839_v46  ;;  %1640 = vst.msk [vmem:[#allocation6 + $0x2c] sm:$0xf] %vm350_vm14, %v1619_v2 }
 0x1c5   : > { %8610 = vmatpush3.bf16.msra.mxu1 %v9158_v62 }
 0x1c6   : > { %8611 = vmatprep.subr.bf16.mxu1 %v9159_v63 }
 0x1c7   : > { %2045 = vrot.lane.b32.xlu1 %v2030_v11, %s9436_s10 }
 0x1c9   : > { %8612 = vmatpush3.bf16.msra.mxu1 %v9160_v48 }
 0x1ca   : > { %8613 = vmatprep.subr.bf16.mxu1 %v9161_v30 }
 0x1cb   : > { %v2149_v47 = vld [vmem:[#allocation6 + $0x28] sm:$0xff] }
 0x1cd   : > { %8614 = vmatpush3.bf16.msra.mxu1 %v9162_v42 }
 0x1ce   : > { %8615 = vmatprep.subr.bf16.mxu1 %v9163_v59 }
 0x1cf   : > { %v1490_v39 = vpop.permute.xlu1 %1489 }
 0x1d0   : > { %1510 = vst.msk [vmem:[#allocation6 + $0x3c] sm:$0xf] %vm350_vm14, %v1490_v39 }
 0x1d1   : > { %8616 = vmatpush3.bf16.msra.mxu1 %v9164_v1 }
 0x1d2   : > { %8617 = vmatprep.subr.bf16.mxu1 %v9165_v54 }
 0x1d3   : > { %v1621_v13 = vpop.permute.xlu1 %1620 }
 0x1d4   : > { %1641 = vst.msk [vmem:[#allocation6 + $0x40] sm:$0xf] %vm350_vm14, %v1621_v13  ;;  %v9177_v13 = vld [vmem:[%s12265_s3 + $0x118] sm:$0xff]  }
 0x1d5   : > { %8618 = vmatpush3.bf16.msra.mxu1 %v9166_v43  ;;  %v9174_v43 = vld [vmem:[%s12265_s3 + $0x130] sm:$0xff]  }
 0x1d6   : > { %8619 = vmatprep.subr.bf16.mxu1 %v9167_v12  ;;  %v9175_v12 = vld [vmem:[%s12265_s3 + $0x128] sm:$0xff]  }
 0x1d9   : > { %8620 = vmatpush3.bf16.msra.mxu1 %v9168_v49 }
 0x1da   : > { %8621 = vmatprep.subr.bf16.mxu1 %v9169_v15 }
 0x1db   : > { %v2152_v9 = vld [vmem:[#allocation6 + $0x3c] sm:$0xff] }
 0x1dc   : > { %v7845_v16 = vcombine.high %v2149_v47, %v2152_v9  ;;  %v7844_v23 = vcombine.low %v2149_v47, %v2152_v9  ;;  %v9178_v9 = vld [vmem:[%s12265_s3 + $0x110] sm:$0xff]  }
 0x1dd   : > { %8622 = vmatpush3.bf16.msra.mxu1 %v9170_v7 }
 0x1de   : > { %8623 = vmatprep.subr.bf16.mxu1 %v9171_v10  ;;  %v1492_v41 = vpop.permute.xlu0 %1491  ;;  %2636 = vmatprep.mubr.bf16.mxu1 %v7845_v16  ;;  %v3510_v16 = vld [vmem:[#allocation5 + $0x48] sm:$0xf] }
 0x1df   : > { %1511 = vst.msk [vmem:[#allocation6 + $0x50] sm:$0xf] %vm350_vm14, %v1492_v41  ;;  %2637 = vmatmul.mubr.bf16.gmra.mxu1 %v7844_v23  ;;  %v9179_v23 = vld [vmem:[%s12265_s3 + $0x108] sm:$0xff]  }
 0x1e1   : > { %8624 = vmatpush3.bf16.msra.mxu1 %v9172_v61 }
 0x1e2   : > { %8937 = vmatprep.subr.bf16.mxu1 %v10422_v51 }
 0x1e3   : > { %v1623_v56 = vpop.permute.xlu0 %1622 }
 0x1e4   : > { %1642 = vst.msk [vmem:[#allocation6 + $0x54] sm:$0xf] %vm350_vm14, %v1623_v56 }
 0x1eb   : > { %v2155_v17 = vld [vmem:[#allocation6 + $0x50] sm:$0xff] }
 0x1ee   : > { %v1494_v27 = vpop.permute.xlu1 %1493 }
 0x1ef   : > { %1512 = vst.msk [vmem:[#allocation6 + $0x64] sm:$0xf] %vm350_vm14, %v1494_v27 }
 0x1f5   : > { %v1625_v44 = vpop.permute.xlu1 %1624 }
 0x1f6   : > { %1643 = vst.msk [vmem:[#allocation6 + $0x68] sm:$0xf] %vm350_vm14, %v1625_v44 }
 0x1fd   : > { %v2158_v57 = vld [vmem:[#allocation6 + $0x64] sm:$0xff] }
 0x1fe   : > { %v7850_v0 = vcombine.high %v2155_v17, %v2158_v57  ;;  %v7849_v20 = vcombine.low %v2155_v17, %v2158_v57  ;;  %v9181_v17 = vld [vmem:[%s12265_s3 + $0x100] sm:$0xff]  }
 0x1ff   : > { %v1496_v8 = vpop.permute.xlu0 %1495  ;;  %v9180_v57 = vld [vmem:[#allocation6 + $0x10] ss:$20 sps:$4 sm:$0xff]  }
 0x200   : > { %1513 = vst.msk [vmem:[#allocation6 + $0x78] sm:$0xf] %vm350_vm14, %v1496_v8  ;;  %2644 = vmatprep.mubr.bf16.mxu1 %v7850_v0  ;;  %v9182_v8 = vld [vmem:[#allocation6 + $0x38] ss:$20 sps:$4 sm:$0xff]   ;;  %v9183_v0 = vld [vmem:[#allocation6 + $0x60] ss:$20 sps:$4 sm:$0xff]  }
 0x201   : > { %2645 = vmatmul.mubr.bf16.gmra.mxu1 %v7849_v20  ;;  %v2975_v20 = vld [vmem:[#allocation5] sm:$0xf] }
 0x205   : > { %v1627_v53 = vpop.permute.xlu0 %1626 }
 0x206   : > { %1644 = vst.msk [vmem:[#allocation6 + $0x7c] sm:$0xf] %vm350_vm14, %v1627_v53  ;;  %v2976_v53 = vld [vmem:[#allocation5 + $0x4] sm:$0x1] }
 0x209   : > { %v1855_v32 = vpop.permute.xlu0 %1854 }
 0x20a   : > { %1878 = vst.msk [vmem:[#allocation6 + $0x8] sm:$0xf] %vm350_vm14, %v1855_v32  ;;  %v2992_v32 = vshrl.u32 %v2975_v20, 16 }
 0x20d   : > { %v2032_v25 = vpop.permute.xlu0 %2031  ;;  %v2161_v29 = vld [vmem:[#allocation6 + $0x78] sm:$0xff] }
 0x20e   : > { %2055 = vst.msk [vmem:[#allocation6 + $0xc] sm:$0xf] %vm350_vm14, %v2032_v25  ;;  %v2995_v25 = vshll.u32 %v2975_v20, 16 }
 0x20f   : > { %v1498_v26 = vpop.permute.xlu1 %1497 }
 0x210   : > { %1514 = vst.msk [vmem:[#allocation6 + $0x8c] sm:$0xf] %vm350_vm14, %v1498_v26  ;;  %v3001_v26 = vshll.u32 %v2976_v53, 16 }
 0x211   : > { %v1859_v4 = vpop.permute.xlu0 %1858 }
 0x212   : > { %1880 = vst.msk [vmem:[#allocation6 + $0x30] sm:$0xf] %vm350_vm14, %v1859_v4  ;;  %v2994_v4 = vrot.slane %v2992_v32, 4 }
 0x215   : > { %v2036_v18 = vpop.permute.xlu0 %2035  ;;  %v2144_v30 = vld [vmem:[#allocation6 + $0x8] sm:$0xff] }
 0x216   : > { %2057 = vst.msk [vmem:[#allocation6 + $0x34] sm:$0xf] %vm350_vm14, %v2036_v18 }
 0x219   : > { %v1629_v14 = vpop.permute.xlu1 %1628 }
 0x21a   : > { %1645 = vst.msk [vmem:[#allocation6 + $0x90] sm:$0xf] %vm350_vm14, %v1629_v14  ;;  %v2997_v14 = vrot.slane %v2995_v25, 5 }
 0x21b   : > { %v1863_v40 = vpop.permute.xlu0 %1862 }
 0x21c   : > { %1882 = vst.msk [vmem:[#allocation6 + $0x58] sm:$0xf] %vm350_vm14, %v1863_v40  ;;  %v2998_v18 = vor.u32 %v2997_v14, %v2994_v4 }
 0x21d   : > { %v1857_v33 = vpop.permute.xlu1 %1856  ;;  %v2150_v36 = vld [vmem:[#allocation6 + $0x30] sm:$0xff] }
 0x21e   : > { %1879 = vst.msk [vmem:[#allocation6 + $0x1c] sm:$0xf] %vm350_vm14, %v1857_v33  ;;  %v3003_v33 = vrot.slane %v3001_v26, 5  ;;  %v2999_v40 = vrot.slane %v2998_v18, 4  ;;  %v7838_v18 = vld [vmem:[%s12266_s4] ss:$0 sm:$0xff] }
 0x221   : > { %v2164_v28 = vld [vmem:[#allocation6 + $0x8c] sm:$0xff]  ;;  %v2034_v46 = vpop.permute.xlu1 %2033 }
 0x222   : > { %2056 = vst.msk [vmem:[#allocation6 + $0x20] sm:$0xf] %vm350_vm14, %v2034_v46  ;;  %v7855_v62 = vcombine.high %v2161_v29, %v2164_v28  ;;  %v7854_v3 = vcombine.low %v2161_v29, %v2164_v28  ;;  %v3004_v29 = vsel %vm9787_vm13, %v2999_v40, %v3003_v33 }
 0x223   : > { %v2040_v11 = vpop.permute.xlu0 %2039  ;;  %3103 = vrot.lane.b32.xlu0 %v3004_v29, %s9436_s10 }
 0x224   : > { %2059 = vst.msk [vmem:[#allocation6 + $0x5c] sm:$0xf] %vm350_vm14, %v2040_v11  ;;  %2652 = vmatprep.mubr.bf16.mxu1 %v7855_v62 }
 0x225   : > { %v1861_v63 = vpop.permute.xlu1 %1860  ;;  %2653 = vmatmul.mubr.bf16.gmra.mxu1 %v7854_v3  ;;  %v9185_v3 = vld [vmem:[%s12265_s3 + $0x238] sm:$0xff]  }
 0x226   : > { %1881 = vst.msk [vmem:[#allocation6 + $0x44] sm:$0xf] %vm350_vm14, %v1861_v63  ;;  %v9186_v63 = vld [vmem:[%s12265_s3 + $0x1f8] sm:$0xff]   ;;  %8701 = vmatprep.subr.bf16.mxu0 %v9185_v3 }
 0x227   : > { %v1867_v48 = vpop.permute.xlu0 %1866  ;;  %8702 = vmatpush3.bf16.msra.mxu0 %v9186_v63 }
 0x228   : > { %1884 = vst.msk [vmem:[#allocation6 + $0x80] sm:$0xf] %vm350_vm14, %v1867_v48 }
 0x229   : > { %v2147_v2 = vld [vmem:[#allocation6 + $0x1c] sm:$0xff]  ;;  %v2038_v42 = vpop.permute.xlu1 %2037 }
 0x22a   : > { %2058 = vst.msk [vmem:[#allocation6 + $0x48] sm:$0xf] %vm350_vm14, %v2038_v42  ;;  %v7842_v1 = vcombine.high %v2144_v30, %v2147_v2  ;;  %v7841_v54 = vcombine.low %v2144_v30, %v2147_v2 }
 0x22b   : > { %v2044_v59 = vpop.permute.xlu0 %2043  ;;  %v2156_v7 = vld [vmem:[#allocation6 + $0x58] sm:$0xff] }
 0x22c   : > { %2061 = vst.msk [vmem:[#allocation6 + $0x84] sm:$0xf] %vm350_vm14, %v2044_v59  ;;  %2693 = vmatprep.mubr.bf16.mxu1 %v7842_v1  ;;  %v9187_v1 = vld [vmem:[%s12265_s3 + $0x230] sm:$0xff]  }
 0x22d   : > { %v1865_v39 = vpop.permute.xlu1 %1864  ;;  %2694 = vmatmul.mubr.bf16.vlgmr.msra.gmra.mxu1 %v7841_v54  ;;  %v9188_v54 = vld [vmem:[%s12265_s3 + $0x1f0] sm:$0xff]   ;;  %8703 = vmatprep.subr.bf16.mxu0 %v9187_v1 }
 0x22e   : > { %1883 = vst.msk [vmem:[#allocation6 + $0x6c] sm:$0xf] %vm350_vm14, %v1865_v39  ;;  %8938 = vmatpush3.bf16.msra.mxu1 %v10422_v51  ;;  %8704 = vmatpush3.bf16.msra.mxu0 %v9188_v54 }
 0x22f   : > { %8939 = vmatprep.subr.bf16.mxu1 %v9174_v43 }
 0x231   : > { %v2153_v35 = vld [vmem:[#allocation6 + $0x44] sm:$0xff]  ;;  %v2042_v60 = vpop.permute.xlu1 %2041 }
 0x232   : > { %2060 = vst.msk [vmem:[#allocation6 + $0x70] sm:$0xf] %vm350_vm14, %v2042_v60  ;;  %8940 = vmatpush3.bf16.msra.mxu1 %v9174_v43  ;;  %v7847_v37 = vcombine.high %v2150_v36, %v2153_v35  ;;  %v7846_v49 = vcombine.low %v2150_v36, %v2153_v35  ;;  %v9189_v35 = vld [vmem:[%s12265_s3 + $0x228] sm:$0xff]  }
 0x233   : > { %8941 = vmatprep.subr.bf16.mxu1 %v9175_v12  ;;  %v2162_v41 = vld [vmem:[#allocation6 + $0x80] sm:$0xff]  ;;  %v9190_v60 = vld [vmem:[%s12265_s3 + $0x1e8] sm:$0xff]   ;;  %8705 = vmatprep.subr.bf16.mxu0 %v9189_v35 }
 0x234   : > { %2701 = vmatprep.mubr.bf16.mxu1 %v7847_v37  ;;  %v9191_v37 = vld [vmem:[%s12265_s3 + $0x220] sm:$0xff]   ;;  %8706 = vmatpush3.bf16.msra.mxu0 %v9190_v60  ;;  %v3533_v60 = vld [vmem:[#allocation5 + $0x48] sm:$0xf] }
 0x235   : > { %v1869_v15 = vpop.permute.xlu1 %1868  ;;  %2702 = vmatmul.mubr.bf16.gmra.mxu1 %v7846_v49  ;;  %8707 = vmatprep.subr.bf16.mxu0 %v9191_v37 }
 0x236   : > { %1885 = vst.msk [vmem:[#allocation6 + $0x94] sm:$0xf] %vm350_vm14, %v1869_v15  ;;  %8942 = vmatpush3.bf16.msra.mxu1 %v9175_v12  ;;  %v9196_v15 = vld [vmem:[%s12265_s3 + $0x178] sm:$0xff]  }
 0x237   : > { %8943 = vmatprep.subr.bf16.mxu1 %v9176_v52 }
 0x239   : > { %v2159_v10 = vld [vmem:[#allocation6 + $0x6c] sm:$0xff]  ;;  %v2046_v61 = vpop.permute.xlu1 %2045 }
 0x23a   : > { %2062 = vst.msk [vmem:[#allocation6 + $0x98] sm:$0xf] %vm350_vm14, %v2046_v61  ;;  %8944 = vmatpush3.bf16.msra.mxu1 %v9176_v52  ;;  %v7852_v51 = vcombine.high %v2156_v7, %v2159_v10  ;;  %v7851_v47 = vcombine.low %v2156_v7, %v2159_v10  ;;  %v9195_v52 = vld [vmem:[%s12265_s3 + $0x1b8] sm:$0xff]   ;;  %v9192_v10 = vld [vmem:[%s12265_s3 + $0x1e0] sm:$0xff]   ;;  %v9197_v61 = vld [vmem:[%s12265_s3 + $0x1b0] sm:$0xff]  }
 0x23b   : > { %8945 = vmatprep.subr.bf16.mxu1 %v9177_v13  ;;  %8708 = vmatpush3.bf16.msra.mxu0 %v9192_v10 }
 0x23c   : > { %2709 = vmatprep.mubr.bf16.mxu1 %v7852_v51  ;;  %v9193_v51 = vld [vmem:[%s12265_s3 + $0x218] sm:$0xff]  }
 0x23d   : > { %2710 = vmatmul.mubr.bf16.gmra.mxu1 %v7851_v47  ;;  %8709 = vmatprep.subr.bf16.mxu0 %v9193_v51 }
 0x23e   : > { %8946 = vmatpush3.bf16.msra.mxu1 %v9177_v13  ;;  %v2959_v13 = vld [vmem:[#allocation5] sm:$0xf] }
 0x23f   : > { %8947 = vmatprep.subr.bf16.mxu1 %v9178_v9  ;;  %2967 = vst.msk [vmem:[#allocation6] sm:$0xf] %vm279_vm6, %v2959_v13 }
 0x241   : > { %v2165_v56 = vld [vmem:[#allocation6 + $0x94] sm:$0xff] }
 0x242   : > { %3518 = vst.msk [vmem:[#allocation6 + $0x98] sm:$0xf] %vm279_vm6, %v3510_v16  ;;  %8948 = vmatpush3.bf16.msra.mxu1 %v9178_v9  ;;  %v7857_v27 = vcombine.high %v2162_v41, %v2165_v56  ;;  %v7856_v44 = vcombine.low %v2162_v41, %v2165_v56  ;;  %v9198_v9 = vld [vmem:[%s12265_s3 + $0x170] sm:$0xff]  }
 0x243   : > { %8949 = vmatprep.subr.bf16.mxu1 %v9179_v23 }
 0x244   : > { %2717 = vmatprep.mubr.bf16.mxu1 %v7857_v27 }
 0x245   : > { %2718 = vmatmul.mubr.bf16.gmra.mxu1 %v7856_v44 }
 0x246   : > { %8950 = vmatpush3.bf16.msra.mxu1 %v9179_v23  ;;  %8953 = vmatprep.mubr.bf16.mxu1 %v9180_v57  ;;  %v9194_v23 = vld [vmem:[%s12265_s3 + $0x1d8] sm:$0xff]  }
 0x247   : > { %8951 = vmatprep.subr.bf16.mxu1 %v9181_v17  ;;  %8710 = vmatpush3.bf16.msra.mxu0 %v9194_v23 }
 0x24a   : > { %8952 = vmatpush3.bf16.msra.mxu1 %v9181_v17 }
 0x24b   : > { %8661 = vmatprep.subr.bf16.mxu1 %v9195_v52 }
 0x24d   : > { %8954 = vmatmul.mubr.bf16.vlgmr.msra.gmra.mxu1 %v9182_v8 }
 0x24e   : > { %8957 = vmatprep.mubr.bf16.mxu1 %v9183_v0  ;;  %8662 = vmatpush3.bf16.msra.mxu1 %v9196_v15 }
 0x24f   : > { %8663 = vmatprep.subr.bf16.mxu1 %v9197_v61  ;;  %v10528_v61 = vld [vmem:[#allocation5 + $0x4c] sm:$0x1] }
 0x252   : > { %8664 = vmatpush3.bf16.msra.mxu1 %v9198_v9 }
 0x255   : > { %8958 = vmatmul.mubr.bf16.gmra.mxu1 %v10401_v34 }
 0x284   : > { %v8585_v28 = vpop.f32.mrf.mxu1 }
 0x286   : > { %v8586_v46 = vpop.f32.mrf.mxu1 }
 0x287   : > { %v8587_v4 = vadd.f32 %v8586_v46, %v8585_v28 }
 0x288   : > { %v8588_v11 = vpop.f32.mrf.mxu1 }
 0x289   : > { %v2631_v37 = vadd.f32 %v8587_v4, %v7838_v18 }
 0x28a   : > { %v8589_v62 = vpop.f32.mrf.mxu1 }
 0x28b   : > { %v8590_v33 = vadd.f32 %v8589_v62, %v8588_v11  ;;  %v3634_v11 = vshrl.u32 %v3533_v60, 16 }
 0x28d   : > { %v10534_v4 = vrot.slane %v3634_v11, 4 }
 0x29f   : > { %v8591_v34 = vpop.f32.mrf.mxu1 }
 0x2a1   : > { %v8592_v48 = vpop.f32.mrf.mxu1 }
 0x2a2   : > { %v8593_v25 = vadd.f32 %v8592_v48, %v8591_v34  ;;  %v2634_v34 = vadd.f32 %v8590_v33, %v7838_v18 }
 0x2a3   : > { %v8594_v30 = vpop.f32.mrf.mxu1 }
 0x2a4   : > { %v2639_v3 = vadd.f32 %v8593_v25, %v7838_v18 }
 0x2a5   : > { %v8595_v2 = vpop.f32.mrf.mxu1 }
 0x2a6   : > { %v8596_v40 = vadd.f32 %v8595_v2, %v8594_v30 }
 0x2a8   : > { %v2642_v48 = vadd.f32 %v8596_v40, %v7838_v18 }
 0x2c1   : > { %v8597_v42 = vpop.f32.mrf.mxu1 }
 0x2c3   : > { %v8598_v59 = vpop.f32.mrf.mxu1 }
 0x2c4   : > { %v8599_v63 = vadd.f32 %v8598_v59, %v8597_v42  ;;  %v3637_v59 = vshll.u32 %v3533_v60, 16 }
 0x2c5   : > { %v8600_v43 = vpop.f32.mrf.mxu1 }
 0x2c6   : > { %v2647_v46 = vadd.f32 %v8599_v63, %v7838_v18 }
 0x2c7   : > { %v8601_v39 = vpop.f32.mrf.mxu1 }
 0x2c8   : > { %v8602_v54 = vadd.f32 %v8601_v39, %v8600_v43 }
 0x2ca   : > { %v2650_v62 = vadd.f32 %v8602_v54, %v7838_v18 }
 0x2e5   : > { %v10488_v12 = vpop.f32.mrf.mxu1 }
 0x2e7   : > { %v10490_v36 = vpop.f32.mrf.mxu1 }
 0x2e8   : > { %v8605_v30 = vadd.f32 %v10490_v36, %v10488_v12 }
 0x2e9   : > { %v10501_v49 = vpop.f32.mrf.mxu1 }
 0x2ea   : > { %v2655_v12 = vadd.f32 %v8605_v30, %v7838_v18 }
 0x2eb   : > { %v8607_v7 = vpop.f32.mrf.mxu1 }
 0x2ec   : > { %v8608_v43 = vadd.f32 %v8607_v7, %v10501_v49 }
 0x2ed   : > { %v8625_v47 = vpop.f32.mrf.mxu1 }
 0x2ee   : > { %v2658_v49 = vadd.f32 %v8608_v43, %v7838_v18  ;;  %v9200_v18 = vld [vmem:[%s12265_s3 + $0x168] sm:$0xff]  }
 0x2ef   : > { %v8626_v16 = vpop.f32.mrf.mxu1 }
 0x2f0   : > { %v8627_v1 = vadd.f32 %v8626_v16, %v8625_v47 }
 0x2f1   : > { %v8628_v41 = vpop.f32.mrf.mxu1 }
 0x2f2   : > { %v2696_v10 = vadd.f32 %v8627_v1, %v2631_v37 }
 0x2f3   : > { %v8629_v56 = vpop.f32.mrf.mxu1 }
 0x2f4   : > { %v8630_v2 = vadd.f32 %v8629_v56, %v8628_v41 }
 0x2f5   : > { %v8631_v27 = vpop.f32.mrf.mxu1 }
 0x2f6   : > { %v2699_v41 = vadd.f32 %v8630_v2, %v2634_v34 }
 0x2f7   : > { %v8632_v44 = vpop.f32.mrf.mxu1 }
 0x2f8   : > { %v8633_v14 = vadd.f32 %v8632_v44, %v8631_v27  ;;  %v3643_v44 = vshll.u32 %v10528_v61, 16 }
 0x2f9   : > { %v8634_v17 = vpop.f32.mrf.mxu1 }
 0x2fa   : > { %v2704_v15 = vadd.f32 %v8633_v14, %v2639_v3  ;;  %v10536_v14 = vrot.slane %v3637_v59, 5 }
 0x2fb   : > { %v8635_v57 = vpop.f32.mrf.mxu1 }
 0x2fc   : > { %v8636_v52 = vadd.f32 %v8635_v57, %v8634_v17 }
 0x2fd   : > { %v8637_v8 = vpop.f32.mrf.mxu1 }
 0x2fe   : > { %v2707_v47 = vadd.f32 %v8636_v52, %v2642_v48 }
 0x2ff   : > { %v8638_v0 = vpop.f32.mrf.mxu1 }
 0x300   : > { %v8639_v9 = vadd.f32 %v8638_v0, %v8637_v8 }
 0x301   : > { %v8640_v20 = vpop.f32.mrf.mxu1 }
 0x303   : > { %v8641_v53 = vpop.f32.mrf.mxu1 }
 0x304   : > { %v8642_v16 = vadd.f32 %v8641_v53, %v8640_v20 }
 0x305   : > { %v8643_v32 = vpop.f32.mrf.mxu1 }
 0x307   : > { %v8644_v26 = vpop.f32.mrf.mxu1 }
 0x308   : > { %v8645_v23 = vadd.f32 %v8644_v26, %v8643_v32  ;;  %v2712_v32 = vadd.f32 %v8639_v9, %v2647_v46  ;;  %v2715_v26 = vadd.f32 %v8642_v16, %v2650_v62  ;;  %v2923_v46 = vld [vmem:[#allocation5 + $0x18] sm:$0xf] }
 0x309   : > { %v8646_v29 = vpop.f32.mrf.mxu1 }
 0x30a   : > { %v2720_v20 = vadd.f32 %v8645_v23, %v2655_v12 }
 0x30b   : > { %v8647_v35 = vpop.f32.mrf.mxu1 }
 0x30c   : > { %v8648_v36 = vadd.f32 %v8647_v35, %v8646_v29  ;;  %v9199_v29 = vld [vmem:[%s12265_s3 + $0x1a8] sm:$0xff]  }
 0x30d   : > { %v8955_v28 = vpop.f32.mrf.mxu1  ;;  %8665 = vmatprep.subr.bf16.mxu1 %v9199_v29  ;;  %v2917_v29 = vld [vmem:[#allocation5 + $0x10] sm:$0xf] }
 0x30e   : > { %v2769_v13 = vadd.f32 %v8955_v28, %v2704_v15  ;;  %v2723_v52 = vadd.f32 %v8648_v36, %v2658_v49  ;;  %8666 = vmatpush3.bf16.msra.mxu1 %v9200_v18  ;;  %v2920_v18 = vld [vmem:[#allocation5 + $0x14] sm:$0x1] }
 0x30f   : > { %v2760_v42 = vpop.f32.mrf.mxu1 }
 0x310   : > { %v2793_v39 = vmax.f32 %v2769_v13, 0.0  ;;  %v2761_v51 = vadd.f32 %v2760_v42, %v2696_v10  ;;  %v2926_v13 = vld [vmem:[#allocation5 + $0x1c] sm:$0x1] }
 0x311   : > { %v8956_v27 = vpop.f32.mrf.mxu1 }
 0x312   : > { %v8434_v17 = vpack.c.bf16 %v2793_v39, %v2793_v39  ;;  %v2791_v57 = vmax.f32 %v2761_v51, 0.0  ;;  %v2772_v25 = vadd.f32 %v8956_v27, %v2707_v47  ;;  %v2911_v51 = vld [vmem:[#allocation5 + $0x8] sm:$0xf]  ;;  %v2914_v47 = vld [vmem:[#allocation5 + $0xc] sm:$0x1] }
 0x313   : > { %v2763_v56 = vpop.f32.mrf.mxu1 }
 0x314   : > { %v2848_v7 = vshrl.u32 %v8434_v17, 16  ;;  %v8432_v33 = vpack.c.bf16 %v2791_v57, %v2791_v57  ;;  %v2794_v8 = vmax.f32 %v2772_v25, 0.0  ;;  %v2764_v0 = vadd.f32 %v2763_v56, %v2699_v41 }
 0x315   : > { %v8959_v53 = vpop.f32.mrf.mxu1  ;;  %v2851_v3 = vshll.u32 %v8434_v17, 16 }
 0x316   : > { %v2850_v40 = vrot.slane %v2848_v7, 7  ;;  %v2832_v63 = vshrl.u32 %v8432_v33, 16  ;;  %v8435_v1 = vpack.c.bf16 %v2794_v8, %v2794_v8  ;;  %v2835_v54 = vshll.u32 %v8432_v33, 16  ;;  %v2929_v33 = vld [vmem:[#allocation5 + $0x20] sm:$0xf] }
 0x317   : > { %v2792_v35 = vmax.f32 %v2764_v0, 0.0  ;;  %v2785_v60 = vadd.f32 %v8959_v53, %v2720_v20  ;;  %v2776_v37 = vpop.f32.mrf.mxu1  ;;  %v2932_v8 = vld [vmem:[#allocation5 + $0x24] sm:$0x1] }
 0x318   : > { %v2853_v15 = vor.u32 %v2851_v3, %v2850_v40  ;;  %v2854_v34 = vrot.slane %v2850_v40, 4  ;;  %v2834_v48 = vrot.slane %v2832_v63, 7  ;;  %v2856_v28 = vshrl.u32 %v8435_v1, 16 }
 0x319   : > { %v2859_v10 = vshll.u32 %v8435_v1, 16  ;;  %v8433_v11 = vpack.c.bf16 %v2792_v35, %v2792_v35  ;;  %v2797_v62 = vmax.f32 %v2785_v60, 0.0  ;;  %v2777_v30 = vadd.f32 %v2776_v37, %v2712_v32  ;;  %v8960_v2 = vpop.f32.mrf.mxu1 }
 0x31a   : > { %v2924_v42 = vsel %vm9887_vm1, %v2853_v15, %v2923_v46  ;;  %v2927_v59 = vsel %vm9769_vm9, %v2854_v34, %v2926_v13  ;;  %v2837_v43 = vor.u32 %v2835_v54, %v2834_v48  ;;  %v2838_v39 = vrot.slane %v2834_v48, 4 }
 0x31b   : > { %2928 = vst [vmem:[#allocation5 + $0x1c] sm:$0x1] %v2927_v59  ;;  %2925 = vst [vmem:[#allocation5 + $0x18] sm:$0xf] %v2924_v42  ;;  %v2858_v9 = vrot.slane %v2856_v28, 7  ;;  %v2840_v16 = vshrl.u32 %v8433_v11, 16  ;;  %v8438_v27 = vpack.c.bf16 %v2797_v62, %v2797_v62  ;;  %v2779_v17 = vpop.f32.mrf.mxu1  ;;  %v2788_v36 = vadd.f32 %v8960_v2, %v2723_v52 }
 0x31c   : > { %v2843_v23 = vshll.u32 %v8433_v11, 16  ;;  %v2912_v57 = vsel %vm9887_vm1, %v2837_v43, %v2911_v51  ;;  %v2915_v25 = vsel %vm9769_vm9, %v2838_v39, %v2914_v47  ;;  %v2795_v12 = vmax.f32 %v2777_v30, 0.0  ;;  %v2950_v11 = vld [vmem:[#allocation5 + $0x3c] sm:$0x1]  ;;  %v2935_v47 = vld [vmem:[#allocation5 + $0x28] sm:$0xf] }
 0x31d   : > { %2916 = vst [vmem:[#allocation5 + $0xc] sm:$0x1] %v2915_v25  ;;  %2913 = vst [vmem:[#allocation5 + $0x8] sm:$0xf] %v2912_v57  ;;  %v2861_v41 = vor.u32 %v2859_v10, %v2858_v9  ;;  %v2862_v56 = vrot.slane %v2858_v9, 4  ;;  %v2842_v49 = vrot.slane %v2840_v16, 7  ;;  %v2780_v53 = vadd.f32 %v2779_v17, %v2715_v26 }
 0x31e   : > { %v2880_v7 = vshrl.u32 %v8438_v27, 16  ;;  %v8436_v0 = vpack.c.bf16 %v2795_v12, %v2795_v12  ;;  %v2798_v20 = vmax.f32 %v2788_v36, 0.0  ;;  %v3640_v32 = vor.u32 %v10536_v14, %v10534_v4  ;;  %v2947_v14 = vld [vmem:[#allocation5 + $0x38] sm:$0xf]  ;;  %v9201_v10 = vld [vmem:[%s12265_s3 + $0x210] sm:$0xff]   ;;  %v9202_v16 = vld [vmem:[%s12265_s3 + $0x1a0] sm:$0xff]  }
 0x31f   : > { %v2930_v40 = vsel %vm9887_vm1, %v2861_v41, %v2929_v33  ;;  %v2933_v3 = vsel %vm9769_vm9, %v2862_v56, %v2932_v8  ;;  %v2845_v63 = vor.u32 %v2843_v23, %v2842_v49  ;;  %v2846_v1 = vrot.slane %v2842_v49, 4  ;;  %v2938_v9 = vld [vmem:[#allocation5 + $0x2c] sm:$0x1]  ;;  %8711 = vmatprep.subr.bf16.mxu0 %v9201_v10  ;;  %v2953_v12 = vld [vmem:[#allocation5 + $0x40] sm:$0xf]  ;;  %8667 = vmatprep.subr.bf16.mxu1 %v9202_v16  ;;  %v9205_v10 = vld [vmem:[%s12265_s3 + $0x198] sm:$0xff]  }
 0x320   : > { %2934 = vst [vmem:[#allocation5 + $0x24] sm:$0x1] %v2933_v3  ;;  %2931 = vst [vmem:[#allocation5 + $0x20] sm:$0xf] %v2930_v40  ;;  %v2882_v54 = vrot.slane %v2880_v7, 7  ;;  %v2883_v35 = vshll.u32 %v8438_v27, 16  ;;  %v8439_v37 = vpack.c.bf16 %v2798_v20, %v2798_v20 }
 0x321   : > { %v2864_v60 = vshrl.u32 %v8436_v0, 16  ;;  %v2918_v26 = vsel %vm9887_vm1, %v2845_v63, %v2917_v29  ;;  %v2921_v4 = vsel %vm9769_vm9, %v2846_v1, %v2920_v18  ;;  %v2867_v52 = vshll.u32 %v8436_v0, 16  ;;  %v2956_v36 = vld [vmem:[#allocation5 + $0x44] sm:$0x1]  ;;  %v2941_v40 = vld [vmem:[#allocation5 + $0x30] sm:$0xf] }
 0x322   : > { %v2796_v15 = vmax.f32 %v2780_v53, 0.0  ;;  %2922 = vst [vmem:[#allocation5 + $0x14] sm:$0x1] %v2921_v4  ;;  %2919 = vst [vmem:[#allocation5 + $0x10] sm:$0xf] %v2918_v26  ;;  %v2885_v34 = vor.u32 %v2883_v35, %v2882_v54  ;;  %v2886_v48 = vrot.slane %v2882_v54, 4  ;;  %v3104_v35 = vpop.permute.xlu0 %3103 }
 0x323   : > { %v2866_v28 = vrot.slane %v2864_v60, 7  ;;  %v2888_v46 = vshrl.u32 %v8439_v37, 16  ;;  %v3217_v13 = vld [vmem:[#allocation5 + $0x18] sm:$0xf]  ;;  %v10566_v2 = vrot.slane %v3640_v32, 4  ;;  %v10570_v42 = vrot.slane %v3643_v44, 5 }
 0x324   : > { %v8437_v62 = vpack.c.bf16 %v2796_v15, %v2796_v15  ;;  %3235 = vrot.lane.b32.xlu0 %v3217_v13, %s9436_s10  ;;  %v2981_v30 = vld [vmem:[#allocation5 + $0x18] sm:$0xf]  ;;  %v2948_v59 = vsel %vm9887_vm1, %v2885_v34, %v2947_v14  ;;  %v2951_v43 = vsel %vm9769_vm9, %v2886_v48, %v2950_v11  ;;  %v2891_v44 = vshll.u32 %v8439_v37, 16  ;;  %v2982_v27 = vld [vmem:[#allocation5 + $0x1c] sm:$0x1]  ;;  %v9203_v32 = vld [vmem:[%s12265_s3 + $0x1d0] sm:$0xff]  }
 0x325   : > { %v2869_v39 = vor.u32 %v2867_v52, %v2866_v28  ;;  %v2870_v51 = vrot.slane %v2866_v28, 4  ;;  %2952 = vst [vmem:[#allocation5 + $0x3c] sm:$0x1] %v2951_v43  ;;  %2949 = vst [vmem:[#allocation5 + $0x38] sm:$0xf] %v2948_v59  ;;  %v2890_v61 = vrot.slane %v2888_v46, 7  ;;  %8712 = vmatpush3.bf16.msra.mxu0 %v9203_v32 }
 0x326   : > { %v2872_v23 = vshrl.u32 %v8437_v62, 16  ;;  %v3034_v17 = vshrl.u32 %v2981_v30, 16  ;;  %v2875_v41 = vshll.u32 %v8437_v62, 16  ;;  %v3215_v56 = vld [vmem:[#allocation5 + $0x8] sm:$0xf]  ;;  %v3037_v49 = vshll.u32 %v2981_v30, 16 }
 0x327   : > { %v2936_v57 = vsel %vm9887_vm1, %v2869_v39, %v2935_v47  ;;  %v2939_v25 = vsel %vm9769_vm9, %v2870_v51, %v2938_v9  ;;  %v2977_v7 = vld [vmem:[#allocation5 + $0x8] sm:$0xf]  ;;  %v2893_v33 = vor.u32 %v2891_v44, %v2890_v61  ;;  %v2894_v8 = vrot.slane %v2890_v61, 4  ;;  %v2983_v53 = vld [vmem:[#allocation5 + $0x20] sm:$0xf]  ;;  %v9206_v16 = vld [vmem:[%s12265_s3 + $0x158] sm:$0xff]  }
 0x328   : > { %2940 = vst [vmem:[#allocation5 + $0x2c] sm:$0x1] %v2939_v25  ;;  %2937 = vst [vmem:[#allocation5 + $0x28] sm:$0xf] %v2936_v57  ;;  %v2874_v0 = vrot.slane %v2872_v23, 7  ;;  %3231 = vrot.lane.b32.xlu0 %v3215_v56, %s9436_s10  ;;  %v3036_v20 = vrot.slane %v3034_v17, 4 }
 0x329   : > { %v2944_v3 = vld [vmem:[#allocation5 + $0x34] sm:$0x1]  ;;  %v3039_v63 = vrot.slane %v3037_v49, 5  ;;  %v3043_v1 = vshll.u32 %v2982_v27, 16  ;;  %v2984_v29 = vld [vmem:[#allocation5 + $0x24] sm:$0x1]  ;;  %v2954_v60 = vsel %vm9887_vm1, %v2893_v33, %v2953_v12  ;;  %v2957_v37 = vsel %vm9769_vm9, %v2894_v8, %v2956_v36 }
 0x32a   : > { %v3048_v18 = vshrl.u32 %v2983_v53, 16  ;;  %v3051_v54 = vshll.u32 %v2983_v53, 16  ;;  %v2877_v26 = vor.u32 %v2875_v41, %v2874_v0  ;;  %v2878_v4 = vrot.slane %v2874_v0, 4  ;;  %v3216_v14 = vld [vmem:[#allocation5 + $0x10] sm:$0xf]  ;;  %v9204_v15 = vld [vmem:[%s12265_s3 + $0x160] sm:$0xff]  }
 0x32b   : > { %v2978_v52 = vld [vmem:[#allocation5 + $0xc] sm:$0x1]  ;;  %3127 = vst.msk [vmem:[#allocation6] sm:$0xf] %vm350_vm14, %v3104_v35  ;;  %2958 = vst [vmem:[#allocation5 + $0x44] sm:$0x1] %v2957_v37  ;;  %3233 = vrot.lane.b32.xlu1 %v3216_v14, %s9436_s10  ;;  %v3040_v34 = vor.u32 %v3039_v63, %v3036_v20  ;;  %8668 = vmatpush3.bf16.msra.mxu1 %v9204_v15 }
 0x32c   : > { %2955 = vst [vmem:[#allocation5 + $0x40] sm:$0xf] %v2954_v60  ;;  %v3050_v48 = vrot.slane %v3048_v18, 4  ;;  %v3053_v28 = vrot.slane %v3051_v54, 5  ;;  %v3057_v46 = vshll.u32 %v2984_v29, 16  ;;  %v2942_v11 = vsel %vm9887_vm1, %v2877_v26, %v2941_v40  ;;  %8669 = vmatprep.subr.bf16.mxu1 %v9205_v10  ;;  %v9207_v56 = vld [vmem:[%s12265_s3 + $0x190] sm:$0xff]  }
 0x32d   : > { %v2979_v13 = vld [vmem:[#allocation5 + $0x10] sm:$0xf]  ;;  %v2945_v62 = vsel %vm9769_vm9, %v2878_v4, %v2944_v3  ;;  %v3006_v30 = vshrl.u32 %v2977_v7, 16  ;;  %v3009_v59 = vshll.u32 %v2977_v7, 16  ;;  %v2980_v43 = vld [vmem:[#allocation5 + $0x14] sm:$0x1] }
 0x32e   : > { %2946 = vst [vmem:[#allocation5 + $0x34] sm:$0x1] %v2945_v62  ;;  %2943 = vst [vmem:[#allocation5 + $0x30] sm:$0xf] %v2942_v11  ;;  %v3041_v39 = vrot.slane %v3040_v34, 4  ;;  %v3045_v51 = vrot.slane %v3043_v1, 5  ;;  %v3054_v47 = vor.u32 %v3053_v28, %v3050_v48 }
 0x32f   : > { %v3015_v9 = vshll.u32 %v2978_v52, 16  ;;  %v3008_v61 = vrot.slane %v3006_v30, 4  ;;  %v3011_v44 = vrot.slane %v3009_v59, 5  ;;  %v3020_v23 = vshrl.u32 %v2979_v13, 16  ;;  %v2989_v17 = vld [vmem:[#allocation5 + $0x38] sm:$0xf]  ;;  %8670 = vmatpush3.bf16.msra.mxu1 %v9206_v16 }
 0x330   : > { %v3023_v27 = vshll.u32 %v2979_v13, 16  ;;  %v3046_v57 = vsel %vm9787_vm13, %v3041_v39, %v3045_v51  ;;  %v3055_v25 = vrot.slane %v3054_v47, 4  ;;  %v3059_v12 = vrot.slane %v3057_v46, 5  ;;  %v10608_v41 = vld [vmem:[#allocation5 + $0x8] sm:$0xe]  ;;  %v9208_v53 = vld [vmem:[%s12265_s3 + $0x150] sm:$0xff]   ;;  %8671 = vmatprep.subr.bf16.mxu1 %v9207_v56 }
 0x331   : > { %v3029_v36 = vshll.u32 %v2980_v43, 16  ;;  %3109 = vrot.lane.b32.xlu1 %v3046_v57, %s9436_s10  ;;  %v3012_v49 = vor.u32 %v3011_v44, %v3008_v61  ;;  %v3022_v7 = vrot.slane %v3020_v23, 4  ;;  %v2990_v8 = vld [vmem:[#allocation5 + $0x3c] sm:$0x1]  ;;  %v3090_v0 = vshrl.u32 %v2989_v17, 16  ;;  %v9209_v29 = vld [vmem:[%s12265_s3 + $0x188] sm:$0xff]  }
 0x332   : > { %v3025_v33 = vrot.slane %v3023_v27, 5  ;;  %v10614_v20 = vld [vmem:[#allocation5 + $0x10] sm:$0xf]  ;;  %v3060_v32 = vsel %vm9787_vm13, %v3055_v25, %v3059_v12  ;;  %v3017_v40 = vrot.slane %v3015_v9, 5  ;;  %v3093_v3 = vshll.u32 %v2989_v17, 16  ;;  %v9210_v13 = vld [vmem:[%s12265_s3 + $0x148] sm:$0xff]  }
 0x333   : > { %v3099_v63 = vshll.u32 %v2990_v8, 16  ;;  %v2985_v1 = vld [vmem:[#allocation5 + $0x28] sm:$0xf]  ;;  %3111 = vrot.lane.b32.xlu0 %v3060_v32, %s9436_s10  ;;  %v3013_v18 = vrot.slane %v3012_v49, 4  ;;  %v3031_v35 = vrot.slane %v3029_v36, 5  ;;  %v3092_v60 = vrot.slane %v3090_v0, 4  ;;  %8672 = vmatpush3.bf16.msra.mxu1 %v9208_v53 }
 0x334   : > { %v3026_v54 = vor.u32 %v3025_v33, %v3022_v7  ;;  %v2986_v37 = vld [vmem:[#allocation5 + $0x2c] sm:$0x1]  ;;  %v3095_v26 = vrot.slane %v3093_v3, 5  ;;  %v7915_v52 = vrot.slane %v10608_v41, 9  ;;  %v3062_v15 = vshrl.u32 %v2985_v1, 16  ;;  %8673 = vmatprep.subr.bf16.mxu1 %v9209_v29  ;;  %v9212_v44 = vld [vmem:[%s12265_s3 + $0x180] sm:$0xff]  }
 0x335   : > { %v10625_v4 = vrot.slane %v3099_v63, 5  ;;  %v10627_v14 = vld [vmem:[#allocation5 + $0xc] sm:$0x1]  ;;  %v3018_v34 = vsel %vm9787_vm13, %v3013_v18, %v3017_v40  ;;  %v3065_v28 = vshll.u32 %v2985_v1, 16  ;;  %v3071_v46 = vshll.u32 %v2986_v37, 16  ;;  %v9214_v40 = vld [vmem:[%s12265_s3 + $0x140] sm:$0xff]  }
 0x336   : > { %v3027_v48 = vrot.slane %v3026_v54, 4  ;;  %v9211_v10 = vld [vmem:[%s12265_s3 + $0x208] sm:$0xff]   ;;  %3105 = vrot.lane.b32.xlu1 %v3018_v34, %s9436_s10  ;;  %v3096_v11 = vor.u32 %v3095_v26, %v3092_v60  ;;  %v3064_v62 = vrot.slane %v3062_v15, 4  ;;  %v2987_v30 = vld [vmem:[#allocation5 + $0x30] sm:$0xf]  ;;  %v3536_v43 = vshrl.u32 %v10614_v20, 16 }
 0x337   : > { %v2988_v59 = vld [vmem:[#allocation5 + $0x34] sm:$0x1]  ;;  %v3218_v51 = vld [vmem:[#allocation5 + $0x20] sm:$0xf]  ;;  %v3441_v47 = vrot.slane %v10627_v14, 5  ;;  %v3067_v9 = vrot.slane %v3065_v28, 5  ;;  %8713 = vmatprep.subr.bf16.mxu0 %v9211_v10  ;;  %8674 = vmatpush3.bf16.msra.mxu1 %v9210_v13 }
 0x338   : > { %v3032_v39 = vsel %vm9787_vm13, %v3027_v48, %v3031_v35  ;;  %v3076_v16 = vshrl.u32 %v2987_v30, 16  ;;  %v3520_v61 = vld [vmem:[#allocation5 + $0x14] sm:$0x1]  ;;  %v10647_v23 = vrot.slane %v3071_v46, 5  ;;  %v3079_v27 = vshll.u32 %v2987_v30, 16  ;;  %v9213_v33 = vld [vmem:[%s12265_s3 + $0x1c8] sm:$0xff]   ;;  %8675 = vmatprep.subr.bf16.mxu1 %v9212_v44 }
 0x339   : > { %3107 = vrot.lane.b32.xlu0 %v3032_v39, %s9436_s10  ;;  %v3085_v17 = vshll.u32 %v2988_v59, 16  ;;  %v3538_v57 = vrot.slane %v3536_v43, 4  ;;  %v10649_v25 = vld [vmem:[#allocation5 + $0x10] sm:$0xe]  ;;  %v3219_v12 = vld [vmem:[#allocation5 + $0x28] sm:$0xf]  ;;  %v3068_v36 = vor.u32 %v3067_v9, %v3064_v62  ;;  %8714 = vmatpush3.bf16.msra.mxu0 %v9213_v33 }
 0x33a   : > { %v3078_v56 = vrot.slane %v3076_v16, 4  ;;  %v3539_v49 = vshll.u32 %v10614_v20, 16  ;;  %v3545_v7 = vshll.u32 %v3520_v61, 16  ;;  %3237 = vrot.lane.b32.xlu1 %v3218_v51, %s9436_s10  ;;  %v3097_v8 = vrot.slane %v3096_v11, 4  ;;  %v10658_v32 = vld [vmem:[#allocation5 + $0x14] sm:$0x1] }
 0x33b   : > { %v3081_v0 = vrot.slane %v3079_v27, 5  ;;  %v10656_v53 = vrot.slane %v3085_v17, 5  ;;  %v3220_v20 = vld [vmem:[#allocation5 + $0x30] sm:$0xf]  ;;  %v10663_v3 = vrot.slane %v3068_v36, 4  ;;  %v7916_v29 = vrot.slane %v10649_v25, 9  ;;  %8676 = vmatpush3.bf16.msra.mxu1 %v9214_v40 }
 0x33c   : > { %v3541_v63 = vrot.slane %v3539_v49, 5  ;;  %v10665_v1 = vrot.slane %v3545_v7, 5  ;;  %v10668_v18 = vld [vmem:[#allocation5 + $0x18] sm:$0xe]  ;;  %v10671_v35 = vld [vmem:[#allocation5 + $0x1c] sm:$0x1]  ;;  %v3102_v17 = vsel %vm9787_vm13, %v3097_v8, %v10625_v4  ;;  %v3442_v7 = vsel %vm9896_vm2, %v7915_v52, %v3441_v47 }
 0x33d   : > { %3239 = vrot.lane.b32.xlu0 %v3219_v12, %s9436_s10  ;;  %v3082_v54 = vor.u32 %v3081_v0, %v3078_v56  ;;  %v3521_v60 = vld [vmem:[#allocation5 + $0x18] sm:$0xf]  ;;  %v3522_v37 = vld [vmem:[#allocation5 + $0x1c] sm:$0x1]  ;;  %v3523_v34 = vld [vmem:[#allocation5 + $0x20] sm:$0xf]  ;;  %v3074_v41 = vsel %vm9787_vm13, %v10663_v3, %v10647_v23 }
 0x33e   : > { %v3542_v26 = vor.u32 %v3541_v63, %v3538_v57  ;;  %v3550_v15 = vshrl.u32 %v3521_v60, 16  ;;  %v3524_v48 = vld [vmem:[#allocation5 + $0x24] sm:$0x1]  ;;  %v10676_v28 = vld [vmem:[%s12265_s3 + $0x278] sm:$0xff]   ;;  %3241 = vrot.lane.b32.xlu1 %v3220_v20, %s9436_s10  ;;  %v3445_v13 = vrot.slane %v10658_v32, 5  ;;  %v7917_v10 = vrot.slane %v10668_v18, 9 }
 0x33f   : > { %v3221_v46 = vld [vmem:[#allocation5 + $0x38] sm:$0xf]  ;;  %v3553_v11 = vshll.u32 %v3521_v60, 16  ;;  %v3559_v62 = vshll.u32 %v3522_v37, 16  ;;  %v3449_v30 = vrot.slane %v10671_v35, 5  ;;  %v3564_v43 = vshrl.u32 %v3523_v34, 16  ;;  %8961 = vmatprep.subr.bf16.mxu1 %v10676_v28 }
 0x340   : > { %v3552_v59 = vrot.slane %v3550_v15, 4  ;;  %v3567_v39 = vshll.u32 %v3523_v34, 16  ;;  %v10682_v51 = vld [vmem:[#allocation5 + $0x20] sm:$0xe]  ;;  %v3083_v9 = vrot.slane %v3082_v54, 4  ;;  %v10686_v16 = vrot.slane %v3542_v26, 4 }
 0x341   : > { %3243 = vrot.lane.b32.xlu0 %v3221_v46, %s9436_s10  ;;  %v3555_v61 = vrot.slane %v3553_v11, 5  ;;  %v3573_v44 = vshll.u32 %v3524_v48, 16  ;;  %v10688_v27 = vld [vmem:[#allocation5 + $0x24] sm:$0x1]  ;;  %v10693_v57 = vrot.slane %v3559_v62, 5  ;;  %v3566_v12 = vrot.slane %v3564_v43, 4 }
 0x342   : > { %v3569_v36 = vrot.slane %v3567_v39, 5  ;;  %v10695_v56 = vld [vmem:[#allocation5 + $0x28] sm:$0xe]  ;;  %v9220_v49 = vld [vmem:[%s12265_s3 + $0x200] sm:$0xff]   ;;  %3117 = vrot.lane.b32.xlu1 %v3102_v17, %s9436_s10  ;;  %v7918_v33 = vrot.slane %v10682_v51, 9  ;;  %v3453_v52 = vrot.slane %v10688_v27, 5  ;;  %v3088_v11 = vsel %vm9787_vm13, %v3083_v9, %v10656_v53 }
 0x343   : > { %v3556_v4 = vor.u32 %v3555_v61, %v3552_v59  ;;  %v10708_v8 = vld [vmem:[#allocation5 + $0x2c] sm:$0x1]  ;;  %v3525_v0 = vld [vmem:[#allocation5 + $0x28] sm:$0xf]  ;;  %v9221_v40 = vld [vmem:[%s12265_s3 + $0x1c0] sm:$0xff]   ;;  %v10713_v63 = vrot.slane %v3573_v44, 5  ;;  %8715 = vmatprep.subr.bf16.mxu0 %v9220_v49  ;;  %v3548_v53 = vsel %vm9787_vm13, %v10686_v16, %v10665_v1  ;;  %v3450_v32 = vsel %vm9896_vm2, %v7917_v10, %v3449_v30 }
 0x344   : > { %v3570_v20 = vor.u32 %v3569_v36, %v3566_v12  ;;  %v3526_v54 = vld [vmem:[#allocation5 + $0x2c] sm:$0x1]  ;;  %v3578_v14 = vshrl.u32 %v3525_v0, 16  ;;  %v3581_v60 = vshll.u32 %v3525_v0, 16  ;;  %v7919_v47 = vrot.slane %v10695_v56, 9  ;;  %8716 = vmatpush3.bf16.msra.mxu0 %v9221_v40 }
 0x345   : > { %3471 = vrot.lane.b32.xlu0 %v3442_v7, %s9436_s10  ;;  %v3527_v37 = vld [vmem:[#allocation5 + $0x30] sm:$0xf]  ;;  %v3528_v26 = vld [vmem:[#allocation5 + $0x34] sm:$0x1]  ;;  %v3457_v15 = vrot.slane %v10708_v8, 5  ;;  %v3587_v46 = vshll.u32 %v3526_v54, 16 }
 0x346   : > { %v3580_v34 = vrot.slane %v3578_v14, 4  ;;  %v3583_v48 = vrot.slane %v3581_v60, 5  ;;  %3113 = vrot.lane.b32.xlu1 %v3074_v41, %s9436_s10  ;;  %v3592_v62 = vshrl.u32 %v3527_v37, 16  ;;  %v3595_v23 = vshll.u32 %v3527_v37, 16  ;;  %v10727_v3 = vld [vmem:[#allocation5 + $0x30] sm:$0xe] }
 0x347   : > { %v10729_v59 = vld [vmem:[#allocation5 + $0x34] sm:$0x1]  ;;  %v3222_v43 = vld [vmem:[#allocation5 + $0x40] sm:$0xf]  ;;  %v3557_v39 = vrot.slane %v3556_v4, 4  ;;  %v10731_v61 = vrot.slane %v3570_v20, 4  ;;  %v3458_v51 = vsel %vm9896_vm2, %v7919_v47, %v3457_v15 }
 0x348   : > { %v3584_v44 = vor.u32 %v3583_v48, %v3580_v34  ;;  %v3601_v17 = vshll.u32 %v3528_v26, 16  ;;  %v10733_v12 = vld [vmem:[#allocation5 + $0x38] sm:$0xe]  ;;  %v3594_v9 = vrot.slane %v3592_v62, 4  ;;  %v3597_v36 = vrot.slane %v3595_v23, 5 }
 0x349   : > { %3115 = vrot.lane.b32.xlu0 %v3088_v11, %s9436_s10  ;;  %v10740_v49 = vld [vmem:[#allocation5 + $0x3c] sm:$0x1]  ;;  %v3529_v7 = vld [vmem:[#allocation5 + $0x38] sm:$0xf]  ;;  %v10742_v0 = vrot.slane %v3587_v46, 5  ;;  %v7920_v4 = vrot.slane %v10727_v3, 9 }
 0x34a   : > { %v3461_v40 = vrot.slane %v10729_v59, 5  ;;  %v3530_v20 = vld [vmem:[#allocation5 + $0x3c] sm:$0x1]  ;;  %v3606_v54 = vshrl.u32 %v3529_v7, 16  ;;  %3245 = vrot.lane.b32.xlu1 %v3222_v43, %s9436_s10  ;;  %v3598_v14 = vor.u32 %v3597_v36, %v3594_v9  ;;  %v7921_v60 = vrot.slane %v10733_v12, 9 }
 0x34b   : > { %v3609_v41 = vshll.u32 %v3529_v7, 16  ;;  %v3615_v1 = vshll.u32 %v3530_v20, 16  ;;  %v3531_v16 = vld [vmem:[#allocation5 + $0x40] sm:$0xf]  ;;  %v10748_v37 = vrot.slane %v3584_v44, 4  ;;  %v10750_v26 = vrot.slane %v3601_v17, 5 }
 0x34c   : > { %v3465_v34 = vrot.slane %v10740_v49, 5  ;;  %v3620_v48 = vshrl.u32 %v3531_v16, 16  ;;  %v10754_v46 = vrot.slane %v3606_v54, 4  ;;  %v10756_v11 = vld [vmem:[#allocation5 + $0x44] sm:$0x1]  ;;  %v3623_v62 = vshll.u32 %v3531_v16, 16 }
 0x34d   : > { %3647 = vrot.lane.b32.xlu0 %v3548_v53, %s9436_s10  ;;  %v3139_v23 = vld [vmem:[#allocation5 + $0x10] sm:$0xe]  ;;  %v3446_v43 = vsel %vm9896_vm2, %v7916_v29, %v3445_v13  ;;  %v10764_v44 = vrot.slane %v3598_v14, 4  ;;  %v3611_v17 = vrot.slane %v3609_v41, 5  ;;  %v10766_v9 = vld [vmem:[#allocation5 + $0x40] sm:$0xe]  ;;  %v3590_v47 = vsel %vm9787_vm13, %v10748_v37, %v10742_v0 }
 0x34e   : > { %v3140_v36 = vld [vmem:[#allocation5 + $0x14] sm:$0x1]  ;;  %3473 = vrot.lane.b32.xlu1 %v3446_v43, %s9436_s10  ;;  %v10775_v53 = vrot.slane %v3615_v1, 5  ;;  %v7909_v25 = vrot.slane %v3139_v23, 9  ;;  %v3137_v7 = vld [vmem:[#allocation5 + $0x8] sm:$0xe]  ;;  %v3562_v1 = vsel %vm9787_vm13, %v3557_v39, %v10693_v57  ;;  %v3462_v15 = vsel %vm9896_vm2, %v7920_v4, %v3461_v40 }
 0x34f   : > { %v3138_v29 = vld [vmem:[#allocation5 + $0xc] sm:$0x1]  ;;  %v3622_v13 = vrot.slane %v3620_v48, 4  ;;  %v3625_v20 = vrot.slane %v3623_v62, 5  ;;  %v10777_v54 = vld [vmem:[#allocation5 + $0x44] sm:$0x1]  ;;  %v3576_v48 = vsel %vm9787_vm13, %v10731_v61, %v10713_v63 }
 0x350   : > { %v3177_v14 = vrot.slane %v3140_v36, 5  ;;  %v7908_v41 = vrot.slane %v3137_v7, 9  ;;  %v2962_v16 = vld [vmem:[#allocation5 + $0x18] sm:$0xf]  ;;  %v3629_v35 = vshll.u32 %v10756_v11, 16  ;;  %v3173_v18 = vrot.slane %v3138_v29, 5 }
 0x351   : > { %3475 = vrot.lane.b32.xlu0 %v3450_v32, %s9436_s10  ;;  %2970 = vst.msk [vmem:[#allocation6 + $0x3c] sm:$0xf] %vm279_vm6, %v2962_v16  ;;  %v2963_v10 = vld [vmem:[#allocation5 + $0x20] sm:$0xf]  ;;  %v2960_v30 = vld [vmem:[#allocation5 + $0x8] sm:$0xf]  ;;  %v3612_v32 = vor.u32 %v3611_v17, %v10754_v46  ;;  %v3626_v7 = vor.u32 %v3625_v20, %v3622_v13  ;;  %v3454_v46 = vsel %vm9896_vm2, %v7918_v33, %v3453_v52 }
 0x352   : > { %v3178_v62 = vsel %vm9896_vm2, %v7909_v25, %v3177_v14  ;;  %2971 = vst.msk [vmem:[#allocation6 + $0x50] sm:$0xf] %vm279_vm6, %v2963_v10  ;;  %2968 = vst.msk [vmem:[#allocation6 + $0x14] sm:$0xf] %vm279_vm6, %v2960_v30  ;;  %v2961_v23 = vld [vmem:[#allocation5 + $0x10] sm:$0xf]  ;;  %3649 = vrot.lane.b32.xlu1 %v3562_v1, %s9436_s10  ;;  %v3174_v63 = vsel %vm9896_vm2, %v7908_v41, %v3173_v18 }
 0x353   : > { %v3141_v43 = vld [vmem:[#allocation5 + $0x18] sm:$0xe]  ;;  %v3142_v36 = vld [vmem:[#allocation5 + $0x1c] sm:$0x1]  ;;  %v7922_v57 = vrot.slane %v10766_v9, 9  ;;  %v3469_v17 = vrot.slane %v10777_v54, 5 }
 0x354   : > { %3209 = vst.msk [vmem:[#allocation6 + $0x2c] sm:$0xf] %vm279_vm6, %v3178_v62  ;;  %2969 = vst.msk [vmem:[#allocation6 + $0x28] sm:$0xf] %vm279_vm6, %v2961_v23  ;;  %v7910_v39 = vrot.slane %v3141_v43, 9  ;;  %v3181_v29 = vrot.slane %v3142_v36, 5 }
 0x355   : > { %v3143_v61 = vld [vmem:[#allocation5 + $0x20] sm:$0xe]  ;;  %v3144_v25 = vld [vmem:[#allocation5 + $0x24] sm:$0x1]  ;;  %3208 = vst.msk [vmem:[#allocation6 + $0x18] sm:$0xf] %vm279_vm6, %v3174_v63  ;;  %3651 = vrot.lane.b32.xlu0 %v3576_v48, %s9436_s10 }
 0x356   : > { %v7911_v14 = vrot.slane %v3143_v61, 9  ;;  %v3185_v16 = vrot.slane %v3144_v25, 5  ;;  %v3145_v10 = vld [vmem:[#allocation5 + $0x28] sm:$0xe]  ;;  %v3146_v41 = vld [vmem:[#allocation5 + $0x2c] sm:$0x1]  ;;  %v3182_v20 = vsel %vm9896_vm2, %v7910_v39, %v3181_v29  ;;  %3477 = vrot.lane.b32.xlu1 %v3454_v46, %s9436_s10 }
 0x357   : > { %v7912_v18 = vrot.slane %v3145_v10, 9  ;;  %v3147_v13 = vld [vmem:[#allocation5 + $0x30] sm:$0xe]  ;;  %v3189_v1 = vrot.slane %v3146_v41, 5  ;;  %v3148_v48 = vld [vmem:[#allocation5 + $0x34] sm:$0x1] }
 0x358   : > { %v3186_v30 = vsel %vm9896_vm2, %v7911_v14, %v3185_v16  ;;  %v7913_v62 = vrot.slane %v3147_v13, 9  ;;  %v2966_v27 = vld [vmem:[#allocation5 + $0x38] sm:$0xf]  ;;  %v10820_v33 = vrot.slane %v3612_v32, 4  ;;  %3210 = vst.msk [vmem:[#allocation6 + $0x40] sm:$0xf] %vm279_vm6, %v3182_v20  ;;  %v3466_v32 = vsel %vm9896_vm2, %v7921_v60, %v3465_v34 }
 0x359   : > { %3211 = vst.msk [vmem:[#allocation6 + $0x54] sm:$0xf] %vm279_vm6, %v3186_v30  ;;  %v3193_v52 = vrot.slane %v3148_v48, 5  ;;  %2974 = vst.msk [vmem:[#allocation6 + $0x8c] sm:$0xf] %vm279_vm6, %v2966_v27  ;;  %v10825_v36 = vrot.slane %v3626_v7, 4  ;;  %v3190_v8 = vsel %vm9896_vm2, %v7912_v18, %v3189_v1  ;;  %3479 = vrot.lane.b32.xlu0 %v3458_v51, %s9436_s10  ;;  %v3604_v60 = vsel %vm9787_vm13, %v10764_v44, %v10750_v26 }
 0x35a   : > { %v3263_v23 = vld [vmem:[#allocation5 + $0x8] sm:$0xf]  ;;  %v3264_v43 = vld [vmem:[#allocation5 + $0xc] sm:$0x1]  ;;  %3212 = vst.msk [vmem:[#allocation6 + $0x68] sm:$0xf] %vm279_vm6, %v3190_v8  ;;  %3653 = vrot.lane.b32.xlu1 %v3590_v47, %s9436_s10  ;;  %v3618_v34 = vsel %vm9787_vm13, %v10820_v33, %v10775_v53 }
 0x35b   : > { %v3280_v56 = vshrl.u32 %v3263_v23, 16  ;;  %v3283_v63 = vshll.u32 %v3263_v23, 16  ;;  %v2964_v39 = vld [vmem:[#allocation5 + $0x28] sm:$0xf]  ;;  %v3194_v61 = vsel %vm9896_vm2, %v7913_v62, %v3193_v52  ;;  %v2965_v59 = vld [vmem:[#allocation5 + $0x30] sm:$0xf] }
 0x35c   : > { %2972 = vst.msk [vmem:[#allocation6 + $0x64] sm:$0xf] %vm279_vm6, %v2964_v39  ;;  %v3149_v0 = vld [vmem:[#allocation5 + $0x38] sm:$0xe]  ;;  %v3150_v3 = vld [vmem:[#allocation5 + $0x3c] sm:$0x1] }
 0x35d   : > { %3213 = vst.msk [vmem:[#allocation6 + $0x7c] sm:$0xf] %vm279_vm6, %v3194_v61  ;;  %v3282_v4 = vrot.slane %v3280_v56, 4  ;;  %v3285_v40 = vrot.slane %v3283_v63, 5  ;;  %v3289_v49 = vshll.u32 %v3264_v43, 16  ;;  %v7914_v12 = vrot.slane %v3149_v0, 9  ;;  %3655 = vrot.lane.b32.xlu0 %v3604_v60, %s9436_s10 }
 0x35e   : > { %2973 = vst.msk [vmem:[#allocation6 + $0x78] sm:$0xf] %vm279_vm6, %v2965_v59  ;;  %v3503_v37 = vld [vmem:[#allocation5 + $0x10] sm:$0xf]  ;;  %v3631_v25 = vrot.slane %v3629_v35, 5  ;;  %v3197_v7 = vrot.slane %v3150_v3, 5  ;;  %3481 = vrot.lane.b32.xlu1 %v3462_v15, %s9436_s10 }
 0x35f   : > { %3511 = vst.msk [vmem:[#allocation6 + $0xc] sm:$0xf] %vm279_vm6, %v3503_v37  ;;  %v3265_v29 = vld [vmem:[#allocation5 + $0x10] sm:$0xf]  ;;  %v3266_v14 = vld [vmem:[#allocation5 + $0x14] sm:$0x1]  ;;  %v3286_v16 = vor.u32 %v3285_v40, %v3282_v4 }
 0x360   : > { %v3294_v10 = vshrl.u32 %v3265_v29, 16  ;;  %v3297_v46 = vshll.u32 %v3265_v29, 16  ;;  %v3303_v41 = vshll.u32 %v3266_v14, 16  ;;  %v3267_v18 = vld [vmem:[#allocation5 + $0x18] sm:$0xf]  ;;  %v3632_v26 = vsel %vm9787_vm13, %v10825_v36, %v3631_v25 }
 0x361   : > { %v3198_v11 = vsel %vm9896_vm2, %v7914_v12, %v3197_v7  ;;  %v3268_v44 = vld [vmem:[#allocation5 + $0x1c] sm:$0x1]  ;;  %v3308_v53 = vshrl.u32 %v3267_v18, 16  ;;  %v3311_v35 = vshll.u32 %v3267_v18, 16  ;;  %v3504_v13 = vld [vmem:[#allocation5 + $0x18] sm:$0xf]  ;;  %3483 = vrot.lane.b32.xlu0 %v3466_v32, %s9436_s10 }
 0x362   : > { %v3287_v20 = vrot.slane %v3286_v16, 4  ;;  %v3291_v30 = vrot.slane %v3289_v49, 5  ;;  %3214 = vst.msk [vmem:[#allocation6 + $0x90] sm:$0xf] %vm279_vm6, %v3198_v11  ;;  %v3296_v1 = vrot.slane %v3294_v10, 4  ;;  %v3299_v48 = vrot.slane %v3297_v46, 5  ;;  %3657 = vrot.lane.b32.xlu1 %v3618_v34, %s9436_s10 }
 0x363   : > { %3512 = vst.msk [vmem:[#allocation6 + $0x20] sm:$0xf] %vm279_vm6, %v3504_v13  ;;  %v3505_v62 = vld [vmem:[#allocation5 + $0x20] sm:$0xf]  ;;  %v3305_v27 = vrot.slane %v3303_v41, 5  ;;  %v3310_v51 = vrot.slane %v3308_v53, 4 }
 0x364   : > { %v3313_v33 = vrot.slane %v3311_v35, 5  ;;  %v3317_v52 = vshll.u32 %v3268_v44, 16  ;;  %3513 = vst.msk [vmem:[#allocation6 + $0x34] sm:$0xf] %vm279_vm6, %v3505_v62  ;;  %v3269_v23 = vld [vmem:[#allocation5 + $0x20] sm:$0xf]  ;;  %v3292_v43 = vsel %vm9787_vm13, %v3287_v20, %v3291_v30  ;;  %v3300_v36 = vor.u32 %v3299_v48, %v3296_v1 }
 0x365   : > { %v3270_v8 = vld [vmem:[#allocation5 + $0x24] sm:$0x1]  ;;  %v3322_v56 = vshrl.u32 %v3269_v23, 16  ;;  %v3325_v63 = vshll.u32 %v3269_v23, 16  ;;  %v3271_v39 = vld [vmem:[#allocation5 + $0x28] sm:$0xf]  ;;  %3659 = vrot.lane.b32.xlu0 %v3632_v26, %s9436_s10  ;;  %v3470_v35 = vsel %vm9896_vm2, %v7922_v57, %v3469_v17  ;;  %v3646_v48 = vsel %vm9787_vm13, %v10566_v2, %v10570_v42 }
 0x366   : > { %3399 = vst.msk [vmem:[#allocation6 + $0x8] sm:$0xf] %vm279_vm6, %v3292_v43  ;;  %v3314_v47 = vor.u32 %v3313_v33, %v3310_v51  ;;  %v3319_v15 = vrot.slane %v3317_v52, 5  ;;  %v3331_v61 = vshll.u32 %v3270_v8, 16  ;;  %v3272_v59 = vld [vmem:[#allocation5 + $0x2c] sm:$0x1]  ;;  %3485 = vrot.lane.b32.xlu1 %v3470_v35, %s9436_s10 }
 0x367   : > { %v3336_v0 = vshrl.u32 %v3271_v39, 16  ;;  %v3301_v3 = vrot.slane %v3300_v36, 4  ;;  %v3324_v4 = vrot.slane %v3322_v56, 4  ;;  %v3327_v40 = vrot.slane %v3325_v63, 5  ;;  %v3506_v12 = vld [vmem:[#allocation5 + $0x28] sm:$0xf] }
 0x368   : > { %v3339_v49 = vshll.u32 %v3271_v39, 16  ;;  %v3315_v37 = vrot.slane %v3314_v47, 4  ;;  %v3333_v60 = vrot.slane %v3331_v61, 5  ;;  %v3345_v7 = vshll.u32 %v3272_v59, 16  ;;  %3514 = vst.msk [vmem:[#allocation6 + $0x48] sm:$0xf] %vm279_vm6, %v3506_v12 }
 0x369   : > { %v3338_v25 = vrot.slane %v3336_v0, 4  ;;  %v3679_v32 = vld [vmem:[#allocation5 + $0x10] sm:$0xe]  ;;  %v3306_v29 = vsel %vm9787_vm13, %v3301_v3, %v3305_v27  ;;  %v3328_v14 = vor.u32 %v3327_v40, %v3324_v4  ;;  %v3680_v10 = vld [vmem:[#allocation5 + $0x14] sm:$0x1] }
 0x36a   : > { %v3341_v16 = vrot.slane %v3339_v49, 5  ;;  %v3681_v46 = vld [vmem:[#allocation5 + $0x18] sm:$0xe]  ;;  %v7923_v41 = vrot.slane %v3679_v32, 9  ;;  %3400 = vst.msk [vmem:[#allocation6 + $0x1c] sm:$0xf] %vm279_vm6, %v3306_v29  ;;  %v3320_v34 = vsel %vm9787_vm13, %v3315_v37, %v3319_v15  ;;  %3661 = vrot.lane.b32.xlu1 %v3646_v48, %s9436_s10 }
 0x36b   : > { %v3347_v18 = vrot.slane %v3345_v7, 5  ;;  %v3682_v11 = vld [vmem:[#allocation5 + $0x1c] sm:$0x1]  ;;  %v3713_v44 = vrot.slane %v3680_v10, 5  ;;  %v7924_v53 = vrot.slane %v3681_v46, 9  ;;  %v3329_v13 = vrot.slane %v3328_v14, 4 }
 0x36c   : > { %3401 = vst.msk [vmem:[#allocation6 + $0x30] sm:$0xf] %vm279_vm6, %v3320_v34  ;;  %v3342_v26 = vor.u32 %v3341_v16, %v3338_v25  ;;  %v3717_v20 = vrot.slane %v3682_v11, 5  ;;  %v3507_v30 = vld [vmem:[#allocation5 + $0x30] sm:$0xf] }
 0x36d   : > { %v3273_v1 = vld [vmem:[#allocation5 + $0x30] sm:$0xf]  ;;  %v3714_v9 = vsel %vm9896_vm2, %v7923_v41, %v3713_v44  ;;  %3515 = vst.msk [vmem:[#allocation6 + $0x5c] sm:$0xf] %vm279_vm6, %v3507_v30  ;;  %v3274_v54 = vld [vmem:[#allocation5 + $0x34] sm:$0x1]  ;;  %v3334_v27 = vsel %vm9787_vm13, %v3329_v13, %v3333_v60 }
 0x36e   : > { %v3350_v57 = vshrl.u32 %v3273_v1, 16  ;;  %v3353_v17 = vshll.u32 %v3273_v1, 16  ;;  %v3275_v62 = vld [vmem:[#allocation5 + $0x38] sm:$0xf]  ;;  %v3343_v51 = vrot.slane %v3342_v26, 4  ;;  %v3718_v33 = vsel %vm9896_vm2, %v7924_v53, %v3717_v20 }
 0x36f   : > { %3751 = vst.msk [vmem:[#allocation6 + $0x10] sm:$0xf] %vm279_vm6, %v3714_v9  ;;  %v3359_v52 = vshll.u32 %v3274_v54, 16  ;;  %v3276_v2 = vld [vmem:[#allocation5 + $0x3c] sm:$0x1]  ;;  %v3364_v36 = vshrl.u32 %v3275_v62, 16 }
 0x370   : > { %v3508_v42 = vld [vmem:[#allocation5 + $0x38] sm:$0xf]  ;;  %3402 = vst.msk [vmem:[#allocation6 + $0x44] sm:$0xf] %vm279_vm6, %v3334_v27  ;;  %3752 = vst.msk [vmem:[#allocation6 + $0x24] sm:$0xf] %vm279_vm6, %v3718_v33  ;;  %v3348_v63 = vsel %vm9787_vm13, %v3343_v51, %v3347_v18 }
 0x371   : > { %v3352_v23 = vrot.slane %v3350_v57, 4  ;;  %v3355_v43 = vrot.slane %v3353_v17, 5  ;;  %v3367_v8 = vshll.u32 %v3275_v62, 16  ;;  %3516 = vst.msk [vmem:[#allocation6 + $0x70] sm:$0xf] %vm279_vm6, %v3508_v42  ;;  %v3361_v39 = vrot.slane %v3359_v52, 5 }
 0x372   : > { %v3683_v56 = vld [vmem:[#allocation5 + $0x20] sm:$0xe]  ;;  %v3373_v47 = vshll.u32 %v3276_v2, 16  ;;  %v3684_v15 = vld [vmem:[#allocation5 + $0x24] sm:$0x1]  ;;  %v3366_v0 = vrot.slane %v3364_v36, 4 }
 0x373   : > { %v3685_v61 = vld [vmem:[#allocation5 + $0x28] sm:$0xe]  ;;  %3403 = vst.msk [vmem:[#allocation6 + $0x58] sm:$0xf] %vm279_vm6, %v3348_v63  ;;  %v3356_v59 = vor.u32 %v3355_v43, %v3352_v23  ;;  %v3369_v3 = vrot.slane %v3367_v8, 5  ;;  %v7925_v40 = vrot.slane %v3683_v56, 9 }
 0x374   : > { %v3686_v4 = vld [vmem:[#allocation5 + $0x2c] sm:$0x1]  ;;  %v3375_v49 = vrot.slane %v3373_v47, 5  ;;  %v3721_v12 = vrot.slane %v3684_v15, 5  ;;  %v7926_v37 = vrot.slane %v3685_v61, 9 }
 0x375   : > { %v3725_v60 = vrot.slane %v3686_v4, 5  ;;  %v3687_v25 = vld [vmem:[#allocation5 + $0x30] sm:$0xe]  ;;  %v3357_v7 = vrot.slane %v3356_v59, 4  ;;  %v3370_v32 = vor.u32 %v3369_v3, %v3366_v0  ;;  %v3688_v29 = vld [vmem:[#allocation5 + $0x34] sm:$0x1] }
 0x376   : > { %v3689_v14 = vld [vmem:[#allocation5 + $0x38] sm:$0xe]  ;;  %v7927_v16 = vrot.slane %v3687_v25, 9  ;;  %v3722_v10 = vsel %vm9896_vm2, %v7925_v40, %v3721_v12  ;;  %v3690_v41 = vld [vmem:[#allocation5 + $0x3c] sm:$0x1]  ;;  %v3729_v34 = vrot.slane %v3688_v29, 5 }
 0x377   : > { %v3726_v46 = vsel %vm9896_vm2, %v7926_v37, %v3725_v60  ;;  %v7928_v18 = vrot.slane %v3689_v14, 9  ;;  %v3509_v11 = vld [vmem:[#allocation5 + $0x40] sm:$0xf]  ;;  %v3362_v44 = vsel %vm9787_vm13, %v3357_v7, %v3361_v39  ;;  %v3371_v53 = vrot.slane %v3370_v32, 4  ;;  %3753 = vst.msk [vmem:[#allocation6 + $0x38] sm:$0xf] %vm279_vm6, %v3722_v10 }
 0x378   : > { %3754 = vst.msk [vmem:[#allocation6 + $0x4c] sm:$0xf] %vm279_vm6, %v3726_v46  ;;  %v3733_v35 = vrot.slane %v3690_v41, 5  ;;  %3517 = vst.msk [vmem:[#allocation6 + $0x84] sm:$0xf] %vm279_vm6, %v3509_v11  ;;  %v3730_v26 = vsel %vm9896_vm2, %v7927_v16, %v3729_v34  ;;  %v9218_v34 = vld [vmem:[%s12265_s3 + $0x270] sm:$0xff]  }
 0x379   : > { %v3277_v13 = vld [vmem:[#allocation5 + $0x40] sm:$0xf]  ;;  %3404 = vst.msk [vmem:[#allocation6 + $0x6c] sm:$0xf] %vm279_vm6, %v3362_v44  ;;  %v3278_v20 = vld [vmem:[#allocation5 + $0x44] sm:$0x1]  ;;  %v3376_v30 = vsel %vm9787_vm13, %v3371_v53, %v3375_v49 }
 0x37a   : > { %v3734_v1 = vsel %vm9896_vm2, %v7928_v18, %v3733_v35  ;;  %3755 = vst.msk [vmem:[#allocation6 + $0x60] sm:$0xf] %vm279_vm6, %v3730_v26  ;;  %v3378_v48 = vshrl.u32 %v3277_v13, 16  ;;  %v3381_v9 = vshll.u32 %v3277_v13, 16  ;;  %v3691_v54 = vld [vmem:[#allocation5 + $0x40] sm:$0xe] }
 0x37b   : > { %3405 = vst.msk [vmem:[#allocation6 + $0x80] sm:$0xf] %vm279_vm6, %v3376_v30  ;;  %3756 = vst.msk [vmem:[#allocation6 + $0x74] sm:$0xf] %vm279_vm6, %v3734_v1  ;;  %v3692_v57 = vld [vmem:[#allocation5 + $0x44] sm:$0x1] }
 0x37c   : > { %v7929_v17 = vrot.slane %v3691_v54, 9  ;;  %v3380_v62 = vrot.slane %v3378_v48, 4  ;;  %v3383_v27 = vrot.slane %v3381_v9, 5  ;;  %v3387_v51 = vshll.u32 %v3278_v20, 16  ;;  %v5318_v52 = vld [vmem:[#allocation5 + $0x48] sm:$0xe] }
 0x37d   : > { %v3737_v33 = vrot.slane %v3692_v57, 5  ;;  %v5319_v2 = vld [vmem:[#allocation5 + $0x4c] sm:$0x1]  ;;  %v8103_v8 = vrot.slane %v5318_v52, 9  ;;  %v4760_v61 = vld [vmem:[#allocation5] sm:$0xe] }
 0x37e   : > { %v3384_v42 = vor.u32 %v3383_v27, %v3380_v62  ;;  %v3389_v36 = vrot.slane %v3387_v51, 5  ;;  %v5366_v56 = vrot.slane %v5319_v2, 5  ;;  %v4761_v59 = vld [vmem:[#allocation5 + $0x4] sm:$0x1]  ;;  %v8080_v3 = vrot.slane %v4760_v61, 9  ;;  %v9219_v53 = vld [vmem:[%s12265_s3 + $0x268] sm:$0xff]  }
 0x37f   : > { %v3738_v23 = vsel %vm9896_vm2, %v7929_v17, %v3737_v33  ;;  %v4794_v4 = vrot.slane %v4761_v59, 5  ;;  %v9225_v9 = vld [vmem:[%s12265_s3 + $0x258] sm:$0xff]   ;;  %v9228_v33 = vld [vmem:[%s12265_s3 + $0x250] sm:$0xff]  }
 0x380   : > { %3757 = vst.msk [vmem:[#allocation6 + $0x88] sm:$0xf] %vm279_vm6, %v3738_v23  ;;  %v3385_v43 = vrot.slane %v3384_v42, 4  ;;  %v5367_v39 = vsel %vm9896_vm2, %v8103_v8, %v5366_v56  ;;  %v9229_v23 = vld [vmem:[%s12265_s3 + $0x248] sm:$0xff]  }
 0x381   : > { %v4795_v49 = vsel %vm9896_vm2, %v8080_v3, %v4794_v4 }
 0x382   : > { %v3390_v63 = vsel %vm9787_vm13, %v3385_v43, %v3389_v36 }
 0x383   : > { %3406 = vst.msk [vmem:[#allocation6 + $0x94] sm:$0xf] %vm279_vm6, %v3390_v63 }
 0x387   : > { %v10940_v47 = vld [vmem:[#allocation6 + $0x88] ss:$20 sps:$4 sm:$0xff]  }
 0x388   : > { %5383 = vst.msk [vmem:[#allocation6 + $0x9c] sm:$0xf] %vm279_vm6, %v5367_v39  ;;  %v9234_v39 = vld [vmem:[%s12265_s3 + $0x240] sm:$0xff]  }
 0x396   : > { %v3236_v15 = vpop.permute.xlu0 %3235 }
 0x397   : > { %3257 = vst.msk [vmem:[#allocation6 + $0x2c] sm:$0xf] %vm350_vm14, %v3236_v15  ;;  %v9230_v15 = vld [vmem:[#allocation6 + $0x10] ss:$20 sps:$4 sm:$0xff]  }
 0x39a   : > { %v3232_v0 = vpop.permute.xlu0 %3231 }
 0x39b   : > { %3255 = vst.msk [vmem:[#allocation6 + $0x4] sm:$0xf] %vm350_vm14, %v3232_v0 }
 0x39d   : > { %v3234_v40 = vpop.permute.xlu1 %3233 }
 0x39e   : > { %3256 = vst.msk [vmem:[#allocation6 + $0x18] sm:$0xf] %vm350_vm14, %v3234_v40 }
 0x3a2   : > { %v3759_v12 = vld [vmem:[#allocation6] sm:$0xff] }
 0x3a3   : > { %v3110_v37 = vpop.permute.xlu1 %3109  ;;  %4832 = vst.msk [vmem:[#allocation6 + $0x4] sm:$0xf] %vm279_vm6, %v4795_v49  ;;  %v9235_v49 = vld [vmem:[#allocation6 + $0x38] ss:$20 sps:$4 sm:$0xff]  }
 0x3a4   : > { %3130 = vst.msk [vmem:[#allocation6 + $0x3c] sm:$0xf] %vm350_vm14, %v3110_v37 }
 0x3a5   : > { %v3112_v60 = vpop.permute.xlu0 %3111 }
 0x3a6   : > { %3131 = vst.msk [vmem:[#allocation6 + $0x50] sm:$0xf] %vm350_vm14, %v3112_v60 }
 0x3a8   : > { %v3106_v25 = vpop.permute.xlu1 %3105 }
 0x3a9   : > { %3128 = vst.msk [vmem:[#allocation6 + $0x14] sm:$0xf] %vm350_vm14, %v3106_v25 }
 0x3ab   : > { %v3108_v7 = vpop.permute.xlu0 %3107 }
 0x3ac   : > { %3129 = vst.msk [vmem:[#allocation6 + $0x28] sm:$0xf] %vm350_vm14, %v3108_v7  ;;  %v3238_v32 = vpop.permute.xlu1 %3237 }
 0x3ad   : > { %3258 = vst.msk [vmem:[#allocation6 + $0x40] sm:$0xf] %vm350_vm14, %v3238_v32 }
 0x3af   : > { %v3240_v29 = vpop.permute.xlu0 %3239 }
 0x3b0   : > { %3259 = vst.msk [vmem:[#allocation6 + $0x54] sm:$0xf] %vm350_vm14, %v3240_v29  ;;  %v3242_v14 = vpop.permute.xlu1 %3241  ;;  %v3762_v16 = vld [vmem:[#allocation6 + $0x14] sm:$0xff] }
 0x3b1   : > { %3260 = vst.msk [vmem:[#allocation6 + $0x68] sm:$0xf] %vm350_vm14, %v3242_v14  ;;  %v8013_v10 = vcombine.high %v3759_v12, %v3762_v16  ;;  %v8012_v46 = vcombine.low %v3759_v12, %v3762_v16  ;;  %v9236_v12 = vld [vmem:[#allocation6 + $0x60] ss:$20 sps:$4 sm:$0xff]  }
 0x3b3   : > { %v3244_v41 = vpop.permute.xlu0 %3243  ;;  %4245 = vmatprep.mubr.bf16.mxu1 %v8013_v10  ;;  %v3765_v35 = vld [vmem:[#allocation6 + $0x28] sm:$0xff]  ;;  %v5135_v10 = vld [vmem:[#allocation5 + $0x48] sm:$0xf] }
 0x3b4   : > { %3261 = vst.msk [vmem:[#allocation6 + $0x7c] sm:$0xf] %vm350_vm14, %v3244_v41  ;;  %v3118_v18 = vpop.permute.xlu1 %3117  ;;  %4246 = vmatmul.mubr.bf16.vlgmr.msra.gmra.mxu1 %v8012_v46  ;;  %v9216_v11 = vld [vmem:[#allocation6 + $0x2c] ss:$20 sps:$4 sm:$0xff]  }
 0x3b5   : > { %3134 = vst.msk [vmem:[#allocation6 + $0x8c] sm:$0xf] %vm350_vm14, %v3118_v18  ;;  %8962 = vmatpush3.bf16.msra.mxu1 %v10676_v28  ;;  %4253 = vmatprep.mubr.bf16.mxu1 %v9216_v11  ;;  %v3768_v13 = vld [vmem:[#allocation6 + $0x3c] sm:$0xff]  ;;  %v9222_v28 = vld [vmem:[%s12265_s3 + $0x260] sm:$0xff]  }
 0x3b6   : > { %8963 = vmatprep.subr.bf16.mxu1 %v9218_v34  ;;  %v8017_v30 = vcombine.low %v3765_v35, %v3768_v13  ;;  %v4600_v11 = vld [vmem:[#allocation5] sm:$0xf] }
 0x3b7   : > { %v3472_v44 = vpop.permute.xlu0 %3471  ;;  %v3771_v57 = vld [vmem:[#allocation6 + $0x50] sm:$0xff]  ;;  %v4620_v35 = vshll.u32 %v4600_v11, 16 }
 0x3b8   : > { %3495 = vst.msk [vmem:[#allocation6 + $0x8] sm:$0xf] %vm350_vm14, %v3472_v44  ;;  %v3114_v26 = vpop.permute.xlu1 %3113  ;;  %v9223_v62 = vld [vmem:[#allocation6 + $0x54] ss:$20 sps:$4 sm:$0xff]  }
 0x3b9   : > { %3132 = vst.msk [vmem:[#allocation6 + $0x64] sm:$0xf] %vm350_vm14, %v3114_v26  ;;  %8964 = vmatpush3.bf16.msra.mxu1 %v9218_v34  ;;  %v4601_v44 = vld [vmem:[#allocation5 + $0x4] sm:$0x1]  ;;  %v4622_v26 = vrot.slane %v4620_v35, 5 }
 0x3ba   : > { %8965 = vmatprep.subr.bf16.mxu1 %v9219_v53 }
 0x3bb   : > { %v3116_v20 = vpop.permute.xlu0 %3115 }
 0x3bc   : > { %3133 = vst.msk [vmem:[#allocation6 + $0x78] sm:$0xf] %vm350_vm14, %v3116_v20  ;;  %v3246_v1 = vpop.permute.xlu1 %3245  ;;  %4254 = vmatmul.mubr.bf16.gmra.mxu1 %v8017_v30 }
 0x3bd   : > { %3262 = vst.msk [vmem:[#allocation6 + $0x90] sm:$0xf] %vm350_vm14, %v3246_v1  ;;  %8966 = vmatpush3.bf16.msra.mxu1 %v9219_v53  ;;  %4261 = vmatprep.mubr.bf16.mxu1 %v9223_v62  ;;  %v4617_v53 = vshrl.u32 %v4600_v11, 16  ;;  %v4584_v62 = vld [vmem:[#allocation5] sm:$0xf] }
 0x3be   : > { %8967 = vmatprep.subr.bf16.mxu1 %v9222_v28  ;;  %4592 = vst.msk [vmem:[#allocation6] sm:$0xf] %vm279_vm6, %v4584_v62 }
 0x3bf   : > { %v3648_v48 = vpop.permute.xlu0 %3647  ;;  %v4619_v13 = vrot.slane %v4617_v53, 4 }
 0x3c0   : > { %3671 = vst.msk [vmem:[#allocation6 + $0xc] sm:$0xf] %vm350_vm14, %v3648_v48  ;;  %v3474_v54 = vpop.permute.xlu1 %3473  ;;  %v3774_v17 = vld [vmem:[#allocation6 + $0x64] sm:$0xff] }
 0x3c1   : > { %3496 = vst.msk [vmem:[#allocation6 + $0x1c] sm:$0xf] %vm350_vm14, %v3474_v54  ;;  %8968 = vmatpush3.bf16.msra.mxu1 %v9222_v28  ;;  %v8022_v27 = vcombine.low %v3771_v57, %v3774_v17  ;;  %v4623_v20 = vor.u32 %v4622_v26, %v4619_v13  ;;  %v9244_v57 = vld [vmem:[%s12265_s3 + $0x2f8] sm:$0xff]  }
 0x3c2   : > { %8969 = vmatprep.subr.bf16.mxu1 %v9225_v9  ;;  %v9245_v17 = vld [vmem:[%s12265_s3 + $0x2b8] sm:$0xff]   ;;  %8753 = vmatprep.subr.bf16.mxu0 %v9244_v57  ;;  %v11036_v57 = vld [vmem:[#allocation5 + $0x48] sm:$0xf] }
 0x3c3   : > { %v3476_v51 = vpop.permute.xlu0 %3475  ;;  %v3777_v43 = vld [vmem:[#allocation6 + $0x78] sm:$0xff]  ;;  %v4624_v28 = vrot.slane %v4623_v20, 4 }
 0x3c4   : > { %3497 = vst.msk [vmem:[#allocation6 + $0x30] sm:$0xf] %vm350_vm14, %v3476_v51  ;;  %v3650_v52 = vpop.permute.xlu1 %3649  ;;  %4262 = vmatmul.mubr.bf16.gmra.mxu1 %v8022_v27  ;;  %v9226_v2 = vld [vmem:[#allocation6 + $0x7c] ss:$20 sps:$4 sm:$0xff]  }
 0x3c5   : > { %3672 = vst.msk [vmem:[#allocation6 + $0x20] sm:$0xf] %vm350_vm14, %v3650_v52  ;;  %8970 = vmatpush3.bf16.msra.mxu1 %v9225_v9  ;;  %4269 = vmatprep.mubr.bf16.mxu1 %v9226_v2  ;;  %v3780_v36 = vld [vmem:[#allocation6 + $0x8c] sm:$0xff] }
 0x3c6   : > { %8971 = vmatprep.subr.bf16.mxu1 %v9228_v33  ;;  %v8027_v63 = vcombine.low %v3777_v43, %v3780_v36 }
 0x3c7   : > { %v3652_v42 = vpop.permute.xlu0 %3651 }
 0x3c8   : > { %3673 = vst.msk [vmem:[#allocation6 + $0x34] sm:$0xf] %vm350_vm14, %v3652_v42  ;;  %v3478_v8 = vpop.permute.xlu1 %3477  ;;  %v9233_v0 = vld [vmem:[#allocation6 + $0x8] ss:$20 sps:$4 sm:$0xff]  }
 0x3c9   : > { %3498 = vst.msk [vmem:[#allocation6 + $0x44] sm:$0xf] %vm350_vm14, %v3478_v8  ;;  %8972 = vmatpush3.bf16.msra.mxu1 %v9228_v33 }
 0x3ca   : > { %8973 = vmatprep.subr.bf16.mxu1 %v9229_v23 }
 0x3cb   : > { %v3480_v56 = vpop.permute.xlu0 %3479 }
 0x3cc   : > { %3499 = vst.msk [vmem:[#allocation6 + $0x58] sm:$0xf] %vm350_vm14, %v3480_v56  ;;  %v3654_v61 = vpop.permute.xlu1 %3653  ;;  %4270 = vmatmul.mubr.bf16.gmra.mxu1 %v8027_v63  ;;  %v9231_v59 = vld [vmem:[#allocation6 + $0xc] ss:$20 sps:$4 sm:$0xff]  }
 0x3cd   : > { %3674 = vst.msk [vmem:[#allocation6 + $0x48] sm:$0xf] %vm350_vm14, %v3654_v61  ;;  %8974 = vmatpush3.bf16.msra.mxu1 %v9229_v23  ;;  %8977 = vmatprep.mubr.bf16.mxu1 %v9230_v15 }
 0x3ce   : > { %4310 = vmatprep.mubr.bf16.mxu0 %v9231_v59  ;;  %8975 = vmatprep.subr.bf16.mxu1 %v9234_v39 }
 0x3cf   : > { %v3656_v3 = vpop.permute.xlu0 %3655  ;;  %4311 = vmatmul.mubr.bf16.vlgmr.msra.gmra.mxu0 %v9233_v0 }
 0x3d0   : > { %3675 = vst.msk [vmem:[#allocation6 + $0x5c] sm:$0xf] %vm350_vm14, %v3656_v3  ;;  %v3482_v4 = vpop.permute.xlu1 %3481  ;;  %v9239_v25 = vld [vmem:[#allocation6 + $0x30] ss:$20 sps:$4 sm:$0xff]   ;;  %8754 = vmatpush3.bf16.msra.mxu0 %v9245_v17 }
 0x3d1   : > { %3500 = vst.msk [vmem:[#allocation6 + $0x6c] sm:$0xf] %vm350_vm14, %v3482_v4  ;;  %8976 = vmatpush3.bf16.msra.mxu1 %v9234_v39  ;;  %v11018_v39 = vld [vmem:[%s12266_s4 + $0x1] ss:$0 sm:$0xff] }
 0x3d3   : > { %v3484_v40 = vpop.permute.xlu0 %3483 }
 0x3d4   : > { %3501 = vst.msk [vmem:[#allocation6 + $0x80] sm:$0xf] %vm350_vm14, %v3484_v40  ;;  %v3658_v37 = vpop.permute.xlu1 %3657  ;;  %8978 = vmatmul.mubr.bf16.vlgmr.msra.gmra.mxu1 %v9235_v49  ;;  %v9237_v60 = vld [vmem:[#allocation6 + $0x34] ss:$20 sps:$4 sm:$0xff]  }
 0x3d5   : > { %3676 = vst.msk [vmem:[#allocation6 + $0x70] sm:$0xf] %vm350_vm14, %v3658_v37  ;;  %8981 = vmatprep.mubr.bf16.mxu1 %v9236_v12  ;;  %4318 = vmatprep.mubr.bf16.mxu0 %v9237_v60 }
 0x3d7   : > { %v3660_v7 = vpop.permute.xlu0 %3659  ;;  %4319 = vmatmul.mubr.bf16.gmra.mxu0 %v9239_v25 }
 0x3d8   : > { %3677 = vst.msk [vmem:[#allocation6 + $0x84] sm:$0xf] %vm350_vm14, %v3660_v7  ;;  %v3486_v32 = vpop.permute.xlu1 %3485  ;;  %v9243_v16 = vld [vmem:[#allocation6 + $0x58] ss:$20 sps:$4 sm:$0xff]  }
 0x3d9   : > { %3502 = vst.msk [vmem:[#allocation6 + $0x94] sm:$0xf] %vm350_vm14, %v3486_v32 }
 0x3dc   : > { %v3662_v29 = vpop.permute.xlu1 %3661  ;;  %8982 = vmatmul.mubr.bf16.gmra.mxu1 %v10940_v47  ;;  %v9241_v14 = vld [vmem:[#allocation6 + $0x5c] ss:$20 sps:$4 sm:$0xff]   ;;  %v4626_v47 = vshll.u32 %v4601_v44, 16 }
 0x3dd   : > { %3678 = vst.msk [vmem:[#allocation6 + $0x98] sm:$0xf] %vm350_vm14, %v3662_v29  ;;  %4326 = vmatprep.mubr.bf16.mxu0 %v9241_v14 }
 0x3de   : > { %v4628_v30 = vrot.slane %v4626_v47, 5 }
 0x3df   : > { %4327 = vmatmul.mubr.bf16.gmra.mxu0 %v9243_v16  ;;  %v3778_v41 = vld [vmem:[#allocation6 + $0x80] sm:$0xff] }
 0x3e0   : > { %v4629_v1 = vsel %vm9787_vm13, %v4624_v28, %v4628_v30 }
 0x3e1   : > { %4728 = vrot.lane.b32.xlu0 %v4629_v1, %s9436_s10 }
 0x3e4   : > { %v3781_v46 = vld [vmem:[#allocation6 + $0x94] sm:$0xff] }
 0x3e5   : > { %5143 = vst.msk [vmem:[#allocation6 + $0x98] sm:$0xf] %vm279_vm6, %v5135_v10  ;;  %v8030_v34 = vcombine.high %v3778_v41, %v3781_v46  ;;  %v8029_v18 = vcombine.low %v3778_v41, %v3781_v46 }
 0x3e7   : > { %4334 = vmatprep.mubr.bf16.mxu0 %v8030_v34 }
 0x3e8   : > { %4335 = vmatmul.mubr.bf16.gmra.mxu0 %v8029_v18 }
 0x474   : > { %v8677_v48 = vpop.f32.mrf.mxu1 }
 0x476   : > { %v8678_v9 = vpop.f32.mrf.mxu1 }
 0x477   : > { %v8679_v56 = vadd.f32 %v8678_v9, %v8677_v48 }
 0x478   : > { %v8680_v54 = vpop.f32.mrf.mxu1 }
 0x479   : > { %v4248_v0 = vadd.f32 %v8679_v56, %v11018_v39 }
 0x47a   : > { %v8681_v27 = vpop.f32.mrf.mxu1 }
 0x47b   : > { %v8682_v3 = vadd.f32 %v8681_v27, %v8680_v54 }
 0x47c   : > { %v8683_v51 = vpop.f32.mrf.mxu1 }
 0x47d   : > { %v4251_v25 = vadd.f32 %v8682_v3, %v11018_v39 }
 0x47e   : > { %v8684_v33 = vpop.f32.mrf.mxu1 }
 0x47f   : > { %v8685_v7 = vadd.f32 %v8684_v33, %v8683_v51 }
 0x480   : > { %v8686_v52 = vpop.f32.mrf.mxu1 }
 0x481   : > { %v4256_v18 = vadd.f32 %v8685_v7, %v11018_v39 }
 0x482   : > { %v8687_v2 = vpop.f32.mrf.mxu1 }
 0x483   : > { %v8688_v11 = vadd.f32 %v8687_v2, %v8686_v52 }
 0x484   : > { %v8689_v42 = vpop.f32.mrf.mxu1 }
 0x485   : > { %v4259_v1 = vadd.f32 %v8688_v11, %v11018_v39 }
 0x486   : > { %v8690_v23 = vpop.f32.mrf.mxu1 }
 0x488   : > { %v8692_v43 = vpop.f32.mrf.mxu1 }
 0x48a   : > { %v8693_v36 = vpop.f32.mrf.mxu1 }
 0x48c   : > { %v11011_v8 = vpop.f32.mrf.mxu1 }
 0x48e   : > { %v11013_v63 = vpop.f32.mrf.mxu1 }
 0x48f   : > { %v8717_v15 = vpop.f32.mrf.mxu0 }
 0x490   : > { %v11020_v61 = vpop.f32.mrf.mxu1 }
 0x491   : > { %v8718_v59 = vpop.f32.mrf.mxu0 }
 0x492   : > { %v11023_v4 = vpop.f32.mrf.mxu1  ;;  %v8719_v40 = vadd.f32 %v8718_v59, %v8717_v15 }
 0x493   : > { %v8720_v49 = vpop.f32.mrf.mxu0 }
 0x494   : > { %v8979_v12 = vpop.f32.mrf.mxu1  ;;  %v4313_v37 = vadd.f32 %v8719_v40, %v4248_v0  ;;  %v8694_v40 = vadd.f32 %v8693_v36, %v8692_v43 }
 0x495   : > { %v8721_v60 = vpop.f32.mrf.mxu0 }
 0x496   : > { %v8722_v32 = vadd.f32 %v8721_v60, %v8720_v49  ;;  %v4377_v29 = vpop.f32.mrf.mxu1  ;;  %v4536_v60 = vld [vmem:[#allocation5 + $0x8] sm:$0xf] }
 0x497   : > { %v4378_v14 = vadd.f32 %v4377_v29, %v4313_v37  ;;  %v8723_v16 = vpop.f32.mrf.mxu0 }
 0x498   : > { %v8980_v10 = vpop.f32.mrf.mxu1  ;;  %v4316_v46 = vadd.f32 %v8722_v32, %v4251_v25  ;;  %v4539_v25 = vld [vmem:[#allocation5 + $0xc] sm:$0x1] }
 0x499   : > { %v4408_v41 = vadd.f32 %v4378_v14, %v9868_v21  ;;  %v8724_v34 = vpop.f32.mrf.mxu0  ;;  %v8691_v21 = vadd.f32 %v8690_v23, %v8689_v42  ;;  %v5259_v42 = vshrl.u32 %v11036_v57, 16  ;;  %v5262_v14 = vshll.u32 %v11036_v57, 16 }
 0x49a   : > { %v8725_v44 = vadd.f32 %v8724_v34, %v8723_v16  ;;  %v4380_v53 = vpop.f32.mrf.mxu1  ;;  %v8697_v34 = vadd.f32 %v11013_v63, %v11011_v8  ;;  %v4545_v8 = vld [vmem:[#allocation5 + $0x14] sm:$0x1] }
 0x49b   : > { %v11028_v35 = vmax.f32 %v4408_v41, 0.0  ;;  %v4381_v47 = vadd.f32 %v4380_v53, %v4316_v46  ;;  %v8726_v13 = vpop.f32.mrf.mxu0  ;;  %v4264_v23 = vadd.f32 %v8691_v21, %v11018_v39  ;;  %v9246_v41 = vld [vmem:[%s12265_s3 + $0x2f0] sm:$0xff]  }
 0x49c   : > { %v4321_v26 = vadd.f32 %v8725_v44, %v4256_v18  ;;  %v11034_v9 = vpop.f32.mrf.mxu1  ;;  %8755 = vmatprep.subr.bf16.mxu0 %v9246_v41  ;;  %v11104_v41 = vrot.slane %v5259_v42, 4  ;;  %v11116_v42 = vrot.slane %v5262_v14, 5 }
 0x49d   : > { %v8440_v20 = vpack.c.bf16 %v11028_v35, %v11028_v35  ;;  %v4409_v30 = vadd.f32 %v4381_v47, %v9930_v24  ;;  %v8727_v28 = vpop.f32.mrf.mxu0  ;;  %v11067_v47 = vld [vmem:[#allocation5 + $0x4c] sm:$0x1] }
 0x49e   : > { %v4386_v48 = vadd.f32 %v8979_v12, %v4321_v26  ;;  %v8728_v54 = vadd.f32 %v8727_v28, %v8726_v13  ;;  %v4393_v0 = vpop.f32.mrf.mxu1  ;;  %v4267_v13 = vadd.f32 %v8694_v40, %v11018_v39  ;;  %v4548_v40 = vld [vmem:[#allocation5 + $0x18] sm:$0xf] }
 0x49f   : > { %v4457_v17 = vshrl.u32 %v8440_v20, 16  ;;  %v11038_v62 = vmax.f32 %v4409_v30, 0.0  ;;  %v8729_v27 = vpop.f32.mrf.mxu0  ;;  %v4460_v2 = vshll.u32 %v8440_v20, 16  ;;  %v4542_v30 = vld [vmem:[#allocation5 + $0x10] sm:$0xf] }
 0x4a0   : > { %v4410_v51 = vadd.f32 %v4386_v48, %v9980_v38  ;;  %v4324_v33 = vadd.f32 %v8728_v54, %v4259_v1  ;;  %v11065_v44 = vpop.f32.mrf.mxu1 }
 0x4a1   : > { %v4459_v52 = vrot.slane %v4457_v17, 7  ;;  %v8441_v24 = vpack.c.bf16 %v11038_v62, %v11038_v62  ;;  %v8730_v56 = vpop.f32.mrf.mxu0  ;;  %v9248_v17 = vld [vmem:[%s12265_s3 + $0x2e8] sm:$0xff]  }
 0x4a2   : > { %v11045_v15 = vmax.f32 %v4410_v51, 0.0  ;;  %v4389_v59 = vadd.f32 %v8980_v10, %v4324_v33  ;;  %v8731_v3 = vadd.f32 %v8730_v56, %v8729_v27  ;;  %v9249_v27 = vld [vmem:[%s12265_s3 + $0x2a8] sm:$0xff]  }
 0x4a3   : > { %v4462_v49 = vor.u32 %v4460_v2, %v4459_v52  ;;  %v4463_v12 = vrot.slane %v4459_v52, 4  ;;  %v4465_v38 = vshrl.u32 %v8441_v24, 16  ;;  %v8732_v37 = vpop.f32.mrf.mxu0  ;;  %v4468_v10 = vshll.u32 %v8441_v24, 16 }
 0x4a4   : > { %v8442_v7 = vpack.c.bf16 %v11045_v15, %v11045_v15  ;;  %v4411_v32 = vadd.f32 %v4389_v59, %v10017_v55  ;;  %v4329_v29 = vadd.f32 %v8731_v3, %v4264_v23  ;;  %v9247_v55 = vld [vmem:[%s12265_s3 + $0x2b0] sm:$0xff]   ;;  %v5268_v2 = vshll.u32 %v11067_v47, 16  ;;  %v4396_v59 = vpop.f32.mrf.mxu1 }
 0x4a5   : > { %v4537_v16 = vsel %vm9887_vm1, %v4462_v49, %v4536_v60  ;;  %v4540_v43 = vsel %vm9769_vm9, %v4463_v12, %v4539_v25  ;;  %v4467_v36 = vrot.slane %v4465_v38, 7  ;;  %v8733_v46 = vpop.f32.mrf.mxu0  ;;  %8756 = vmatpush3.bf16.msra.mxu0 %v9247_v55  ;;  %v8700_v3 = vadd.f32 %v11023_v4, %v11020_v61  ;;  %v4551_v49 = vld [vmem:[#allocation5 + $0x1c] sm:$0x1]  ;;  %v9250_v61 = vld [vmem:[%s12265_s3 + $0x2e0] sm:$0xff]  }
 0x4a6   : > { %4538 = vst [vmem:[#allocation5 + $0x8] sm:$0xf] %v4537_v16  ;;  %4541 = vst [vmem:[#allocation5 + $0xc] sm:$0x1] %v4540_v43  ;;  %v4473_v18 = vshrl.u32 %v8442_v7, 16  ;;  %v11063_v11 = vmax.f32 %v4411_v32, 0.0  ;;  %v4394_v53 = vadd.f32 %v4393_v0, %v4329_v29  ;;  %v8734_v28 = vadd.f32 %v8733_v46, %v8732_v37  ;;  %8757 = vmatprep.subr.bf16.mxu0 %v9248_v17 }
 0x4a7   : > { %v4470_v26 = vor.u32 %v4468_v10, %v4467_v36  ;;  %v4471_v20 = vrot.slane %v4467_v36, 4  ;;  %v4476_v21 = vshll.u32 %v8442_v7, 16  ;;  %v9251_v4 = vld [vmem:[%s12265_s3 + $0x2a0] sm:$0xff]   ;;  %v9252_v55 = vld [vmem:[%s12265_s3 + $0x2d8] sm:$0xff]  }
 0x4a8   : > { %v4475_v1 = vrot.slane %v4473_v18, 7  ;;  %v8443_v63 = vpack.c.bf16 %v11063_v11, %v11063_v11  ;;  %v4412_v48 = vadd.f32 %v4394_v53, %v10051_v6  ;;  %v8735_v54 = vpop.f32.mrf.mxu0  ;;  %v4332_v52 = vadd.f32 %v8734_v28, %v4267_v13  ;;  %v4554_v16 = vld [vmem:[#allocation5 + $0x20] sm:$0xf]  ;;  %v4557_v53 = vld [vmem:[#allocation5 + $0x24] sm:$0x1] }
 0x4a9   : > { %v4543_v51 = vsel %vm9887_vm1, %v4470_v26, %v4542_v30  ;;  %v4546_v33 = vsel %vm9769_vm9, %v4471_v20, %v4545_v8  ;;  %v4272_v6 = vadd.f32 %v8697_v34, %v11018_v39  ;;  %8758 = vmatpush3.bf16.msra.mxu0 %v9249_v27 }
 0x4aa   : > { %v4478_v24 = vor.u32 %v4476_v21, %v4475_v1  ;;  %v4479_v56 = vrot.slane %v4475_v1, 4  ;;  %4544 = vst [vmem:[#allocation5 + $0x10] sm:$0xf] %v4543_v51  ;;  %4547 = vst [vmem:[#allocation5 + $0x14] sm:$0x1] %v4546_v33  ;;  %v4481_v23 = vshrl.u32 %v8443_v63, 16  ;;  %v8736_v0 = vpop.f32.mrf.mxu0  ;;  %v4397_v38 = vadd.f32 %v4396_v59, %v4332_v52  ;;  %8759 = vmatprep.subr.bf16.mxu0 %v9250_v61 }
 0x4ab   : > { %v11087_v12 = vmax.f32 %v4412_v48, 0.0  ;;  %v8737_v37 = vadd.f32 %v8736_v0, %v8735_v54  ;;  %v4484_v32 = vshll.u32 %v8443_v63, 16  ;;  %v4275_v21 = vadd.f32 %v8700_v3, %v11018_v39  ;;  %v4560_v39 = vld [vmem:[#allocation5 + $0x28] sm:$0xf]  ;;  %v4566_v61 = vld [vmem:[#allocation5 + $0x30] sm:$0xf] }
 0x4ac   : > { %v4549_v60 = vsel %vm9887_vm1, %v4478_v24, %v4548_v40  ;;  %v4552_v25 = vsel %vm9769_vm9, %v4479_v56, %v4551_v49  ;;  %v4483_v7 = vrot.slane %v4481_v23, 7  ;;  %v8738_v29 = vpop.f32.mrf.mxu0  ;;  %v4413_v36 = vadd.f32 %v4397_v38, %v10094_v31  ;;  %v4563_v23 = vld [vmem:[#allocation5 + $0x2c] sm:$0x1] }
 0x4ad   : > { %4550 = vst [vmem:[#allocation5 + $0x18] sm:$0xf] %v4549_v60  ;;  %4553 = vst [vmem:[#allocation5 + $0x1c] sm:$0x1] %v4552_v25  ;;  %v8444_v43 = vpack.c.bf16 %v11087_v12, %v11087_v12  ;;  %v4337_v10 = vadd.f32 %v8737_v37, %v4272_v6  ;;  %v4602_v46 = vld [vmem:[#allocation5 + $0x8] sm:$0xf]  ;;  %8760 = vmatpush3.bf16.msra.mxu0 %v9251_v4 }
 0x4ae   : > { %v4486_v34 = vor.u32 %v4484_v32, %v4483_v7  ;;  %v4487_v18 = vrot.slane %v4483_v7, 4  ;;  %v8739_v13 = vpop.f32.mrf.mxu0  ;;  %v4631_v26 = vshrl.u32 %v4602_v46, 16  ;;  %v4634_v20 = vshll.u32 %v4602_v46, 16  ;;  %v11112_v1 = vld [vmem:[#allocation5 + $0xc] sm:$0x1]  ;;  %8761 = vmatprep.subr.bf16.mxu0 %v9252_v55 }
 0x4af   : > { %v4489_v30 = vshrl.u32 %v8444_v43, 16  ;;  %v11109_v28 = vmax.f32 %v4413_v36, 0.0  ;;  %v4402_v31 = vadd.f32 %v11034_v9, %v4337_v10  ;;  %v8740_v48 = vadd.f32 %v8739_v13, %v8738_v29  ;;  %v4569_v4 = vld [vmem:[#allocation5 + $0x34] sm:$0x1]  ;;  %v4840_v55 = vld [vmem:[#allocation5 + $0x8] sm:$0xf] }
 0x4b0   : > { %v4555_v8 = vsel %vm9887_vm1, %v4486_v34, %v4554_v16  ;;  %v4558_v63 = vsel %vm9769_vm9, %v4487_v18, %v4557_v53  ;;  %v4492_v9 = vshll.u32 %v8444_v43, 16  ;;  %v4633_v33 = vrot.slane %v4631_v26, 4  ;;  %v9254_v53 = vld [vmem:[%s12265_s3 + $0x2d0] sm:$0xff]  }
 0x4b1   : > { %4556 = vst [vmem:[#allocation5 + $0x20] sm:$0xf] %v4555_v8  ;;  %4559 = vst [vmem:[#allocation5 + $0x24] sm:$0x1] %v4558_v63  ;;  %v4491_v54 = vrot.slane %v4489_v30, 7  ;;  %v8445_v17 = vpack.c.bf16 %v11109_v28, %v11109_v28  ;;  %v4414_v57 = vadd.f32 %v4402_v31, %v10147_v19  ;;  %v4340_v51 = vadd.f32 %v8740_v48, %v4275_v21  ;;  %v9253_v19 = vld [vmem:[%s12265_s3 + $0x298] sm:$0xff]  }
 0x4b2   : > { %v4841_v14 = vld [vmem:[#allocation5 + $0x10] sm:$0xf]  ;;  %v4636_v52 = vrot.slane %v4634_v20, 5  ;;  %v4640_v6 = vshll.u32 %v11112_v1, 16  ;;  %8762 = vmatpush3.bf16.msra.mxu0 %v9253_v19  ;;  %v4575_v19 = vld [vmem:[#allocation5 + $0x3c] sm:$0x1] }
 0x4b3   : > { %v11126_v27 = vld [vmem:[#allocation5 + $0x10] sm:$0xf]  ;;  %4858 = vrot.lane.b32.xlu1 %v4841_v14, %s9436_s10  ;;  %v4494_v24 = vor.u32 %v4492_v9, %v4491_v54  ;;  %v4495_v56 = vrot.slane %v4491_v54, 4  ;;  %v4497_v59 = vshrl.u32 %v8445_v17, 16  ;;  %v4500_v3 = vshll.u32 %v8445_v17, 16  ;;  %8763 = vmatprep.subr.bf16.mxu0 %v9254_v53 }
 0x4b4   : > { %v4645_v0 = vshrl.u32 %v11126_v27, 16  ;;  %v11134_v40 = vmax.f32 %v4414_v57, 0.0  ;;  %v4405_v49 = vadd.f32 %v11065_v44, %v4340_v51  ;;  %v4842_v38 = vld [vmem:[#allocation5 + $0x18] sm:$0xf]  ;;  %v4607_v32 = vld [vmem:[#allocation5 + $0x1c] sm:$0x1]  ;;  %v4637_v18 = vor.u32 %v4636_v52, %v4633_v33 }
 0x4b5   : > { %v4606_v37 = vld [vmem:[#allocation5 + $0x18] sm:$0xf]  ;;  %v4561_v60 = vsel %vm9887_vm1, %v4494_v24, %v4560_v39  ;;  %v4564_v25 = vsel %vm9769_vm9, %v4495_v56, %v4563_v23  ;;  %v4499_v7 = vrot.slane %v4497_v59, 7  ;;  %4860 = vrot.lane.b32.xlu0 %v4842_v38, %s9436_s10  ;;  %v4648_v36 = vshll.u32 %v11126_v27, 16  ;;  %v9255_v51 = vld [vmem:[%s12265_s3 + $0x290] sm:$0xff]   ;;  %v9256_v59 = vld [vmem:[%s12265_s3 + $0x2c8] sm:$0xff]  }
 0x4b6   : > { %v4659_v29 = vshrl.u32 %v4606_v37, 16  ;;  %4562 = vst [vmem:[#allocation5 + $0x28] sm:$0xf] %v4561_v60  ;;  %4565 = vst [vmem:[#allocation5 + $0x2c] sm:$0x1] %v4564_v25  ;;  %v8446_v44 = vpack.c.bf16 %v11134_v40, %v11134_v40  ;;  %v4415_v16 = vadd.f32 %v4405_v49, %v10197_v5  ;;  %v4662_v43 = vshll.u32 %v4606_v37, 16  ;;  %8764 = vmatpush3.bf16.msra.mxu0 %v9255_v51 }
 0x4b7   : > { %v4502_v10 = vor.u32 %v4500_v3, %v4499_v7  ;;  %v4503_v46 = vrot.slane %v4499_v7, 4  ;;  %v4668_v30 = vshll.u32 %v4607_v32, 16  ;;  %v11158_v14 = vrot.slane %v4637_v18, 4  ;;  %v4572_v24 = vld [vmem:[#allocation5 + $0x38] sm:$0xf]  ;;  %8765 = vmatprep.subr.bf16.mxu0 %v9256_v59 }
 0x4b8   : > { %v4661_v34 = vrot.slane %v4659_v29, 4  ;;  %v4505_v13 = vshrl.u32 %v8446_v44, 16  ;;  %v11149_v26 = vmax.f32 %v4415_v16, 0.0  ;;  %v4664_v20 = vrot.slane %v4662_v43, 5  ;;  %v4608_v31 = vld [vmem:[#allocation5 + $0x20] sm:$0xf] }
 0x4b9   : > { %v4567_v5 = vsel %vm9887_vm1, %v4502_v10, %v4566_v61  ;;  %v4570_v1 = vsel %vm9769_vm9, %v4503_v46, %v4569_v4  ;;  %v4508_v21 = vshll.u32 %v8446_v44, 16  ;;  %4856 = vrot.lane.b32.xlu0 %v4840_v55, %s9436_s10  ;;  %v4609_v8 = vld [vmem:[#allocation5 + $0x24] sm:$0x1]  ;;  %v4673_v63 = vshrl.u32 %v4608_v31, 16  ;;  %v4605_v7 = vld [vmem:[#allocation5 + $0x14] sm:$0x1]  ;;  %v4729_v46 = vpop.permute.xlu0 %4728 }
 0x4ba   : > { %4568 = vst [vmem:[#allocation5 + $0x30] sm:$0xf] %v4567_v5  ;;  %4571 = vst [vmem:[#allocation5 + $0x34] sm:$0x1] %v4570_v1  ;;  %v4507_v48 = vrot.slane %v4505_v13, 7  ;;  %v8447_v54 = vpack.c.bf16 %v11149_v26, %v11149_v26  ;;  %v4665_v9 = vor.u32 %v4664_v20, %v4661_v34  ;;  %v4676_v17 = vshll.u32 %v4608_v31, 16 }
 0x4bb   : > { %v4675_v57 = vrot.slane %v4673_v63, 4  ;;  %v11160_v27 = vrot.slane %v4640_v6, 5  ;;  %v4647_v39 = vrot.slane %v4645_v0, 4  ;;  %v4682_v23 = vshll.u32 %v4609_v8, 16  ;;  %v4578_v29 = vld [vmem:[#allocation5 + $0x40] sm:$0xf] }
 0x4bc   : > { %v4510_v33 = vor.u32 %v4508_v21, %v4507_v48  ;;  %v4511_v52 = vrot.slane %v4507_v48, 4  ;;  %v4513_v56 = vshrl.u32 %v8447_v54, 16  ;;  %v4666_v3 = vrot.slane %v4665_v9, 4  ;;  %v4581_v61 = vld [vmem:[#allocation5 + $0x44] sm:$0x1]  ;;  %v9257_v55 = vld [vmem:[%s12265_s3 + $0x288] sm:$0xff]  }
 0x4bd   : > { %v4670_v49 = vrot.slane %v4668_v30, 5  ;;  %v4678_v38 = vrot.slane %v4676_v17, 5  ;;  %v4650_v6 = vrot.slane %v4648_v36, 5  ;;  %v4516_v25 = vshll.u32 %v8447_v54, 16  ;;  %v4610_v32 = vld [vmem:[#allocation5 + $0x28] sm:$0xf]  ;;  %8766 = vmatpush3.bf16.msra.mxu0 %v9257_v55 }
 0x4be   : > { %v4573_v0 = vsel %vm9887_vm1, %v4510_v33, %v4572_v24  ;;  %v4576_v37 = vsel %vm9769_vm9, %v4511_v52, %v4575_v19  ;;  %v4515_v60 = vrot.slane %v4513_v56, 7  ;;  %v5032_v43 = vld [vmem:[#allocation5 + $0x8] sm:$0xe]  ;;  %v5033_v36 = vld [vmem:[#allocation5 + $0xc] sm:$0x1]  ;;  %v5265_v10 = vor.u32 %v11116_v42, %v11104_v41  ;;  %v9258_v41 = vld [vmem:[%s12265_s3 + $0x2c0] sm:$0xff]  }
 0x4bf   : > { %4574 = vst [vmem:[#allocation5 + $0x38] sm:$0xf] %v4573_v0  ;;  %4577 = vst [vmem:[#allocation5 + $0x3c] sm:$0x1] %v4576_v37  ;;  %v4671_v4 = vsel %vm9787_vm13, %v4666_v3, %v4670_v49  ;;  %v4679_v44 = vor.u32 %v4678_v38, %v4675_v57  ;;  %v4651_v16 = vor.u32 %v4650_v6, %v4647_v39  ;;  %v4684_v53 = vrot.slane %v4682_v23, 5  ;;  %v9259_v9 = vld [vmem:[%s12265_s3 + $0x378] sm:$0xff]  }
 0x4c0   : > { %v4518_v34 = vor.u32 %v4516_v25, %v4515_v60  ;;  %v4519_v18 = vrot.slane %v4515_v60, 4  ;;  %4734 = vrot.lane.b32.xlu1 %v4671_v4, %s9436_s10  ;;  %v4643_v13 = vsel %vm9787_vm13, %v11158_v14, %v11160_v27  ;;  %v11184_v20 = vld [vmem:[#allocation5 + $0x10] sm:$0xf]  ;;  %4752 = vst.msk [vmem:[#allocation6] sm:$0xf] %vm350_vm14, %v4729_v46  ;;  %v4654_v30 = vshll.u32 %v4605_v7, 16  ;;  %8767 = vmatprep.subr.bf16.mxu0 %v9258_v41 }
 0x4c1   : > { %v4680_v42 = vrot.slane %v4679_v44, 4  ;;  %v4611_v31 = vld [vmem:[#allocation5 + $0x2c] sm:$0x1]  ;;  %v4687_v5 = vshrl.u32 %v4610_v32, 16  ;;  %v4690_v1 = vshll.u32 %v4610_v32, 16  ;;  %v8088_v63 = vrot.slane %v5032_v43, 9  ;;  %8793 = vmatprep.subr.bf16.mxu1 %v9259_v9 }
 0x4c2   : > { %v4579_v21 = vsel %vm9887_vm1, %v4518_v34, %v4578_v29  ;;  %v4582_v8 = vsel %vm9769_vm9, %v4519_v18, %v4581_v61  ;;  %v5066_v48 = vrot.slane %v5033_v36, 5  ;;  %v4612_v54 = vld [vmem:[#allocation5 + $0x30] sm:$0xf]  ;;  %v4652_v57 = vrot.slane %v4651_v16, 4  ;;  %v4613_v39 = vld [vmem:[#allocation5 + $0x34] sm:$0x1] }
 0x4c3   : > { %4580 = vst [vmem:[#allocation5 + $0x40] sm:$0xf] %v4579_v21  ;;  %4583 = vst [vmem:[#allocation5 + $0x44] sm:$0x1] %v4582_v8  ;;  %v4685_v17 = vsel %vm9787_vm13, %v4680_v42, %v4684_v53  ;;  %v4689_v14 = vrot.slane %v4687_v5, 4  ;;  %v4692_v27 = vrot.slane %v4690_v1, 5 }
 0x4c4   : > { %4736 = vrot.lane.b32.xlu0 %v4685_v17, %s9436_s10  ;;  %4730 = vrot.lane.b32.xlu1 %v4643_v13, %s9436_s10  ;;  %v4696_v51 = vshll.u32 %v4611_v31, 16  ;;  %v4701_v33 = vshrl.u32 %v4612_v54, 16  ;;  %v4704_v52 = vshll.u32 %v4612_v54, 16  ;;  %v11203_v24 = vrot.slane %v5268_v2, 5  ;;  %v4843_v23 = vld [vmem:[#allocation5 + $0x20] sm:$0xf] }
 0x4c5   : > { %v4656_v56 = vrot.slane %v4654_v30, 5  ;;  %v4693_v59 = vor.u32 %v4692_v27, %v4689_v14  ;;  %v11205_v19 = vld [vmem:[#allocation5 + $0x14] sm:$0x1]  ;;  %v5161_v3 = vshrl.u32 %v11184_v20, 16  ;;  %v11208_v49 = vrot.slane %v5265_v10, 4  ;;  %v9260_v38 = vld [vmem:[%s12265_s3 + $0x280] sm:$0xff]  }
 0x4c6   : > { %v4614_v6 = vld [vmem:[#allocation5 + $0x38] sm:$0xf]  ;;  %v4615_v0 = vld [vmem:[#allocation5 + $0x3c] sm:$0x1]  ;;  %v4710_v37 = vshll.u32 %v4613_v39, 16  ;;  %v5164_v47 = vshll.u32 %v11184_v20, 16  ;;  %v11220_v61 = vsel %vm9896_vm2, %v8088_v63, %v5066_v48  ;;  %8768 = vmatpush3.bf16.msra.mxu0 %v9260_v38 }
 0x4c7   : > { %v5034_v2 = vld [vmem:[#allocation5 + $0x10] sm:$0xe]  ;;  %v5035_v60 = vld [vmem:[#allocation5 + $0x14] sm:$0x1]  ;;  %v11214_v25 = vld [vmem:[#allocation5 + $0x18] sm:$0xe]  ;;  %v4657_v7 = vsel %vm9787_vm13, %v4652_v57, %v4656_v56 }
 0x4c8   : > { %v4715_v32 = vshrl.u32 %v4614_v6, 16  ;;  %v4718_v29 = vshll.u32 %v4614_v6, 16  ;;  %v11222_v4 = vld [vmem:[#allocation5 + $0x1c] sm:$0x1]  ;;  %v5146_v44 = vld [vmem:[#allocation5 + $0x18] sm:$0xf]  ;;  %4732 = vrot.lane.b32.xlu0 %v4657_v7, %s9436_s10  ;;  %4862 = vrot.lane.b32.xlu1 %v4843_v23, %s9436_s10 }
 0x4c9   : > { %v11226_v16 = vrot.slane %v4696_v51, 5  ;;  %v4703_v43 = vrot.slane %v4701_v33, 4  ;;  %v4706_v36 = vrot.slane %v4704_v52, 5  ;;  %v5163_v10 = vrot.slane %v5161_v3, 4  ;;  %v5147_v46 = vld [vmem:[#allocation5 + $0x1c] sm:$0x1] }
 0x4ca   : > { %v4717_v55 = vrot.slane %v4715_v32, 4  ;;  %v4720_v34 = vrot.slane %v4718_v29, 5  ;;  %v4724_v18 = vshll.u32 %v4615_v0, 16  ;;  %v11228_v53 = vrot.slane %v4693_v59, 4  ;;  %v9261_v13 = vld [vmem:[%s12265_s3 + $0x338] sm:$0xff]   ;;  %v9264_v1 = vld [vmem:[%s12265_s3 + $0x370] sm:$0xff]  }
 0x4cb   : > { %v4844_v20 = vld [vmem:[#allocation5 + $0x28] sm:$0xf]  ;;  %v4707_v41 = vor.u32 %v4706_v36, %v4703_v43  ;;  %v11233_v42 = vrot.slane %v4710_v37, 5  ;;  %v5166_v30 = vrot.slane %v5164_v47, 5  ;;  %v5170_v31 = vshll.u32 %v11205_v19, 16  ;;  %8794 = vmatpush3.bf16.msra.mxu1 %v9261_v13  ;;  %v11243_v9 = vld [vmem:[%s12265_s3 + $0x3b8] sm:$0xff]  }
 0x4cc   : > { %v5148_v5 = vld [vmem:[#allocation5 + $0x20] sm:$0xf]  ;;  %v4845_v21 = vld [vmem:[#allocation5 + $0x30] sm:$0xf]  ;;  %v4721_v8 = vor.u32 %v4720_v34, %v4717_v55  ;;  %v8089_v63 = vrot.slane %v5034_v2, 9  ;;  %v5070_v48 = vrot.slane %v5035_v60, 5  ;;  %4864 = vrot.lane.b32.xlu0 %v4844_v20, %s9436_s10  ;;  %v4699_v23 = vsel %vm9787_vm13, %v11228_v53, %v11226_v16  ;;  %8795 = vmatprep.subr.bf16.mxu1 %v9264_v1 }
 0x4cd   : > { %v8090_v54 = vrot.slane %v11214_v25, 9  ;;  %4866 = vrot.lane.b32.xlu1 %v4845_v21, %s9436_s10  ;;  %v5167_v17 = vor.u32 %v5166_v30, %v5163_v10  ;;  %v5074_v57 = vrot.slane %v11222_v4, 5  ;;  %v5175_v14 = vshrl.u32 %v5146_v44, 16  ;;  %v5149_v39 = vld [vmem:[#allocation5 + $0x24] sm:$0x1]  ;;  %v9266_v33 = vld [vmem:[%s12265_s3 + $0x330] sm:$0xff]   ;;  %8985 = vmatprep.subr.bf16.mxu0 %v11243_v9 }
 0x4ce   : > { %v5178_v27 = vshll.u32 %v5146_v44, 16  ;;  %v11248_v51 = vld [vmem:[#allocation5 + $0x20] sm:$0xe]  ;;  %v4722_v52 = vrot.slane %v4721_v8, 4  ;;  %v4726_v56 = vrot.slane %v4724_v18, 5  ;;  %v5184_v59 = vshll.u32 %v5147_v46, 16 }
 0x4cf   : > { %v11257_v19 = vld [vmem:[#allocation5 + $0x24] sm:$0x1]  ;;  %v11259_v3 = vld [vmem:[#allocation5 + $0x28] sm:$0xe]  ;;  %v11262_v38 = vrot.slane %v4707_v41, 4  ;;  %v11264_v6 = vrot.slane %v5170_v31, 5  ;;  %v11273_v25 = vsel %vm9896_vm2, %v8089_v63, %v5070_v48  ;;  %8796 = vmatpush3.bf16.msra.mxu1 %v9266_v33  ;;  %v11281_v44 = vsel %vm9896_vm2, %v8090_v54, %v5074_v57 }
 0x4d0   : > { %v5177_v0 = vrot.slane %v5175_v14, 4  ;;  %v5180_v37 = vrot.slane %v5178_v27, 5  ;;  %v9269_v47 = vld [vmem:[%s12265_s3 + $0x368] sm:$0xff]   ;;  %v4846_v2 = vld [vmem:[#allocation5 + $0x38] sm:$0xf]  ;;  %v4727_v60 = vsel %vm9787_vm13, %v4722_v52, %v4726_v56  ;;  %v5189_v7 = vshrl.u32 %v5148_v5, 16 }
 0x4d1   : > { %v5192_v32 = vshll.u32 %v5148_v5, 16  ;;  %v5150_v29 = vld [vmem:[#allocation5 + $0x28] sm:$0xf]  ;;  %4868 = vrot.lane.b32.xlu0 %v4846_v2, %s9436_s10  ;;  %4742 = vrot.lane.b32.xlu1 %v4727_v60, %s9436_s10  ;;  %v11277_v4 = vrot.slane %v5167_v17, 4  ;;  %v11283_v43 = vrot.slane %v5184_v59, 5  ;;  %v5198_v34 = vshll.u32 %v5149_v39, 16 }
 0x4d2   : > { %v5181_v16 = vor.u32 %v5180_v37, %v5177_v0  ;;  %v5041_v36 = vld [vmem:[#allocation5 + $0x2c] sm:$0x1]  ;;  %v5191_v46 = vrot.slane %v5189_v7, 4  ;;  %v8091_v18 = vrot.slane %v11248_v51, 9  ;;  %v5152_v53 = vld [vmem:[#allocation5 + $0x30] sm:$0xf]  ;;  %8797 = vmatprep.subr.bf16.mxu1 %v9269_v47  ;;  %v4713_v57 = vsel %vm9787_vm13, %v11262_v38, %v11233_v42 }
 0x4d3   : > { %v5151_v10 = vld [vmem:[#allocation5 + $0x2c] sm:$0x1]  ;;  %v5194_v55 = vrot.slane %v5192_v32, 5  ;;  %v5078_v20 = vrot.slane %v11257_v19, 5  ;;  %v8092_v41 = vrot.slane %v11259_v3, 9  ;;  %v5203_v30 = vshrl.u32 %v5150_v29, 16 }
 0x4d4   : > { %v11286_v13 = vrot.slane %v5181_v16, 4  ;;  %v5153_v31 = vld [vmem:[#allocation5 + $0x34] sm:$0x1]  ;;  %v5082_v1 = vrot.slane %v5041_v36, 5  ;;  %v5206_v21 = vshll.u32 %v5150_v29, 16  ;;  %v5212_v8 = vshll.u32 %v5151_v10, 16 }
 0x4d5   : > { %v5195_v5 = vor.u32 %v5194_v55, %v5191_v46  ;;  %v11290_v63 = vld [vmem:[#allocation5 + $0x30] sm:$0xe]  ;;  %v11292_v48 = vld [vmem:[#allocation5 + $0x34] sm:$0x1]  ;;  %v5154_v54 = vld [vmem:[#allocation5 + $0x38] sm:$0xf]  ;;  %5096 = vrot.lane.b32.xlu0 %v11220_v61, %s9436_s10  ;;  %4738 = vrot.lane.b32.xlu1 %v4699_v23, %s9436_s10  ;;  %v5173_v14 = vsel %vm9787_vm13, %v11277_v4, %v11264_v6  ;;  %v11320_v38 = vsel %vm9896_vm2, %v8091_v18, %v5078_v20 }
 0x4d6   : > { %v4587_v17 = vld [vmem:[#allocation5 + $0x18] sm:$0xf]  ;;  %v5205_v27 = vrot.slane %v5203_v30, 4  ;;  %v5217_v39 = vshrl.u32 %v5152_v53, 16  ;;  %v4588_v33 = vld [vmem:[#allocation5 + $0x20] sm:$0xf]  ;;  %v5187_v3 = vsel %vm9787_vm13, %v11286_v13, %v11283_v43  ;;  %v11327_v2 = vsel %vm9896_vm2, %v8092_v41, %v5082_v1 }
 0x4d7   : > { %v11305_v51 = vld [vmem:[#allocation5 + $0x38] sm:$0xe]  ;;  %4595 = vst.msk [vmem:[#allocation6 + $0x3c] sm:$0xf] %vm279_vm6, %v4587_v17  ;;  %v4585_v61 = vld [vmem:[#allocation5 + $0x8] sm:$0xf] }
 0x4d8   : > { %v4847_v52 = vld [vmem:[#allocation5 + $0x40] sm:$0xf]  ;;  %v11308_v56 = vrot.slane %v5195_v5, 4  ;;  %v11310_v23 = vrot.slane %v5198_v34, 5  ;;  %v5208_v59 = vrot.slane %v5206_v21, 5  ;;  %v5220_v42 = vshll.u32 %v5152_v53, 16 }
 0x4d9   : > { %4596 = vst.msk [vmem:[#allocation6 + $0x50] sm:$0xf] %vm279_vm6, %v4588_v33  ;;  %4593 = vst.msk [vmem:[#allocation6 + $0x14] sm:$0xf] %vm279_vm6, %v4585_v61  ;;  %v4586_v19 = vld [vmem:[#allocation5 + $0x10] sm:$0xf]  ;;  %4740 = vrot.lane.b32.xlu0 %v4713_v57, %s9436_s10  ;;  %4870 = vrot.lane.b32.xlu1 %v4847_v52, %s9436_s10 }
 0x4da   : > { %v5219_v6 = vrot.slane %v5217_v39, 4  ;;  %v5226_v0 = vshll.u32 %v5153_v31, 16  ;;  %v11322_v37 = vld [vmem:[#allocation5 + $0x3c] sm:$0x1]  ;;  %4594 = vst.msk [vmem:[#allocation6 + $0x28] sm:$0xf] %vm279_vm6, %v4586_v19  ;;  %v5209_v60 = vor.u32 %v5208_v59, %v5205_v27  ;;  %v5201_v16 = vsel %vm9787_vm13, %v11308_v56, %v11310_v23 }
 0x4db   : > { %v5155_v47 = vld [vmem:[#allocation5 + $0x3c] sm:$0x1]  ;;  %v11329_v7 = vrot.slane %v5212_v8, 5  ;;  %v5222_v32 = vrot.slane %v5220_v42, 5  ;;  %v5156_v29 = vld [vmem:[#allocation5 + $0x40] sm:$0xf] }
 0x4dc   : > { %v5157_v4 = vld [vmem:[#allocation5 + $0x44] sm:$0x1]  ;;  %v8093_v36 = vrot.slane %v11290_v63, 9  ;;  %v5086_v10 = vrot.slane %v11292_v48, 5  ;;  %v5231_v46 = vshrl.u32 %v5154_v54, 16  ;;  %v9271_v53 = vld [vmem:[%s12265_s3 + $0x328] sm:$0xff]  }
 0x4dd   : > { %v11339_v55 = vld [vmem:[#allocation5 + $0x40] sm:$0xe]  ;;  %v11341_v34 = vld [vmem:[#allocation5 + $0x44] sm:$0x1]  ;;  %v4762_v18 = vld [vmem:[#allocation5 + $0x8] sm:$0xe]  ;;  %v5223_v20 = vor.u32 %v5222_v32, %v5219_v6  ;;  %8798 = vmatpush3.bf16.msra.mxu1 %v9271_v53  ;;  %5272 = vrot.lane.b32.xlu0 %v5173_v14, %s9436_s10 }
 0x4de   : > { %v8094_v41 = vrot.slane %v11305_v51, 9  ;;  %v5234_v30 = vshll.u32 %v5154_v54, 16  ;;  %v5240_v31 = vshll.u32 %v5155_v47, 16  ;;  %v4763_v5 = vld [vmem:[#allocation5 + $0xc] sm:$0x1]  ;;  %v9272_v21 = vld [vmem:[%s12265_s3 + $0x360] sm:$0xff]   ;;  %5098 = vrot.lane.b32.xlu1 %v11273_v25, %s9436_s10  ;;  %v11373_v25 = vsel %vm9896_vm2, %v8093_v36, %v5086_v10 }
 0x4df   : > { %v4764_v1 = vld [vmem:[#allocation5 + $0x10] sm:$0xe]  ;;  %v11350_v8 = vrot.slane %v5226_v0, 5  ;;  %v5233_v63 = vrot.slane %v5231_v46, 4  ;;  %v5245_v48 = vshrl.u32 %v5156_v29, 16  ;;  %v5248_v17 = vshll.u32 %v5156_v29, 16  ;;  %8799 = vmatprep.subr.bf16.mxu1 %v9272_v21 }
 0x4e0   : > { %v4765_v57 = vld [vmem:[#allocation5 + $0x14] sm:$0x1]  ;;  %v4766_v27 = vld [vmem:[#allocation5 + $0x18] sm:$0xe]  ;;  %v11352_v39 = vrot.slane %v5209_v60, 4  ;;  %v11354_v33 = vrot.slane %v5223_v20, 4 }
 0x4e1   : > { %v5090_v54 = vrot.slane %v11322_v37, 5  ;;  %v5236_v51 = vrot.slane %v5234_v30, 5  ;;  %v4767_v61 = vld [vmem:[#allocation5 + $0x1c] sm:$0x1]  ;;  %v4768_v52 = vld [vmem:[#allocation5 + $0x20] sm:$0xe]  ;;  %5100 = vrot.lane.b32.xlu0 %v11281_v44, %s9436_s10 }
 0x4e2   : > { %v9274_v59 = vld [vmem:[%s12265_s3 + $0x320] sm:$0xff]   ;;  %v11363_v42 = vrot.slane %v5240_v31, 5  ;;  %v11365_v19 = vrot.slane %v5245_v48, 4  ;;  %v11367_v6 = vrot.slane %v5248_v17, 5  ;;  %v5254_v0 = vshll.u32 %v5157_v4, 16  ;;  %5274 = vrot.lane.b32.xlu1 %v5187_v3, %s9436_s10  ;;  %v9277_v44 = vld [vmem:[%s12265_s3 + $0x318] sm:$0xff]  }
 0x4e3   : > { %v4769_v37 = vld [vmem:[#allocation5 + $0x24] sm:$0x1]  ;;  %v4770_v47 = vld [vmem:[#allocation5 + $0x28] sm:$0xe]  ;;  %v5237_v60 = vor.u32 %v5236_v51, %v5233_v63  ;;  %v8095_v32 = vrot.slane %v11339_v55, 9  ;;  %v5094_v29 = vrot.slane %v11341_v34, 5  ;;  %8800 = vmatpush3.bf16.msra.mxu1 %v9274_v59  ;;  %v5215_v48 = vsel %vm9787_vm13, %v11352_v39, %v11329_v7 }
 0x4e4   : > { %v8081_v46 = vrot.slane %v4762_v18, 9  ;;  %v4771_v53 = vld [vmem:[#allocation5 + $0x2c] sm:$0x1]  ;;  %v4772_v14 = vld [vmem:[#allocation5 + $0x30] sm:$0xe]  ;;  %v11375_v30 = vrot.slane %v5254_v0, 5  ;;  %v11387_v36 = vsel %vm9896_vm2, %v8094_v41, %v5090_v54  ;;  %v5229_v43 = vsel %vm9787_vm13, %v11354_v33, %v11350_v8 }
 0x4e5   : > { %v4591_v20 = vld [vmem:[#allocation5 + $0x38] sm:$0xf]  ;;  %v4798_v31 = vrot.slane %v4763_v5, 5  ;;  %v8082_v21 = vrot.slane %v4764_v1, 9  ;;  %v4773_v4 = vld [vmem:[#allocation5 + $0x34] sm:$0x1]  ;;  %v5251_v0 = vor.u32 %v11367_v6, %v11365_v19  ;;  %5276 = vrot.lane.b32.xlu0 %v5201_v16, %s9436_s10 }
 0x4e6   : > { %4599 = vst.msk [vmem:[#allocation6 + $0x8c] sm:$0xf] %vm279_vm6, %v4591_v20  ;;  %v4888_v63 = vld [vmem:[#allocation5 + $0x8] sm:$0xf]  ;;  %v9275_v18 = vld [vmem:[%s12265_s3 + $0x358] sm:$0xff]   ;;  %v4802_v10 = vrot.slane %v4765_v57, 5  ;;  %5102 = vrot.lane.b32.xlu1 %v11320_v38, %s9436_s10 }
 0x4e7   : > { %v8083_v5 = vrot.slane %v4766_v27, 9  ;;  %v11389_v1 = vld [vmem:[#allocation5 + $0xc] sm:$0x1]  ;;  %v4589_v17 = vld [vmem:[#allocation5 + $0x28] sm:$0xf]  ;;  %v11399_v51 = vrot.slane %v5237_v60, 4  ;;  %v4799_v41 = vsel %vm9896_vm2, %v8081_v46, %v4798_v31  ;;  %8801 = vmatprep.subr.bf16.mxu1 %v9275_v18 }
 0x4e8   : > { %v4806_v57 = vrot.slane %v4767_v61, 5  ;;  %v8084_v27 = vrot.slane %v4768_v52, 9  ;;  %4597 = vst.msk [vmem:[#allocation6 + $0x64] sm:$0xf] %vm279_vm6, %v4589_v17  ;;  %v4590_v54 = vld [vmem:[#allocation5 + $0x30] sm:$0xf]  ;;  %v4803_v13 = vsel %vm9896_vm2, %v8082_v21, %v4802_v10  ;;  %8802 = vmatpush3.bf16.msra.mxu1 %v9277_v44 }
 0x4e9   : > { %4833 = vst.msk [vmem:[#allocation6 + $0x18] sm:$0xf] %vm279_vm6, %v4799_v41  ;;  %v4810_v3 = vrot.slane %v4769_v37, 5  ;;  %v8085_v61 = vrot.slane %v4770_v47, 9  ;;  %4598 = vst.msk [vmem:[#allocation6 + $0x78] sm:$0xf] %vm279_vm6, %v4590_v54  ;;  %5104 = vrot.lane.b32.xlu0 %v11327_v2, %s9436_s10 }
 0x4ea   : > { %v4774_v52 = vld [vmem:[#allocation5 + $0x38] sm:$0xe]  ;;  %v4775_v59 = vld [vmem:[#allocation5 + $0x3c] sm:$0x1]  ;;  %4834 = vst.msk [vmem:[#allocation6 + $0x2c] sm:$0xf] %vm279_vm6, %v4803_v13  ;;  %v4807_v60 = vsel %vm9896_vm2, %v8083_v5, %v4806_v57  ;;  %5278 = vrot.lane.b32.xlu1 %v5215_v48, %s9436_s10 }
 0x4eb   : > { %v4814_v46 = vrot.slane %v4771_v53, 5  ;;  %v8086_v20 = vrot.slane %v4772_v14, 9  ;;  %v5128_v31 = vld [vmem:[#allocation5 + $0x10] sm:$0xf]  ;;  %4835 = vst.msk [vmem:[#allocation6 + $0x40] sm:$0xf] %vm279_vm6, %v4807_v60  ;;  %v4811_v37 = vsel %vm9896_vm2, %v8084_v27, %v4810_v3  ;;  %v5243_v60 = vsel %vm9787_vm13, %v11399_v51, %v11363_v42 }
 0x4ec   : > { %v4890_v17 = vld [vmem:[#allocation5 + $0x10] sm:$0xf]  ;;  %v4818_v47 = vrot.slane %v4773_v4, 5  ;;  %v4905_v21 = vshrl.u32 %v4888_v63, 16  ;;  %v4908_v18 = vshll.u32 %v4888_v63, 16  ;;  %v4914_v14 = vshll.u32 %v11389_v1, 16 }
 0x4ed   : > { %5136 = vst.msk [vmem:[#allocation6 + $0xc] sm:$0xf] %vm279_vm6, %v5128_v31  ;;  %v4891_v19 = vld [vmem:[#allocation5 + $0x14] sm:$0x1]  ;;  %4836 = vst.msk [vmem:[#allocation6 + $0x54] sm:$0xf] %vm279_vm6, %v4811_v37  ;;  %v4815_v53 = vsel %vm9896_vm2, %v8085_v61, %v4814_v46  ;;  %5280 = vrot.lane.b32.xlu0 %v5229_v43, %s9436_s10 }
 0x4ee   : > { %v9280_v6 = vld [vmem:[%s12265_s3 + $0x350] sm:$0xff]   ;;  %v8087_v4 = vrot.slane %v4774_v52, 9  ;;  %v4822_v63 = vrot.slane %v4775_v59, 5  ;;  %v4892_v10 = vld [vmem:[#allocation5 + $0x18] sm:$0xf]  ;;  %v4819_v5 = vsel %vm9896_vm2, %v8086_v20, %v4818_v47  ;;  %v4907_v56 = vrot.slane %v4905_v21, 4  ;;  %5106 = vrot.lane.b32.xlu1 %v11373_v25, %s9436_s10 }
 0x4ef   : > { %4837 = vst.msk [vmem:[#allocation6 + $0x68] sm:$0xf] %vm279_vm6, %v4815_v53  ;;  %v4910_v23 = vrot.slane %v4908_v18, 5  ;;  %v4919_v16 = vshrl.u32 %v4890_v17, 16  ;;  %8803 = vmatprep.subr.bf16.mxu1 %v9280_v6  ;;  %v4893_v38 = vld [vmem:[#allocation5 + $0x1c] sm:$0x1] }
 0x4f0   : > { %v9282_v41 = vld [vmem:[%s12265_s3 + $0x310] sm:$0xff]   ;;  %v11445_v57 = vrot.slane %v5251_v0, 4  ;;  %4838 = vst.msk [vmem:[#allocation6 + $0x7c] sm:$0xf] %vm279_vm6, %v4819_v5  ;;  %v4823_v1 = vsel %vm9896_vm2, %v8087_v4, %v4822_v63  ;;  %v4922_v27 = vshll.u32 %v4890_v17, 16  ;;  %v4928_v54 = vshll.u32 %v4891_v19, 16 }
 0x4f1   : > { %v5129_v44 = vld [vmem:[#allocation5 + $0x18] sm:$0xf]  ;;  %v9285_v13 = vld [vmem:[%s12265_s3 + $0x348] sm:$0xff]   ;;  %v4911_v3 = vor.u32 %v4910_v23, %v4907_v56  ;;  %4839 = vst.msk [vmem:[#allocation6 + $0x90] sm:$0xf] %vm279_vm6, %v4823_v1  ;;  %v4921_v61 = vrot.slane %v4919_v16, 4  ;;  %8804 = vmatpush3.bf16.msra.mxu1 %v9282_v41  ;;  %5108 = vrot.lane.b32.xlu0 %v11387_v36, %s9436_s10 }
 0x4f2   : > { %v4933_v52 = vshrl.u32 %v4892_v10, 16  ;;  %v4936_v59 = vshll.u32 %v4892_v10, 16  ;;  %5137 = vst.msk [vmem:[#allocation6 + $0x20] sm:$0xf] %vm279_vm6, %v5129_v44  ;;  %v5130_v0 = vld [vmem:[#allocation5 + $0x20] sm:$0xf]  ;;  %8805 = vmatprep.subr.bf16.mxu1 %v9285_v13  ;;  %5282 = vrot.lane.b32.xlu1 %v5243_v60, %s9436_s10  ;;  %v5257_v36 = vsel %vm9787_vm13, %v11445_v57, %v11375_v30 }
 0x4f3   : > { %v4916_v46 = vrot.slane %v4914_v14, 5  ;;  %v4924_v20 = vrot.slane %v4922_v27, 5  ;;  %v4942_v31 = vshll.u32 %v4893_v38, 16  ;;  %5138 = vst.msk [vmem:[#allocation6 + $0x34] sm:$0xf] %vm279_vm6, %v5130_v0  ;;  %v9287_v2 = vld [vmem:[%s12265_s3 + $0x308] sm:$0xff]  }
 0x4f4   : > { %v4894_v17 = vld [vmem:[#allocation5 + $0x20] sm:$0xf]  ;;  %v4912_v37 = vrot.slane %v4911_v3, 4  ;;  %v4935_v47 = vrot.slane %v4933_v52, 4  ;;  %v4938_v21 = vrot.slane %v4936_v59, 5  ;;  %v4930_v18 = vrot.slane %v4928_v54, 5 }
 0x4f5   : > { %v4895_v7 = vld [vmem:[#allocation5 + $0x24] sm:$0x1]  ;;  %v4947_v39 = vshrl.u32 %v4894_v17, 16  ;;  %v4925_v48 = vor.u32 %v4924_v20, %v4921_v61  ;;  %v4950_v19 = vshll.u32 %v4894_v17, 16  ;;  %v4896_v6 = vld [vmem:[#allocation5 + $0x28] sm:$0xf]  ;;  %8806 = vmatpush3.bf16.msra.mxu1 %v9287_v2  ;;  %5284 = vrot.lane.b32.xlu0 %v5257_v36, %s9436_s10 }
 0x4f6   : > { %v4956_v42 = vshll.u32 %v4895_v7, 16  ;;  %v9288_v51 = vld [vmem:[%s12265_s3 + $0x340] sm:$0xff]   ;;  %v4917_v53 = vsel %vm9787_vm13, %v4912_v37, %v4916_v46  ;;  %v4939_v14 = vor.u32 %v4938_v21, %v4935_v47  ;;  %v4897_v63 = vld [vmem:[#allocation5 + $0x2c] sm:$0x1]  ;;  %v4961_v10 = vshrl.u32 %v4896_v6, 16 }
 0x4f7   : > { %v4949_v4 = vrot.slane %v4947_v39, 4  ;;  %v5131_v5 = vld [vmem:[#allocation5 + $0x28] sm:$0xf]  ;;  %5024 = vst.msk [vmem:[#allocation6 + $0x8] sm:$0xf] %vm279_vm6, %v4917_v53  ;;  %v4926_v56 = vrot.slane %v4925_v48, 4  ;;  %8807 = vmatprep.subr.bf16.mxu1 %v9288_v51 }
 0x4f8   : > { %v4944_v23 = vrot.slane %v4942_v31, 5  ;;  %v4952_v16 = vrot.slane %v4950_v19, 5  ;;  %v4964_v38 = vshll.u32 %v4896_v6, 16  ;;  %5139 = vst.msk [vmem:[#allocation6 + $0x48] sm:$0xf] %vm279_vm6, %v5131_v5  ;;  %v9290_v41 = vld [vmem:[%s12265_s3 + $0x300] sm:$0xff]   ;;  %v5095_v31 = vsel %vm9896_vm2, %v8095_v32, %v5094_v29 }
 0x4f9   : > { %v4940_v1 = vrot.slane %v4939_v14, 4  ;;  %v4958_v27 = vrot.slane %v4956_v42, 5  ;;  %v4963_v8 = vrot.slane %v4961_v10, 4  ;;  %v4970_v33 = vshll.u32 %v4897_v63, 16  ;;  %v5304_v43 = vld [vmem:[#allocation5 + $0x10] sm:$0xe]  ;;  %8808 = vmatpush3.bf16.msra.mxu1 %v9290_v41  ;;  %5110 = vrot.lane.b32.xlu1 %v5095_v31, %s9436_s10 }
 0x4fa   : > { %v4931_v25 = vsel %vm9787_vm13, %v4926_v56, %v4930_v18  ;;  %v4953_v54 = vor.u32 %v4952_v16, %v4949_v4  ;;  %v4966_v44 = vrot.slane %v4964_v38, 5  ;;  %v5305_v13 = vld [vmem:[#allocation5 + $0x14] sm:$0x1]  ;;  %v5306_v3 = vld [vmem:[#allocation5 + $0x18] sm:$0xe]  ;;  %v8096_v61 = vrot.slane %v5304_v43, 9 }
 0x4fb   : > { %5025 = vst.msk [vmem:[#allocation6 + $0x1c] sm:$0xf] %vm279_vm6, %v4931_v25  ;;  %v4945_v52 = vsel %vm9787_vm13, %v4940_v1, %v4944_v23  ;;  %v4972_v59 = vrot.slane %v4970_v33, 5  ;;  %v5307_v0 = vld [vmem:[#allocation5 + $0x1c] sm:$0x1]  ;;  %v5338_v46 = vrot.slane %v5305_v13, 5  ;;  %v5271_v14 = vsel %vm9787_vm13, %v11208_v49, %v11203_v24 }
 0x4fc   : > { %v8097_v20 = vrot.slane %v5306_v3, 9  ;;  %5026 = vst.msk [vmem:[#allocation6 + $0x30] sm:$0xf] %vm279_vm6, %v4945_v52  ;;  %v4954_v17 = vrot.slane %v4953_v54, 4  ;;  %v4967_v2 = vor.u32 %v4966_v44, %v4963_v8  ;;  %v5342_v37 = vrot.slane %v5307_v0, 5 }
 0x4fd   : > { %v5132_v47 = vld [vmem:[#allocation5 + $0x30] sm:$0xf]  ;;  %v5339_v34 = vsel %vm9896_vm2, %v8096_v61, %v5338_v46  ;;  %v4899_v55 = vld [vmem:[#allocation5 + $0x34] sm:$0x1]  ;;  %v4900_v29 = vld [vmem:[#allocation5 + $0x38] sm:$0xf]  ;;  %5286 = vrot.lane.b32.xlu1 %v5271_v14, %s9436_s10 }
 0x4fe   : > { %v4898_v21 = vld [vmem:[#allocation5 + $0x30] sm:$0xf]  ;;  %5140 = vst.msk [vmem:[#allocation6 + $0x5c] sm:$0xf] %vm279_vm6, %v5132_v47  ;;  %v4959_v7 = vsel %vm9787_vm13, %v4954_v17, %v4958_v27  ;;  %v4968_v39 = vrot.slane %v4967_v2, 4  ;;  %v5343_v48 = vsel %vm9896_vm2, %v8097_v20, %v5342_v37  ;;  %v4984_v18 = vshll.u32 %v4899_v55, 16 }
 0x4ff   : > { %v4975_v60 = vshrl.u32 %v4898_v21, 16  ;;  %v4978_v32 = vshll.u32 %v4898_v21, 16  ;;  %5376 = vst.msk [vmem:[#allocation6 + $0x10] sm:$0xf] %vm279_vm6, %v5339_v34  ;;  %v4901_v30 = vld [vmem:[#allocation5 + $0x3c] sm:$0x1] }
 0x500   : > { %v5133_v57 = vld [vmem:[#allocation5 + $0x38] sm:$0xf]  ;;  %5027 = vst.msk [vmem:[#allocation6 + $0x44] sm:$0xf] %vm279_vm6, %v4959_v7  ;;  %5377 = vst.msk [vmem:[#allocation6 + $0x24] sm:$0xf] %vm279_vm6, %v5343_v48  ;;  %v4973_v4 = vsel %vm9787_vm13, %v4968_v39, %v4972_v59 }
 0x501   : > { %v4977_v19 = vrot.slane %v4975_v60, 4  ;;  %v4980_v42 = vrot.slane %v4978_v32, 5  ;;  %v4989_v51 = vshrl.u32 %v4900_v29, 16  ;;  %v4992_v6 = vshll.u32 %v4900_v29, 16  ;;  %5141 = vst.msk [vmem:[#allocation6 + $0x70] sm:$0xf] %vm279_vm6, %v5133_v57 }
 0x502   : > { %v5308_v53 = vld [vmem:[#allocation5 + $0x20] sm:$0xe]  ;;  %v4986_v63 = vrot.slane %v4984_v18, 5  ;;  %v4998_v10 = vshll.u32 %v4901_v30, 16  ;;  %v5309_v5 = vld [vmem:[#allocation5 + $0x24] sm:$0x1] }
 0x503   : > { %v5310_v56 = vld [vmem:[#allocation5 + $0x28] sm:$0xe]  ;;  %5028 = vst.msk [vmem:[#allocation6 + $0x58] sm:$0xf] %vm279_vm6, %v4973_v4  ;;  %v4981_v23 = vor.u32 %v4980_v42, %v4977_v19  ;;  %v4991_v16 = vrot.slane %v4989_v51, 4  ;;  %v4994_v38 = vrot.slane %v4992_v6, 5 }
 0x504   : > { %v5311_v41 = vld [vmem:[#allocation5 + $0x2c] sm:$0x1]  ;;  %v8098_v1 = vrot.slane %v5308_v53, 9  ;;  %v5000_v27 = vrot.slane %v4998_v10, 5  ;;  %v5346_v8 = vrot.slane %v5309_v5, 5  ;;  %v8099_v33 = vrot.slane %v5310_v56, 9 }
 0x505   : > { %v5350_v43 = vrot.slane %v5311_v41, 5  ;;  %v5312_v25 = vld [vmem:[#allocation5 + $0x30] sm:$0xe]  ;;  %v4982_v24 = vrot.slane %v4981_v23, 4  ;;  %v4995_v49 = vor.u32 %v4994_v38, %v4991_v16  ;;  %v5313_v54 = vld [vmem:[#allocation5 + $0x34] sm:$0x1] }
 0x506   : > { %v5314_v44 = vld [vmem:[#allocation5 + $0x38] sm:$0xe]  ;;  %v8100_v13 = vrot.slane %v5312_v25, 9  ;;  %v5347_v3 = vsel %vm9896_vm2, %v8098_v1, %v5346_v8  ;;  %v5315_v52 = vld [vmem:[#allocation5 + $0x3c] sm:$0x1]  ;;  %v5354_v59 = vrot.slane %v5313_v54, 5 }
 0x507   : > { %v5351_v61 = vsel %vm9896_vm2, %v8099_v33, %v5350_v43  ;;  %v8101_v0 = vrot.slane %v5314_v44, 9  ;;  %v5134_v46 = vld [vmem:[#allocation5 + $0x40] sm:$0xf]  ;;  %v4987_v20 = vsel %vm9787_vm13, %v4982_v24, %v4986_v63  ;;  %v4996_v31 = vrot.slane %v4995_v49, 4  ;;  %5378 = vst.msk [vmem:[#allocation6 + $0x38] sm:$0xf] %vm279_vm6, %v5347_v3 }
 0x508   : > { %5379 = vst.msk [vmem:[#allocation6 + $0x4c] sm:$0xf] %vm279_vm6, %v5351_v61  ;;  %v5358_v17 = vrot.slane %v5315_v52, 5  ;;  %5142 = vst.msk [vmem:[#allocation6 + $0x84] sm:$0xf] %vm279_vm6, %v5134_v46  ;;  %v5355_v37 = vsel %vm9896_vm2, %v8100_v13, %v5354_v59  ;;  %v9270_v54 = vld [vmem:[%s12265_s3 + $0x3b0] sm:$0xff]  }
 0x509   : > { %v4902_v2 = vld [vmem:[#allocation5 + $0x40] sm:$0xf]  ;;  %5029 = vst.msk [vmem:[#allocation6 + $0x6c] sm:$0xf] %vm279_vm6, %v4987_v20  ;;  %v4903_v47 = vld [vmem:[#allocation5 + $0x44] sm:$0x1]  ;;  %v5001_v21 = vsel %vm9787_vm13, %v4996_v31, %v5000_v27 }
 0x50a   : > { %v5359_v36 = vsel %vm9896_vm2, %v8101_v0, %v5358_v17  ;;  %5380 = vst.msk [vmem:[#allocation6 + $0x60] sm:$0xf] %vm279_vm6, %v5355_v37  ;;  %v5003_v34 = vshrl.u32 %v4902_v2, 16  ;;  %v5006_v55 = vshll.u32 %v4902_v2, 16  ;;  %v5316_v60 = vld [vmem:[#allocation5 + $0x40] sm:$0xe] }
 0x50b   : > { %v5317_v32 = vld [vmem:[#allocation5 + $0x44] sm:$0x1]  ;;  %5030 = vst.msk [vmem:[#allocation6 + $0x80] sm:$0xf] %vm279_vm6, %v5001_v21  ;;  %5381 = vst.msk [vmem:[#allocation6 + $0x74] sm:$0xf] %vm279_vm6, %v5359_v36 }
 0x50c   : > { %v5012_v29 = vshll.u32 %v4903_v47, 16  ;;  %v8102_v7 = vrot.slane %v5316_v60, 9  ;;  %v5362_v39 = vrot.slane %v5317_v32, 5  ;;  %v5005_v48 = vrot.slane %v5003_v34, 4  ;;  %v6935_v30 = vld [vmem:[#allocation5 + $0x48] sm:$0xe] }
 0x50d   : > { %v5008_v18 = vrot.slane %v5006_v55, 5  ;;  %v6936_v57 = vld [vmem:[#allocation5 + $0x4c] sm:$0x1]  ;;  %v8276_v51 = vrot.slane %v6935_v30, 9  ;;  %v9276_v20 = vld [vmem:[%s12265_s3 + $0x3a0] sm:$0xff]   ;;  %v9281_v2 = vld [vmem:[%s12265_s3 + $0x398] sm:$0xff]  }
 0x50e   : > { %v5363_v19 = vsel %vm9896_vm2, %v8102_v7, %v5362_v39  ;;  %v6983_v6 = vrot.slane %v6936_v57, 5  ;;  %v5014_v14 = vrot.slane %v5012_v29, 5  ;;  %v9273_v61 = vld [vmem:[%s12265_s3 + $0x3a8] sm:$0xff]   ;;  %v9286_v60 = vld [vmem:[%s12265_s3 + $0x390] sm:$0xff]  }
 0x50f   : > { %v5009_v42 = vor.u32 %v5008_v18, %v5005_v48  ;;  %5382 = vst.msk [vmem:[#allocation6 + $0x88] sm:$0xf] %vm279_vm6, %v5363_v19  ;;  %v9289_v39 = vld [vmem:[%s12265_s3 + $0x388] sm:$0xff]  }
 0x510   : > { %v6984_v63 = vsel %vm9896_vm2, %v8276_v51, %v6983_v6  ;;  %v9291_v51 = vld [vmem:[#allocation6 + $0x10] ss:$20 sps:$4 sm:$0xff]  }
 0x511   : > { %v5010_v53 = vrot.slane %v5009_v42, 4  ;;  %v9294_v42 = vld [vmem:[%s12265_s3 + $0x380] sm:$0xff]  }
 0x513   : > { %v5015_v4 = vsel %vm9787_vm13, %v5010_v53, %v5014_v14 }
 0x514   : > { %5031 = vst.msk [vmem:[#allocation6 + $0x94] sm:$0xf] %vm279_vm6, %v5015_v4 }
 0x516   : > { %v11556_v10 = vld [vmem:[#allocation6 + $0x88] ss:$20 sps:$4 sm:$0xff]  }
 0x517   : > { %7000 = vst.msk [vmem:[#allocation6 + $0x9c] sm:$0xf] %vm279_vm6, %v6984_v63 }
 0x525   : > { %v4859_v5 = vpop.permute.xlu1 %4858 }
 0x526   : > { %4881 = vst.msk [vmem:[#allocation6 + $0x18] sm:$0xf] %vm350_vm14, %v4859_v5 }
 0x527   : > { %v4861_v56 = vpop.permute.xlu0 %4860 }
 0x528   : > { %4882 = vst.msk [vmem:[#allocation6 + $0x2c] sm:$0xf] %vm350_vm14, %v4861_v56 }
 0x52b   : > { %v4857_v23 = vpop.permute.xlu0 %4856 }
 0x52c   : > { %4880 = vst.msk [vmem:[#allocation6 + $0x4] sm:$0xf] %vm350_vm14, %v4857_v23 }
 0x532   : > { %v4735_v16 = vpop.permute.xlu1 %4734 }
 0x533   : > { %4755 = vst.msk [vmem:[#allocation6 + $0x3c] sm:$0xf] %vm350_vm14, %v4735_v16  ;;  %v5384_v43 = vld [vmem:[#allocation6] sm:$0xff]  ;;  %v9295_v16 = vld [vmem:[#allocation6 + $0x38] ss:$20 sps:$4 sm:$0xff]  }
 0x534   : > { %v9262_v24 = vld [vmem:[#allocation6 + $0x4] ss:$20 sps:$4 sm:$0xff]  }
 0x535   : > { %5870 = vmatprep.mubr.bf16.mxu0 %v9262_v24 }
 0x536   : > { %v4737_v38 = vpop.permute.xlu0 %4736  ;;  %v4731_v41 = vpop.permute.xlu1 %4730 }
 0x537   : > { %4756 = vst.msk [vmem:[#allocation6 + $0x50] sm:$0xf] %vm350_vm14, %v4737_v38  ;;  %4753 = vst.msk [vmem:[#allocation6 + $0x14] sm:$0xf] %vm350_vm14, %v4731_v41  ;;  %v9296_v38 = vld [vmem:[#allocation6 + $0x60] ss:$20 sps:$4 sm:$0xff]  }
 0x53a   : > { %v4733_v1 = vpop.permute.xlu0 %4732  ;;  %v4863_v27 = vpop.permute.xlu1 %4862 }
 0x53b   : > { %4754 = vst.msk [vmem:[#allocation6 + $0x28] sm:$0xf] %vm350_vm14, %v4733_v1  ;;  %4883 = vst.msk [vmem:[#allocation6 + $0x40] sm:$0xf] %vm350_vm14, %v4863_v27 }
 0x53e   : > { %v4865_v8 = vpop.permute.xlu0 %4864  ;;  %v5387_v25 = vld [vmem:[#allocation6 + $0x14] sm:$0xff] }
 0x53f   : > { %v4867_v33 = vpop.permute.xlu1 %4866  ;;  %4884 = vst.msk [vmem:[#allocation6 + $0x54] sm:$0xf] %vm350_vm14, %v4865_v8  ;;  %v8185_v49 = vcombine.low %v5384_v43, %v5387_v25 }
 0x540   : > { %4885 = vst.msk [vmem:[#allocation6 + $0x68] sm:$0xf] %vm350_vm14, %v4867_v33 }
 0x541   : > { %5871 = vmatmul.mubr.bf16.vlgmr.msra.gmra.mxu0 %v8185_v49 }
 0x542   : > { %8986 = vmatpush3.bf16.msra.mxu0 %v11243_v9  ;;  %v9267_v3 = vld [vmem:[#allocation6 + $0x2c] ss:$20 sps:$4 sm:$0xff]  }
 0x543   : > { %v4869_v44 = vpop.permute.xlu0 %4868  ;;  %v4743_v13 = vpop.permute.xlu1 %4742  ;;  %8987 = vmatprep.subr.bf16.mxu0 %v9270_v54  ;;  %v5390_v52 = vld [vmem:[#allocation6 + $0x28] sm:$0xff]  ;;  %v5393_v59 = vld [vmem:[#allocation6 + $0x3c] sm:$0xff]  ;;  %5878 = vmatprep.mubr.bf16.mxu0 %v9267_v3 }
 0x544   : > { %4886 = vst.msk [vmem:[#allocation6 + $0x7c] sm:$0xf] %vm350_vm14, %v4869_v44  ;;  %4759 = vst.msk [vmem:[#allocation6 + $0x8c] sm:$0xf] %vm350_vm14, %v4743_v13  ;;  %v8190_v9 = vcombine.low %v5390_v52, %v5393_v59  ;;  %v6218_v52 = vld [vmem:[#allocation5 + $0x4] sm:$0x1] }
 0x546   : > { %8988 = vmatpush3.bf16.msra.mxu0 %v9270_v54  ;;  %v5396_v21 = vld [vmem:[#allocation6 + $0x50] sm:$0xff] }
 0x547   : > { %v5097_v0 = vpop.permute.xlu0 %5096  ;;  %v4739_v46 = vpop.permute.xlu1 %4738  ;;  %8989 = vmatprep.subr.bf16.mxu0 %v9273_v61  ;;  %v9278_v34 = vld [vmem:[#allocation6 + $0x54] ss:$20 sps:$4 sm:$0xff]  }
 0x548   : > { %5120 = vst.msk [vmem:[#allocation6 + $0x8] sm:$0xf] %vm350_vm14, %v5097_v0  ;;  %4757 = vst.msk [vmem:[#allocation6 + $0x64] sm:$0xf] %vm350_vm14, %v4739_v46  ;;  %v6243_v46 = vshll.u32 %v6218_v52, 16 }
 0x549   : > { %5879 = vmatmul.mubr.bf16.gmra.mxu0 %v8190_v9 }
 0x54a   : > { %8990 = vmatpush3.bf16.msra.mxu0 %v9273_v61  ;;  %5886 = vmatprep.mubr.bf16.mxu0 %v9278_v34  ;;  %v6217_v61 = vld [vmem:[#allocation5] sm:$0xf] }
 0x54b   : > { %v4741_v31 = vpop.permute.xlu0 %4740  ;;  %v4871_v17 = vpop.permute.xlu1 %4870  ;;  %8991 = vmatprep.subr.bf16.mxu0 %v9276_v20  ;;  %v6234_v59 = vshrl.u32 %v6217_v61, 16  ;;  %v6237_v0 = vshll.u32 %v6217_v61, 16 }
 0x54c   : > { %4758 = vst.msk [vmem:[#allocation6 + $0x78] sm:$0xf] %vm350_vm14, %v4741_v31  ;;  %4887 = vst.msk [vmem:[#allocation6 + $0x90] sm:$0xf] %vm350_vm14, %v4871_v17 }
 0x54d   : > { %v6236_v9 = vrot.slane %v6234_v59, 4 }
 0x54e   : > { %8992 = vmatpush3.bf16.msra.mxu0 %v9276_v20  ;;  %v6239_v20 = vrot.slane %v6237_v0, 5 }
 0x54f   : > { %v5273_v37 = vpop.permute.xlu0 %5272  ;;  %v5399_v36 = vld [vmem:[#allocation6 + $0x64] sm:$0xff]  ;;  %8993 = vmatprep.subr.bf16.mxu0 %v9281_v2 }
 0x550   : > { %v5099_v47 = vpop.permute.xlu1 %5098  ;;  %5296 = vst.msk [vmem:[#allocation6 + $0xc] sm:$0xf] %vm350_vm14, %v5273_v37  ;;  %v8195_v55 = vcombine.low %v5396_v21, %v5399_v36  ;;  %v6240_v31 = vor.u32 %v6239_v20, %v6236_v9 }
 0x551   : > { %5121 = vst.msk [vmem:[#allocation6 + $0x1c] sm:$0xf] %vm350_vm14, %v5099_v47  ;;  %v6201_v47 = vld [vmem:[#allocation5] sm:$0xf] }
 0x552   : > { %5887 = vmatmul.mubr.bf16.gmra.mxu0 %v8195_v55  ;;  %v6241_v17 = vrot.slane %v6240_v31, 4  ;;  %6209 = vst.msk [vmem:[#allocation6] sm:$0xf] %vm279_vm6, %v6201_v47 }
 0x553   : > { %v5101_v32 = vpop.permute.xlu0 %5100  ;;  %8994 = vmatpush3.bf16.msra.mxu0 %v9281_v2  ;;  %v9283_v7 = vld [vmem:[#allocation6 + $0x7c] ss:$20 sps:$4 sm:$0xff]  }
 0x554   : > { %v5275_v29 = vpop.permute.xlu1 %5274  ;;  %5122 = vst.msk [vmem:[#allocation6 + $0x30] sm:$0xf] %vm350_vm14, %v5101_v32  ;;  %8995 = vmatprep.subr.bf16.mxu0 %v9286_v60  ;;  %v5402_v48 = vld [vmem:[#allocation6 + $0x78] sm:$0xff]  ;;  %v5405_v18 = vld [vmem:[#allocation6 + $0x8c] sm:$0xff]  ;;  %5894 = vmatprep.mubr.bf16.mxu0 %v9283_v7 }
 0x555   : > { %5297 = vst.msk [vmem:[#allocation6 + $0x20] sm:$0xf] %vm350_vm14, %v5275_v29  ;;  %v8200_v19 = vcombine.low %v5402_v48, %v5405_v18 }
 0x557   : > { %v5277_v30 = vpop.permute.xlu0 %5276  ;;  %8996 = vmatpush3.bf16.msra.mxu0 %v9286_v60  ;;  %v5385_v14 = vld [vmem:[#allocation6 + $0x8] sm:$0xff] }
 0x558   : > { %v5103_v57 = vpop.permute.xlu1 %5102  ;;  %5298 = vst.msk [vmem:[#allocation6 + $0x34] sm:$0xf] %vm350_vm14, %v5277_v30  ;;  %8997 = vmatprep.subr.bf16.mxu0 %v9289_v39 }
 0x559   : > { %5123 = vst.msk [vmem:[#allocation6 + $0x44] sm:$0xf] %vm350_vm14, %v5103_v57 }
 0x55a   : > { %5895 = vmatmul.mubr.bf16.gmra.mxu0 %v8200_v19 }
 0x55b   : > { %v5105_v6 = vpop.permute.xlu0 %5104  ;;  %8998 = vmatpush3.bf16.msra.mxu0 %v9289_v39  ;;  %9001 = vmatprep.mubr.bf16.mxu0 %v9291_v51 }
 0x55c   : > { %v5279_v53 = vpop.permute.xlu1 %5278  ;;  %v5388_v4 = vld [vmem:[#allocation6 + $0x1c] sm:$0xff]  ;;  %5124 = vst.msk [vmem:[#allocation6 + $0x58] sm:$0xf] %vm350_vm14, %v5105_v6  ;;  %8999 = vmatprep.subr.bf16.mxu0 %v9294_v42 }
 0x55d   : > { %v9292_v63 = vld [vmem:[#allocation6 + $0xc] ss:$20 sps:$4 sm:$0xff]   ;;  %5299 = vst.msk [vmem:[#allocation6 + $0x48] sm:$0xf] %vm350_vm14, %v5279_v53  ;;  %v8187_v5 = vcombine.low %v5385_v14, %v5388_v4 }
 0x55e   : > { %5935 = vmatprep.mubr.bf16.mxu1 %v9292_v63 }
 0x55f   : > { %5936 = vmatmul.mubr.bf16.vlgmr.msra.gmra.mxu1 %v8187_v5  ;;  %v5281_v56 = vpop.permute.xlu0 %5280  ;;  %9000 = vmatpush3.bf16.msra.mxu0 %v9294_v42  ;;  %v5391_v27 = vld [vmem:[#allocation6 + $0x30] sm:$0xff] }
 0x560   : > { %v5107_v23 = vpop.permute.xlu1 %5106  ;;  %5300 = vst.msk [vmem:[#allocation6 + $0x5c] sm:$0xf] %vm350_vm14, %v5281_v56  ;;  %v11624_v42 = vld [vmem:[%s12266_s4 + $0x2] ss:$0 sm:$0xff] }
 0x561   : > { %5125 = vst.msk [vmem:[#allocation6 + $0x6c] sm:$0xf] %vm350_vm14, %v5107_v23 }
 0x562   : > { %9002 = vmatmul.mubr.bf16.vlgmr.msra.gmra.mxu0 %v9295_v16 }
 0x563   : > { %v5109_v41 = vpop.permute.xlu0 %5108  ;;  %9005 = vmatprep.mubr.bf16.mxu0 %v9296_v38 }
 0x564   : > { %v5283_v1 = vpop.permute.xlu1 %5282  ;;  %v5394_v8 = vld [vmem:[#allocation6 + $0x44] sm:$0xff]  ;;  %5126 = vst.msk [vmem:[#allocation6 + $0x80] sm:$0xf] %vm350_vm14, %v5109_v41 }
 0x565   : > { %v9297_v33 = vld [vmem:[#allocation6 + $0x34] ss:$20 sps:$4 sm:$0xff]   ;;  %5301 = vst.msk [vmem:[#allocation6 + $0x70] sm:$0xf] %vm350_vm14, %v5283_v1  ;;  %v8192_v43 = vcombine.low %v5391_v27, %v5394_v8 }
 0x566   : > { %5943 = vmatprep.mubr.bf16.mxu1 %v9297_v33 }
 0x567   : > { %5944 = vmatmul.mubr.bf16.gmra.mxu1 %v8192_v43  ;;  %v5285_v25 = vpop.permute.xlu0 %5284 }
 0x568   : > { %5302 = vst.msk [vmem:[#allocation6 + $0x84] sm:$0xf] %vm350_vm14, %v5285_v25  ;;  %v9302_v44 = vld [vmem:[#allocation6 + $0x58] ss:$20 sps:$4 sm:$0xff]  }
 0x56a   : > { %9006 = vmatmul.mubr.bf16.gmra.mxu0 %v11556_v10  ;;  %v6245_v10 = vrot.slane %v6243_v46, 5 }
 0x56b   : > { %v5111_v24 = vpop.permute.xlu1 %5110 }
 0x56c   : > { %5127 = vst.msk [vmem:[#allocation6 + $0x94] sm:$0xf] %vm350_vm14, %v5111_v24  ;;  %v9300_v54 = vld [vmem:[#allocation6 + $0x5c] ss:$20 sps:$4 sm:$0xff]   ;;  %v6246_v2 = vsel %vm9787_vm13, %v6241_v17, %v6245_v10 }
 0x56d   : > { %5951 = vmatprep.mubr.bf16.mxu1 %v9300_v54  ;;  %6345 = vrot.lane.b32.xlu0 %v6246_v2, %s9436_s10 }
 0x56f   : > { %v5287_v49 = vpop.permute.xlu1 %5286  ;;  %5952 = vmatmul.mubr.bf16.gmra.mxu1 %v9302_v44 }
 0x570   : > { %5303 = vst.msk [vmem:[#allocation6 + $0x98] sm:$0xf] %vm350_vm14, %v5287_v49 }
 0x573   : > { %v9305_v3 = vld [vmem:[#allocation6 + $0x80] ss:$20 sps:$4 sm:$0xff]  }
 0x577   : > { %v9303_v13 = vld [vmem:[#allocation6 + $0x84] ss:$20 sps:$4 sm:$0xff]  }
 0x578   : > { %5959 = vmatprep.mubr.bf16.mxu1 %v9303_v13 }
 0x579   : > { %5960 = vmatmul.mubr.bf16.gmra.mxu1 %v9305_v3 }
 0x601   : > { %v8769_v37 = vpop.f32.mrf.mxu0 }
 0x603   : > { %v8770_v21 = vpop.f32.mrf.mxu0 }
 0x604   : > { %v8771_v19 = vadd.f32 %v8770_v21, %v8769_v37 }
 0x605   : > { %v8772_v36 = vpop.f32.mrf.mxu0 }
 0x606   : > { %v5873_v4 = vadd.f32 %v8771_v19, %v11624_v42 }
 0x607   : > { %v8773_v34 = vpop.f32.mrf.mxu0 }
 0x608   : > { %v8774_v63 = vadd.f32 %v8773_v34, %v8772_v36  ;;  %v6775_v36 = vld [vmem:[#allocation5 + $0x48] sm:$0xf] }
 0x609   : > { %v8775_v55 = vpop.f32.mrf.mxu0 }
 0x60a   : > { %v5876_v1 = vadd.f32 %v8774_v63, %v11624_v42  ;;  %v6156_v63 = vld [vmem:[#allocation5 + $0xc] sm:$0x1] }
 0x60b   : > { %v8776_v60 = vpop.f32.mrf.mxu0 }
 0x60c   : > { %v8777_v27 = vadd.f32 %v8776_v60, %v8775_v55 }
 0x60d   : > { %v8778_v32 = vpop.f32.mrf.mxu0 }
 0x60e   : > { %v5881_v13 = vadd.f32 %v8777_v27, %v11624_v42 }
 0x60f   : > { %v8779_v29 = vpop.f32.mrf.mxu0 }
 0x610   : > { %v8780_v59 = vadd.f32 %v8779_v29, %v8778_v32 }
 0x612   : > { %v8781_v7 = vpop.f32.mrf.mxu0  ;;  %v5884_v34 = vadd.f32 %v8780_v59, %v11624_v42 }
 0x614   : > { %v8782_v39 = vpop.f32.mrf.mxu0 }
 0x615   : > { %v8783_v55 = vadd.f32 %v8782_v39, %v8781_v7 }
 0x616   : > { %v8784_v48 = vpop.f32.mrf.mxu0 }
 0x618   : > { %v8785_v18 = vpop.f32.mrf.mxu0 }
 0x619   : > { %v8786_v60 = vadd.f32 %v8785_v18, %v8784_v48  ;;  %v5889_v48 = vadd.f32 %v8783_v55, %v11624_v42 }
 0x61a   : > { %v11617_v30 = vpop.f32.mrf.mxu0 }
 0x61c   : > { %v11619_v57 = vpop.f32.mrf.mxu0 }
 0x61e   : > { %v11626_v51 = vpop.f32.mrf.mxu0 }
 0x61f   : > { %v8809_v6 = vpop.f32.mrf.mxu1 }
 0x620   : > { %v11628_v53 = vpop.f32.mrf.mxu0 }
 0x621   : > { %v8810_v14 = vpop.f32.mrf.mxu1 }
 0x622   : > { %v8811_v5 = vadd.f32 %v8810_v14, %v8809_v6  ;;  %v9003_v23 = vpop.f32.mrf.mxu0 }
 0x623   : > { %v8812_v56 = vpop.f32.mrf.mxu1 }
 0x624   : > { %v5938_v16 = vadd.f32 %v8811_v5, %v5873_v4  ;;  %v6002_v41 = vpop.f32.mrf.mxu0  ;;  %v6153_v4 = vld [vmem:[#allocation5 + $0x8] sm:$0xf] }
 0x625   : > { %v8813_v38 = vpop.f32.mrf.mxu1 }
 0x626   : > { %v8814_v8 = vadd.f32 %v8813_v38, %v8812_v56  ;;  %v6003_v33 = vadd.f32 %v6002_v41, %v5938_v16  ;;  %v9004_v25 = vpop.f32.mrf.mxu0  ;;  %v6876_v41 = vshrl.u32 %v6775_v36, 16 }
 0x627   : > { %v8815_v43 = vpop.f32.mrf.mxu1 }
 0x628   : > { %v6033_v24 = vmax.f32 %v6003_v33, 0.0  ;;  %v5941_v49 = vadd.f32 %v8814_v8, %v5876_v1  ;;  %v6005_v44 = vpop.f32.mrf.mxu0  ;;  %v6879_v33 = vshll.u32 %v6775_v36, 16 }
 0x629   : > { %v8816_v54 = vpop.f32.mrf.mxu1 }
 0x62a   : > { %v8448_v3 = vpack.c.bf16 %v6033_v24, %v6033_v24  ;;  %v8817_v61 = vadd.f32 %v8816_v54, %v8815_v43  ;;  %v6006_v52 = vadd.f32 %v6005_v44, %v5941_v49  ;;  %v11633_v10 = vpop.f32.mrf.mxu0  ;;  %v5892_v43 = vadd.f32 %v8786_v60, %v11624_v42  ;;  %v11642_v44 = vld [vmem:[#allocation5 + $0x4c] sm:$0x1] }
 0x62b   : > { %v8818_v0 = vpop.f32.mrf.mxu1  ;;  %v11655_v60 = vrot.slane %v6876_v41, 4 }
 0x62c   : > { %v6074_v46 = vshrl.u32 %v8448_v3, 16  ;;  %v5946_v9 = vadd.f32 %v8817_v61, %v5881_v13  ;;  %v6034_v20 = vmax.f32 %v6006_v52, 0.0  ;;  %v6077_v31 = vshll.u32 %v8448_v3, 16  ;;  %v6018_v16 = vpop.f32.mrf.mxu0  ;;  %v6159_v61 = vld [vmem:[#allocation5 + $0x10] sm:$0xf] }
 0x62d   : > { %v8819_v17 = vpop.f32.mrf.mxu1  ;;  %v8789_v13 = vadd.f32 %v11619_v57, %v11617_v30  ;;  %v6162_v52 = vld [vmem:[#allocation5 + $0x14] sm:$0x1] }
 0x62e   : > { %v6076_v2 = vrot.slane %v6074_v46, 7  ;;  %v6011_v37 = vadd.f32 %v9003_v23, %v5946_v9  ;;  %v8449_v47 = vpack.c.bf16 %v6034_v20, %v6034_v20  ;;  %v8820_v21 = vadd.f32 %v8819_v17, %v8818_v0  ;;  %v11646_v0 = vpop.f32.mrf.mxu0 }
 0x62f   : > { %v8821_v19 = vpop.f32.mrf.mxu1 }
 0x630   : > { %v6079_v6 = vor.u32 %v6077_v31, %v6076_v2  ;;  %v6080_v32 = vrot.slane %v6076_v2, 4  ;;  %v6035_v29 = vmax.f32 %v6011_v37, 0.0  ;;  %v6082_v14 = vshrl.u32 %v8449_v47, 16 }
 0x631   : > { %v6085_v5 = vshll.u32 %v8449_v47, 16  ;;  %v5949_v56 = vadd.f32 %v8820_v21, %v5884_v34  ;;  %v8822_v38 = vpop.f32.mrf.mxu1  ;;  %v8792_v2 = vadd.f32 %v11628_v53, %v11626_v51  ;;  %v6885_v47 = vshll.u32 %v11642_v44, 16  ;;  %v6165_v34 = vld [vmem:[#allocation5 + $0x18] sm:$0xf] }
 0x632   : > { %v6154_v23 = vsel %vm9887_vm1, %v6079_v6, %v6153_v4  ;;  %v6157_v1 = vsel %vm9769_vm9, %v6080_v32, %v6156_v63  ;;  %v8450_v7 = vpack.c.bf16 %v6035_v29, %v6035_v29  ;;  %v6084_v39 = vrot.slane %v6082_v14, 7  ;;  %v6168_v6 = vld [vmem:[#allocation5 + $0x1c] sm:$0x1]  ;;  %v6021_v14 = vpop.f32.mrf.mxu0 }
 0x633   : > { %6155 = vst [vmem:[#allocation5 + $0x8] sm:$0xf] %v6154_v23  ;;  %6158 = vst [vmem:[#allocation5 + $0xc] sm:$0x1] %v6157_v1  ;;  %v6014_v18 = vadd.f32 %v9004_v25, %v5949_v56  ;;  %v8823_v27 = vadd.f32 %v8822_v38, %v8821_v19  ;;  %v8824_v8 = vpop.f32.mrf.mxu1  ;;  %v5897_v19 = vadd.f32 %v8789_v13, %v11624_v42  ;;  %v11658_v53 = vrot.slane %v6879_v33, 5 }
 0x634   : > { %v6090_v24 = vshrl.u32 %v8450_v7, 16  ;;  %v6087_v49 = vor.u32 %v6085_v5, %v6084_v39  ;;  %v6088_v54 = vrot.slane %v6084_v39, 4  ;;  %v6093_v3 = vshll.u32 %v8450_v7, 16  ;;  %v6174_v13 = vld [vmem:[#allocation5 + $0x24] sm:$0x1] }
 0x635   : > { %v6036_v59 = vmax.f32 %v6014_v18, 0.0  ;;  %v5954_v25 = vadd.f32 %v8823_v27, %v5889_v48  ;;  %v8825_v46 = vpop.f32.mrf.mxu1  ;;  %v5900_v41 = vadd.f32 %v8792_v2, %v11624_v42  ;;  %v9306_v18 = vld [vmem:[%s12265_s3 + $0x438] sm:$0xff]   ;;  %v6171_v27 = vld [vmem:[#allocation5 + $0x20] sm:$0xf] }
 0x636   : > { %v6092_v9 = vrot.slane %v6090_v24, 7  ;;  %v6160_v20 = vsel %vm9887_vm1, %v6087_v49, %v6159_v61  ;;  %v6163_v31 = vsel %vm9769_vm9, %v6088_v54, %v6162_v52  ;;  %v8826_v17 = vadd.f32 %v8825_v46, %v8824_v8  ;;  %v9307_v42 = vld [vmem:[%s12265_s3 + $0x3f8] sm:$0xff]   ;;  %8845 = vmatprep.subr.bf16.mxu1 %v9306_v18 }
 0x637   : > { %6161 = vst [vmem:[#allocation5 + $0x10] sm:$0xf] %v6160_v20  ;;  %6164 = vst [vmem:[#allocation5 + $0x14] sm:$0x1] %v6163_v31  ;;  %v8451_v30 = vpack.c.bf16 %v6036_v59, %v6036_v59  ;;  %v6019_v57 = vadd.f32 %v6018_v16, %v5954_v25  ;;  %8846 = vmatpush3.bf16.msra.mxu1 %v9307_v42 }
 0x638   : > { %v6095_v21 = vor.u32 %v6093_v3, %v6092_v9  ;;  %v6096_v36 = vrot.slane %v6092_v9, 4  ;;  %v5957_v55 = vadd.f32 %v8826_v17, %v5892_v43 }
 0x639   : > { %v8827_v37 = vpop.f32.mrf.mxu1  ;;  %v6098_v32 = vshrl.u32 %v8451_v30, 16  ;;  %v6037_v29 = vmax.f32 %v6019_v57, 0.0  ;;  %v6101_v1 = vshll.u32 %v8451_v30, 16 }
 0x63a   : > { %v6166_v4 = vsel %vm9887_vm1, %v6095_v21, %v6165_v34  ;;  %v6169_v63 = vsel %vm9769_vm9, %v6096_v36, %v6168_v6  ;;  %v6022_v5 = vadd.f32 %v6021_v14, %v5957_v55  ;;  %v11664_v16 = vld [vmem:[#allocation5 + $0x8] sm:$0xe]  ;;  %v11666_v38 = vld [vmem:[#allocation5 + $0xc] sm:$0x1] }
 0x63b   : > { %v8828_v51 = vpop.f32.mrf.mxu1  ;;  %6167 = vst [vmem:[#allocation5 + $0x18] sm:$0xf] %v6166_v4  ;;  %6170 = vst [vmem:[#allocation5 + $0x1c] sm:$0x1] %v6169_v63  ;;  %v6100_v23 = vrot.slane %v6098_v32, 7  ;;  %v8452_v7 = vpack.c.bf16 %v6037_v29, %v6037_v29  ;;  %v8261_v43 = vrot.slane %v11664_v16, 9 }
 0x63c   : > { %v8829_v56 = vadd.f32 %v8828_v51, %v8827_v37  ;;  %v11669_v48 = vld [vmem:[#allocation5 + $0x8] sm:$0xf]  ;;  %v6038_v8 = vmax.f32 %v6022_v5, 0.0  ;;  %v6683_v24 = vrot.slane %v11666_v38, 5  ;;  %v6180_v29 = vld [vmem:[#allocation5 + $0x2c] sm:$0x1] }
 0x63d   : > { %v8830_v39 = vpop.f32.mrf.mxu1  ;;  %v6103_v49 = vor.u32 %v6101_v1, %v6100_v23  ;;  %v6104_v54 = vrot.slane %v6100_v23, 4  ;;  %v6106_v3 = vshrl.u32 %v8452_v7, 16  ;;  %v6248_v52 = vshrl.u32 %v11669_v48, 16  ;;  %v9309_v4 = vld [vmem:[%s12265_s3 + $0x3f0] sm:$0xff]   ;;  %v6220_v22 = vld [vmem:[#allocation5 + $0xc] sm:$0x1] }
 0x63e   : > { %v5962_v33 = vadd.f32 %v8829_v56, %v5897_v19  ;;  %v8453_v59 = vpack.c.bf16 %v6038_v8, %v6038_v8  ;;  %v11681_v9 = vld [vmem:[#allocation5 + $0x10] sm:$0xe]  ;;  %v11683_v20 = vld [vmem:[#allocation5 + $0x14] sm:$0x1]  ;;  %v6251_v31 = vshll.u32 %v11669_v48, 16  ;;  %v6109_v57 = vshll.u32 %v8452_v7, 16 }
 0x63f   : > { %v8831_v61 = vpop.f32.mrf.mxu1  ;;  %v6172_v17 = vsel %vm9887_vm1, %v6103_v49, %v6171_v27  ;;  %v6175_v2 = vsel %vm9769_vm9, %v6104_v54, %v6174_v13  ;;  %v6108_v30 = vrot.slane %v6106_v3, 7  ;;  %v11690_v37 = vld [vmem:[#allocation5 + $0x10] sm:$0xf]  ;;  %v8262_v55 = vrot.slane %v11681_v9, 9  ;;  %v9311_v3 = vld [vmem:[%s12265_s3 + $0x478] sm:$0xff]  }
 0x640   : > { %v6027_v25 = vadd.f32 %v11633_v10, %v5962_v33  ;;  %v8832_v46 = vadd.f32 %v8831_v61, %v8830_v39  ;;  %6173 = vst [vmem:[#allocation5 + $0x20] sm:$0xf] %v6172_v17  ;;  %6176 = vst [vmem:[#allocation5 + $0x24] sm:$0x1] %v6175_v2  ;;  %v6177_v10 = vld [vmem:[#allocation5 + $0x28] sm:$0xf] }
 0x641   : > { %v6114_v21 = vshrl.u32 %v8453_v59, 16  ;;  %v9308_v19 = vld [vmem:[%s12265_s3 + $0x430] sm:$0xff]   ;;  %v6111_v6 = vor.u32 %v6109_v57, %v6108_v30  ;;  %v6112_v32 = vrot.slane %v6108_v30, 4  ;;  %v6117_v14 = vshll.u32 %v8453_v59, 16 }
 0x642   : > { %v6039_v36 = vmax.f32 %v6027_v25, 0.0  ;;  %v5965_v34 = vadd.f32 %v8832_v46, %v5900_v41  ;;  %v6687_v51 = vrot.slane %v11683_v20, 5  ;;  %v6459_v41 = vld [vmem:[#allocation5 + $0x18] sm:$0xf]  ;;  %v6262_v1 = vshrl.u32 %v11690_v37, 16  ;;  %8847 = vmatprep.subr.bf16.mxu1 %v9308_v19  ;;  %v9315_v9 = vld [vmem:[%s12265_s3 + $0x470] sm:$0xff]  }
 0x643   : > { %v6116_v63 = vrot.slane %v6114_v21, 7  ;;  %v6653_v23 = vld [vmem:[#allocation5 + $0x18] sm:$0xe]  ;;  %v6178_v7 = vsel %vm9887_vm1, %v6111_v6, %v6177_v10  ;;  %v6181_v39 = vsel %vm9769_vm9, %v6112_v32, %v6180_v29  ;;  %6477 = vrot.lane.b32.xlu0 %v6459_v41, %s9436_s10  ;;  %v6654_v18 = vld [vmem:[#allocation5 + $0x1c] sm:$0x1]  ;;  %v6265_v8 = vshll.u32 %v11690_v37, 16  ;;  %8848 = vmatpush3.bf16.msra.mxu1 %v9309_v4 }
 0x644   : > { %v8454_v5 = vpack.c.bf16 %v6039_v36, %v6039_v36  ;;  %v6030_v56 = vadd.f32 %v11646_v0, %v5965_v34  ;;  %v6223_v27 = vld [vmem:[#allocation5 + $0x18] sm:$0xf]  ;;  %6179 = vst [vmem:[#allocation5 + $0x28] sm:$0xf] %v6178_v7  ;;  %6182 = vst [vmem:[#allocation5 + $0x2c] sm:$0x1] %v6181_v39  ;;  %v6684_v4 = vsel %vm9896_vm2, %v8261_v43, %v6683_v24 }
 0x645   : > { %v9310_v0 = vld [vmem:[%s12265_s3 + $0x4b8] sm:$0xff]   ;;  %v6119_v33 = vor.u32 %v6117_v14, %v6116_v63  ;;  %v6120_v42 = vrot.slane %v6116_v63, 4  ;;  %v6183_v49 = vld [vmem:[#allocation5 + $0x30] sm:$0xf]  ;;  %v8263_v13 = vrot.slane %v6653_v23, 9  ;;  %v6276_v46 = vshrl.u32 %v6223_v27, 16 }
 0x646   : > { %v6122_v54 = vshrl.u32 %v8454_v5, 16  ;;  %v6186_v61 = vld [vmem:[#allocation5 + $0x34] sm:$0x1]  ;;  %v6125_v59 = vshll.u32 %v8454_v5, 16  ;;  %v6040_v25 = vmax.f32 %v6030_v56, 0.0  ;;  %v6279_v17 = vshll.u32 %v6223_v27, 16  ;;  %8885 = vmatprep.subr.bf16.mxu0 %v9310_v0 }
 0x647   : > { %v6184_v2 = vsel %vm9887_vm1, %v6119_v33, %v6183_v49  ;;  %v6187_v30 = vsel %vm9769_vm9, %v6120_v42, %v6186_v61  ;;  %v6457_v10 = vld [vmem:[#allocation5 + $0x8] sm:$0xf]  ;;  %v6691_v21 = vrot.slane %v6654_v18, 5  ;;  %v11718_v36 = vld [vmem:[#allocation5 + $0x1c] sm:$0x1]  ;;  %8886 = vmatpush3.bf16.msra.mxu0 %v9311_v3  ;;  %v6882_v63 = vor.u32 %v11658_v53, %v11655_v60 }
 0x648   : > { %v6124_v57 = vrot.slane %v6122_v54, 7  ;;  %6185 = vst [vmem:[#allocation5 + $0x30] sm:$0xf] %v6184_v2  ;;  %6188 = vst [vmem:[#allocation5 + $0x34] sm:$0x1] %v6187_v30  ;;  %v8455_v6 = vpack.c.bf16 %v6040_v25, %v6040_v25  ;;  %6473 = vrot.lane.b32.xlu0 %v6457_v10, %s9436_s10  ;;  %v9312_v39 = vld [vmem:[%s12265_s3 + $0x428] sm:$0xff]  }
 0x649   : > { %v6189_v34 = vld [vmem:[#allocation5 + $0x38] sm:$0xf]  ;;  %v6192_v19 = vld [vmem:[#allocation5 + $0x3c] sm:$0x1]  ;;  %v6460_v32 = vld [vmem:[#allocation5 + $0x20] sm:$0xf]  ;;  %v6692_v42 = vsel %vm9896_vm2, %v8263_v13, %v6691_v21  ;;  %8849 = vmatprep.subr.bf16.mxu1 %v9312_v39 }
 0x64a   : > { %v6655_v29 = vld [vmem:[#allocation5 + $0x20] sm:$0xe]  ;;  %v6656_v14 = vld [vmem:[#allocation5 + $0x24] sm:$0x1]  ;;  %v6127_v5 = vor.u32 %v6125_v59, %v6124_v57  ;;  %v6128_v56 = vrot.slane %v6124_v57, 4  ;;  %6479 = vrot.lane.b32.xlu1 %v6460_v32, %s9436_s10  ;;  %v6130_v38 = vshrl.u32 %v8455_v6, 16  ;;  %v11756_v57 = vsel %vm9896_vm2, %v8262_v55, %v6687_v51 }
 0x64b   : > { %v8264_v41 = vrot.slane %v6655_v29, 9  ;;  %v6695_v23 = vrot.slane %v6656_v14, 5  ;;  %v6225_v7 = vld [vmem:[#allocation5 + $0x20] sm:$0xf]  ;;  %v6278_v18 = vrot.slane %v6276_v46, 4  ;;  %v6281_v16 = vrot.slane %v6279_v17, 5 }
 0x64c   : > { %v6285_v27 = vshll.u32 %v11718_v36, 16  ;;  %v6763_v43 = vld [vmem:[#allocation5 + $0x18] sm:$0xf]  ;;  %v6190_v24 = vsel %vm9887_vm1, %v6127_v5, %v6189_v34  ;;  %v6193_v0 = vsel %vm9769_vm9, %v6128_v56, %v6192_v19  ;;  %v6133_v33 = vshll.u32 %v8455_v6, 16  ;;  %v6226_v49 = vld [vmem:[#allocation5 + $0x24] sm:$0x1]  ;;  %6717 = vrot.lane.b32.xlu0 %v6692_v42, %s9436_s10  ;;  %v6346_v34 = vpop.permute.xlu0 %6345 }
 0x64d   : > { %v9313_v54 = vld [vmem:[%s12265_s3 + $0x3e8] sm:$0xff]   ;;  %6191 = vst [vmem:[#allocation5 + $0x38] sm:$0xf] %v6190_v24  ;;  %6194 = vst [vmem:[#allocation5 + $0x3c] sm:$0x1] %v6193_v0  ;;  %v6132_v3 = vrot.slane %v6130_v38, 7  ;;  %v6282_v59 = vor.u32 %v6281_v16, %v6278_v18  ;;  %v6696_v30 = vsel %vm9896_vm2, %v8264_v41, %v6695_v23 }
 0x64e   : > { %v6458_v61 = vld [vmem:[#allocation5 + $0x10] sm:$0xf]  ;;  %v6290_v25 = vshrl.u32 %v6225_v7, 16  ;;  %v6293_v46 = vshll.u32 %v6225_v7, 16  ;;  %v6195_v13 = vld [vmem:[#allocation5 + $0x40] sm:$0xf]  ;;  %8850 = vmatpush3.bf16.msra.mxu1 %v9313_v54 }
 0x64f   : > { %v9314_v17 = vld [vmem:[%s12265_s3 + $0x4b0] sm:$0xff]   ;;  %v6198_v2 = vld [vmem:[#allocation5 + $0x44] sm:$0x1]  ;;  %6475 = vrot.lane.b32.xlu1 %v6458_v61, %s9436_s10  ;;  %v6764_v10 = vld [vmem:[#allocation5 + $0x1c] sm:$0x1]  ;;  %v6792_v21 = vshrl.u32 %v6763_v43, 16  ;;  %v6135_v19 = vor.u32 %v6133_v33, %v6132_v3 }
 0x650   : > { %v6795_v36 = vshll.u32 %v6763_v43, 16  ;;  %v6136_v6 = vrot.slane %v6132_v3, 4  ;;  %v6292_v32 = vrot.slane %v6290_v25, 4  ;;  %v6299_v29 = vshll.u32 %v6226_v49, 16  ;;  %v6765_v14 = vld [vmem:[#allocation5 + $0x20] sm:$0xf]  ;;  %8887 = vmatprep.subr.bf16.mxu0 %v9314_v17  ;;  %6713 = vrot.lane.b32.xlu0 %v6684_v4, %s9436_s10 }
 0x651   : > { %6369 = vst.msk [vmem:[#allocation6] sm:$0xf] %vm350_vm14, %v6346_v34  ;;  %v6283_v20 = vrot.slane %v6282_v59, 4  ;;  %v6295_v55 = vrot.slane %v6293_v46, 5  ;;  %v6794_v51 = vrot.slane %v6792_v21, 4  ;;  %v6196_v41 = vsel %vm9887_vm1, %v6135_v19, %v6195_v13  ;;  %8888 = vmatpush3.bf16.msra.mxu0 %v9315_v9  ;;  %v9316_v38 = vld [vmem:[%s12265_s3 + $0x420] sm:$0xff]  }
 0x652   : > { %v6797_v5 = vrot.slane %v6795_v36, 5  ;;  %v6222_v56 = vld [vmem:[#allocation5 + $0x14] sm:$0x1]  ;;  %v6199_v23 = vsel %vm9769_vm9, %v6136_v6, %v6198_v2  ;;  %v6287_v7 = vrot.slane %v6285_v27, 5  ;;  %v6801_v39 = vshll.u32 %v6764_v10, 16  ;;  %8851 = vmatprep.subr.bf16.mxu1 %v9316_v38 }
 0x653   : > { %6197 = vst [vmem:[#allocation5 + $0x40] sm:$0xf] %v6196_v41  ;;  %6200 = vst [vmem:[#allocation5 + $0x44] sm:$0x1] %v6199_v23  ;;  %6719 = vrot.lane.b32.xlu1 %v6696_v30, %s9436_s10  ;;  %v6296_v18 = vor.u32 %v6295_v55, %v6292_v32  ;;  %v6766_v50 = vld [vmem:[#allocation5 + $0x24] sm:$0x1] }
 0x654   : > { %v6798_v16 = vor.u32 %v6797_v5, %v6794_v51  ;;  %v6806_v43 = vshrl.u32 %v6765_v14, 16  ;;  %v6809_v24 = vshll.u32 %v6765_v14, 16  ;;  %v6761_v0 = vld [vmem:[#allocation5 + $0x10] sm:$0xf]  ;;  %v6301_v33 = vrot.slane %v6299_v29, 5 }
 0x655   : > { %v6264_v4 = vrot.slane %v6262_v1, 4  ;;  %v6267_v27 = vrot.slane %v6265_v8, 5  ;;  %v6271_v42 = vshll.u32 %v6222_v56, 16  ;;  %v6762_v49 = vld [vmem:[#allocation5 + $0x14] sm:$0x1]  ;;  %v6288_v54 = vsel %vm9787_vm13, %v6283_v20, %v6287_v7  ;;  %v9317_v8 = vld [vmem:[%s12265_s3 + $0x3e0] sm:$0xff]  }
 0x656   : > { %v6461_v3 = vld [vmem:[#allocation5 + $0x28] sm:$0xf]  ;;  %v6297_v61 = vrot.slane %v6296_v18, 4  ;;  %v6808_v59 = vrot.slane %v6806_v43, 4  ;;  %v6811_v25 = vrot.slane %v6809_v24, 5  ;;  %v6799_v46 = vrot.slane %v6798_v16, 4  ;;  %8852 = vmatpush3.bf16.msra.mxu1 %v9317_v8 }
 0x657   : > { %6481 = vrot.lane.b32.xlu0 %v6461_v3, %s9436_s10  ;;  %v6815_v17 = vshll.u32 %v6766_v50, 16  ;;  %v6268_v13 = vor.u32 %v6267_v27, %v6264_v4  ;;  %v6250_v1 = vrot.slane %v6248_v52, 4  ;;  %v11780_v37 = vld [vmem:[#allocation5 + $0x28] sm:$0xe]  ;;  %6351 = vrot.lane.b32.xlu1 %v6288_v54, %s9436_s10  ;;  %v6803_v2 = vrot.slane %v6801_v39, 5  ;;  %v9320_v7 = vld [vmem:[%s12265_s3 + $0x418] sm:$0xff]  }
 0x658   : > { %v6812_v30 = vor.u32 %v6811_v25, %v6808_v59  ;;  %v11786_v10 = vrot.slane %v6271_v42, 5  ;;  %v6253_v21 = vrot.slane %v6251_v31, 5  ;;  %v6658_v36 = vld [vmem:[#allocation5 + $0x2c] sm:$0x1]  ;;  %v6257_v19 = vshll.u32 %v6220_v22, 16  ;;  %v9321_v43 = vld [vmem:[%s12265_s3 + $0x3d8] sm:$0xff]   ;;  %8853 = vmatprep.subr.bf16.mxu1 %v9320_v7 }
 0x659   : > { %v9318_v52 = vld [vmem:[%s12265_s3 + $0x4a8] sm:$0xff]   ;;  %v11793_v34 = vrot.slane %v6268_v13, 4  ;;  %v6778_v6 = vshrl.u32 %v6761_v0, 16  ;;  %v6781_v32 = vshll.u32 %v6761_v0, 16  ;;  %v6229_v29 = vld [vmem:[#allocation5 + $0x30] sm:$0xf]  ;;  %v6302_v14 = vsel %vm9787_vm13, %v6297_v61, %v6301_v33 }
 0x65a   : > { %v6813_v9 = vrot.slane %v6812_v30, 4  ;;  %v6254_v20 = vor.u32 %v6253_v21, %v6250_v1  ;;  %v6787_v55 = vshll.u32 %v6762_v49, 16  ;;  %v6231_v48 = vld [vmem:[#allocation5 + $0x38] sm:$0xf]  ;;  %8889 = vmatprep.subr.bf16.mxu0 %v9318_v52  ;;  %v9319_v31 = vld [vmem:[%s12265_s3 + $0x468] sm:$0xff]   ;;  %v6804_v51 = vsel %vm9787_vm13, %v6799_v46, %v6803_v2  ;;  %v9322_v4 = vld [vmem:[%s12265_s3 + $0x4a0] sm:$0xff]   ;;  %8854 = vmatpush3.bf16.msra.mxu1 %v9321_v43 }
 0x65b   : > { %6353 = vrot.lane.b32.xlu0 %v6302_v14, %s9436_s10  ;;  %v6817_v5 = vrot.slane %v6815_v17, 5  ;;  %v6780_v56 = vrot.slane %v6778_v6, 4  ;;  %v6783_v41 = vrot.slane %v6781_v32, 5  ;;  %v6230_v23 = vld [vmem:[#allocation5 + $0x34] sm:$0x1]  ;;  %6715 = vrot.lane.b32.xlu1 %v11756_v57, %s9436_s10  ;;  %v6274_v39 = vsel %vm9787_vm13, %v11793_v34, %v11786_v10 }
 0x65c   : > { %v6255_v38 = vrot.slane %v6254_v20, 4  ;;  %v6259_v18 = vrot.slane %v6257_v19, 5  ;;  %v8265_v16 = vrot.slane %v11780_v37, 9  ;;  %v6232_v50 = vld [vmem:[#allocation5 + $0x3c] sm:$0x1]  ;;  %8890 = vmatpush3.bf16.msra.mxu0 %v9319_v31  ;;  %v6699_v22 = vrot.slane %v6658_v36, 5 }
 0x65d   : > { %v6784_v24 = vor.u32 %v6783_v41, %v6780_v56  ;;  %v6332_v0 = vshrl.u32 %v6231_v48, 16  ;;  %v6335_v33 = vshll.u32 %v6231_v48, 16  ;;  %v6227_v57 = vld [vmem:[#allocation5 + $0x28] sm:$0xf]  ;;  %v6818_v27 = vsel %vm9787_vm13, %v6813_v9, %v6817_v5  ;;  %v6228_v3 = vld [vmem:[#allocation5 + $0x2c] sm:$0x1]  ;;  %8891 = vmatprep.subr.bf16.mxu0 %v9322_v4 }
 0x65e   : > { %v6789_v42 = vrot.slane %v6787_v55, 5  ;;  %v6318_v49 = vshrl.u32 %v6229_v29, 16  ;;  %v6321_v54 = vshll.u32 %v6229_v29, 16  ;;  %v6341_v46 = vshll.u32 %v6232_v50, 16  ;;  %v6769_v17 = vld [vmem:[#allocation5 + $0x30] sm:$0xf] }
 0x65f   : > { %6893 = vrot.lane.b32.xlu0 %v6818_v27, %s9436_s10  ;;  %v6785_v61 = vrot.slane %v6784_v24, 4  ;;  %v6334_v59 = vrot.slane %v6332_v0, 4  ;;  %v6337_v25 = vrot.slane %v6335_v33, 5  ;;  %6891 = vrot.lane.b32.xlu1 %v6804_v51, %s9436_s10  ;;  %v6327_v37 = vshll.u32 %v6230_v23, 16  ;;  %v6770_v36 = vld [vmem:[#allocation5 + $0x34] sm:$0x1] }
 0x660   : > { %v6320_v13 = vrot.slane %v6318_v49, 4  ;;  %v6323_v1 = vrot.slane %v6321_v54, 5  ;;  %v6304_v8 = vshrl.u32 %v6227_v57, 16  ;;  %v6260_v2 = vsel %vm9787_vm13, %v6255_v38, %v6259_v18  ;;  %v6767_v52 = vld [vmem:[#allocation5 + $0x28] sm:$0xf]  ;;  %v9323_v9 = vld [vmem:[%s12265_s3 + $0x460] sm:$0xff]  }
 0x661   : > { %v11827_v30 = vsel %vm9896_vm2, %v8265_v16, %v6699_v22  ;;  %v6338_v10 = vor.u32 %v6337_v25, %v6334_v59  ;;  %v6307_v21 = vshll.u32 %v6227_v57, 16  ;;  %v6768_v34 = vld [vmem:[#allocation5 + $0x2c] sm:$0x1]  ;;  %v6313_v32 = vshll.u32 %v6228_v3, 16  ;;  %v11829_v14 = vld [vmem:[#allocation5 + $0x38] sm:$0xe]  ;;  %8892 = vmatpush3.bf16.msra.mxu0 %v9323_v9 }
 0x662   : > { %v6324_v19 = vor.u32 %v6323_v1, %v6320_v13  ;;  %v6306_v6 = vrot.slane %v6304_v8, 4  ;;  %v6834_v29 = vshrl.u32 %v6769_v17, 16  ;;  %v6790_v20 = vsel %vm9787_vm13, %v6785_v61, %v6789_v42  ;;  %v6662_v51 = vld [vmem:[#allocation5 + $0x3c] sm:$0x1]  ;;  %v11839_v5 = vld [vmem:[#allocation5 + $0x30] sm:$0xe] }
 0x663   : > { %6349 = vrot.lane.b32.xlu0 %v6274_v39, %s9436_s10  ;;  %v11837_v55 = vrot.slane %v6341_v46, 5  ;;  %v6309_v48 = vrot.slane %v6307_v21, 5  ;;  %v6837_v31 = vshll.u32 %v6769_v17, 16  ;;  %6347 = vrot.lane.b32.xlu1 %v6260_v2, %s9436_s10  ;;  %v11842_v56 = vrot.slane %v6338_v10, 4  ;;  %v6660_v38 = vld [vmem:[#allocation5 + $0x34] sm:$0x1] }
 0x664   : > { %v11844_v41 = vrot.slane %v6327_v37, 5  ;;  %v6836_v23 = vrot.slane %v6834_v29, 4  ;;  %v6820_v7 = vshrl.u32 %v6767_v52, 16  ;;  %v6462_v39 = vld [vmem:[#allocation5 + $0x30] sm:$0xf]  ;;  %v11846_v18 = vrot.slane %v6324_v19, 4 }
 0x665   : > { %v6310_v16 = vor.u32 %v6309_v48, %v6306_v6  ;;  %v6839_v50 = vrot.slane %v6837_v31, 5  ;;  %v6823_v43 = vshll.u32 %v6767_v52, 16  ;;  %v6773_v24 = vld [vmem:[#allocation5 + $0x40] sm:$0xf]  ;;  %v11848_v22 = vrot.slane %v6313_v32, 5  ;;  %v9324_v4 = vld [vmem:[%s12265_s3 + $0x410] sm:$0xff]  }
 0x666   : > { %v6843_v0 = vshll.u32 %v6770_v36, 16  ;;  %v6822_v33 = vrot.slane %v6820_v7, 4  ;;  %v6829_v57 = vshll.u32 %v6768_v34, 16  ;;  %v8267_v54 = vrot.slane %v11829_v14, 9  ;;  %v6774_v3 = vld [vmem:[#allocation5 + $0x44] sm:$0x1]  ;;  %8855 = vmatprep.subr.bf16.mxu1 %v9324_v4 }
 0x667   : > { %6889 = vrot.lane.b32.xlu0 %v6790_v20, %s9436_s10  ;;  %v11854_v27 = vrot.slane %v6310_v16, 4  ;;  %v6840_v42 = vor.u32 %v6839_v50, %v6836_v23  ;;  %v6825_v49 = vrot.slane %v6823_v43, 5  ;;  %v9325_v61 = vld [vmem:[%s12265_s3 + $0x3d0] sm:$0xff]   ;;  %6483 = vrot.lane.b32.xlu1 %v6462_v39, %s9436_s10  ;;  %v6463_v59 = vld [vmem:[#allocation5 + $0x38] sm:$0xf]  ;;  %v6344_v25 = vsel %vm9787_vm13, %v11842_v56, %v11837_v55 }
 0x668   : > { %v6707_v46 = vrot.slane %v6662_v51, 5  ;;  %v8266_v17 = vrot.slane %v11839_v5, 9  ;;  %v6703_v13 = vrot.slane %v6660_v38, 5  ;;  %v6771_v1 = vld [vmem:[#allocation5 + $0x38] sm:$0xf]  ;;  %v6330_v8 = vsel %vm9787_vm13, %v11846_v18, %v11844_v41  ;;  %8856 = vmatpush3.bf16.msra.mxu1 %v9325_v61  ;;  %v9331_v41 = vld [vmem:[%s12265_s3 + $0x450] sm:$0xff]  }
 0x669   : > { %v6464_v37 = vld [vmem:[#allocation5 + $0x40] sm:$0xf]  ;;  %v11870_v2 = vrot.slane %v6840_v42, 4  ;;  %v6826_v10 = vor.u32 %v6825_v49, %v6822_v33  ;;  %v6862_v21 = vshrl.u32 %v6773_v24, 16  ;;  %v11872_v36 = vld [vmem:[#allocation5 + $0x3c] sm:$0x1]  ;;  %v6316_v48 = vsel %vm9787_vm13, %v11854_v27, %v11848_v22 }
 0x66a   : > { %v11874_v52 = vld [vmem:[#allocation5 + $0x40] sm:$0xe]  ;;  %v6381_v34 = vld [vmem:[#allocation5 + $0x10] sm:$0xe]  ;;  %v11876_v19 = vrot.slane %v6843_v0, 5  ;;  %v11878_v6 = vrot.slane %v6829_v57, 5  ;;  %v11889_v31 = vsel %vm9896_vm2, %v8267_v54, %v6707_v46  ;;  %v11899_v39 = vsel %vm9896_vm2, %v8266_v17, %v6703_v13 }
 0x66b   : > { %v6865_v32 = vshll.u32 %v6773_v24, 16  ;;  %v6871_v29 = vshll.u32 %v6774_v3, 16  ;;  %v11880_v14 = vld [vmem:[#allocation5 + $0x44] sm:$0x1]  ;;  %v6382_v9 = vld [vmem:[#allocation5 + $0x14] sm:$0x1]  ;;  %6485 = vrot.lane.b32.xlu0 %v6463_v59, %s9436_s10  ;;  %6487 = vrot.lane.b32.xlu1 %v6464_v37, %s9436_s10 }
 0x66c   : > { %v6383_v20 = vld [vmem:[#allocation5 + $0x18] sm:$0xe]  ;;  %v6384_v55 = vld [vmem:[#allocation5 + $0x1c] sm:$0x1]  ;;  %v6864_v51 = vrot.slane %v6862_v21, 4  ;;  %v6848_v5 = vshrl.u32 %v6771_v1, 16  ;;  %v6846_v0 = vsel %vm9787_vm13, %v11870_v2, %v11876_v19 }
 0x66d   : > { %v6377_v56 = vld [vmem:[#allocation5] sm:$0xe]  ;;  %v6378_v23 = vld [vmem:[#allocation5 + $0x4] sm:$0x1]  ;;  %v9326_v7 = vld [vmem:[%s12265_s3 + $0x498] sm:$0xff]   ;;  %v11895_v38 = vrot.slane %v6826_v10, 4 }
 0x66e   : > { %v6867_v16 = vrot.slane %v6865_v32, 5  ;;  %v6851_v50 = vshll.u32 %v6771_v1, 16  ;;  %v6379_v43 = vld [vmem:[#allocation5 + $0x8] sm:$0xe]  ;;  %v6380_v24 = vld [vmem:[#allocation5 + $0xc] sm:$0x1]  ;;  %8893 = vmatprep.subr.bf16.mxu0 %v9326_v7 }
 0x66f   : > { %v11905_v33 = vrot.slane %v6871_v29, 5  ;;  %v11907_v57 = vrot.slane %v6848_v5, 4  ;;  %v6857_v4 = vshll.u32 %v11872_v36, 16  ;;  %v11910_v42 = vld [vmem:[#allocation5 + $0x18] sm:$0xf]  ;;  %v8268_v59 = vrot.slane %v11874_v52, 9  ;;  %6721 = vrot.lane.b32.xlu0 %v11827_v30, %s9436_s10  ;;  %6359 = vrot.lane.b32.xlu1 %v6344_v25, %s9436_s10 }
 0x670   : > { %v6204_v49 = vld [vmem:[#allocation5 + $0x18] sm:$0xf]  ;;  %v6868_v3 = vor.u32 %v6867_v16, %v6864_v51  ;;  %v6853_v61 = vrot.slane %v6851_v50, 5  ;;  %v8255_v46 = vrot.slane %v6381_v34, 9  ;;  %v11916_v17 = vld [vmem:[#allocation5 + $0x1c] sm:$0x1] }
 0x671   : > { %v9327_v54 = vld [vmem:[%s12265_s3 + $0x458] sm:$0xff]   ;;  %v11918_v13 = vld [vmem:[#allocation5 + $0x20] sm:$0xf]  ;;  %6212 = vst.msk [vmem:[#allocation6 + $0x3c] sm:$0xf] %vm279_vm6, %v6204_v49  ;;  %v9328_v1 = vld [vmem:[%s12265_s3 + $0x408] sm:$0xff]  }
 0x672   : > { %v6711_v37 = vrot.slane %v11880_v14, 5  ;;  %v6419_v10 = vrot.slane %v6382_v9, 5  ;;  %v8256_v21 = vrot.slane %v6383_v20, 9  ;;  %v6423_v36 = vrot.slane %v6384_v55, 5  ;;  %v11927_v32 = vld [vmem:[#allocation5 + $0x24] sm:$0x1]  ;;  %8894 = vmatpush3.bf16.msra.mxu0 %v9327_v54  ;;  %8857 = vmatprep.subr.bf16.mxu1 %v9328_v1 }
 0x673   : > { %v9329_v34 = vld [vmem:[%s12265_s3 + $0x3c8] sm:$0xff]   ;;  %v11933_v29 = vrot.slane %v6868_v3, 4  ;;  %v6854_v51 = vor.u32 %v6853_v61, %v11907_v57  ;;  %v8253_v5 = vrot.slane %v6377_v56, 9  ;;  %v6411_v30 = vrot.slane %v6378_v23, 5  ;;  %v9330_v9 = vld [vmem:[%s12265_s3 + $0x490] sm:$0xff]   ;;  %6357 = vrot.lane.b32.xlu0 %v6330_v8, %s9436_s10  ;;  %6355 = vrot.lane.b32.xlu1 %v6316_v48, %s9436_s10 }
 0x674   : > { %v11936_v7 = vld [vmem:[#allocation5 + $0x8] sm:$0xf]  ;;  %v6420_v20 = vsel %vm9896_vm2, %v8255_v46, %v6419_v10  ;;  %v6424_v55 = vsel %vm9896_vm2, %v8256_v21, %v6423_v36  ;;  %v8254_v25 = vrot.slane %v6379_v43, 9  ;;  %v6415_v16 = vrot.slane %v6380_v24, 5  ;;  %v11945_v50 = vld [vmem:[#allocation5 + $0xc] sm:$0x1]  ;;  %8858 = vmatpush3.bf16.msra.mxu1 %v9329_v34  ;;  %8895 = vmatprep.subr.bf16.mxu0 %v9330_v9 }
 0x675   : > { %v6205_v57 = vld [vmem:[#allocation5 + $0x20] sm:$0xf]  ;;  %v6832_v56 = vsel %vm9787_vm13, %v11895_v38, %v11878_v6  ;;  %v11951_v23 = vrot.slane %v6857_v4, 5  ;;  %6451 = vst.msk [vmem:[#allocation6 + $0x2c] sm:$0xf] %vm279_vm6, %v6420_v20  ;;  %v6412_v49 = vsel %vm9896_vm2, %v8253_v5, %v6411_v30  ;;  %v6550_v43 = vshrl.u32 %v11910_v42, 16 }
 0x676   : > { %6452 = vst.msk [vmem:[#allocation6 + $0x40] sm:$0xf] %vm279_vm6, %v6424_v55  ;;  %v6385_v24 = vld [vmem:[#allocation5 + $0x20] sm:$0xe]  ;;  %v6386_v54 = vld [vmem:[#allocation5 + $0x24] sm:$0x1]  ;;  %v6416_v6 = vsel %vm9896_vm2, %v8254_v25, %v6415_v16  ;;  %v6874_v18 = vsel %vm9787_vm13, %v11933_v29, %v11905_v33  ;;  %8896 = vmatpush3.bf16.msra.mxu0 %v9331_v41  ;;  %v6712_v44 = vsel %vm9896_vm2, %v8268_v59, %v6711_v37 }
 0x677   : > { %6213 = vst.msk [vmem:[#allocation6 + $0x50] sm:$0xf] %vm279_vm6, %v6205_v57  ;;  %v6746_v3 = vld [vmem:[#allocation5 + $0x18] sm:$0xf]  ;;  %v6747_v61 = vld [vmem:[#allocation5 + $0x20] sm:$0xf]  ;;  %6897 = vrot.lane.b32.xlu0 %v6846_v0, %s9436_s10  ;;  %6895 = vrot.lane.b32.xlu1 %v6832_v56, %s9436_s10 }
 0x678   : > { %6449 = vst.msk [vmem:[#allocation6 + $0x4] sm:$0xf] %vm279_vm6, %v6412_v49  ;;  %v6553_v38 = vshll.u32 %v11910_v42, 16  ;;  %v6559_v4 = vshll.u32 %v11916_v17, 16  ;;  %v6564_v46 = vshrl.u32 %v11918_v13, 16  ;;  %v6552_v8 = vrot.slane %v6550_v43, 4 }
 0x679   : > { %v6507_v1 = vld [vmem:[#allocation5 + $0x10] sm:$0xf]  ;;  %6754 = vst.msk [vmem:[#allocation6 + $0x20] sm:$0xf] %vm279_vm6, %v6746_v3  ;;  %6755 = vst.msk [vmem:[#allocation6 + $0x34] sm:$0xf] %vm279_vm6, %v6747_v61 }
 0x67a   : > { %v6203_v10 = vld [vmem:[#allocation5 + $0x10] sm:$0xf]  ;;  %6450 = vst.msk [vmem:[#allocation6 + $0x18] sm:$0xf] %vm279_vm6, %v6416_v6  ;;  %v6567_v42 = vshll.u32 %v11918_v13, 16  ;;  %v6573_v17 = vshll.u32 %v11927_v32, 16 }
 0x67b   : > { %6211 = vst.msk [vmem:[#allocation6 + $0x28] sm:$0xf] %vm279_vm6, %v6203_v10  ;;  %v6202_v21 = vld [vmem:[#allocation5 + $0x8] sm:$0xf]  ;;  %v9332_v22 = vld [vmem:[%s12265_s3 + $0x400] sm:$0xff]   ;;  %v11993_v27 = vrot.slane %v6854_v51, 4  ;;  %6725 = vrot.lane.b32.xlu0 %v11889_v31, %s9436_s10  ;;  %6723 = vrot.lane.b32.xlu1 %v11899_v39, %s9436_s10 }
 0x67c   : > { %v6555_v48 = vrot.slane %v6553_v38, 5  ;;  %v6566_v36 = vrot.slane %v6564_v46, 4  ;;  %v6522_v34 = vshrl.u32 %v11936_v7, 16  ;;  %6210 = vst.msk [vmem:[#allocation6 + $0x14] sm:$0xf] %vm279_vm6, %v6202_v21  ;;  %v6561_v13 = vrot.slane %v6559_v4, 5  ;;  %8859 = vmatprep.subr.bf16.mxu1 %v9332_v22 }
 0x67d   : > { %v6745_v5 = vld [vmem:[#allocation5 + $0x10] sm:$0xf]  ;;  %v6569_v30 = vrot.slane %v6567_v42, 5  ;;  %v6525_v32 = vshll.u32 %v11936_v7, 16  ;;  %v6531_v9 = vshll.u32 %v11945_v50, 16  ;;  %v8257_v16 = vrot.slane %v6385_v24, 9 }
 0x67e   : > { %v11999_v20 = vld [vmem:[#allocation5 + $0x14] sm:$0x1]  ;;  %6753 = vst.msk [vmem:[#allocation6 + $0xc] sm:$0xf] %vm279_vm6, %v6745_v5  ;;  %v6387_v51 = vld [vmem:[#allocation5 + $0x28] sm:$0xe]  ;;  %v6556_v55 = vor.u32 %v6555_v48, %v6552_v8 }
 0x67f   : > { %v6524_v25 = vrot.slane %v6522_v34, 4  ;;  %v6427_v57 = vrot.slane %v6386_v54, 5  ;;  %v6388_v7 = vld [vmem:[#allocation5 + $0x2c] sm:$0x1]  ;;  %v9333_v50 = vld [vmem:[%s12265_s3 + $0x3c0] sm:$0xff]   ;;  %v6570_v49 = vor.u32 %v6569_v30, %v6566_v36  ;;  %v6575_v43 = vrot.slane %v6573_v17, 5  ;;  %6901 = vrot.lane.b32.xlu0 %v6874_v18, %s9436_s10 }
 0x680   : > { %v6527_v3 = vrot.slane %v6525_v32, 5  ;;  %v6536_v61 = vshrl.u32 %v6507_v1, 16  ;;  %v9334_v2 = vld [vmem:[%s12265_s3 + $0x488] sm:$0xff]   ;;  %v6389_v19 = vld [vmem:[#allocation5 + $0x30] sm:$0xe]  ;;  %v6557_v0 = vrot.slane %v6556_v55, 4  ;;  %8860 = vmatpush3.bf16.msra.mxu1 %v9333_v50 }
 0x681   : > { %v6533_v6 = vrot.slane %v6531_v9, 5  ;;  %v6428_v24 = vsel %vm9896_vm2, %v8257_v16, %v6427_v57  ;;  %v6539_v54 = vshll.u32 %v6507_v1, 16  ;;  %v6390_v38 = vld [vmem:[#allocation5 + $0x34] sm:$0x1]  ;;  %v9335_v56 = vld [vmem:[%s12265_s3 + $0x448] sm:$0xff]   ;;  %v6571_v4 = vrot.slane %v6570_v49, 4  ;;  %8897 = vmatprep.subr.bf16.mxu0 %v9334_v2 }
 0x682   : > { %v6528_v46 = vor.u32 %v6527_v3, %v6524_v25  ;;  %6453 = vst.msk [vmem:[#allocation6 + $0x54] sm:$0xf] %vm279_vm6, %v6428_v24  ;;  %v6538_v10 = vrot.slane %v6536_v61, 4  ;;  %v8258_v41 = vrot.slane %v6387_v51, 9  ;;  %v6391_v8 = vld [vmem:[#allocation5 + $0x38] sm:$0xe]  ;;  %v6562_v1 = vsel %vm9787_vm13, %v6557_v0, %v6561_v13  ;;  %8898 = vmatpush3.bf16.msra.mxu0 %v9335_v56 }
 0x683   : > { %v12024_v42 = vld [vmem:[%s12265_s3 + $0x4f8] sm:$0xff]   ;;  %v6541_v17 = vrot.slane %v6539_v54, 5  ;;  %v6545_v21 = vshll.u32 %v11999_v20, 16  ;;  %v6431_v22 = vrot.slane %v6388_v7, 5  ;;  %v9340_v36 = vld [vmem:[%s12265_s3 + $0x480] sm:$0xff]   ;;  %v6576_v31 = vsel %vm9787_vm13, %v6571_v4, %v6575_v43 }
 0x684   : > { %v6392_v48 = vld [vmem:[#allocation5 + $0x3c] sm:$0x1]  ;;  %6643 = vst.msk [vmem:[#allocation6 + $0x30] sm:$0xf] %vm279_vm6, %v6562_v1  ;;  %v6529_v34 = vrot.slane %v6528_v46, 4  ;;  %v8259_v5 = vrot.slane %v6389_v19, 9  ;;  %9009 = vmatprep.subr.bf16.mxu1 %v12024_v42  ;;  %8899 = vmatprep.subr.bf16.mxu0 %v9340_v36  ;;  %v6860_v43 = vsel %vm9787_vm13, %v11993_v27, %v11951_v23 }
 0x685   : > { %v6435_v13 = vrot.slane %v6390_v38, 5  ;;  %v6513_v30 = vld [vmem:[#allocation5 + $0x28] sm:$0xf]  ;;  %v9343_v32 = vld [vmem:[%s12265_s3 + $0x440] sm:$0xff]   ;;  %6644 = vst.msk [vmem:[#allocation6 + $0x44] sm:$0xf] %vm279_vm6, %v6576_v31  ;;  %v6542_v9 = vor.u32 %v6541_v17, %v6538_v10  ;;  %v6432_v39 = vsel %vm9896_vm2, %v8258_v41, %v6431_v22  ;;  %6899 = vrot.lane.b32.xlu1 %v6860_v43, %s9436_s10 }
 0x686   : > { %v8260_v20 = vrot.slane %v6391_v8, 9  ;;  %v6439_v51 = vrot.slane %v6392_v48, 5  ;;  %v6514_v55 = vld [vmem:[#allocation5 + $0x2c] sm:$0x1]  ;;  %v6208_v25 = vld [vmem:[#allocation5 + $0x38] sm:$0xf]  ;;  %v6534_v16 = vsel %vm9787_vm13, %v6529_v34, %v6533_v6  ;;  %8900 = vmatpush3.bf16.msra.mxu0 %v9343_v32 }
 0x687   : > { %6454 = vst.msk [vmem:[#allocation6 + $0x68] sm:$0xf] %vm279_vm6, %v6432_v39  ;;  %v6436_v57 = vsel %vm9896_vm2, %v8259_v5, %v6435_v13  ;;  %v6578_v7 = vshrl.u32 %v6513_v30, 16  ;;  %v6581_v50 = vshll.u32 %v6513_v30, 16  ;;  %6216 = vst.msk [vmem:[#allocation6 + $0x8c] sm:$0xf] %vm279_vm6, %v6208_v25 }
 0x688   : > { %v6207_v49 = vld [vmem:[#allocation5 + $0x30] sm:$0xf]  ;;  %6641 = vst.msk [vmem:[#allocation6 + $0x8] sm:$0xf] %vm279_vm6, %v6534_v16  ;;  %v6543_v3 = vrot.slane %v6542_v9, 4  ;;  %v6547_v61 = vrot.slane %v6545_v21, 5  ;;  %v6440_v2 = vsel %vm9896_vm2, %v8260_v20, %v6439_v51 }
 0x689   : > { %6455 = vst.msk [vmem:[#allocation6 + $0x7c] sm:$0xf] %vm279_vm6, %v6436_v57  ;;  %6215 = vst.msk [vmem:[#allocation6 + $0x78] sm:$0xf] %vm279_vm6, %v6207_v49  ;;  %v6206_v19 = vld [vmem:[#allocation5 + $0x28] sm:$0xf]  ;;  %6727 = vrot.lane.b32.xlu1 %v6712_v44, %s9436_s10 }
 0x68a   : > { %v6749_v33 = vld [vmem:[#allocation5 + $0x30] sm:$0xf]  ;;  %6456 = vst.msk [vmem:[#allocation6 + $0x90] sm:$0xf] %vm279_vm6, %v6440_v2  ;;  %v6580_v29 = vrot.slane %v6578_v7, 4  ;;  %v6583_v23 = vrot.slane %v6581_v50, 5  ;;  %v6548_v24 = vsel %vm9787_vm13, %v6543_v3, %v6547_v61 }
 0x68b   : > { %v6587_v18 = vshll.u32 %v6514_v55, 16  ;;  %6214 = vst.msk [vmem:[#allocation6 + $0x64] sm:$0xf] %vm279_vm6, %v6206_v19  ;;  %6757 = vst.msk [vmem:[#allocation6 + $0x5c] sm:$0xf] %vm279_vm6, %v6749_v33  ;;  %v6883_v0 = vrot.slane %v6882_v63, 4 }
 0x68c   : > { %v6748_v27 = vld [vmem:[#allocation5 + $0x28] sm:$0xf]  ;;  %v6887_v6 = vrot.slane %v6885_v47, 5  ;;  %v6517_v54 = vld [vmem:[#allocation5 + $0x38] sm:$0xf]  ;;  %v6584_v56 = vor.u32 %v6583_v23, %v6580_v29 }
 0x68d   : > { %6756 = vst.msk [vmem:[#allocation6 + $0x48] sm:$0xf] %vm279_vm6, %v6748_v27  ;;  %v6518_v38 = vld [vmem:[#allocation5 + $0x3c] sm:$0x1]  ;;  %6642 = vst.msk [vmem:[#allocation6 + $0x1c] sm:$0xf] %vm279_vm6, %v6548_v24 }
 0x68e   : > { %v6606_v4 = vshrl.u32 %v6517_v54, 16  ;;  %v6609_v46 = vshll.u32 %v6517_v54, 16  ;;  %v6615_v10 = vshll.u32 %v6518_v38, 16  ;;  %v6515_v41 = vld [vmem:[#allocation5 + $0x30] sm:$0xf]  ;;  %v6585_v8 = vrot.slane %v6584_v56, 4 }
 0x68f   : > { %v6516_v47 = vld [vmem:[#allocation5 + $0x34] sm:$0x1]  ;;  %v6592_v60 = vshrl.u32 %v6515_v41, 16  ;;  %v6595_v53 = vshll.u32 %v6515_v41, 16  ;;  %v6751_v63 = vld [vmem:[#allocation5 + $0x40] sm:$0xf]  ;;  %v6888_v14 = vsel %vm9787_vm13, %v6883_v0, %v6887_v6 }
 0x690   : > { %v6589_v1 = vrot.slane %v6587_v18, 5  ;;  %v6608_v17 = vrot.slane %v6606_v4, 4  ;;  %v6611_v21 = vrot.slane %v6609_v46, 5  ;;  %6759 = vst.msk [vmem:[#allocation6 + $0x84] sm:$0xf] %vm279_vm6, %v6751_v63  ;;  %v6601_v36 = vshll.u32 %v6516_v47, 16  ;;  %6903 = vrot.lane.b32.xlu1 %v6888_v14, %s9436_s10 }
 0x691   : > { %v6750_v22 = vld [vmem:[#allocation5 + $0x38] sm:$0xf]  ;;  %v6594_v52 = vrot.slane %v6592_v60, 4  ;;  %v6597_v48 = vrot.slane %v6595_v53, 5  ;;  %v6519_v59 = vld [vmem:[#allocation5 + $0x40] sm:$0xf] }
 0x692   : > { %6758 = vst.msk [vmem:[#allocation6 + $0x70] sm:$0xf] %vm279_vm6, %v6750_v22  ;;  %v6590_v37 = vsel %vm9787_vm13, %v6585_v8, %v6589_v1  ;;  %v6612_v31 = vor.u32 %v6611_v21, %v6608_v17  ;;  %v6520_v34 = vld [vmem:[#allocation5 + $0x44] sm:$0x1]  ;;  %v6620_v5 = vshrl.u32 %v6519_v59, 16  ;;  %v6623_v13 = vshll.u32 %v6519_v59, 16 }
 0x693   : > { %v6752_v30 = vld [vmem:[#allocation5 + $0x48] sm:$0xf]  ;;  %6645 = vst.msk [vmem:[#allocation6 + $0x58] sm:$0xf] %vm279_vm6, %v6590_v37  ;;  %v6617_v32 = vrot.slane %v6615_v10, 5  ;;  %v6598_v9 = vor.u32 %v6597_v48, %v6594_v52  ;;  %v6629_v39 = vshll.u32 %v6520_v34, 16 }
 0x694   : > { %6760 = vst.msk [vmem:[#allocation6 + $0x98] sm:$0xf] %vm279_vm6, %v6752_v30  ;;  %v6921_v20 = vld [vmem:[#allocation5 + $0x10] sm:$0xe]  ;;  %v6922_v51 = vld [vmem:[#allocation5 + $0x14] sm:$0x1] }
 0x695   : > { %v6613_v55 = vrot.slane %v6612_v31, 4  ;;  %v6622_v25 = vrot.slane %v6620_v5, 4  ;;  %v6625_v16 = vrot.slane %v6623_v13, 5  ;;  %v6923_v57 = vld [vmem:[#allocation5 + $0x18] sm:$0xe]  ;;  %v8269_v7 = vrot.slane %v6921_v20, 9 }
 0x696   : > { %v6599_v50 = vrot.slane %v6598_v9, 4  ;;  %v6603_v49 = vrot.slane %v6601_v36, 5  ;;  %v6924_v43 = vld [vmem:[#allocation5 + $0x1c] sm:$0x1]  ;;  %v6955_v3 = vrot.slane %v6922_v51, 5  ;;  %v8270_v61 = vrot.slane %v6923_v57, 9 }
 0x697   : > { %v6618_v2 = vsel %vm9787_vm13, %v6613_v55, %v6617_v32  ;;  %v6626_v19 = vor.u32 %v6625_v16, %v6622_v25  ;;  %v6631_v33 = vrot.slane %v6629_v39, 5  ;;  %v6959_v29 = vrot.slane %v6924_v43, 5  ;;  %v6925_v23 = vld [vmem:[#allocation5 + $0x20] sm:$0xe]  ;;  %v6926_v18 = vld [vmem:[#allocation5 + $0x24] sm:$0x1] }
 0x698   : > { %6647 = vst.msk [vmem:[#allocation6 + $0x80] sm:$0xf] %vm279_vm6, %v6618_v2  ;;  %v6604_v27 = vsel %vm9787_vm13, %v6599_v50, %v6603_v49  ;;  %v6956_v0 = vsel %vm9896_vm2, %v8269_v7, %v6955_v3  ;;  %v6927_v6 = vld [vmem:[#allocation5 + $0x28] sm:$0xe]  ;;  %v6928_v24 = vld [vmem:[#allocation5 + $0x2c] sm:$0x1] }
 0x699   : > { %v8271_v54 = vrot.slane %v6925_v23, 9  ;;  %v6963_v38 = vrot.slane %v6926_v18, 5  ;;  %6646 = vst.msk [vmem:[#allocation6 + $0x6c] sm:$0xf] %vm279_vm6, %v6604_v27  ;;  %v6627_v56 = vrot.slane %v6626_v19, 4  ;;  %v6960_v4 = vsel %vm9896_vm2, %v8270_v61, %v6959_v29  ;;  %v9347_v2 = vld [vmem:[%s12265_s3 + $0x4f0] sm:$0xff]  }
 0x69a   : > { %6993 = vst.msk [vmem:[#allocation6 + $0x10] sm:$0xf] %vm279_vm6, %v6956_v0  ;;  %v8272_v46 = vrot.slane %v6927_v6, 9  ;;  %v6967_v10 = vrot.slane %v6928_v24, 5  ;;  %v6929_v41 = vld [vmem:[#allocation5 + $0x30] sm:$0xe] }
 0x69b   : > { %6994 = vst.msk [vmem:[#allocation6 + $0x24] sm:$0xf] %vm279_vm6, %v6960_v4  ;;  %v6964_v44 = vsel %vm9896_vm2, %v8271_v54, %v6963_v38  ;;  %v6930_v47 = vld [vmem:[#allocation5 + $0x34] sm:$0x1]  ;;  %v6931_v60 = vld [vmem:[#allocation5 + $0x38] sm:$0xe]  ;;  %v6632_v63 = vsel %vm9787_vm13, %v6627_v56, %v6631_v33 }
 0x69c   : > { %v6932_v53 = vld [vmem:[#allocation5 + $0x3c] sm:$0x1]  ;;  %v6968_v8 = vsel %vm9896_vm2, %v8272_v46, %v6967_v10  ;;  %6995 = vst.msk [vmem:[#allocation6 + $0x38] sm:$0xf] %vm279_vm6, %v6964_v44  ;;  %v8273_v1 = vrot.slane %v6929_v41, 9  ;;  %v6971_v17 = vrot.slane %v6930_v47, 5 }
 0x69d   : > { %v6933_v21 = vld [vmem:[#allocation5 + $0x40] sm:$0xe]  ;;  %v6934_v22 = vld [vmem:[#allocation5 + $0x44] sm:$0x1]  ;;  %6648 = vst.msk [vmem:[#allocation6 + $0x94] sm:$0xf] %vm279_vm6, %v6632_v63 }
 0x69e   : > { %6996 = vst.msk [vmem:[#allocation6 + $0x4c] sm:$0xf] %vm279_vm6, %v6968_v8  ;;  %v8274_v14 = vrot.slane %v6931_v60, 9  ;;  %v6975_v52 = vrot.slane %v6932_v53, 5  ;;  %v8275_v48 = vrot.slane %v6933_v21, 9  ;;  %v6979_v36 = vrot.slane %v6934_v22, 5 }
 0x69f   : > { %v6972_v45 = vsel %vm9896_vm2, %v8273_v1, %v6971_v17  ;;  %v9348_v27 = vld [vmem:[%s12265_s3 + $0x4e8] sm:$0xff]   ;;  %v9349_v38 = vld [vmem:[%s12265_s3 + $0x4e0] sm:$0xff]   ;;  %v9352_v46 = vld [vmem:[%s12265_s3 + $0x4d8] sm:$0xff]   ;;  %s215_s10 = sand.u32 1, %s9424_s19  }
 0x6a0   : > { %v6976_v59 = vsel %vm9896_vm2, %v8274_v14, %v6975_v52  ;;  %6997 = vst.msk [vmem:[#allocation6 + $0x60] sm:$0xf] %vm279_vm6, %v6972_v45  ;;  %v6980_v37 = vsel %vm9896_vm2, %v8275_v48, %v6979_v36  ;;  %v9357_v63 = vld [vmem:[%s12265_s3 + $0x4d0] sm:$0xff]   ;;  %v9359_v14 = vld [vmem:[%s12265_s3 + $0x4c8] sm:$0xff]   ;;  %s7754_s12 = sshll.u32 %s215_s10, 6  ;;  %s12222_s22 = scalar_lea.sflag [#allocation8], %s215_s10 }
 0x6a1   : > { %6998 = vst.msk [vmem:[#allocation6 + $0x74] sm:$0xf] %vm279_vm6, %v6976_v59  ;;  %6999 = vst.msk [vmem:[#allocation6 + $0x88] sm:$0xf] %vm279_vm6, %v6980_v37  ;;  %v9364_v59 = vld [vmem:[%s12265_s3 + $0x4c0] sm:$0xff]   ;;  %s12187_s13 = scalar_lea.vmem [#allocation7], %s7754_s12 }
 0x6a2   : > { %v9360_v37 = vld [vmem:[#allocation6 + $0x10] ss:$20 sps:$4 sm:$0xff]   ;;  %s7688_s15 = sshll.u32 %s12187_s13, 4  ;;  %s12214_s15 = int_to_ptr.vmem [resolvable:$true] %s7688_s15 }
 0x6a3   : > { %s9372_s25 = scalar_lea.vmem %s12214_s15, 1024  ;;  %p9379_p0 = scmp.lt.s32.totalorder %s12214_s15, %s9377_s30 }
 0x6a4   : > { %p9373_p11 = scmp.ne.s32.totalorder %s12214_s15, %s9372_s25  ;;  %p9380_p1 = scmp.lt.s32.totalorder %s9378_s6, %s9372_s25 }
 0x6a6   : > { %p9374_p12 = pnand %p9373_p11, %p9508_p5  ;;  %p9381_p2 = por %p9380_p1, %p9379_p0 }
 0x6a8   : > { %p9375_p13 = pneg %p9374_p12 }
 0x6aa   : > { %p9382_p3 = pnand %p9381_p2, %p9375_p13 }
 0x6b5   : > { %v6478_v31 = vpop.permute.xlu0 %6477 }
 0x6b6   : > { %6499 = vst.msk [vmem:[#allocation6 + $0x2c] sm:$0xf] %vm350_vm14, %v6478_v31 }
 0x6ba   : > { %v6474_v34 = vpop.permute.xlu0 %6473 }
 0x6bb   : > { %6497 = vst.msk [vmem:[#allocation6 + $0x4] sm:$0xf] %vm350_vm14, %v6474_v34 }
 0x6bc   : > { %v6480_v5 = vpop.permute.xlu1 %6479 }
 0x6bd   : > { %6500 = vst.msk [vmem:[#allocation6 + $0x40] sm:$0xf] %vm350_vm14, %v6480_v5 }
 0x6be   : > { %v6718_v13 = vpop.permute.xlu0 %6717 }
 0x6bf   : > { %6739 = vst.msk [vmem:[#allocation6 + $0x30] sm:$0xf] %vm350_vm14, %v6718_v13  ;;  %v9365_v13 = vld [vmem:[#allocation6 + $0x38] ss:$20 sps:$4 sm:$0xff]  }
 0x6c1   : > { %v6476_v30 = vpop.permute.xlu1 %6475 }
 0x6c2   : > { %6498 = vst.msk [vmem:[#allocation6 + $0x18] sm:$0xf] %vm350_vm14, %v6476_v30  ;;  %v6714_v58 = vpop.permute.xlu0 %6713  ;;  %v9366_v30 = vld [vmem:[#allocation6 + $0x60] ss:$20 sps:$4 sm:$0xff]  }
 0x6c3   : > { %6737 = vst.msk [vmem:[#allocation6 + $0x8] sm:$0xf] %vm350_vm14, %v6714_v58 }
 0x6c4   : > { %v9341_v19 = vld [vmem:[#allocation6 + $0x2c] ss:$20 sps:$4 sm:$0xff]  }
 0x6c5   : > { %v6720_v32 = vpop.permute.xlu1 %6719 }
 0x6c6   : > { %6740 = vst.msk [vmem:[#allocation6 + $0x44] sm:$0xf] %vm350_vm14, %v6720_v32 }
 0x6c9   : > { %v6482_v9 = vpop.permute.xlu0 %6481  ;;  %v6352_v39 = vpop.permute.xlu1 %6351  ;;  %v9338_v61 = vld [vmem:[#allocation6 + $0x4] ss:$20 sps:$4 sm:$0xff]  }
 0x6ca   : > { %6501 = vst.msk [vmem:[#allocation6 + $0x54] sm:$0xf] %vm350_vm14, %v6482_v9  ;;  %6372 = vst.msk [vmem:[#allocation6 + $0x3c] sm:$0xf] %vm350_vm14, %v6352_v39  ;;  %7487 = vmatprep.mubr.bf16.mxu1 %v9338_v61  ;;  %v9370_v9 = vld [vmem:[#allocation6 + $0x88] ss:$20 sps:$4 sm:$0xff]  }
 0x6cd   : > { %v6354_v20 = vpop.permute.xlu0 %6353  ;;  %v6716_v51 = vpop.permute.xlu1 %6715  ;;  %v9358_v22 = vld [vmem:[#allocation6 + $0x30] ss:$20 sps:$4 sm:$0xff]  }
 0x6ce   : > { %6373 = vst.msk [vmem:[#allocation6 + $0x50] sm:$0xf] %vm350_vm14, %v6354_v20  ;;  %6738 = vst.msk [vmem:[#allocation6 + $0x1c] sm:$0xf] %vm350_vm14, %v6716_v51 }
 0x6d1   : > { %v6894_v55 = vpop.permute.xlu0 %6893  ;;  %v6892_v25 = vpop.permute.xlu1 %6891  ;;  %v7010_v24 = vld [vmem:[#allocation6 + $0x3c] sm:$0xff] }
 0x6d2   : > { %6915 = vst.msk [vmem:[#allocation6 + $0x34] sm:$0xf] %vm350_vm14, %v6894_v55  ;;  %6914 = vst.msk [vmem:[#allocation6 + $0x20] sm:$0xf] %vm350_vm14, %v6892_v25 }
 0x6d5   : > { %v6350_v16 = vpop.permute.xlu0 %6349  ;;  %v6348_v57 = vpop.permute.xlu1 %6347  ;;  %v9344_v29 = vld [vmem:[#allocation6 + $0x8] ss:$20 sps:$4 sm:$0xff]   ;;  %v7013_v44 = vld [vmem:[#allocation6 + $0x50] sm:$0xff] }
 0x6d6   : > { %6371 = vst.msk [vmem:[#allocation6 + $0x28] sm:$0xf] %vm350_vm14, %v6350_v16  ;;  %6370 = vst.msk [vmem:[#allocation6 + $0x14] sm:$0xf] %vm350_vm14, %v6348_v57 }
 0x6d9   : > { %v6890_v7 = vpop.permute.xlu0 %6889  ;;  %v6484_v50 = vpop.permute.xlu1 %6483 }
 0x6da   : > { %6913 = vst.msk [vmem:[#allocation6 + $0xc] sm:$0xf] %vm350_vm14, %v6890_v7  ;;  %6502 = vst.msk [vmem:[#allocation6 + $0x68] sm:$0xf] %vm350_vm14, %v6484_v50 }
 0x6dd   : > { %v6486_v49 = vpop.permute.xlu0 %6485  ;;  %v6488_v43 = vpop.permute.xlu1 %6487  ;;  %v9336_v3 = vld [vmem:[#allocation6] ss:$20 sps:$4 sm:$0xff]   ;;  %v7007_v0 = vld [vmem:[#allocation6 + $0x28] sm:$0xff] }
 0x6de   : > { %6503 = vst.msk [vmem:[#allocation6 + $0x7c] sm:$0xf] %vm350_vm14, %v6486_v49  ;;  %6504 = vst.msk [vmem:[#allocation6 + $0x90] sm:$0xf] %vm350_vm14, %v6488_v43  ;;  %7488 = vmatmul.mubr.bf16.vlgmr.msra.gmra.mxu1 %v9336_v3 }
 0x6df   : > { %9010 = vmatpush3.bf16.msra.mxu1 %v12024_v42  ;;  %7495 = vmatprep.mubr.bf16.mxu1 %v9341_v19  ;;  %v8363_v42 = vcombine.low %v7007_v0, %v7010_v24 }
 0x6e0   : > { %9011 = vmatprep.subr.bf16.mxu1 %v9347_v2 }
 0x6e1   : > { %v6722_v33 = vpop.permute.xlu0 %6721  ;;  %v9346_v23 = vld [vmem:[#allocation6 + $0xc] ss:$20 sps:$4 sm:$0xff]   ;;  %v6360_v18 = vpop.permute.xlu1 %6359  ;;  %v9350_v60 = vld [vmem:[#allocation6 + $0x54] ss:$20 sps:$4 sm:$0xff]  }
 0x6e2   : > { %6741 = vst.msk [vmem:[#allocation6 + $0x58] sm:$0xf] %vm350_vm14, %v6722_v33  ;;  %6376 = vst.msk [vmem:[#allocation6 + $0x8c] sm:$0xf] %vm350_vm14, %v6360_v18  ;;  %7552 = vmatprep.mubr.bf16.mxu0 %v9346_v23 }
 0x6e3   : > { %7553 = vmatmul.mubr.bf16.vlgmr.msra.gmra.mxu0 %v9344_v29  ;;  %9012 = vmatpush3.bf16.msra.mxu1 %v9347_v2 }
 0x6e4   : > { %9013 = vmatprep.subr.bf16.mxu1 %v9348_v27 }
 0x6e5   : > { %v6358_v6 = vpop.permute.xlu0 %6357  ;;  %v6356_v54 = vpop.permute.xlu1 %6355  ;;  %v9353_v8 = vld [vmem:[#allocation6 + $0x7c] ss:$20 sps:$4 sm:$0xff]  }
 0x6e6   : > { %6375 = vst.msk [vmem:[#allocation6 + $0x78] sm:$0xf] %vm350_vm14, %v6358_v6  ;;  %6374 = vst.msk [vmem:[#allocation6 + $0x64] sm:$0xf] %vm350_vm14, %v6356_v54  ;;  %7496 = vmatmul.mubr.bf16.gmra.mxu1 %v8363_v42 }
 0x6e7   : > { %9014 = vmatpush3.bf16.msra.mxu1 %v9348_v27  ;;  %7503 = vmatprep.mubr.bf16.mxu1 %v9350_v60 }
 0x6e8   : > { %9015 = vmatprep.subr.bf16.mxu1 %v9349_v38 }
 0x6e9   : > { %v6898_v56 = vpop.permute.xlu0 %6897  ;;  %v6896_v4 = vpop.permute.xlu1 %6895  ;;  %v7022_v48 = vld [vmem:[#allocation6 + $0x8c] sm:$0xff] }
 0x6ea   : > { %6917 = vst.msk [vmem:[#allocation6 + $0x5c] sm:$0xf] %vm350_vm14, %v6898_v56  ;;  %6916 = vst.msk [vmem:[#allocation6 + $0x48] sm:$0xf] %vm350_vm14, %v6896_v4 }
 0x6eb   : > { %9016 = vmatpush3.bf16.msra.mxu1 %v9349_v38  ;;  %v8357_v38 = vld [vmem:[%s12266_s4 + $0x3] ss:$0 sm:$0xff] }
 0x6ec   : > { %9017 = vmatprep.subr.bf16.mxu1 %v9352_v46 }
 0x6ed   : > { %v6726_v10 = vpop.permute.xlu0 %6725  ;;  %v6724_v41 = vpop.permute.xlu1 %6723  ;;  %v7016_v47 = vld [vmem:[#allocation6 + $0x64] sm:$0xff]  ;;  %v7019_v52 = vld [vmem:[#allocation6 + $0x78] sm:$0xff] }
 0x6ee   : > { %6743 = vst.msk [vmem:[#allocation6 + $0x80] sm:$0xf] %vm350_vm14, %v6726_v10  ;;  %6742 = vst.msk [vmem:[#allocation6 + $0x6c] sm:$0xf] %vm350_vm14, %v6724_v41  ;;  %v8368_v53 = vcombine.low %v7013_v44, %v7016_v47  ;;  %v8373_v45 = vcombine.low %v7019_v52, %v7022_v48 }
 0x6ef   : > { %9018 = vmatpush3.bf16.msra.mxu1 %v9352_v46 }
 0x6f0   : > { %7504 = vmatmul.mubr.bf16.gmra.mxu1 %v8368_v53  ;;  %9019 = vmatprep.subr.bf16.mxu1 %v9357_v63 }
 0x6f1   : > { %v6902_v1 = vpop.permute.xlu0 %6901  ;;  %7511 = vmatprep.mubr.bf16.mxu1 %v9353_v8  ;;  %v9355_v21 = vld [vmem:[#allocation6 + $0x34] ss:$20 sps:$4 sm:$0xff]  }
 0x6f2   : > { %6919 = vst.msk [vmem:[#allocation6 + $0x84] sm:$0xf] %vm350_vm14, %v6902_v1  ;;  %7560 = vmatprep.mubr.bf16.mxu0 %v9355_v21 }
 0x6f3   : > { %7561 = vmatmul.mubr.bf16.gmra.mxu0 %v9358_v22  ;;  %9020 = vmatpush3.bf16.msra.mxu1 %v9357_v63 }
 0x6f4   : > { %9021 = vmatprep.subr.bf16.mxu1 %v9359_v14 }
 0x6f5   : > { %v9361_v34 = vld [vmem:[#allocation6 + $0x58] ss:$20 sps:$4 sm:$0xff]  }
 0x6f7   : > { %v6900_v17 = vpop.permute.xlu1 %6899  ;;  %9022 = vmatpush3.bf16.msra.mxu1 %v9359_v14 }
 0x6f8   : > { %6918 = vst.msk [vmem:[#allocation6 + $0x70] sm:$0xf] %vm350_vm14, %v6900_v17  ;;  %7512 = vmatmul.mubr.bf16.gmra.mxu1 %v8373_v45  ;;  %9023 = vmatprep.subr.bf16.mxu1 %v9364_v59 }
 0x6f9   : > { %9025 = vmatprep.mubr.bf16.mxu1 %v9360_v37 }
 0x6fb   : > { %v6728_v36 = vpop.permute.xlu1 %6727  ;;  %9024 = vmatpush3.bf16.msra.mxu1 %v9364_v59 }
 0x6fc   : > { %6744 = vst.msk [vmem:[#allocation6 + $0x94] sm:$0xf] %vm350_vm14, %v6728_v36 }
 0x6ff   : > { %v9363_v5 = vld [vmem:[#allocation6 + $0x5c] ss:$20 sps:$4 sm:$0xff]  }
 0x700   : > { %7568 = vmatprep.mubr.bf16.mxu0 %v9363_v5  ;;  %9026 = vmatmul.mubr.bf16.vlgmr.msra.gmra.mxu1 %v9365_v13 }
 0x701   : > { %7569 = vmatmul.mubr.bf16.gmra.mxu0 %v9361_v34  ;;  %9029 = vmatprep.mubr.bf16.mxu1 %v9366_v30 }
 0x702   : > { %v6904_v31 = vpop.permute.xlu1 %6903 }
 0x703   : > { %6920 = vst.msk [vmem:[#allocation6 + $0x98] sm:$0xf] %vm350_vm14, %v6904_v31  ;;  %v9367_v58 = vld [vmem:[#allocation6 + $0x80] ss:$20 sps:$4 sm:$0xff]  }
 0x708   : > { %9030 = vmatmul.mubr.bf16.gmra.mxu1 %v9370_v9 }
 0x70a   : > { %v9369_v32 = vld [vmem:[#allocation6 + $0x84] ss:$20 sps:$4 sm:$0xff]  }
 0x70b   : > { %7576 = vmatprep.mubr.bf16.mxu0 %v9369_v32 }
 0x70c   : > { %7577 = vmatmul.mubr.bf16.gmra.mxu0 %v9367_v58 }
 0x79e   : > { %v8861_v39 = vpop.f32.mrf.mxu1 }
 0x7a0   : > { %v8862_v20 = vpop.f32.mrf.mxu1 }
 0x7a1   : > { %v8863_v54 = vadd.f32 %v8862_v20, %v8861_v39 }
 0x7a2   : > { %v8864_v51 = vpop.f32.mrf.mxu1 }
 0x7a3   : > { %v8901_v55 = vpop.f32.mrf.mxu0  ;;  %v7490_v60 = vadd.f32 %v8863_v54, %v8357_v38 }
 0x7a4   : > { %v8865_v25 = vpop.f32.mrf.mxu1 }
 0x7a5   : > { %v8902_v57 = vpop.f32.mrf.mxu0  ;;  %v8866_v53 = vadd.f32 %v8865_v25, %v8864_v51 }
 0x7a6   : > { %v8867_v16 = vpop.f32.mrf.mxu1  ;;  %v8903_v46 = vadd.f32 %v8902_v57, %v8901_v55 }
 0x7a7   : > { %v8904_v49 = vpop.f32.mrf.mxu0  ;;  %v7493_v37 = vadd.f32 %v8866_v53, %v8357_v38 }
 0x7a8   : > { %v8868_v7 = vpop.f32.mrf.mxu1  ;;  %v7555_v52 = vadd.f32 %v8903_v46, %v7490_v60 }
 0x7a9   : > { %v8905_v61 = vpop.f32.mrf.mxu0  ;;  %v8869_v0 = vadd.f32 %v8868_v7, %v8867_v16 }
 0x7aa   : > { %v8870_v50 = vpop.f32.mrf.mxu1  ;;  %v8906_v21 = vadd.f32 %v8905_v61, %v8904_v49 }
 0x7ab   : > { %v7498_v10 = vadd.f32 %v8869_v0, %v8357_v38 }
 0x7ac   : > { %v8871_v43 = vpop.f32.mrf.mxu1  ;;  %v7558_v20 = vadd.f32 %v8906_v21, %v7493_v37 }
 0x7ad   : > { %v8872_v41 = vadd.f32 %v8871_v43, %v8870_v50 }
 0x7af   : > { %v7501_v22 = vadd.f32 %v8872_v41, %v8357_v38 }
 0x7b0   : > { %v8873_v3 = vpop.f32.mrf.mxu1 }
 0x7b2   : > { %v8874_v2 = vpop.f32.mrf.mxu1 }
 0x7b3   : > { %v8907_v33 = vpop.f32.mrf.mxu0  ;;  %v8875_v48 = vadd.f32 %v8874_v2, %v8873_v3 }
 0x7b4   : > { %v8876_v19 = vpop.f32.mrf.mxu1 }
 0x7b5   : > { %v8908_v23 = vpop.f32.mrf.mxu0  ;;  %v7506_v51 = vadd.f32 %v8875_v48, %v8357_v38 }
 0x7b6   : > { %v8877_v29 = vpop.f32.mrf.mxu1  ;;  %v8909_v42 = vadd.f32 %v8908_v23, %v8907_v33 }
 0x7b7   : > { %v8910_v27 = vpop.f32.mrf.mxu0  ;;  %v8878_v55 = vadd.f32 %v8877_v29, %v8876_v19 }
 0x7b8   : > { %v8879_v18 = vpop.f32.mrf.mxu1  ;;  %v7563_v8 = vadd.f32 %v8909_v42, %v7498_v10 }
 0x7b9   : > { %v8911_v24 = vpop.f32.mrf.mxu0  ;;  %v7509_v23 = vadd.f32 %v8878_v55, %v8357_v38 }
 0x7ba   : > { %v8880_v6 = vpop.f32.mrf.mxu1  ;;  %v8912_v63 = vadd.f32 %v8911_v24, %v8910_v27 }
 0x7bb   : > { %v8881_v36 = vadd.f32 %v8880_v6, %v8879_v18 }
 0x7bc   : > { %v8882_v56 = vpop.f32.mrf.mxu1  ;;  %v7566_v5 = vadd.f32 %v8912_v63, %v7501_v22 }
 0x7bd   : > { %v7514_v25 = vadd.f32 %v8881_v36, %v8357_v38 }
 0x7be   : > { %v8883_v44 = vpop.f32.mrf.mxu1 }
 0x7bf   : > { %v8884_v16 = vadd.f32 %v8883_v44, %v8882_v56 }
 0x7c0   : > { %v9027_v17 = vpop.f32.mrf.mxu1 }
 0x7c1   : > { %v8913_v4 = vpop.f32.mrf.mxu0  ;;  %v7628_v14 = vadd.f32 %v9027_v17, %v7563_v8  ;;  %v7517_v18 = vadd.f32 %v8884_v16, %v8357_v38 }
 0x7c2   : > { %v7619_v59 = vpop.f32.mrf.mxu1 }
 0x7c3   : > { %v8914_v47 = vpop.f32.mrf.mxu0  ;;  %v7652_v31 = vadd.f32 %v7628_v14, %v11045_v15  ;;  %v7620_v34 = vadd.f32 %v7619_v59, %v7555_v52 }
 0x7c4   : > { %v8915_v13 = vadd.f32 %v8914_v47, %v8913_v4  ;;  %v9028_v58 = vpop.f32.mrf.mxu1 }
 0x7c5   : > { %v8916_v1 = vpop.f32.mrf.mxu0  ;;  %v7660_v32 = vmax.f32 %v7652_v31, 0.0  ;;  %v7650_v9 = vadd.f32 %v7620_v34, %v11028_v35  ;;  %v7631_v39 = vadd.f32 %v9028_v58, %v7566_v5 }
 0x7c6   : > { %v7622_v7 = vpop.f32.mrf.mxu1  ;;  %v7571_v61 = vadd.f32 %v8915_v13, %v7506_v51 }
 0x7c7   : > { %v8917_v45 = vpop.f32.mrf.mxu0  ;;  %7668 = vst.msk [vmem:[%s12187_s13 + $0x10] sm:$0xff] %vm257_vm4, %v7660_v32  ;;  %v7658_v15 = vmax.f32 %v7650_v9, 0.0  ;;  %v7653_v50 = vadd.f32 %v7631_v39, %v11063_v11  ;;  %v7623_v35 = vadd.f32 %v7622_v7, %v7558_v20 }
 0x7c8   : > { %v9031_v3 = vpop.f32.mrf.mxu1  ;;  %v8918_v2 = vadd.f32 %v8917_v45, %v8916_v1 }
 0x7c9   : > { %7666 = vst.msk [vmem:[%s12187_s13] sm:$0xff] %vm257_vm4, %v7658_v15  ;;  %v7661_v19 = vmax.f32 %v7653_v50, 0.0  ;;  %v7651_v33 = vadd.f32 %v7623_v35, %v11038_v62 }
 0x7ca   : > { %v7635_v0 = vpop.f32.mrf.mxu1  ;;  %v7574_v4 = vadd.f32 %v8918_v2, %v7509_v23 }
 0x7cb   : > { %7669 = vst.msk [vmem:[%s12187_s13 + $0x18] sm:$0xff] %vm257_vm4, %v7661_v19  ;;  %v7659_v11 = vmax.f32 %v7651_v33, 0.0  ;;  %v7636_v54 = vadd.f32 %v7635_v0, %v7571_v61 }
 0x7cc   : > { %v8919_v30 = vpop.f32.mrf.mxu0  ;;  %v9032_v42 = vpop.f32.mrf.mxu1 }
 0x7cd   : > { %7667 = vst.msk [vmem:[%s12187_s13 + $0x8] sm:$0xff] %vm257_vm4, %v7659_v11  ;;  %v7654_v56 = vadd.f32 %v7636_v54, %v11087_v12 }
 0x7ce   : > { %v8920_v57 = vpop.f32.mrf.mxu0  ;;  %v7638_v46 = vpop.f32.mrf.mxu1 }
 0x7cf   : > { %v8921_v49 = vadd.f32 %v8920_v57, %v8919_v30  ;;  %v7662_v41 = vmax.f32 %v7654_v56, 0.0  ;;  %v7639_v47 = vadd.f32 %v7638_v46, %v7574_v4 }
 0x7d0   : > { %v8922_v43 = vpop.f32.mrf.mxu0 }
 0x7d1   : > { %v7579_v29 = vadd.f32 %v8921_v49, %v7514_v25  ;;  %7670 = vst.msk [vmem:[%s12187_s13 + $0x20] sm:$0xff] %vm257_vm4, %v7662_v41  ;;  %v7655_v12 = vadd.f32 %v7639_v47, %v11109_v28 }
 0x7d2   : > { %v8923_v27 = vpop.f32.mrf.mxu0 }
 0x7d3   : > { %v7644_v6 = vadd.f32 %v9031_v3, %v7579_v29  ;;  %v8924_v24 = vadd.f32 %v8923_v27, %v8922_v43  ;;  %v7663_v53 = vmax.f32 %v7655_v12, 0.0 }
 0x7d5   : > { %v7656_v62 = vadd.f32 %v7644_v6, %v11134_v40  ;;  %v7582_v38 = vadd.f32 %v8924_v24, %v7517_v18  ;;  %7671 = vst.msk [vmem:[%s12187_s13 + $0x28] sm:$0xff] %vm257_vm4, %v7663_v53 }
 0x7d7   : > { %v7664_v10 = vmax.f32 %v7656_v62, 0.0  ;;  %v7647_v44 = vadd.f32 %v9032_v42, %v7582_v38 }
 0x7d9   : > { %7672 = vst.msk [vmem:[%s12187_s13 + $0x30] sm:$0xff] %vm257_vm4, %v7664_v10  ;;  %v7657_v40 = vadd.f32 %v7647_v44, %v11149_v26 }
 0x7db   : > { %v7665_v60 = vmax.f32 %v7657_v40, 0.0 }
 0x7dd   : > { %7673 = vst.msk [vmem:[%s12187_s13 + $0x38] sm:$0xff] %vm257_vm4, %v7665_v60 }
 0x7de   : > { %9385 = shalt.err (!%p9382_p3)
}
 0x7df   : > { %s9386_s7 = scalar_lea.hbm %s12212_s23, 1024  ;;  %s9390_s11 = scalar_lea.hbm %s12267_s5, 2048 }
 0x7e0   : > { %p9387_p4 = scmp.ne.s32.totalorder %s12212_s23, %s9386_s7  ;;  %p9391_p9 = scmp.lt.s32.totalorder %s12212_s23, %s12267_s5 }
 0x7e1   : > { %p9392_p10 = scmp.lt.s32.totalorder %s9390_s11, %s9386_s7 }
 0x7e2   : > { %p9388_p7 = pnand %p9387_p4, %p9508_p5 }
 0x7e3   : > { %p9393_p11 = por %p9392_p10, %p9391_p9 }
 0x7e4   : > { %p9389_p8 = pneg %p9388_p7 }
 0x7e6   : > { %p9394_p12 = pnand %p9393_p11, %p9389_p8 }
 0x7e8   : > { %9397 = shalt.err (!%p9394_p12)
}
 0x7e9   : > { %s9438_s13 = smov 128   ;;  %s9439_s14 = smov 8  }
 0x7ea   : > { %9033 = dma.vmem_to_hbm [thread:$0]  (%p9508_p5), %s12214_s15, 1024, %s12212_s23, %s12222_s22, %s9438_s13, %s9438_s13, %s9439_s14  }
 0x7eb PF: > { %p9039_p13 = scmp.ge.s32.totalorder %s9432_s21, 2  ;;  %s7703_s16 = sand.u32 1, %s9420_s18  }
 0x7ec   : > { %s7704_s17 = scalar_lea.sflag [#allocation8], %s7703_s16 }
 0x7ed   : > { %p9036_p0 = pnand %p9039_p13, %p9512_p6 }
 0x7ef   : > { %p9037_p1 = pneg %p9036_p0 }
 0x7f1   : > { %9415 = dma.done.wait (%p9037_p1), %s7704_s17, 1024  }
 0x7f2   : > { %9417 = vsyncadd (%p9037_p1), %s7704_s17, 4294966272  ;;  %p15_p2 = scmp.ge.s32.totalorder %s9495_s24, 4   ;;  %s12282_s18 = smov %s9424_s19 }
 0x7f3   : > { %s12283_s19 = smov %s9428_s20  ;;  %s12284_s20 = smov %s9506_s27 }
 0x7f4   : > { %s12285_s21 = smov %s9495_s24  ;;  %17 = sbr.rel (!%p15_p2) target bundleno = 3 (0x3), region = 134 }
 0x7f9   :  { %7709 = vsyncpa [#allocation8], 1 }
 0x7fa   :  { %7711 = vsyncpa [#allocation8 + $0x1], 1 }

</bundles_post_ra>
